<compile_context>
chip_gen: v5e
topology: v5e:2x2
jax: 0.10.0
libtpu: 0.0.40
codegen_flags: <defaults>
</compile_context>

<pallas_src>
import math
from functools import partial

import jax
import jax.numpy as jnp
from jax import lax
from jax.experimental import pallas as pl
from jax.experimental.pallas import tpu as pltpu


# ----------------------------- math helpers ---------------------------------

def _gelu_exact(x):
    # matches torch.nn.GELU() (erf formulation)
    return 0.5 * x * (1.0 + lax.erf(x * (1.0 / math.sqrt(2.0))))


def _layernorm(x, w, b, eps=1e-5):
    mu = jnp.mean(x, axis=-1, keepdims=True)
    var = jnp.mean((x - mu) ** 2, axis=-1, keepdims=True)
    return (x - mu) * lax.rsqrt(var + eps) * w + b


# ------------------------------- the kernel ---------------------------------

def deltawostep_kernel(
    x_ref,
    w_proj_ref, b_proj_ref,
    lr_w1_ref, lr_w2_ref, ln_w_ref, ln_b_ref,
    cls_ln_w_ref, cls_ln_b_ref,
    cls_w1_ref, cls_b1_ref, cls_w2_ref, cls_b2_ref,
    logits_ref,
    *, num_layers,
):
    f32 = jnp.float32
    x = x_ref[...]                                   # (Bt, D_in)

    # feature_proj: Linear(D_in, H) -> ReLU  (Dropout = identity in eval mode)
    h = jnp.dot(x, w_proj_ref[...], preferred_element_type=f32) + b_proj_ref[...]
    h = jnp.maximum(h, 0.0)

    # stacked DeltaProductBlockSingleStep blocks (unrolled at trace time)
    for l in range(num_layers):
        resid = h
        ln_w = ln_w_ref[l:l + 1, :]
        ln_b = ln_b_ref[l:l + 1, :]
        # delta = Linear(rank, H)( GELU( Linear(H, rank)(h) ) )   (no biases)
        d = jnp.dot(h, lr_w1_ref[l], preferred_element_type=f32)
        d = _gelu_exact(d)
        delta = jnp.dot(d, lr_w2_ref[l], preferred_element_type=f32)
        # LayerNorm(h + delta) (+ dropout = identity) + initial residual
        h = _layernorm(h + delta, ln_w, ln_b) + resid

    # classifier: LN -> Linear(H, 64) -> ReLU -> (Dropout) -> Linear(64, C)
    h = _layernorm(h, cls_ln_w_ref[...], cls_ln_b_ref[...])
    h1 = jnp.dot(h, cls_w1_ref[...], preferred_element_type=f32) + cls_b1_ref[...]
    h1 = jnp.maximum(h1, 0.0)
    logits_ref[...] = (jnp.dot(h1, cls_w2_ref[...], preferred_element_type=f32)
                       + cls_b2_ref[...]).astype(logits_ref.dtype)


# ------------------------------- the wrapper ---------------------------------

def _full_spec(shape):
    """Replicated (full-extent) BlockSpec for a weight array."""
    nd = len(shape)
    return pl.BlockSpec(shape, lambda i, _nd=nd: (0,) * _nd)


def deltawostep_forward(params, x, *, batch_tile=128):
    B, D = x.shape
    C = params["cls_w2"].shape[1]
    num_layers = params["lr_w1"].shape[0]

    assert B % batch_tile == 0, "batch must be a multiple of batch_tile"
    grid = (B // batch_tile,)

    weight_order = [
        "w_proj", "b_proj",
        "lr_w1", "lr_w2", "ln_w", "ln_b",
        "cls_ln_w", "cls_ln_b",
        "cls_w1", "cls_b1", "cls_w2", "cls_b2",
    ]
    weights = [params[k] for k in weight_order]

    in_specs = [pl.BlockSpec((batch_tile, D), lambda i: (i, 0))] + \
               [_full_spec(w.shape) for w in weights]
    out_spec = pl.BlockSpec((batch_tile, C), lambda i: (i, 0))

    kernel = partial(deltawostep_kernel, num_layers=num_layers)

    return pl.pallas_call(
        kernel,
        out_shape=jax.ShapeDtypeStruct((B, C), jnp.float32),
        grid_spec=pltpu.PrefetchScalarGridSpec(
            num_scalar_prefetch=0,
            grid=grid,
            in_specs=in_specs,
            out_specs=out_spec,
        ),
        compiler_params=pltpu.CompilerParams(
            dimension_semantics=("parallel",),   # batch tiles shard across TCs (v7x)
        ),
    )(x, *weights)


# --------------------------- params / reference ------------------------------

def init_params(key, input_dim, hidden, num_layers, num_classes, rank):
    """Deterministic synthetic init (PyTorch-Linear-like uniform scaling)."""
    ks = iter(jax.random.split(key, 4 * num_layers + 16))

    def lin(fan_in, fan_out, bias=True):
        bound = 1.0 / math.sqrt(fan_in)
        w = jax.random.uniform(next(ks), (fan_in, fan_out), jnp.float32, -bound, bound)
        if not bias:
            return w
        b = jax.random.uniform(next(ks), (1, fan_out), jnp.float32, -bound, bound)
        return w, b

    p = {}
    p["w_proj"], p["b_proj"] = lin(input_dim, hidden)
    p["lr_w1"] = jnp.stack([lin(hidden, rank, bias=False) for _ in range(num_layers)])
    p["lr_w2"] = jnp.stack([lin(rank, hidden, bias=False) for _ in range(num_layers)])
    p["ln_w"] = jnp.ones((num_layers, hidden), jnp.float32)
    p["ln_b"] = jnp.zeros((num_layers, hidden), jnp.float32)
    p["cls_ln_w"] = jnp.ones((1, hidden), jnp.float32)
    p["cls_ln_b"] = jnp.zeros((1, hidden), jnp.float32)
    p["cls_w1"], p["cls_b1"] = lin(hidden, 64)
    p["cls_w2"], p["cls_b2"] = lin(64, num_classes)
    return p


def reference_forward(p, x):
    """Pure-JAX mirror of the PyTorch forward (eval mode), for validation."""
    hp = lax.Precision.HIGHEST
    num_layers = p["lr_w1"].shape[0]
    h = jnp.maximum(jnp.dot(x, p["w_proj"], precision=hp) + p["b_proj"], 0.0)
    for l in range(num_layers):
        resid = h
        delta = jnp.dot(_gelu_exact(jnp.dot(h, p["lr_w1"][l], precision=hp)),
                        p["lr_w2"][l], precision=hp)
        h = _layernorm(h + delta, p["ln_w"][l:l + 1], p["ln_b"][l:l + 1]) + resid
    h = _layernorm(h, p["cls_ln_w"], p["cls_ln_b"])
    h1 = jnp.maximum(jnp.dot(h, p["cls_w1"], precision=hp) + p["cls_b1"], 0.0)
    return jnp.dot(h1, p["cls_w2"], precision=hp) + p["cls_b2"]


# ----------------------------------- main ------------------------------------

if __name__ == "__main__":
    # Small but MXU-friendly sizes: M-tile of 128 rows, 2 grid steps.
    B = 256
    INPUT_DIM, HIDDEN = 512, 256
    NUM_LAYERS, NUM_CLASSES, RANK = 2, 2, 4
    BATCH_TILE = 128
    # NOTE: the module's `steps` and `lengths` arguments are unused by
    # DeltaProductBlockSingleStep / Deltawostep.forward, so they do not appear here.

    key = jax.random.PRNGKey(0)
    k_x, k_p = jax.random.split(key)
    x = jax.random.normal(k_x, (B, INPUT_DIM), jnp.float32)
    params = init_params(k_p, INPUT_DIM, HIDDEN, NUM_LAYERS, NUM_CLASSES, RANK)

    logits = deltawostep_forward(params, x, batch_tile=BATCH_TILE)
    jax.block_until_ready(logits)

    ref = reference_forward(params, x)
    assert logits.shape == (B, NUM_CLASSES)
    max_err = jnp.max(jnp.abs(logits - ref))
    assert jnp.allclose(logits, ref, atol=2e-4, rtol=2e-4), f"max abs err = {max_err}"

    print("KERNEL_OK")
</pallas_src>

<mosaic_0001>
module attributes {stable_mosaic.version = 11 : i64} {
  func.func @deltawostep_kernel(%arg0: i32, %arg1: memref<128x512xf32, #tpu.memory_space<vmem>>, %arg2: memref<512x256xf32, #tpu.memory_space<vmem>>, %arg3: memref<1x256xf32, #tpu.memory_space<vmem>>, %arg4: memref<2x256x4xf32, #tpu.memory_space<vmem>>, %arg5: memref<2x4x256xf32, #tpu.memory_space<vmem>>, %arg6: memref<2x256xf32, #tpu.memory_space<vmem>>, %arg7: memref<2x256xf32, #tpu.memory_space<vmem>>, %arg8: memref<1x256xf32, #tpu.memory_space<vmem>>, %arg9: memref<1x256xf32, #tpu.memory_space<vmem>>, %arg10: memref<256x64xf32, #tpu.memory_space<vmem>>, %arg11: memref<1x64xf32, #tpu.memory_space<vmem>>, %arg12: memref<64x2xf32, #tpu.memory_space<vmem>>, %arg13: memref<1x2xf32, #tpu.memory_space<vmem>>, %arg14: memref<128x2xf32, #tpu.memory_space<vmem>>) attributes {dimension_semantics = [#tpu.dimension_semantics<parallel>], iteration_bounds = array<i64: 2>, scalar_prefetch = 0 : i64, scratch_operands = 0 : i64, tpu.core_type = #tpu.core_type<tc>, window_params = [{transform_indices = @transform_0, window_bounds = array<i64: 128, 512>}, {pipeline_mode = #tpu.pipeline_mode<synchronous>, transform_indices = @transform_1, window_bounds = array<i64: 512, 256>}, {pipeline_mode = #tpu.pipeline_mode<synchronous>, transform_indices = @transform_2, window_bounds = array<i64: 1, 256>}, {pipeline_mode = #tpu.pipeline_mode<synchronous>, transform_indices = @transform_3, window_bounds = array<i64: 2, 256, 4>}, {pipeline_mode = #tpu.pipeline_mode<synchronous>, transform_indices = @transform_4, window_bounds = array<i64: 2, 4, 256>}, {pipeline_mode = #tpu.pipeline_mode<synchronous>, transform_indices = @transform_5, window_bounds = array<i64: 2, 256>}, {pipeline_mode = #tpu.pipeline_mode<synchronous>, transform_indices = @transform_6, window_bounds = array<i64: 2, 256>}, {pipeline_mode = #tpu.pipeline_mode<synchronous>, transform_indices = @transform_7, window_bounds = array<i64: 1, 256>}, {pipeline_mode = #tpu.pipeline_mode<synchronous>, transform_indices = @transform_8, window_bounds = array<i64: 1, 256>}, {pipeline_mode = #tpu.pipeline_mode<synchronous>, transform_indices = @transform_9, window_bounds = array<i64: 256, 64>}, {pipeline_mode = #tpu.pipeline_mode<synchronous>, transform_indices = @transform_10, window_bounds = array<i64: 1, 64>}, {pipeline_mode = #tpu.pipeline_mode<synchronous>, transform_indices = @transform_11, window_bounds = array<i64: 64, 2>}, {pipeline_mode = #tpu.pipeline_mode<synchronous>, transform_indices = @transform_12, window_bounds = array<i64: 1, 2>}, {transform_indices = @transform_13, window_bounds = array<i64: 128, 2>}]} {
    %c0 = arith.constant 0 : index
    %c0_0 = arith.constant 0 : index
    %0 = vector.load %arg1[%c0, %c0_0] : memref<128x512xf32, #tpu.memory_space<vmem>>, vector<128x512xf32>
    %c0_1 = arith.constant 0 : index
    %c0_2 = arith.constant 0 : index
    %1 = vector.load %arg2[%c0_1, %c0_2] : memref<512x256xf32, #tpu.memory_space<vmem>>, vector<512x256xf32>
    %cst = arith.constant dense<0.000000e+00> : vector<128x256xf32>
    %2 = tpu.matmul %0, %1, %cst {dimension_numbers = #tpu.dot_dimension_numbers<[1], [0], [0], [1], [0, 0, 1, 1], [], []>} : vector<128x512xf32>, vector<512x256xf32>, vector<128x256xf32> -> vector<128x256xf32>
    %c0_3 = arith.constant 0 : index
    %c0_4 = arith.constant 0 : index
    %3 = vector.load %arg3[%c0_3, %c0_4] : memref<1x256xf32, #tpu.memory_space<vmem>>, vector<1x256xf32>
    %4 = vector.broadcast %3 : vector<1x256xf32> to vector<128x256xf32>
    %5 = arith.addf %2, %4 : vector<128x256xf32>
    %cst_5 = arith.constant 0.000000e+00 : f32
    %6 = vector.broadcast %cst_5 : f32 to vector<128x256xf32>
    %7 = arith.maximumf %5, %6 : vector<128x256xf32>
    %c0_6 = arith.constant 0 : index
    %c0_7 = arith.constant 0 : index
    %8 = vector.load %arg6[%c0_6, %c0_7] : memref<2x256xf32, #tpu.memory_space<vmem>>, vector<1x256xf32>
    %c0_8 = arith.constant 0 : index
    %c0_9 = arith.constant 0 : index
    %9 = vector.load %arg7[%c0_8, %c0_9] : memref<2x256xf32, #tpu.memory_space<vmem>>, vector<1x256xf32>
    %c0_10 = arith.constant 0 : index
    %c0_11 = arith.constant 0 : index
    %c0_12 = arith.constant 0 : index
    %10 = vector.load %arg4[%c0_10, %c0_11, %c0_12] : memref<2x256x4xf32, #tpu.memory_space<vmem>>, vector<1x256x4xf32>
    %11 = vector.shape_cast %10 : vector<1x256x4xf32> to vector<256x4xf32>
    %cst_13 = arith.constant dense<0.000000e+00> : vector<128x4xf32>
    %12 = tpu.matmul %7, %11, %cst_13 {dimension_numbers = #tpu.dot_dimension_numbers<[1], [0], [0], [1], [0, 0, 1, 1], [], []>} : vector<128x256xf32>, vector<256x4xf32>, vector<128x4xf32> -> vector<128x4xf32>
    %cst_14 = arith.constant 5.000000e-01 : f32
    %13 = vector.broadcast %cst_14 : f32 to vector<128x4xf32>
    %14 = arith.mulf %13, %12 : vector<128x4xf32>
    %cst_15 = arith.constant 0.707106769 : f32
    %15 = vector.broadcast %cst_15 : f32 to vector<128x4xf32>
    %16 = arith.mulf %12, %15 : vector<128x4xf32>
    %17 = math.erf %16 : vector<128x4xf32>
    %cst_16 = arith.constant 1.000000e+00 : f32
    %18 = vector.broadcast %cst_16 : f32 to vector<128x4xf32>
    %19 = arith.addf %18, %17 : vector<128x4xf32>
    %20 = arith.mulf %14, %19 : vector<128x4xf32>
    %c0_17 = arith.constant 0 : index
    %c0_18 = arith.constant 0 : index
    %c0_19 = arith.constant 0 : index
    %21 = vector.load %arg5[%c0_17, %c0_18, %c0_19] : memref<2x4x256xf32, #tpu.memory_space<vmem>>, vector<1x4x256xf32>
    %22 = vector.shape_cast %21 : vector<1x4x256xf32> to vector<4x256xf32>
    %cst_20 = arith.constant dense<0.000000e+00> : vector<128x256xf32>
    %23 = tpu.matmul %20, %22, %cst_20 {dimension_numbers = #tpu.dot_dimension_numbers<[1], [0], [0], [1], [0, 0, 1, 1], [], []>} : vector<128x4xf32>, vector<4x256xf32>, vector<128x256xf32> -> vector<128x256xf32>
    %24 = arith.addf %7, %23 : vector<128x256xf32>
    %cst_21 = arith.constant dense<0.000000e+00> : vector<128xf32>
    %25 = vector.multi_reduction <add>, %24, %cst_21 [1] : vector<128x256xf32> to vector<128xf32>
    %26 = vector.shape_cast %25 : vector<128xf32> to vector<128x1xf32>
    %cst_22 = arith.constant 2.560000e+02 : f32
    %27 = vector.broadcast %cst_22 : f32 to vector<128x1xf32>
    %28 = arith.divf %26, %27 : vector<128x1xf32>
    %29 = vector.broadcast %28 : vector<128x1xf32> to vector<128x256xf32>
    %30 = arith.subf %24, %29 : vector<128x256xf32>
    %31 = arith.mulf %30, %30 : vector<128x256xf32>
    %cst_23 = arith.constant dense<0.000000e+00> : vector<128xf32>
    %32 = vector.multi_reduction <add>, %31, %cst_23 [1] : vector<128x256xf32> to vector<128xf32>
    %33 = vector.shape_cast %32 : vector<128xf32> to vector<128x1xf32>
    %cst_24 = arith.constant 2.560000e+02 : f32
    %34 = vector.broadcast %cst_24 : f32 to vector<128x1xf32>
    %35 = arith.divf %33, %34 : vector<128x1xf32>
    %36 = vector.broadcast %28 : vector<128x1xf32> to vector<128x256xf32>
    %37 = arith.subf %24, %36 : vector<128x256xf32>
    %cst_25 = arith.constant 9.99999974E-6 : f32
    %38 = vector.broadcast %cst_25 : f32 to vector<128x1xf32>
    %39 = arith.addf %35, %38 : vector<128x1xf32>
    %40 = math.rsqrt %39 : vector<128x1xf32>
    %41 = vector.broadcast %40 : vector<128x1xf32> to vector<128x256xf32>
    %42 = arith.mulf %37, %41 : vector<128x256xf32>
    %43 = vector.broadcast %8 : vector<1x256xf32> to vector<128x256xf32>
    %44 = arith.mulf %42, %43 : vector<128x256xf32>
    %45 = vector.broadcast %9 : vector<1x256xf32> to vector<128x256xf32>
    %46 = arith.addf %44, %45 : vector<128x256xf32>
    %47 = arith.addf %46, %7 : vector<128x256xf32>
    %c1 = arith.constant 1 : index
    %c0_26 = arith.constant 0 : index
    %48 = vector.load %arg6[%c1, %c0_26] : memref<2x256xf32, #tpu.memory_space<vmem>>, vector<1x256xf32>
    %c1_27 = arith.constant 1 : index
    %c0_28 = arith.constant 0 : index
    %49 = vector.load %arg7[%c1_27, %c0_28] : memref<2x256xf32, #tpu.memory_space<vmem>>, vector<1x256xf32>
    %c1_29 = arith.constant 1 : index
    %c0_30 = arith.constant 0 : index
    %c0_31 = arith.constant 0 : index
    %50 = vector.load %arg4[%c1_29, %c0_30, %c0_31] : memref<2x256x4xf32, #tpu.memory_space<vmem>>, vector<1x256x4xf32>
    %51 = vector.shape_cast %50 : vector<1x256x4xf32> to vector<256x4xf32>
    %cst_32 = arith.constant dense<0.000000e+00> : vector<128x4xf32>
    %52 = tpu.matmul %47, %51, %cst_32 {dimension_numbers = #tpu.dot_dimension_numbers<[1], [0], [0], [1], [0, 0, 1, 1], [], []>} : vector<128x256xf32>, vector<256x4xf32>, vector<128x4xf32> -> vector<128x4xf32>
    %cst_33 = arith.constant 5.000000e-01 : f32
    %53 = vector.broadcast %cst_33 : f32 to vector<128x4xf32>
    %54 = arith.mulf %53, %52 : vector<128x4xf32>
    %cst_34 = arith.constant 0.707106769 : f32
    %55 = vector.broadcast %cst_34 : f32 to vector<128x4xf32>
    %56 = arith.mulf %52, %55 : vector<128x4xf32>
    %57 = math.erf %56 : vector<128x4xf32>
    %cst_35 = arith.constant 1.000000e+00 : f32
    %58 = vector.broadcast %cst_35 : f32 to vector<128x4xf32>
    %59 = arith.addf %58, %57 : vector<128x4xf32>
    %60 = arith.mulf %54, %59 : vector<128x4xf32>
    %c1_36 = arith.constant 1 : index
    %c0_37 = arith.constant 0 : index
    %c0_38 = arith.constant 0 : index
    %61 = vector.load %arg5[%c1_36, %c0_37, %c0_38] : memref<2x4x256xf32, #tpu.memory_space<vmem>>, vector<1x4x256xf32>
    %62 = vector.shape_cast %61 : vector<1x4x256xf32> to vector<4x256xf32>
    %cst_39 = arith.constant dense<0.000000e+00> : vector<128x256xf32>
    %63 = tpu.matmul %60, %62, %cst_39 {dimension_numbers = #tpu.dot_dimension_numbers<[1], [0], [0], [1], [0, 0, 1, 1], [], []>} : vector<128x4xf32>, vector<4x256xf32>, vector<128x256xf32> -> vector<128x256xf32>
    %64 = arith.addf %47, %63 : vector<128x256xf32>
    %cst_40 = arith.constant dense<0.000000e+00> : vector<128xf32>
    %65 = vector.multi_reduction <add>, %64, %cst_40 [1] : vector<128x256xf32> to vector<128xf32>
    %66 = vector.shape_cast %65 : vector<128xf32> to vector<128x1xf32>
    %cst_41 = arith.constant 2.560000e+02 : f32
    %67 = vector.broadcast %cst_41 : f32 to vector<128x1xf32>
    %68 = arith.divf %66, %67 : vector<128x1xf32>
    %69 = vector.broadcast %68 : vector<128x1xf32> to vector<128x256xf32>
    %70 = arith.subf %64, %69 : vector<128x256xf32>
    %71 = arith.mulf %70, %70 : vector<128x256xf32>
    %cst_42 = arith.constant dense<0.000000e+00> : vector<128xf32>
    %72 = vector.multi_reduction <add>, %71, %cst_42 [1] : vector<128x256xf32> to vector<128xf32>
    %73 = vector.shape_cast %72 : vector<128xf32> to vector<128x1xf32>
    %cst_43 = arith.constant 2.560000e+02 : f32
    %74 = vector.broadcast %cst_43 : f32 to vector<128x1xf32>
    %75 = arith.divf %73, %74 : vector<128x1xf32>
    %76 = vector.broadcast %68 : vector<128x1xf32> to vector<128x256xf32>
    %77 = arith.subf %64, %76 : vector<128x256xf32>
    %cst_44 = arith.constant 9.99999974E-6 : f32
    %78 = vector.broadcast %cst_44 : f32 to vector<128x1xf32>
    %79 = arith.addf %75, %78 : vector<128x1xf32>
    %80 = math.rsqrt %79 : vector<128x1xf32>
    %81 = vector.broadcast %80 : vector<128x1xf32> to vector<128x256xf32>
    %82 = arith.mulf %77, %81 : vector<128x256xf32>
    %83 = vector.broadcast %48 : vector<1x256xf32> to vector<128x256xf32>
    %84 = arith.mulf %82, %83 : vector<128x256xf32>
    %85 = vector.broadcast %49 : vector<1x256xf32> to vector<128x256xf32>
    %86 = arith.addf %84, %85 : vector<128x256xf32>
    %87 = arith.addf %86, %47 : vector<128x256xf32>
    %c0_45 = arith.constant 0 : index
    %c0_46 = arith.constant 0 : index
    %88 = vector.load %arg8[%c0_45, %c0_46] : memref<1x256xf32, #tpu.memory_space<vmem>>, vector<1x256xf32>
    %c0_47 = arith.constant 0 : index
    %c0_48 = arith.constant 0 : index
    %89 = vector.load %arg9[%c0_47, %c0_48] : memref<1x256xf32, #tpu.memory_space<vmem>>, vector<1x256xf32>
    %cst_49 = arith.constant dense<0.000000e+00> : vector<128xf32>
    %90 = vector.multi_reduction <add>, %87, %cst_49 [1] : vector<128x256xf32> to vector<128xf32>
    %91 = vector.shape_cast %90 : vector<128xf32> to vector<128x1xf32>
    %cst_50 = arith.constant 2.560000e+02 : f32
    %92 = vector.broadcast %cst_50 : f32 to vector<128x1xf32>
    %93 = arith.divf %91, %92 : vector<128x1xf32>
    %94 = vector.broadcast %93 : vector<128x1xf32> to vector<128x256xf32>
    %95 = arith.subf %87, %94 : vector<128x256xf32>
    %96 = arith.mulf %95, %95 : vector<128x256xf32>
    %cst_51 = arith.constant dense<0.000000e+00> : vector<128xf32>
    %97 = vector.multi_reduction <add>, %96, %cst_51 [1] : vector<128x256xf32> to vector<128xf32>
    %98 = vector.shape_cast %97 : vector<128xf32> to vector<128x1xf32>
    %cst_52 = arith.constant 2.560000e+02 : f32
    %99 = vector.broadcast %cst_52 : f32 to vector<128x1xf32>
    %100 = arith.divf %98, %99 : vector<128x1xf32>
    %101 = vector.broadcast %93 : vector<128x1xf32> to vector<128x256xf32>
    %102 = arith.subf %87, %101 : vector<128x256xf32>
    %cst_53 = arith.constant 9.99999974E-6 : f32
    %103 = vector.broadcast %cst_53 : f32 to vector<128x1xf32>
    %104 = arith.addf %100, %103 : vector<128x1xf32>
    %105 = math.rsqrt %104 : vector<128x1xf32>
    %106 = vector.broadcast %105 : vector<128x1xf32> to vector<128x256xf32>
    %107 = arith.mulf %102, %106 : vector<128x256xf32>
    %108 = vector.broadcast %88 : vector<1x256xf32> to vector<128x256xf32>
    %109 = arith.mulf %107, %108 : vector<128x256xf32>
    %110 = vector.broadcast %89 : vector<1x256xf32> to vector<128x256xf32>
    %111 = arith.addf %109, %110 : vector<128x256xf32>
    %c0_54 = arith.constant 0 : index
    %c0_55 = arith.constant 0 : index
    %112 = vector.load %arg10[%c0_54, %c0_55] : memref<256x64xf32, #tpu.memory_space<vmem>>, vector<256x64xf32>
    %cst_56 = arith.constant dense<0.000000e+00> : vector<128x64xf32>
    %113 = tpu.matmul %111, %112, %cst_56 {dimension_numbers = #tpu.dot_dimension_numbers<[1], [0], [0], [1], [0, 0, 1, 1], [], []>} : vector<128x256xf32>, vector<256x64xf32>, vector<128x64xf32> -> vector<128x64xf32>
    %c0_57 = arith.constant 0 : index
    %c0_58 = arith.constant 0 : index
    %114 = vector.load %arg11[%c0_57, %c0_58] : memref<1x64xf32, #tpu.memory_space<vmem>>, vector<1x64xf32>
    %115 = vector.broadcast %114 : vector<1x64xf32> to vector<128x64xf32>
    %116 = arith.addf %113, %115 : vector<128x64xf32>
    %cst_59 = arith.constant 0.000000e+00 : f32
    %117 = vector.broadcast %cst_59 : f32 to vector<128x64xf32>
    %118 = arith.maximumf %116, %117 : vector<128x64xf32>
    %c0_60 = arith.constant 0 : index
    %c0_61 = arith.constant 0 : index
    %119 = vector.load %arg12[%c0_60, %c0_61] : memref<64x2xf32, #tpu.memory_space<vmem>>, vector<64x2xf32>
    %cst_62 = arith.constant dense<0.000000e+00> : vector<128x2xf32>
    %120 = tpu.matmul %118, %119, %cst_62 {dimension_numbers = #tpu.dot_dimension_numbers<[1], [0], [0], [1], [0, 0, 1, 1], [], []>} : vector<128x64xf32>, vector<64x2xf32>, vector<128x2xf32> -> vector<128x2xf32>
    %c0_63 = arith.constant 0 : index
    %c0_64 = arith.constant 0 : index
    %121 = vector.load %arg13[%c0_63, %c0_64] : memref<1x2xf32, #tpu.memory_space<vmem>>, vector<1x2xf32>
    %122 = vector.broadcast %121 : vector<1x2xf32> to vector<128x2xf32>
    %123 = arith.addf %120, %122 : vector<128x2xf32>
    %c0_65 = arith.constant 0 : index
    %c0_66 = arith.constant 0 : index
    %124 = vector.load %arg14[%c0_65, %c0_66] : memref<128x2xf32, #tpu.memory_space<vmem>>, vector<128x2xf32>
    tpu.vector_store %arg14[%c0_65, %c0_66], %123 {strides = array<i32>} : memref<128x2xf32, #tpu.memory_space<vmem>>, vector<128x2xf32>,
    return
  }
  func.func @transform_0(%arg0: i32) -> (i32, i32) {
    %c0_i32 = arith.constant 0 : i32
    %c0_i32_0 = arith.constant 0 : i32
    return %arg0, %c0_i32 : i32, i32
  }
  func.func @transform_1(%arg0: i32) -> (i32, i32) {
    %c0_i32 = arith.constant 0 : i32
    %c0_i32_0 = arith.constant 0 : i32
    %c0_i32_1 = arith.constant 0 : i32
    return %c0_i32, %c0_i32_0 : i32, i32
  }
  func.func @transform_2(%arg0: i32) -> (i32, i32) {
    %c0_i32 = arith.constant 0 : i32
    %c0_i32_0 = arith.constant 0 : i32
    %c0_i32_1 = arith.constant 0 : i32
    return %c0_i32, %c0_i32_0 : i32, i32
  }
  func.func @transform_3(%arg0: i32) -> (i32, i32, i32) {
    %c0_i32 = arith.constant 0 : i32
    %c0_i32_0 = arith.constant 0 : i32
    %c0_i32_1 = arith.constant 0 : i32
    %c0_i32_2 = arith.constant 0 : i32
    return %c0_i32, %c0_i32_0, %c0_i32_1 : i32, i32, i32
  }
  func.func @transform_4(%arg0: i32) -> (i32, i32, i32) {
    %c0_i32 = arith.constant 0 : i32
    %c0_i32_0 = arith.constant 0 : i32
    %c0_i32_1 = arith.constant 0 : i32
    %c0_i32_2 = arith.constant 0 : i32
    return %c0_i32, %c0_i32_0, %c0_i32_1 : i32, i32, i32
  }
  func.func @transform_5(%arg0: i32) -> (i32, i32) {
    %c0_i32 = arith.constant 0 : i32
    %c0_i32_0 = arith.constant 0 : i32
    %c0_i32_1 = arith.constant 0 : i32
    return %c0_i32, %c0_i32_0 : i32, i32
  }
  func.func @transform_6(%arg0: i32) -> (i32, i32) {
    %c0_i32 = arith.constant 0 : i32
    %c0_i32_0 = arith.constant 0 : i32
    %c0_i32_1 = arith.constant 0 : i32
    return %c0_i32, %c0_i32_0 : i32, i32
  }
  func.func @transform_7(%arg0: i32) -> (i32, i32) {
    %c0_i32 = arith.constant 0 : i32
    %c0_i32_0 = arith.constant 0 : i32
    %c0_i32_1 = arith.constant 0 : i32
    return %c0_i32, %c0_i32_0 : i32, i32
  }
  func.func @transform_8(%arg0: i32) -> (i32, i32) {
    %c0_i32 = arith.constant 0 : i32
    %c0_i32_0 = arith.constant 0 : i32
    %c0_i32_1 = arith.constant 0 : i32
    return %c0_i32, %c0_i32_0 : i32, i32
  }
  func.func @transform_9(%arg0: i32) -> (i32, i32) {
    %c0_i32 = arith.constant 0 : i32
    %c0_i32_0 = arith.constant 0 : i32
    %c0_i32_1 = arith.constant 0 : i32
    return %c0_i32, %c0_i32_0 : i32, i32
  }
  func.func @transform_10(%arg0: i32) -> (i32, i32) {
    %c0_i32 = arith.constant 0 : i32
    %c0_i32_0 = arith.constant 0 : i32
    %c0_i32_1 = arith.constant 0 : i32
    return %c0_i32, %c0_i32_0 : i32, i32
  }
  func.func @transform_11(%arg0: i32) -> (i32, i32) {
    %c0_i32 = arith.constant 0 : i32
    %c0_i32_0 = arith.constant 0 : i32
    %c0_i32_1 = arith.constant 0 : i32
    return %c0_i32, %c0_i32_0 : i32, i32
  }
  func.func @transform_12(%arg0: i32) -> (i32, i32) {
    %c0_i32 = arith.constant 0 : i32
    %c0_i32_0 = arith.constant 0 : i32
    %c0_i32_1 = arith.constant 0 : i32
    return %c0_i32, %c0_i32_0 : i32, i32
  }
  func.func @transform_13(%arg0: i32) -> (i32, i32) {
    %c0_i32 = arith.constant 0 : i32
    %c0_i32_0 = arith.constant 0 : i32
    return %arg0, %c0_i32 : i32, i32
  }
}

</mosaic_0001>

<bundles_post_ra>
// kernel: tpu_custom_call.1
= control target key start
LH: loop header
LB: loop body
LE: loop exit
PB: predicated region body
PF: predicated region fallthrough
CT: control target
= control target key end

     0   :  { %s9675_s0 = inlined_call_operand.hbm [shape: f32[256,512], index: 0, kind: input, shape index: {}]   ;;  %s9676_s1 = inlined_call_operand.hbm [shape: f32[512,256], index: 1, kind: input, shape index: {}]   ;;  %s9677_s2 = inlined_call_operand.vmem [shape: f32[1,256], index: 2, kind: input, shape index: {}]   ;;  %s9678_s3 = inlined_call_operand.vmem [shape: f32[2,256,4], index: 3, kind: input, shape index: {}]   ;;  %s9679_s4 = inlined_call_operand.vmem [shape: f32[2,4,256], index: 4, kind: input, shape index: {}]   ;;  %s9680_s5 = inlined_call_operand.vmem [shape: f32[2,256], index: 5, kind: input, shape index: {}]   ;;  %s9681_s6 = inlined_call_operand.vmem [shape: f32[2,256], index: 6, kind: input, shape index: {}]   ;;  %s9682_s7 = inlined_call_operand.vmem [shape: f32[1,256], index: 7, kind: input, shape index: {}]   ;;  %s9683_s8 = inlined_call_operand.vmem [shape: f32[1,256], index: 8, kind: input, shape index: {}]   ;;  %s9684_s9 = inlined_call_operand.vmem [shape: f32[256,64], index: 9, kind: input, shape index: {}]   ;;  %s9685_s10 = inlined_call_operand.vmem [shape: f32[1,64], index: 10, kind: input, shape index: {}]   ;;  %s9686_s11 = inlined_call_operand.vmem [shape: f32[64,2], index: 11, kind: input, shape index: {}]   ;;  %s9687_s12 = inlined_call_operand.vmem [shape: f32[1,2], index: 12, kind: input, shape index: {}]   ;;  %s9688_s13 = inlined_call_operand.vmem [shape: f32[256,2], index: 13, kind: output, shape index: {}]  }
   0x1   :  { %9776 = sst [smem:[#allocation39_spill]] %s9676_s1 }
   0x2   :  { %9777 = sst [smem:[#allocation40_spill]] %s9683_s8 }
   0x3   :  { %9778 = sst [smem:[#allocation41_spill]] %s9685_s10 }
   0x4   :  { %9779 = sst [smem:[#allocation42_spill]] %s9686_s11 }
   0x5   :  { %9780 = sst [smem:[#allocation43_spill]] %s9687_s12 }
   0x6   :  { %9781 = sst [smem:[#allocation44_spill]] %s9688_s13 }
   0x7   :  { %18 = vsyncpa [#allocation3], 0 }
   0x8   :  { %20 = vsyncpa [#allocation3 + $0x1], 0 }
   0x9   :  { %21 = vsyncpa [#allocation5], 0  ;;  %s5922_s25 = smov 0   ;;  %s5924_s26 = smov 0  }
   0xa   :  { %s5926_s27 = smov 0   ;;  %s5928_s28 = smov 0  }
   0xb LB: > { %s9689_s29 = sadd.s32 4294967295, %s5844_s28   ;;  %p47_p0 = scmp.ne.s32.totalorder %s5836_s26, %s5832_s25  ;;  %s5844_s28 = sphi %s5928_s28, %s9963_s28   ;;  %s5840_s27 = sphi %s5926_s27, %s9962_s27   ;;  %s5836_s26 = sphi %s5924_s26, %s9961_s26   ;;  %s5832_s25 = sphi %s5922_s25, %s9960_s25  }
   0xc   : > { %p5944_p1 = scmp.eq.s32.totalorder %s9689_s29, 0  ;;  %p5312_p2 = scmp.ge.s32.totalorder %s5844_s28, 1 }
   0xd   : > { %p336_p3 = scmp.lt.s32.totalorder %s5844_s28, 3  ;;  %s9784_s1 = sld [smem:[#allocation39_spill]] }
   0xe   : > { %p5952_p4 = por %p5944_p1, %p47_p0  ;;  %s5846_s19 = smov [#allocation4]  }
   0xf   : > { %p5959_p5 = pnand %p5312_p2, %p336_p3  ;;  %s349_s20 = sshll.u32 %s5846_s19, 4  ;;  %s350_s20 = int_to_ptr.vmem [resolvable:$true] %s349_s20 }
  0x10   : > { %s5968_s21 = sadd.s32 1, %s5844_s28   ;;  %s5847_s22 = smov 256  }
  0x11   : > { %p5533_p6 = pneg %p5959_p5  ;;  %s5848_s23 = smov 16  }
  0x12   : > { %s31_s24 = ssub.s32 %s5844_s28, %s5968_s21  ;;  %s34_s25 = sadd.s32 1, %s5840_s27 }
  0x13   : > { %s347_s17 = sshll.u32 %s9784_s1, 4  ;;  %p5534_p7 = pnand %p5533_p6, %p5944_p1  ;;  %s348_s17 = int_to_ptr.hbm [resolvable:$true] %s347_s17 }
  0x14   : > { %p32_p8 = scmp.eq.s32.totalorder %s31_s24, 0  ;;  %p41_p9 = scmp.ne.s32.totalorder %s5840_s27, %s5836_s26 }
  0x15   : > { %5536 = dma.hbm_to_vmem [thread:$0]  (!%p5534_p7), %s348_s17, 16384, %s350_s20, [#allocation5], %s5847_s22, %s5847_s22, %s5848_s23  }
  0x16   : > { %p42_p10 = scmp.eq.s32.totalorder %s5844_s28, 0  ;;  %p5542_p11 = scmp.lt.s32.totalorder %s5844_s28, 2 }
  0x17   : > { %s5978_s15 = scalar_select %p32_p8, %s5840_s27, %s34_s25  }
  0x18   : > { %p43_p12 = por %p42_p10, %p41_p9  ;;  %s396_s16 = sand.u32 1, %s5840_s27  }
  0x19   : > { %s5315_s19 = sshll.u32 %s396_s16, 9  ;;  %s5478_s29 = sshll.u32 %s5844_s28, 9 }
  0x1a   : > { %s406_s12 = scalar_lea.hbm %s9675_s0, %s5478_s29  ;;  %s400_s10 = scalar_lea.vmem [#allocation2], %s5315_s19 }
  0x1b   : > { %s409_s11 = sshll.u32 %s400_s10, 4  ;;  %s407_s8 = sshll.u32 %s406_s12, 4  ;;  %s410_s11 = int_to_ptr.vmem [resolvable:$true] %s409_s11  ;;  %s408_s8 = int_to_ptr.hbm [resolvable:$true] %s407_s8 }
  0x1c   : > { %p5985_p13 = pnand %p5542_p11, %p43_p12  ;;  %s397_s20 = scalar_lea.sflag [#allocation3], %s396_s16 }
  0x1d   : > { %s5776_s22 = sshra.s32 %s408_s8, 4  ;;  %s5783_s10 = scalar_lea.hbm %s9675_s0, 1024  ;;  %s5777_s22 = int_to_ptr.hbm [resolvable:$true] %s5776_s22 }
  0x1e   : > { %s5778_s23 = scalar_lea.hbm %s5777_s22, 512  ;;  %p5780_p2 = pneg %p5985_p13 }
  0x1f   : > { %p5779_p0 = scmp.ne.s32.totalorder %s5777_s22, %s5778_s23  ;;  %p5784_p7 = scmp.lt.s32.totalorder %s5777_s22, %s9675_s0 }
  0x20   : > { %p5785_p8 = scmp.lt.s32.totalorder %s5783_s10, %s5778_s23 }
  0x21   : > { %p5781_p3 = pnand %p5780_p2, %p5779_p0 }
  0x22   : > { %p5786_p9 = por %p5785_p8, %p5784_p7 }
  0x23   : > { %p5782_p6 = pneg %p5781_p3 }
  0x25   : > { %p5787_p10 = pnand %p5786_p9, %p5782_p6 }
  0x27   : > { %5790 = shalt.err (!%p5787_p10)
}
  0x28   : > { %s5849_s24 = smov 512   ;;  %s5850_s25 = smov 32  }
  0x29   : > { %5540 = dma.hbm_to_vmem [thread:$0]  (!%p5985_p13), %s408_s8, 8192, %s410_s11, %s397_s20, %s5849_s24, %s5849_s24, %s5850_s25  }
  0x2a   : > { %421 = sbr.rel (%p5959_p5) target bundleno = 2390 (0x956), region = 72 }
  0x2f   : > { %s423_s16 = sand.u32 1, %s5836_s26  }
  0x30   : > { %s5320_s19 = sshll.u32 %s423_s16, 9  ;;  %s424_s1 = scalar_lea.sflag [#allocation3], %s423_s16 }
  0x31   : > { %s6002_s13 = scalar_lea.vmem [#allocation2], %s5320_s19 }
  0x32   : > { %5823 = dma.done.wait (%p5952_p4), %s424_s1, 8192  }
  0x33   : > { %5825 = vsyncadd (%p5952_p4), %s424_s1, 4294959104 }
  0x34   : > { %5827 = dma.done.wait (%p5944_p1), [#allocation5], 16384  }
  0x35   : > { %5829 = vsyncadd (%p5944_p1), [#allocation5], 4294950912  ;;  %v577_v0 = vld [vmem:[#allocation4 + $0xf0] sm:$0xff]  ;;  %v575_v1 = vld [vmem:[#allocation4 + $0xe0] sm:$0xff]  ;;  %vm2155_vm0 = vcmask 1043456   ;;  %vm2106_vm8 = vcmask 31744  }
  0x36   : > { %5479 = vmatpush.msra.mxu3 %v577_v0  ;;  %v6012_v2 = vld [vmem:[#allocation4 + $0x2f0] sm:$0xff]  ;;  %v6014_v3 = vld [vmem:[#allocation4 + $0x2e0] sm:$0xff]  ;;  %681 = vmatpush.msra.mxu0 %v577_v0  ;;  %v6119_v53 = vld [vmem:[%s6002_s13 + $0x88] sm:$0xff]  ;;  %s9954_s25 = sld [smem:[#allocation40_spill]]  ;;  %s9957_s8 = sadd.s32 4294967295, %s5844_s28  }
  0x37   : > { %v573_v4 = vld [vmem:[#allocation4 + $0xd0] sm:$0xff]  ;;  %5511 = vmatpush.msra.mxu2 %v6012_v2  ;;  %v6022_v7 = vld [vmem:[#allocation4 + $0x1e0] sm:$0xff]  ;;  %v6139_v61 = vld [vmem:[%s6002_s13 + $0xa8] sm:$0xff]  ;;  %s9955_s1 = sld [smem:[#allocation42_spill]]  ;;  %s5322_s11 = sshll.u32 %s9957_s8, 4 }
  0x38   : > { %v6017_v5 = vld [vmem:[#allocation4 + $0x1f0] sm:$0xff]  ;;  %5480 = vmatpush.msra.mxu3 %v575_v1  ;;  %v571_v8 = vld [vmem:[#allocation4 + $0xc0] sm:$0xff]  ;;  %682 = vmatpush.msra.mxu0 %v575_v1  ;;  %s9956_s29 = sld [smem:[#allocation41_spill]]  ;;  %p478_p1 = scmp.lt.s32.totalorder %s5322_s11, 31 }
  0x39   : > { %5495 = vmatpush.msra.mxu1 %v6017_v5  ;;  %v6020_v6 = vld [vmem:[#allocation4 + $0x2d0] sm:$0xff]  ;;  %5512 = vmatpush.msra.mxu2 %v6014_v3  ;;  %v6028_v10 = vld [vmem:[#allocation4 + $0x2c0] sm:$0xff]  ;;  %s9958_s17 = sld [smem:[#allocation43_spill]] }
  0x3a   : > { %v6025_v9 = vld [vmem:[#allocation4 + $0x1d0] sm:$0xff]  ;;  %5481 = vmatpush.msra.mxu3 %v573_v4  ;;  %683 = vmatpush.msra.mxu0 %v573_v4  ;;  %v6031_v12 = vld [vmem:[#allocation4 + $0x1c0] sm:$0xff]  ;;  %s9965_s11 = smov (!%p478_p1, %s5322_s11), 31  ;;  %s9959_s22 = sld [smem:[#allocation44_spill]] }
  0x3b   : > { %5496 = vmatpush.msra.mxu1 %v6022_v7  ;;  %v569_v11 = vld [vmem:[#allocation4 + $0xb0] sm:$0xff]  ;;  %5513 = vmatpush.msra.mxu2 %v6020_v6  ;;  %v567_v14 = vld [vmem:[#allocation4 + $0xa0] sm:$0xff]  ;;  %s5323_s30 = sshll.u32 %s9965_s11, 3 }
  0x3c   : > { %5482 = vmatpush.msra.mxu3 %v571_v8  ;;  %v6034_v13 = vld [vmem:[#allocation4 + $0x2b0] sm:$0xff]  ;;  %684 = vmatpush.msra.mxu0 %v571_v8  ;;  %v6040_v16 = vld [vmem:[#allocation4 + $0x2a0] sm:$0xff] }
  0x3d   : > { %5497 = vmatpush.msra.mxu1 %v6025_v9  ;;  %5514 = vmatpush.msra.mxu2 %v6028_v10  ;;  %v6037_v15 = vld [vmem:[#allocation4 + $0x1b0] sm:$0xff]  ;;  %v6043_v18 = vld [vmem:[#allocation4 + $0x1a0] sm:$0xff] }
  0x3e   : > { %5483 = vmatpush.msra.mxu3 %v569_v11  ;;  %v565_v17 = vld [vmem:[#allocation4 + $0x90] sm:$0xff]  ;;  %685 = vmatpush.msra.mxu0 %v569_v11  ;;  %v563_v20 = vld [vmem:[#allocation4 + $0x80] sm:$0xff] }
  0x3f   : > { %5498 = vmatpush.msra.mxu1 %v6031_v12  ;;  %5515 = vmatpush.msra.mxu2 %v6034_v13  ;;  %v6046_v19 = vld [vmem:[#allocation4 + $0x290] sm:$0xff]  ;;  %v6052_v22 = vld [vmem:[#allocation4 + $0x280] sm:$0xff] }
  0x40   : > { %5484 = vmatpush.msra.mxu3 %v567_v14  ;;  %686 = vmatpush.msra.mxu0 %v567_v14  ;;  %v6049_v21 = vld [vmem:[#allocation4 + $0x190] sm:$0xff]  ;;  %v6055_v24 = vld [vmem:[#allocation4 + $0x180] sm:$0xff]  ;;  %v6179_v14 = vld [vmem:[%s6002_s13 + $0xe8] sm:$0xff]  ;;  %s9597_s23 = scalar_lea.vmem %s9959_s22, %s5323_s30 }
  0x41   : > { %5499 = vmatpush.msra.mxu1 %v6037_v15  ;;  %5516 = vmatpush.msra.mxu2 %v6040_v16  ;;  %v561_v23 = vld [vmem:[#allocation4 + $0x70] sm:$0xff]  ;;  %v559_v26 = vld [vmem:[#allocation4 + $0x60] sm:$0xff] }
  0x42   : > { %5485 = vmatpush.msra.mxu3 %v565_v17  ;;  %687 = vmatpush.msra.mxu0 %v565_v17  ;;  %v6058_v25 = vld [vmem:[#allocation4 + $0x270] sm:$0xff]  ;;  %v6064_v28 = vld [vmem:[#allocation4 + $0x260] sm:$0xff] }
  0x43   : > { %5500 = vmatpush.msra.mxu1 %v6043_v18  ;;  %5517 = vmatpush.msra.mxu2 %v6046_v19  ;;  %v6061_v27 = vld [vmem:[#allocation4 + $0x170] sm:$0xff]  ;;  %v6067_v30 = vld [vmem:[#allocation4 + $0x160] sm:$0xff] }
  0x44   : > { %5486 = vmatpush.msra.mxu3 %v563_v20  ;;  %688 = vmatpush.msra.mxu0 %v563_v20  ;;  %v557_v29 = vld [vmem:[#allocation4 + $0x50] sm:$0xff]  ;;  %v555_v32 = vld [vmem:[#allocation4 + $0x40] sm:$0xff]  ;;  %v6195_v20 = vld [vmem:[%s6002_s13 + $0x8] sm:$0xff] }
  0x45   : > { %5501 = vmatpush.msra.mxu1 %v6049_v21  ;;  %5518 = vmatpush.msra.mxu2 %v6052_v22  ;;  %v6070_v31 = vld [vmem:[#allocation4 + $0x250] sm:$0xff]  ;;  %v6076_v34 = vld [vmem:[#allocation4 + $0x240] sm:$0xff] }
  0x46   : > { %5487 = vmatpush.msra.mxu3 %v561_v23  ;;  %689 = vmatpush.msra.mxu0 %v561_v23  ;;  %v6073_v33 = vld [vmem:[#allocation4 + $0x150] sm:$0xff]  ;;  %v6079_v36 = vld [vmem:[#allocation4 + $0x140] sm:$0xff]  ;;  %v6199_v23 = vld [vmem:[%s6002_s13 + $0x108] sm:$0xff] }
  0x47   : > { %5502 = vmatpush.msra.mxu1 %v6055_v24  ;;  %5519 = vmatpush.msra.mxu2 %v6058_v25  ;;  %v553_v35 = vld [vmem:[#allocation4 + $0x30] sm:$0xff]  ;;  %v551_v38 = vld [vmem:[#allocation4 + $0x20] sm:$0xff] }
  0x48   : > { %5488 = vmatpush.msra.mxu3 %v559_v26  ;;  %690 = vmatpush.msra.mxu0 %v559_v26  ;;  %v6082_v37 = vld [vmem:[#allocation4 + $0x230] sm:$0xff]  ;;  %v6088_v40 = vld [vmem:[#allocation4 + $0x220] sm:$0xff] }
  0x49   : > { %5503 = vmatpush.msra.mxu1 %v6061_v27  ;;  %5520 = vmatpush.msra.mxu2 %v6064_v28  ;;  %v6085_v39 = vld [vmem:[#allocation4 + $0x130] sm:$0xff]  ;;  %v6091_v42 = vld [vmem:[#allocation4 + $0x120] sm:$0xff] }
  0x4a   : > { %5489 = vmatpush.msra.mxu3 %v557_v29  ;;  %691 = vmatpush.msra.mxu0 %v557_v29  ;;  %v549_v41 = vld [vmem:[#allocation4 + $0x10] sm:$0xff]  ;;  %v547_v44 = vld [vmem:[#allocation4] sm:$0xff] }
  0x4b   : > { %5504 = vmatpush.msra.mxu1 %v6067_v30  ;;  %5521 = vmatpush.msra.mxu2 %v6070_v31  ;;  %v6094_v43 = vld [vmem:[#allocation4 + $0x210] sm:$0xff]  ;;  %v6100_v46 = vld [vmem:[%s6002_s13 + $0x80] sm:$0xff] }
  0x4c   : > { %5490 = vmatpush.msra.mxu3 %v555_v32  ;;  %692 = vmatpush.msra.mxu0 %v555_v32  ;;  %v6097_v45 = vld [vmem:[#allocation4 + $0x110] sm:$0xff]  ;;  %v6103_v47 = vld [vmem:[#allocation4 + $0x200] sm:$0xff]  ;;  %v6239_v32 = vld [vmem:[%s6002_s13 + $0x148] sm:$0xff] }
  0x4d   : > { %5505 = vmatpush.msra.mxu1 %v6073_v33  ;;  %5522 = vmatpush.msra.mxu2 %v6076_v34  ;;  %v673_v48 = vld [vmem:[#allocation4 + $0x3f0] sm:$0xff]  ;;  %v6110_v50 = vld [vmem:[#allocation4 + $0x100] sm:$0xff] }
  0x4e   : > { %5491 = vmatpush.msra.mxu3 %v553_v35  ;;  %693 = vmatpush.msra.mxu0 %v553_v35  ;;  %v6107_v49 = vld [vmem:[%s6002_s13 + $0x90] sm:$0xff]  ;;  %v671_v51 = vld [vmem:[#allocation4 + $0x3e0] sm:$0xff]  ;;  %v6259_v35 = vld [vmem:[%s6002_s13 + $0x168] sm:$0xff] }
  0x4f   : > { %5506 = vmatpush.msra.mxu1 %v6079_v36  ;;  %5523 = vmatpush.msra.mxu2 %v6082_v37  ;;  %v6115_v52 = vld [vmem:[%s6002_s13] sm:$0xff]  ;;  %v669_v54 = vld [vmem:[#allocation4 + $0x3d0] sm:$0xff] }
  0x50   : > { %5492 = vmatpush.msra.mxu3 %v551_v38  ;;  %694 = vmatpush.msra.mxu0 %v551_v38  ;;  %v667_v55 = vld [vmem:[#allocation4 + $0x3c0] sm:$0xff]  ;;  %v6130_v57 = vld [vmem:[%s6002_s13 + $0xb0] sm:$0xff]  ;;  %v576_v38 = vld [vmem:[#allocation4 + $0xe8] sm:$0xff] }
  0x51   : > { %5507 = vmatpush.msra.mxu1 %v6085_v39  ;;  %5524 = vmatpush.msra.mxu2 %v6088_v40  ;;  %v6126_v56 = vld [vmem:[%s6002_s13 + $0xa0] sm:$0xff]  ;;  %v665_v58 = vld [vmem:[#allocation4 + $0x3b0] sm:$0xff] }
  0x52   : > { %5493 = vmatpush.msra.mxu3 %v549_v41  ;;  %695 = vmatpush.msra.mxu0 %v549_v41  ;;  %v6135_v59 = vld [vmem:[%s6002_s13 + $0x20] sm:$0xff]  ;;  %v661_v62 = vld [vmem:[#allocation4 + $0x390] sm:$0xff] }
  0x53   : > { %5508 = vmatpush.msra.mxu1 %v6091_v42  ;;  %5525 = vmatpush.msra.mxu2 %v6094_v43  ;;  %v663_v60 = vld [vmem:[#allocation4 + $0x3a0] sm:$0xff]  ;;  %v6150_v1 = vld [vmem:[%s6002_s13 + $0xd0] sm:$0xff] }
  0x54   : > { %5494 = vmatpush.msra.mxu3 %v547_v44  ;;  %696 = vmatpush.msra.mxu0 %v547_v44  ;;  %v659_v63 = vld [vmem:[#allocation4 + $0x380] sm:$0xff]  ;;  %v6170_v11 = vld [vmem:[%s6002_s13 + $0xf0] sm:$0xff]  ;;  %v672_v44 = vld [vmem:[#allocation4 + $0x3e8] sm:$0xff] }
  0x55   : > { %5509 = vmatpush.msra.mxu1 %v6097_v45  ;;  %709 = vmatmul.f32.vlgmr.msra.gmra.mxu3 %v6100_v46  ;;  %v6146_v0 = vld [vmem:[%s6002_s13 + $0xc0] sm:$0xff]  ;;  %v6210_v26 = vld [vmem:[%s6002_s13 + $0x130] sm:$0xff] }
  0x56   : > { %5526 = vmatpush.msra.mxu2 %v6103_v47  ;;  %876 = vmatpush.msrb.mxu3 %v673_v48  ;;  %v6155_v4 = vld [vmem:[%s6002_s13 + $0x40] sm:$0xff]  ;;  %v649_v29 = vld [vmem:[#allocation4 + $0x330] sm:$0xff]  ;;  %v568_v48 = vld [vmem:[#allocation4 + $0xa8] sm:$0xff] }
  0x57   : > { %839 = vmatmul.f32.vlgmr.msra.gmra.mxu2 %v6107_v49  ;;  %5510 = vmatpush.msra.mxu1 %v6110_v50  ;;  %v655_v8 = vld [vmem:[#allocation4 + $0x360] sm:$0xff]  ;;  %v6288_v41 = vld [vmem:[%s6002_s13 + $0x1b0] sm:$0xff] }
  0x58   : > { %877 = vmatpush.msrb.mxu3 %v671_v51  ;;  %697 = vmatmul.f32.vlgmr.msra.gmra.mxu0 %v6115_v52  ;;  %v6186_v17 = vld [vmem:[%s6002_s13 + $0x100] sm:$0xff]  ;;  %v566_v51 = vld [vmem:[#allocation4 + $0x98] sm:$0xff] }
  0x59   : > { %774 = vmatmul.f32.vlgmr.msra.gmra.mxu1 %v6119_v53  ;;  %746 = vmatpush.msrb.mxu0 %v6017_v5  ;;  %v657_v5 = vld [vmem:[#allocation4 + $0x370] sm:$0xff] }
  0x5a   : > { %878 = vmatpush.msrb.mxu3 %v669_v54  ;;  %v6304_v54 = vld [vmem:[%s6002_s13 + $0x1d0] sm:$0xff] }
  0x5b   : > { %747 = vmatpush.msrb.mxu0 %v6022_v7  ;;  %v6159_v7 = vld [vmem:[%s6002_s13 + $0xc8] sm:$0xff] }
  0x5c   : > { %879 = vmatpush.msrb.mxu3 %v667_v55  ;;  %v564_v55 = vld [vmem:[#allocation4 + $0x88] sm:$0xff] }
  0x5d   : > { %712 = vmatmul.f32.gmra.mxu3 %v6126_v56  ;;  %748 = vmatpush.msrb.mxu0 %v6025_v9  ;;  %v6166_v9 = vld [vmem:[%s6002_s13 + $0xe0] sm:$0xff] }
  0x5e   : > { %880 = vmatpush.msrb.mxu3 %v665_v58  ;;  %v6308_v58 = vld [vmem:[%s6002_s13 + $0x50] sm:$0xff] }
  0x5f   : > { %842 = vmatmul.f32.gmra.mxu2 %v6130_v57  ;;  %749 = vmatpush.msrb.mxu0 %v6031_v12  ;;  %v6175_v12 = vld [vmem:[%s6002_s13 + $0x60] sm:$0xff] }
  0x60   : > { %700 = vmatmul.f32.gmra.mxu0 %v6135_v59  ;;  %881 = vmatpush.msrb.mxu3 %v663_v60  ;;  %v670_v60 = vld [vmem:[#allocation4 + $0x3d8] sm:$0xff] }
  0x61   : > { %777 = vmatmul.f32.gmra.mxu1 %v6139_v61  ;;  %750 = vmatpush.msrb.mxu0 %v6037_v15  ;;  %v653_v15 = vld [vmem:[#allocation4 + $0x350] sm:$0xff] }
  0x62   : > { %882 = vmatpush.msrb.mxu3 %v661_v62  ;;  %v6312_v62 = vld [vmem:[%s6002_s13 + $0x1c8] sm:$0xff] }
  0x63   : > { %751 = vmatpush.msrb.mxu0 %v6043_v18  ;;  %v6190_v18 = vld [vmem:[%s6002_s13 + $0x110] sm:$0xff]  ;;  %9787 = vst [vmem:[#allocation8_spill] sm:$0xff] %v6312_v62 }
  0x64   : > { %883 = vmatpush.msrb.mxu3 %v659_v63  ;;  %v562_v63 = vld [vmem:[#allocation4 + $0x78] sm:$0xff] }
  0x65   : > { %715 = vmatmul.f32.gmra.mxu3 %v6146_v0  ;;  %752 = vmatpush.msrb.mxu0 %v6049_v21  ;;  %v651_v21 = vld [vmem:[#allocation4 + $0x340] sm:$0xff] }
  0x66   : > { %884 = vmatpush.msrb.mxu3 %v657_v5  ;;  %v560_v5 = vld [vmem:[#allocation4 + $0x68] sm:$0xff] }
  0x67   : > { %845 = vmatmul.f32.gmra.mxu2 %v6150_v1  ;;  %753 = vmatpush.msrb.mxu0 %v6055_v24  ;;  %v6206_v24 = vld [vmem:[%s6002_s13 + $0x120] sm:$0xff] }
  0x68   : > { %703 = vmatmul.f32.gmra.mxu0 %v6155_v4  ;;  %885 = vmatpush.msrb.mxu3 %v655_v8  ;;  %v6317_v8 = vld [vmem:[%s6002_s13 + $0x1e0] sm:$0xff] }
  0x69   : > { %780 = vmatmul.f32.gmra.mxu1 %v6159_v7  ;;  %754 = vmatpush.msrb.mxu0 %v6061_v27  ;;  %v6215_v27 = vld [vmem:[%s6002_s13 + $0x28] sm:$0xff] }
  0x6a   : > { %886 = vmatpush.msrb.mxu3 %v653_v15  ;;  %v558_v15 = vld [vmem:[#allocation4 + $0x58] sm:$0xff] }
  0x6b   : > { %755 = vmatpush.msrb.mxu0 %v6067_v30  ;;  %v647_v30 = vld [vmem:[#allocation4 + $0x320] sm:$0xff] }
  0x6c   : > { %887 = vmatpush.msrb.mxu3 %v651_v21  ;;  %v6320_v21 = vld [vmem:[%s6002_s13 + $0x1f0] sm:$0xff] }
  0x6d   : > { %718 = vmatmul.f32.gmra.mxu3 %v6166_v9  ;;  %756 = vmatpush.msrb.mxu0 %v6073_v33  ;;  %v643_v33 = vld [vmem:[#allocation4 + $0x300] sm:$0xff]  ;;  %9788 = vst [vmem:[#allocation9_spill] sm:$0xff] %v6320_v21 }
  0x6e   : > { %888 = vmatpush.msrb.mxu3 %v649_v29  ;;  %v556_v29 = vld [vmem:[#allocation4 + $0x48] sm:$0xff] }
  0x6f   : > { %848 = vmatmul.f32.gmra.mxu2 %v6170_v11  ;;  %757 = vmatpush.msrb.mxu0 %v6079_v36  ;;  %v6279_v36 = vld [vmem:[%s6002_s13 + $0x188] sm:$0xff] }
  0x70   : > { %706 = vmatmul.f32.gmra.mxu0 %v6175_v12  ;;  %889 = vmatpush.msrb.mxu3 %v647_v30  ;;  %v6324_v30 = vld [vmem:[%s6002_s13 + $0x70] sm:$0xff] }
  0x71   : > { %783 = vmatmul.f32.gmra.mxu1 %v6179_v14  ;;  %758 = vmatpush.msrb.mxu0 %v6085_v39  ;;  %v6285_v39 = vld [vmem:[%s6002_s13 + $0x1a0] sm:$0xff] }
  0x73   : > { %759 = vmatpush.msrb.mxu0 %v6091_v42  ;;  %v572_v42 = vld [vmem:[#allocation4 + $0xc8] sm:$0xff] }
  0x75   : > { %721 = vmatmul.f32.gmra.mxu3 %v6186_v17  ;;  %760 = vmatpush.msrb.mxu0 %v6097_v45  ;;  %v6296_v45 = vld [vmem:[%s6002_s13 + $0x1a8] sm:$0xff] }
  0x77   : > { %851 = vmatmul.f32.gmra.mxu2 %v6190_v18  ;;  %761 = vmatpush.msrb.mxu0 %v6110_v50  ;;  %v6301_v50 = vld [vmem:[%s6002_s13 + $0x1c0] sm:$0xff] }
  0x78   : > { %762 = vmatmul.f32.vlgmr.msrb.gmra.mxu0 %v6195_v20 }
  0x79   : > { %786 = vmatmul.f32.gmra.mxu1 %v6199_v23  ;;  %811 = vmatpush.msra.mxu0 %v6012_v2  ;;  %v6219_v2 = vld [vmem:[%s6002_s13 + $0x128] sm:$0xff] }
  0x7b   : > { %812 = vmatpush.msra.mxu0 %v6014_v3  ;;  %v6226_v3 = vld [vmem:[%s6002_s13 + $0x140] sm:$0xff] }
  0x7d   : > { %724 = vmatmul.f32.gmra.mxu3 %v6206_v24  ;;  %813 = vmatpush.msra.mxu0 %v6020_v6  ;;  %v6230_v6 = vld [vmem:[%s6002_s13 + $0x150] sm:$0xff] }
  0x7f   : > { %854 = vmatmul.f32.gmra.mxu2 %v6210_v26  ;;  %814 = vmatpush.msra.mxu0 %v6028_v10  ;;  %v6235_v10 = vld [vmem:[%s6002_s13 + $0x48] sm:$0xff] }
  0x80   : > { %765 = vmatmul.f32.gmra.mxu0 %v6215_v27 }
  0x81   : > { %789 = vmatmul.f32.gmra.mxu1 %v6219_v2  ;;  %815 = vmatpush.msra.mxu0 %v6034_v13  ;;  %v645_v13 = vld [vmem:[#allocation4 + $0x310] sm:$0xff] }
  0x82   : > { %890 = vmatpush.msrb.mxu3 %v645_v13  ;;  %v668_v13 = vld [vmem:[#allocation4 + $0x3c8] sm:$0xff] }
  0x83   : > { %816 = vmatpush.msra.mxu0 %v6040_v16  ;;  %v6246_v16 = vld [vmem:[%s6002_s13 + $0x160] sm:$0xff] }
  0x84   : > { %891 = vmatpush.msrb.mxu3 %v643_v33  ;;  %v642_v33 = vld [vmem:[#allocation4 + $0x2f8] sm:$0xff] }
  0x85   : > { %727 = vmatmul.f32.gmra.mxu3 %v6226_v3  ;;  %817 = vmatpush.msra.mxu0 %v6046_v19  ;;  %v6250_v19 = vld [vmem:[%s6002_s13 + $0x170] sm:$0xff] }
  0x86   : > { %1071 = vmatpush.msrb.mxu2 %v642_v33  ;;  %v604_v33 = vld [vmem:[#allocation4 + $0x1c8] sm:$0xff] }
  0x87   : > { %857 = vmatmul.f32.gmra.mxu2 %v6230_v6  ;;  %818 = vmatpush.msra.mxu0 %v6052_v22  ;;  %v6255_v22 = vld [vmem:[%s6002_s13 + $0x68] sm:$0xff] }
  0x88   : > { %768 = vmatmul.f32.gmra.mxu0 %v6235_v10 }
  0x89   : > { %792 = vmatmul.f32.gmra.mxu1 %v6239_v32  ;;  %819 = vmatpush.msra.mxu0 %v6058_v25  ;;  %v6266_v25 = vld [vmem:[%s6002_s13 + $0x180] sm:$0xff] }
  0x8b   : > { %820 = vmatpush.msra.mxu0 %v6064_v28  ;;  %v6270_v28 = vld [vmem:[%s6002_s13 + $0x190] sm:$0xff] }
  0x8d   : > { %730 = vmatmul.f32.gmra.mxu3 %v6246_v16  ;;  %821 = vmatpush.msra.mxu0 %v6070_v31  ;;  %v6275_v31 = vld [vmem:[%s6002_s13 + $0x10] sm:$0xff] }
  0x8f   : > { %860 = vmatmul.f32.gmra.mxu2 %v6250_v19  ;;  %822 = vmatpush.msra.mxu0 %v6076_v34  ;;  %v674_v34 = vld [vmem:[#allocation4 + $0x3f8] sm:$0xff] }
  0x90   : > { %771 = vmatmul.f32.gmra.mxu0 %v6255_v22  ;;  %1136 = vmatpush.msra.mxu3 %v674_v34  ;;  %v6328_v34 = vld [vmem:[%s6002_s13 + $0x1e8] sm:$0xff] }
  0x91   : > { %795 = vmatmul.f32.gmra.mxu1 %v6259_v35  ;;  %823 = vmatpush.msra.mxu0 %v6082_v37  ;;  %v578_v37 = vld [vmem:[#allocation4 + $0xf8] sm:$0xff]  ;;  %9789 = vst [vmem:[#allocation10_spill] sm:$0xff] %v6328_v34 }
  0x92   : > { %1137 = vmatpush.msra.mxu3 %v672_v44  ;;  %v548_v44 = vld [vmem:[#allocation4 + $0x8] sm:$0xff] }
  0x93   : > { %824 = vmatpush.msra.mxu0 %v6088_v40  ;;  %v574_v40 = vld [vmem:[#allocation4 + $0xd8] sm:$0xff] }
  0x94   : > { %1138 = vmatpush.msra.mxu3 %v670_v60  ;;  %v608_v60 = vld [vmem:[#allocation4 + $0x1e8] sm:$0xff] }
  0x95   : > { %733 = vmatmul.f32.gmra.mxu3 %v6266_v25  ;;  %825 = vmatpush.msra.mxu0 %v6094_v43  ;;  %v6292_v43 = vld [vmem:[%s6002_s13 + $0x30] sm:$0xff] }
  0x96   : > { %1139 = vmatpush.msra.mxu3 %v668_v13  ;;  %v662_v13 = vld [vmem:[#allocation4 + $0x398] sm:$0xff] }
  0x97   : > { %863 = vmatmul.f32.gmra.mxu2 %v6270_v28  ;;  %826 = vmatpush.msra.mxu0 %v6103_v47  ;;  %v570_v47 = vld [vmem:[#allocation4 + $0xb8] sm:$0xff] }
  0x98   : > { %827 = vmatmul.f32.vlgmr.msra.gmra.mxu0 %v6275_v31 }
  0x99   : > { %798 = vmatmul.f32.gmra.mxu1 %v6279_v36  ;;  %941 = vmatpush.msrb.mxu0 %v578_v37  ;;  %v554_v37 = vld [vmem:[#allocation4 + $0x38] sm:$0xff] }
  0x9b   : > { %942 = vmatpush.msrb.mxu0 %v576_v38  ;;  %v552_v38 = vld [vmem:[#allocation4 + $0x28] sm:$0xff] }
  0x9d   : > { %736 = vmatmul.f32.gmra.mxu3 %v6285_v39  ;;  %943 = vmatpush.msrb.mxu0 %v574_v40  ;;  %v6333_v40 = vld [vmem:[%s6002_s13 + $0x18] sm:$0xff] }
  0x9f   : > { %866 = vmatmul.f32.gmra.mxu2 %v6288_v41  ;;  %944 = vmatpush.msrb.mxu0 %v572_v42  ;;  %v550_v42 = vld [vmem:[#allocation4 + $0x18] sm:$0xff] }
  0xa0   : > { %830 = vmatmul.f32.gmra.mxu0 %v6292_v43 }
  0xa1   : > { %801 = vmatmul.f32.gmra.mxu1 %v6296_v45  ;;  %945 = vmatpush.msrb.mxu0 %v570_v47  ;;  %v666_v47 = vld [vmem:[#allocation4 + $0x3b8] sm:$0xff] }
  0xa2   : > { %1140 = vmatpush.msra.mxu3 %v666_v47  ;;  %v6353_v47 = vld [vmem:[%s6002_s13 + $0x98] sm:$0xff] }
  0xa3   : > { %946 = vmatpush.msrb.mxu0 %v568_v48  ;;  %v610_v48 = vld [vmem:[#allocation4 + $0x1f8] sm:$0xff] }
  0xa4   : > { %1006 = vmatpush.msrb.mxu1 %v610_v48  ;;  %v658_v48 = vld [vmem:[#allocation4 + $0x378] sm:$0xff] }
  0xa5   : > { %739 = vmatmul.f32.gmra.mxu3 %v6301_v50  ;;  %947 = vmatpush.msrb.mxu0 %v566_v51  ;;  %v640_v51 = vld [vmem:[#allocation4 + $0x2e8] sm:$0xff] }
  0xa6   : > { %1072 = vmatpush.msrb.mxu2 %v640_v51  ;;  %1007 = vmatpush.msrb.mxu1 %v608_v60  ;;  %v630_v51 = vld [vmem:[#allocation4 + $0x298] sm:$0xff] }
  0xa7   : > { %869 = vmatmul.f32.gmra.mxu2 %v6304_v54  ;;  %948 = vmatpush.msrb.mxu0 %v564_v55  ;;  %v6338_v55 = vld [vmem:[%s6002_s13 + $0x38] sm:$0xff] }
  0xa8   : > { %833 = vmatmul.f32.gmra.mxu0 %v6308_v58 }
  0xa9   : > { %804 = vmatmul.f32.gmra.mxu1 %v6312_v62  ;;  %949 = vmatpush.msrb.mxu0 %v562_v63  ;;  %v664_v63 = vld [vmem:[#allocation4 + $0x3a8] sm:$0xff]  ;;  %v6433_v62 = vld [vmem:[%s6002_s13 + $0x178] sm:$0xff] }
  0xaa   : > { %1141 = vmatpush.msra.mxu3 %v664_v63  ;;  %v6360_v63 = vld [vmem:[%s6002_s13 + $0xb8] sm:$0xff] }
  0xab   : > { %950 = vmatpush.msrb.mxu0 %v560_v5  ;;  %v638_v5 = vld [vmem:[#allocation4 + $0x2d8] sm:$0xff] }
  0xac   : > { %1073 = vmatpush.msrb.mxu2 %v638_v5  ;;  %1142 = vmatpush.msra.mxu3 %v662_v13  ;;  %v628_v5 = vld [vmem:[#allocation4 + $0x288] sm:$0xff] }
  0xad   : > { %742 = vmatmul.f32.gmra.mxu3 %v6317_v8  ;;  %951 = vmatpush.msrb.mxu0 %v558_v15  ;;  %v6343_v15 = vld [vmem:[%s6002_s13 + $0x58] sm:$0xff] }
  0xaf   : > { %872 = vmatmul.f32.gmra.mxu2 %v6320_v21  ;;  %952 = vmatpush.msrb.mxu0 %v556_v29  ;;  %v606_v29 = vld [vmem:[#allocation4 + $0x1d8] sm:$0xff] }
  0xb0   : > { %836 = vmatmul.f32.gmra.mxu0 %v6324_v30  ;;  %1008 = vmatpush.msrb.mxu1 %v606_v29  ;;  %v656_v29 = vld [vmem:[#allocation4 + $0x368] sm:$0xff]  ;;  %v6412_v21 = vld [vmem:[%s6002_s13 + $0x158] sm:$0xff] }
  0xb1   : > { %807 = vmatmul.f32.gmra.mxu1 %v6328_v34  ;;  %953 = vmatpush.msrb.mxu0 %v554_v37  ;;  %v6348_v37 = vld [vmem:[%s6002_s13 + $0x78] sm:$0xff]  ;;  %v1248_v34 = vld [vmem:[%s9678_s3 + $0x68] sm:$0xff]  ;;  %9790 = vst [vmem:[#allocation11_spill] sm:$0xff] %v6412_v21 }
  0xb2   : > { %1009 = vmatpush.msrb.mxu1 %v604_v33  ;;  %v596_v33 = vld [vmem:[#allocation4 + $0x188] sm:$0xff] }
  0xb3   : > { %954 = vmatpush.msrb.mxu0 %v552_v38  ;;  %v634_v38 = vld [vmem:[#allocation4 + $0x2b8] sm:$0xff] }
  0xb5   : > { %892 = vmatmul.f32.vlgmr.msrb.gmra.mxu3 %v6333_v40  ;;  %955 = vmatpush.msrb.mxu0 %v550_v42  ;;  %v602_v42 = vld [vmem:[#allocation4 + $0x1b8] sm:$0xff] }
  0xb6   : > { %1010 = vmatpush.msrb.mxu1 %v602_v42  ;;  %v594_v42 = vld [vmem:[#allocation4 + $0x178] sm:$0xff] }
  0xb7   : > { %956 = vmatpush.msrb.mxu0 %v548_v44  ;;  %v632_v44 = vld [vmem:[#allocation4 + $0x2a8] sm:$0xff] }
  0xb8   : > { %957 = vmatmul.f32.vlgmr.msrb.gmra.mxu0 %v6115_v52  ;;  %v636_v52 = vld [vmem:[#allocation4 + $0x2c8] sm:$0xff] }
  0xb9   : > { %1074 = vmatpush.msrb.mxu2 %v636_v52 }
  0xbb   : > { %1075 = vmatpush.msrb.mxu2 %v634_v38  ;;  %v6369_v38 = vld [vmem:[%s6002_s13 + $0xd8] sm:$0xff] }
  0xbd   : > { %895 = vmatmul.f32.gmra.mxu3 %v6338_v55  ;;  %1076 = vmatpush.msrb.mxu2 %v632_v44 }
  0xbf   : > { %1077 = vmatpush.msrb.mxu2 %v630_v51  ;;  %v592_v51 = vld [vmem:[#allocation4 + $0x168] sm:$0xff] }
  0xc0   : > { %960 = vmatmul.f32.gmra.mxu0 %v6135_v59  ;;  %v660_v59 = vld [vmem:[#allocation4 + $0x388] sm:$0xff] }
  0xc1   : > { %1143 = vmatpush.msra.mxu3 %v660_v59  ;;  %1078 = vmatpush.msrb.mxu2 %v628_v5  ;;  %v654_v59 = vld [vmem:[#allocation4 + $0x358] sm:$0xff] }
  0xc2   : > { %v622_v5 = vld [vmem:[#allocation4 + $0x258] sm:$0xff] }
  0xc3   : > { %1144 = vmatpush.msra.mxu3 %v658_v48  ;;  %v6378_v48 = vld [vmem:[%s6002_s13 + $0xf8] sm:$0xff] }
  0xc5   : > { %898 = vmatmul.f32.gmra.mxu3 %v6343_v15 }
  0xc6   : > { %1145 = vmatpush.msra.mxu3 %v656_v29 }
  0xc8   : > { %963 = vmatmul.f32.gmra.mxu0 %v6155_v4  ;;  %v600_v4 = vld [vmem:[#allocation4 + $0x1a8] sm:$0xff]  ;;  %1146 = vmatpush.msra.mxu3 %v654_v59 }
  0xc9   : > { %1011 = vmatpush.msrb.mxu1 %v600_v4  ;;  %v620_v59 = vld [vmem:[#allocation4 + $0x248] sm:$0xff] }
  0xcd   : > { %901 = vmatmul.f32.gmra.mxu3 %v6348_v37 }
  0xd0   : > { %966 = vmatmul.f32.gmra.mxu0 %v6175_v12  ;;  %v598_v12 = vld [vmem:[#allocation4 + $0x198] sm:$0xff] }
  0xd1   : > { %1012 = vmatpush.msrb.mxu1 %v598_v12  ;;  %v652_v12 = vld [vmem:[#allocation4 + $0x348] sm:$0xff] }
  0xd2   : > { %1147 = vmatpush.msra.mxu3 %v652_v12  ;;  %v6394_v12 = vld [vmem:[%s6002_s13 + $0x138] sm:$0xff] }
  0xd3   : > { %1013 = vmatpush.msrb.mxu1 %v596_v33 }
  0xd5   : > { %904 = vmatmul.f32.gmra.mxu3 %v6353_v47  ;;  %v6363_v52 = vpop.f32.mrf.mxu0  ;;  %1014 = vmatpush.msrb.mxu1 %v594_v42  ;;  %v650_v42 = vld [vmem:[#allocation4 + $0x338] sm:$0xff] }
  0xd6   : > { %1148 = vmatpush.msra.mxu3 %v650_v42  ;;  %v586_v42 = vld [vmem:[#allocation4 + $0x138] sm:$0xff] }
  0xd7   : > { %1015 = vmatpush.msrb.mxu1 %v592_v51  ;;  %v588_v51 = vld [vmem:[#allocation4 + $0x148] sm:$0xff] }
  0xd8   : > { %v6356_v60 = vpop.f32.mrf.mxu3  ;;  %969 = vmatmul.f32.gmra.mxu0 %v6100_v46  ;;  %v626_v46 = vld [vmem:[#allocation4 + $0x278] sm:$0xff] }
  0xd9   : > { %1079 = vmatpush.msrb.mxu2 %v626_v46  ;;  %v590_v46 = vld [vmem:[#allocation4 + $0x158] sm:$0xff] }
  0xda   : > { %1016 = vmatpush.msrb.mxu1 %v590_v46  ;;  %v648_v46 = vld [vmem:[#allocation4 + $0x328] sm:$0xff] }
  0xdb   : > { %1149 = vmatpush.msra.mxu3 %v648_v46  ;;  %v1247_v46 = vld [vmem:[%s9678_s3 + $0x60] sm:$0xff] }
  0xdc   : > { %1017 = vmatpush.msrb.mxu1 %v588_v51 }
  0xdd   : > { %907 = vmatmul.f32.gmra.mxu3 %v6360_v63  ;;  %v6372_v44 = vpop.f32.mrf.mxu0 }
  0xde   : > { %1018 = vmatpush.msrb.mxu1 %v586_v42  ;;  %v1246_v42 = vld [vmem:[%s9678_s3 + $0x58] sm:$0xff] }
  0xe0   : > { %v6365_v13 = vpop.f32.mrf.mxu3  ;;  %972 = vmatmul.f32.gmra.mxu0 %v6126_v56  ;;  %v624_v56 = vld [vmem:[#allocation4 + $0x268] sm:$0xff] }
  0xe1   : > { %1080 = vmatpush.msrb.mxu2 %v624_v56 }
  0xe3   : > { %1081 = vmatpush.msrb.mxu2 %v622_v5 }
  0xe5   : > { %910 = vmatmul.f32.gmra.mxu3 %v6369_v38  ;;  %v6384_v33 = vpop.f32.mrf.mxu0  ;;  %1082 = vmatpush.msrb.mxu2 %v620_v59  ;;  %v1250_v59 = vld [vmem:[%s9678_s3 + $0x78] sm:$0xff] }
  0xe6   : > { %1267 = vmatpush.msra.mxu0 %v1250_v59  ;;  %v584_v59 = vld [vmem:[#allocation4 + $0x128] sm:$0xff] }
  0xe7   : > { %1019 = vmatpush.msrb.mxu1 %v584_v59  ;;  %v582_v59 = vld [vmem:[#allocation4 + $0x118] sm:$0xff] }
  0xe8   : > { %v6374_v4 = vpop.f32.mrf.mxu3  ;;  %975 = vmatmul.f32.gmra.mxu0 %v6146_v0  ;;  %v6387_v0 = vld [vmem:[%s6002_s13 + $0x118] sm:$0xff] }
  0xe9   : > { %1020 = vmatpush.msrb.mxu1 %v582_v59 }
  0xed   : > { %913 = vmatmul.f32.gmra.mxu3 %v6378_v48  ;;  %v6396_v5 = vpop.f32.mrf.mxu0 }
  0xf0   : > { %v6381_v29 = vpop.f32.mrf.mxu3  ;;  %978 = vmatmul.f32.gmra.mxu0 %v6166_v9  ;;  %v618_v9 = vld [vmem:[#allocation4 + $0x238] sm:$0xff] }
  0xf1   : > { %1083 = vmatpush.msrb.mxu2 %v618_v9  ;;  %v616_v9 = vld [vmem:[#allocation4 + $0x228] sm:$0xff] }
  0xf3   : > { %1084 = vmatpush.msrb.mxu2 %v616_v9  ;;  %v614_v9 = vld [vmem:[#allocation4 + $0x218] sm:$0xff] }
  0xf5   : > { %916 = vmatmul.f32.gmra.mxu3 %v6387_v0  ;;  %1085 = vmatpush.msrb.mxu2 %v614_v9  ;;  %v1242_v9 = vld [vmem:[%s9678_s3 + $0x38] sm:$0xff] }
  0xf8   : > { %v6390_v56 = vpop.f32.mrf.mxu3  ;;  %981 = vmatmul.f32.gmra.mxu0 %v6186_v17  ;;  %v1249_v17 = vld [vmem:[%s9678_s3 + $0x70] sm:$0xff] }
  0xf9   : > { %1268 = vmatpush.msra.mxu0 %v1249_v17  ;;  %v6421_v17 = vpop.f32.mrf.mxu0 }
  0xfb   : > { %1269 = vmatpush.msra.mxu0 %v1248_v34  ;;  %v1245_v34 = vld [vmem:[%s9678_s3 + $0x50] sm:$0xff] }
  0xfd   : > { %919 = vmatmul.f32.gmra.mxu3 %v6394_v12  ;;  %1270 = vmatpush.msra.mxu0 %v1247_v46  ;;  %v1244_v46 = vld [vmem:[%s9678_s3 + $0x48] sm:$0xff] }
  0xff   : > { %1271 = vmatpush.msra.mxu0 %v1246_v42  ;;  %v612_v42 = vld [vmem:[#allocation4 + $0x208] sm:$0xff] }
 0x100   : > { %v6405_v51 = vpop.f32.mrf.mxu3  ;;  %984 = vmatmul.f32.gmra.mxu0 %v6206_v24  ;;  %v646_v24 = vld [vmem:[#allocation4 + $0x318] sm:$0xff]  ;;  %1086 = vmatpush.msrb.mxu2 %v612_v42  ;;  %v1240_v42 = vld [vmem:[%s9678_s3 + $0x28] sm:$0xff] }
 0x101   : > { %1150 = vmatpush.msra.mxu3 %v646_v24  ;;  %1272 = vmatpush.msra.mxu0 %v1245_v34  ;;  %v1243_v24 = vld [vmem:[%s9678_s3 + $0x40] sm:$0xff]  ;;  %v1241_v34 = vld [vmem:[%s9678_s3 + $0x30] sm:$0xff] }
 0x102   : > { %1087 = vmatmul.f32.vlgmr.msrb.gmra.mxu2 %v6275_v31  ;;  %v1239_v31 = vld [vmem:[%s9678_s3 + $0x20] sm:$0xff] }
 0x103   : > { %1273 = vmatpush.msra.mxu0 %v1244_v46  ;;  %v6446_v46 = vpop.f32.mrf.mxu0 }
 0x105   : > { %922 = vmatmul.f32.gmra.mxu3 %v6412_v21  ;;  %1274 = vmatpush.msra.mxu0 %v1243_v24  ;;  %v580_v24 = vld [vmem:[#allocation4 + $0x108] sm:$0xff] }
 0x106   : > { %1021 = vmatpush.msrb.mxu1 %v580_v24 }
 0x107   : > { %1275 = vmatpush.msra.mxu0 %v1242_v9  ;;  %1022 = vmatmul.f32.vlgmr.msrb.gmra.mxu1 %v6195_v20  ;;  %v1237_v9 = vld [vmem:[%s9678_s3 + $0x10] sm:$0xff]  ;;  %v1236_v20 = vld [vmem:[%s9678_s3 + $0x8] sm:$0xff] }
 0x108   : > { %v6426_v21 = vpop.f32.mrf.mxu3  ;;  %987 = vmatmul.f32.gmra.mxu0 %v6226_v3  ;;  %v644_v3 = vld [vmem:[#allocation4 + $0x308] sm:$0xff] }
 0x109   : > { %1151 = vmatpush.msra.mxu3 %v644_v3  ;;  %1276 = vmatpush.msra.mxu0 %v1241_v34  ;;  %v6455_v3 = vld [vmem:[%s6002_s13 + $0x198] sm:$0xff] }
 0x10a   : > { %1090 = vmatmul.f32.gmra.mxu2 %v6292_v43  ;;  %v6484_v43 = vpop.f32.mrf.mxu1 }
 0x10b   : > { %1277 = vmatpush.msra.mxu0 %v1240_v42  ;;  %v6475_v24 = vpop.f32.mrf.mxu0  ;;  %v6478_v42 = vld [vmem:[%s6002_s13 + $0x1b8] sm:$0xff] }
 0x10c   : > { %9791 = vst [vmem:[#allocation12_spill] sm:$0xff] %v6478_v42 }
 0x10d   : > { %925 = vmatmul.f32.gmra.mxu3 %v6433_v62  ;;  %1278 = vmatpush.msra.mxu0 %v1239_v31  ;;  %v1235_v31 = vld [vmem:[%s9678_s3] sm:$0xff] }
 0x10f   : > { %1025 = vmatmul.f32.gmra.mxu1 %v6215_v27  ;;  %v6497_v27 = vld [vmem:[%s6002_s13 + $0x1d8] sm:$0xff] }
 0x110   : > { %v6448_v59 = vpop.f32.mrf.mxu3  ;;  %990 = vmatmul.f32.gmra.mxu0 %v6246_v16  ;;  %v1238_v16 = vld [vmem:[%s9678_s3 + $0x18] sm:$0xff]  ;;  %9793 = vst [vmem:[#allocation14_spill] sm:$0xff] %v6497_v27 }
 0x111   : > { %1279 = vmatpush.msra.mxu0 %v1238_v16  ;;  %v6490_v16 = vpop.f32.mrf.mxu2 }
 0x112   : > { %1093 = vmatmul.f32.gmra.mxu2 %v6308_v58 }
 0x113   : > { %1280 = vmatpush.msra.mxu0 %v1237_v9 }
 0x115   : > { %928 = vmatmul.f32.gmra.mxu3 %v6455_v3  ;;  %1281 = vmatpush.msra.mxu0 %v1236_v20  ;;  %v772_v20 = vpop.f32.mrf.mxu0 }
 0x117   : > { %1282 = vmatpush.msra.mxu0 %v1235_v31  ;;  %1028 = vmatmul.f32.gmra.mxu1 %v6235_v10  ;;  %v1265_v31 = vld [vmem:[%s9678_s3 + $0xf0] sm:$0xff] }
 0x118   : > { %v6469_v34 = vpop.f32.mrf.mxu3  ;;  %993 = vmatmul.f32.gmra.mxu0 %v6266_v25  ;;  %v1266_v25 = vld [vmem:[%s9678_s3 + $0xf8] sm:$0xff] }
 0x119   : > { %1332 = vmatpush.msra.mxu1 %v1266_v25  ;;  %v6504_v25 = vpop.f32.mrf.mxu1  ;;  %v6515_v10 = vpop.f32.mrf.mxu2 }
 0x11a   : > { %1096 = vmatmul.f32.gmra.mxu2 %v6324_v30 }
 0x11b   : > { %1333 = vmatpush.msra.mxu1 %v1265_v31  ;;  %v1264_v31 = vld [vmem:[%s9678_s3 + $0xe8] sm:$0xff] }
 0x11d   : > { %931 = vmatmul.f32.gmra.mxu3 %v6478_v42  ;;  %1334 = vmatpush.msra.mxu1 %v1264_v31 }
 0x11f   : > { %1031 = vmatmul.f32.gmra.mxu1 %v6255_v22 }
 0x120   : > { %v6493_v9 = vpop.f32.mrf.mxu3  ;;  %996 = vmatmul.f32.gmra.mxu0 %v6285_v39  ;;  %v6510_v39 = vld [vmem:[%s9677_s2] sm:$0x3] }
 0x121   : > { %9792 = vst [vmem:[#allocation13_spill] sm:$0xff] %v6493_v9  ;;  %v6521_v42 = vperm.slane %v6510_v39, 0  ;;  %v6537_v9 = vpop.f32.mrf.mxu2 }
 0x122   : > { %9794 = vst [vmem:[#allocation15_spill] sm:$0xff] %v6510_v39  ;;  %1099 = vmatmul.f32.gmra.mxu2 %v6107_v49  ;;  %v6534_v39 = vpop.f32.mrf.mxu1  ;;  %v1263_v49 = vld [vmem:[%s9678_s3 + $0xe0] sm:$0xff] }
 0x123   : > { %v699_v30 = vadd.f32 %v6363_v52, %v6521_v42  ;;  %v702_v52 = vadd.f32 %v6372_v44, %v6521_v42  ;;  %1335 = vmatpush.msra.mxu1 %v1263_v49 }
 0x125   : > { %934 = vmatmul.f32.gmra.mxu3 %v6497_v27  ;;  %v6518_v27 = vld [vmem:[%s6002_s13 + $0x1f8] sm:$0xff]  ;;  %v764_v22 = vadd.f32 %v6421_v17, %v699_v30  ;;  %v767_v17 = vadd.f32 %v6446_v46, %v702_v52 }
 0x126   : > { %9796 = vst [vmem:[#allocation17_spill] sm:$0xff] %v6518_v27 }
 0x127   : > { %1034 = vmatmul.f32.gmra.mxu1 %v6119_v53 }
 0x128   : > { %v6512_v58 = vpop.f32.mrf.mxu3  ;;  %999 = vmatmul.f32.gmra.mxu0 %v6301_v50 }
 0x129   : > { %9795 = vst [vmem:[#allocation16_spill] sm:$0xff] %v6512_v58  ;;  %v828_v58 = vpop.f32.mrf.mxu0  ;;  %v6555_v44 = vpop.f32.mrf.mxu2 }
 0x12a   : > { %1102 = vmatmul.f32.gmra.mxu2 %v6130_v57  ;;  %v1262_v57 = vld [vmem:[%s9678_s3 + $0xd8] sm:$0xff] }
 0x12b   : > { %1336 = vmatpush.msra.mxu1 %v1262_v57 }
 0x12d   : > { %937 = vmatmul.f32.gmra.mxu3 %v6518_v27  ;;  %v829_v27 = vadd.f32 %v828_v58, %v764_v22 }
 0x12f   : > { %1037 = vmatmul.f32.gmra.mxu1 %v6139_v61 }
 0x130   : > { %v6531_v50 = vpop.f32.mrf.mxu3  ;;  %1002 = vmatmul.f32.gmra.mxu0 %v6317_v8 }
 0x131   : > { %9797 = vst [vmem:[#allocation18_spill] sm:$0xff] %v6531_v50  ;;  %v831_v8 = vpop.f32.mrf.mxu0  ;;  %v6548_v50 = vpop.f32.mrf.mxu1 }
 0x132   : > { %v832_v58 = vadd.f32 %v831_v8, %v767_v17  ;;  %1105 = vmatmul.f32.gmra.mxu2 %v6150_v1  ;;  %v1261_v1 = vld [vmem:[%s9678_s3 + $0xd0] sm:$0xff] }
 0x133   : > { %1337 = vmatpush.msra.mxu1 %v1261_v1 }
 0x135   : > { %1152 = vmatmul.f32.vlgmr.msra.gmra.mxu3 %v6333_v40  ;;  %v705_v40 = vadd.f32 %v6384_v33, %v6521_v42 }
 0x137   : > { %v770_v61 = vadd.f32 %v6475_v24, %v705_v40  ;;  %1040 = vmatmul.f32.gmra.mxu1 %v6159_v7  ;;  %v6576_v24 = vpop.f32.mrf.mxu2 }
 0x138   : > { %v893_v31 = vpop.f32.mrf.mxu3 }
 0x139   : > { %v894_v30 = vadd.f32 %v893_v31, %v829_v27  ;;  %v834_v22 = vpop.f32.mrf.mxu0  ;;  %v6569_v52 = vpop.f32.mrf.mxu1 }
 0x13a   : > { %v835_v49 = vadd.f32 %v834_v22, %v770_v61  ;;  %1108 = vmatmul.f32.gmra.mxu2 %v6170_v11  ;;  %v711_v11 = vadd.f32 %v6356_v60, %v6521_v42  ;;  %v1259_v60 = vld [vmem:[%s9678_s3 + $0xc0] sm:$0xff] }
 0x13b   : > { %v6550_v53 = vmax.f32 %v894_v30, 0.0  ;;  %v1260_v30 = vld [vmem:[%s9678_s3 + $0xc8] sm:$0xff] }
 0x13c   : > { %1338 = vmatpush.msra.mxu1 %v1260_v30 }
 0x13d   : > { %1155 = vmatmul.f32.gmra.mxu3 %v6338_v55  ;;  %1283 = vmatmul.f32.vlgmr.msra.gmra.mxu0 %v6550_v53  ;;  %v708_v55 = vadd.f32 %v6396_v5, %v6521_v42 }
 0x13e   : > { %1339 = vmatpush.msra.mxu1 %v1259_v60 }
 0x13f   : > { %v773_v8 = vadd.f32 %v772_v20, %v708_v55  ;;  %1043 = vmatmul.f32.gmra.mxu1 %v6179_v14  ;;  %v6592_v14 = vpop.f32.mrf.mxu2 }
 0x140   : > { %v896_v46 = vpop.f32.mrf.mxu3 }
 0x141   : > { %v897_v27 = vadd.f32 %v896_v46, %v832_v58  ;;  %v837_v17 = vpop.f32.mrf.mxu0  ;;  %v6589_v20 = vpop.f32.mrf.mxu1  ;;  %v714_v46 = vadd.f32 %v6365_v13, %v6521_v42 }
 0x142   : > { %1111 = vmatmul.f32.gmra.mxu2 %v6190_v18 }
 0x143   : > { %v6564_v33 = vmax.f32 %v897_v27, 0.0 }
 0x145   : > { %1158 = vmatmul.f32.gmra.mxu3 %v6343_v15  ;;  %1286 = vmatmul.f32.gmra.mxu0 %v6564_v33  ;;  %v838_v15 = vadd.f32 %v837_v17, %v773_v8 }
 0x147   : > { %1046 = vmatmul.f32.gmra.mxu1 %v6199_v23  ;;  %v6610_v27 = vpop.f32.mrf.mxu2 }
 0x148   : > { %v899_v7 = vpop.f32.mrf.mxu3 }
 0x149   : > { %v900_v31 = vadd.f32 %v899_v7, %v835_v49  ;;  %v6607_v61 = vpop.f32.mrf.mxu1 }
 0x14a   : > { %1114 = vmatmul.f32.gmra.mxu2 %v6210_v26  ;;  %v1258_v26 = vld [vmem:[%s9678_s3 + $0xb8] sm:$0xff] }
 0x14b   : > { %v6579_v5 = vmax.f32 %v900_v31, 0.0  ;;  %1340 = vmatpush.msra.mxu1 %v1258_v26  ;;  %v6657_v31 = vpop.f32.mrf.mxu0 }
 0x14d   : > { %1161 = vmatmul.f32.gmra.mxu3 %v6348_v37  ;;  %1289 = vmatmul.f32.gmra.mxu0 %v6579_v5  ;;  %v776_v37 = vadd.f32 %v6484_v43, %v711_v11 }
 0x14f   : > { %v841_v18 = vadd.f32 %v6490_v16, %v776_v37  ;;  %1049 = vmatmul.f32.gmra.mxu1 %v6219_v2  ;;  %v717_v16 = vadd.f32 %v6374_v4, %v6521_v42  ;;  %v6630_v1 = vpop.f32.mrf.mxu2 }
 0x150   : > { %v902_v40 = vpop.f32.mrf.mxu3 }
 0x151   : > { %v903_v58 = vadd.f32 %v902_v40, %v838_v15  ;;  %v782_v2 = vadd.f32 %v6534_v39, %v717_v16  ;;  %v6625_v49 = vpop.f32.mrf.mxu1  ;;  %v720_v39 = vadd.f32 %v6381_v29, %v6521_v42  ;;  %v1256_v29 = vld [vmem:[%s9678_s3 + $0xa8] sm:$0xff] }
 0x152   : > { %1117 = vmatmul.f32.gmra.mxu2 %v6230_v6  ;;  %v1257_v6 = vld [vmem:[%s9678_s3 + $0xb0] sm:$0xff] }
 0x153   : > { %v6595_v57 = vmax.f32 %v903_v58, 0.0  ;;  %1341 = vmatpush.msra.mxu1 %v1257_v6  ;;  %v847_v4 = vadd.f32 %v6537_v9, %v782_v2  ;;  %v785_v7 = vadd.f32 %v6548_v50, %v720_v39  ;;  %v723_v9 = vadd.f32 %v6390_v56, %v6521_v42  ;;  %v1255_v56 = vld [vmem:[%s9678_s3 + $0xa0] sm:$0xff] }
 0x155   : > { %1164 = vmatmul.f32.gmra.mxu3 %v6353_v47  ;;  %1292 = vmatmul.f32.gmra.mxu0 %v6595_v57  ;;  %v779_v47 = vadd.f32 %v6504_v25, %v714_v46  ;;  %v788_v17 = vadd.f32 %v6569_v52, %v723_v9 }
 0x156   : > { %1342 = vmatpush.msra.mxu1 %v1256_v29 }
 0x157   : > { %v844_v13 = vadd.f32 %v6515_v10, %v779_v47  ;;  %1052 = vmatmul.f32.gmra.mxu1 %v6239_v32  ;;  %v6655_v50 = vpop.f32.mrf.mxu2 }
 0x158   : > { %v905_v43 = vpop.f32.mrf.mxu3  ;;  %1343 = vmatpush.msra.mxu1 %v1255_v56  ;;  %v9809_v56 = vld [vmem:[#allocation12_spill] sm:$0xff] }
 0x159   : > { %v906_v23 = vadd.f32 %v905_v43, %v841_v18  ;;  %v9801_v43 = vld [vmem:[#allocation8_spill] sm:$0xff] }
 0x15a   : > { %1120 = vmatmul.f32.gmra.mxu2 %v6250_v19  ;;  %v850_v19 = vadd.f32 %v6555_v44, %v785_v7  ;;  %v853_v44 = vadd.f32 %v6576_v24, %v788_v17  ;;  %v729_v24 = vadd.f32 %v6426_v21, %v6521_v42 }
 0x15b   : > { %v6612_v22 = vmax.f32 %v906_v23, 0.0  ;;  %v9802_v23 = vld [vmem:[#allocation11_spill] sm:$0xff] }
 0x15d   : > { %1167 = vmatmul.f32.gmra.mxu3 %v6360_v63  ;;  %1295 = vmatmul.f32.gmra.mxu0 %v6612_v22 }
 0x15f   : > { %1055 = vmatmul.f32.gmra.mxu1 %v6259_v35  ;;  %v6673_v11 = vpop.f32.mrf.mxu2 }
 0x160   : > { %v908_v25 = vpop.f32.mrf.mxu3 }
 0x161   : > { %v909_v55 = vadd.f32 %v908_v25, %v844_v13 }
 0x162   : > { %1123 = vmatmul.f32.gmra.mxu2 %v6270_v28  ;;  %v726_v28 = vadd.f32 %v6405_v51, %v6521_v42 }
 0x163   : > { %v6627_v63 = vmax.f32 %v909_v55, 0.0  ;;  %v9805_v55 = vld [vmem:[#allocation10_spill] sm:$0xff] }
 0x164   : > { %v791_v40 = vadd.f32 %v6589_v20, %v726_v28 }
 0x165   : > { %1170 = vmatmul.f32.gmra.mxu3 %v6369_v38  ;;  %1298 = vmatmul.f32.gmra.mxu0 %v6627_v63  ;;  %v6645_v38 = vpop.f32.mrf.mxu1 }
 0x166   : > { %v856_v51 = vadd.f32 %v6592_v14, %v791_v40  ;;  %v732_v14 = vadd.f32 %v6448_v59, %v6521_v42  ;;  %v1252_v59 = vld [vmem:[%s9678_s3 + $0x88] sm:$0xff] }
 0x167   : > { %1058 = vmatmul.f32.gmra.mxu1 %v6279_v36  ;;  %v6675_v36 = vpop.f32.mrf.mxu0 }
 0x168   : > { %v911_v10 = vpop.f32.mrf.mxu3  ;;  %v797_v13 = vadd.f32 %v6625_v49, %v732_v14  ;;  %v735_v49 = vadd.f32 %v6469_v34, %v6521_v42  ;;  %v9807_v34 = vld [vmem:[#allocation13_spill] sm:$0xff] }
 0x169   : > { %v912_v32 = vadd.f32 %v911_v10, %v847_v4 }
 0x16a   : > { %1126 = vmatmul.f32.gmra.mxu2 %v6288_v41  ;;  %v1254_v41 = vld [vmem:[%s9678_s3 + $0x98] sm:$0xff]  ;;  %v800_v10 = vadd.f32 %v6645_v38, %v735_v49 }
 0x16b   : > { %v6642_v8 = vmax.f32 %v912_v32, 0.0  ;;  %1344 = vmatpush.msra.mxu1 %v1254_v41 }
 0x16d   : > { %1173 = vmatmul.f32.gmra.mxu3 %v6378_v48  ;;  %1301 = vmatmul.f32.gmra.mxu0 %v6642_v8  ;;  %v802_v30 = vpop.f32.mrf.mxu1 }
 0x16f   : > { %1061 = vmatmul.f32.gmra.mxu1 %v6296_v45  ;;  %v794_v45 = vadd.f32 %v6607_v61, %v729_v24  ;;  %v6691_v18 = vpop.f32.mrf.mxu0  ;;  %v9803_v61 = vld [vmem:[#allocation9_spill] sm:$0xff] }
 0x170   : > { %v914_v35 = vpop.f32.mrf.mxu3 }
 0x171   : > { %v915_v48 = vadd.f32 %v914_v35, %v850_v19  ;;  %v859_v21 = vadd.f32 %v6610_v27, %v794_v45  ;;  %v862_v27 = vadd.f32 %v6630_v1, %v797_v13  ;;  %v865_v1 = vadd.f32 %v6655_v50, %v800_v10  ;;  %v9810_v50 = vld [vmem:[#allocation16_spill] sm:$0xff]  ;;  %v9813_v45 = vld [vmem:[#allocation18_spill] sm:$0xff]  ;;  %v9816_v13 = vld [vmem:[#allocation17_spill] sm:$0xff] }
 0x172   : > { %1129 = vmatmul.f32.gmra.mxu2 %v6304_v54  ;;  %v1253_v54 = vld [vmem:[%s9678_s3 + $0x90] sm:$0xff]  ;;  %v738_v19 = vadd.f32 %v9807_v34, %v6521_v42 }
 0x173   : > { %v6661_v15 = vmax.f32 %v915_v48, 0.0  ;;  %1345 = vmatpush.msra.mxu1 %v1253_v54  ;;  %v9814_v54 = vld [vmem:[#allocation15_spill] sm:$0xff] }
 0x174   : > { %v803_v48 = vadd.f32 %v802_v30, %v738_v19 }
 0x175   : > { %9798 = vst [vmem:[#allocation19_spill] sm:$0xff] %v6661_v15  ;;  %1176 = vmatmul.f32.gmra.mxu3 %v6387_v0  ;;  %1304 = vmatmul.f32.gmra.mxu0 %v6661_v15  ;;  %v805_v37 = vpop.f32.mrf.mxu1 }
 0x176   : > { %1346 = vmatpush.msra.mxu1 %v1252_v59  ;;  %v868_v28 = vadd.f32 %v6673_v11, %v803_v48 }
 0x177   : > { %1064 = vmatmul.f32.gmra.mxu1 %v9801_v43  ;;  %v6709_v6 = vpop.f32.mrf.mxu0  ;;  %v744_v43 = vadd.f32 %v9813_v45, %v6521_v42 }
 0x178   : > { %v917_v52 = vpop.f32.mrf.mxu3 }
 0x179   : > { %v918_v0 = vadd.f32 %v917_v52, %v853_v44  ;;  %v741_v52 = vadd.f32 %v9810_v50, %v6521_v42 }
 0x17a   : > { %1132 = vmatmul.f32.gmra.mxu2 %v9803_v61 }
 0x17b   : > { %v6678_v58 = vmax.f32 %v918_v0, 0.0 }
 0x17d   : > { %9799 = vst [vmem:[#allocation20_spill] sm:$0xff] %v6678_v58  ;;  %1179 = vmatmul.f32.gmra.mxu3 %v6394_v12  ;;  %1307 = vmatmul.f32.gmra.mxu0 %v6678_v58  ;;  %v870_v12 = vpop.f32.mrf.mxu2  ;;  %v808_v16 = vpop.f32.mrf.mxu1 }
 0x17e   : > { %v809_v61 = vadd.f32 %v808_v16, %v744_v43 }
 0x17f   : > { %1067 = vmatmul.f32.gmra.mxu1 %v9805_v55  ;;  %v6730_v9 = vpop.f32.mrf.mxu0 }
 0x180   : > { %v920_v20 = vpop.f32.mrf.mxu3 }
 0x181   : > { %v921_v60 = vadd.f32 %v920_v20, %v856_v51  ;;  %v806_v51 = vadd.f32 %v805_v37, %v741_v52  ;;  %v9812_v20 = vld [vmem:[#allocation14_spill] sm:$0xff] }
 0x183   : > { %v6693_v46 = vmax.f32 %v921_v60, 0.0  ;;  %v871_v60 = vadd.f32 %v870_v12, %v806_v51 }
 0x185   : > { %9800 = vst [vmem:[#allocation21_spill] sm:$0xff] %v6693_v46  ;;  %1182 = vmatmul.f32.gmra.mxu3 %v9802_v23  ;;  %1310 = vmatmul.f32.gmra.mxu0 %v6693_v46  ;;  %v873_v2 = vpop.f32.mrf.mxu2  ;;  %v1023_v7 = vpop.f32.mrf.mxu1 }
 0x186   : > { %v874_v42 = vadd.f32 %v873_v2, %v809_v61 }
 0x187   : > { %v6739_v40 = vpop.f32.mrf.mxu0 }
 0x188   : > { %v923_v47 = vpop.f32.mrf.mxu3 }
 0x189   : > { %v924_v26 = vadd.f32 %v923_v47, %v859_v21  ;;  %v6748_v21 = vperm.slane %v9814_v54, 1 }
 0x18b   : > { %v6706_v25 = vmax.f32 %v924_v26, 0.0  ;;  %v959_v26 = vadd.f32 %v6657_v31, %v6748_v21  ;;  %v962_v16 = vadd.f32 %v6675_v36, %v6748_v21 }
 0x18d   : > { %9804 = vst [vmem:[#allocation8_spill] sm:$0xff] %v6706_v25  ;;  %1185 = vmatmul.f32.gmra.mxu3 %v6433_v62  ;;  %1313 = vmatmul.f32.gmra.mxu0 %v6706_v25  ;;  %v1251_v62 = vld [vmem:[%s9678_s3 + $0x80] sm:$0xff]  ;;  %v1088_v29 = vpop.f32.mrf.mxu2 }
 0x18e   : > { %1347 = vmatpush.msra.mxu1 %v1251_v62 }
 0x18f   : > { %v6750_v47 = vpop.f32.mrf.mxu0 }
 0x190   : > { %v926_v4 = vpop.f32.mrf.mxu3 }
 0x191   : > { %v927_v39 = vadd.f32 %v926_v4, %v862_v27  ;;  %v1024_v27 = vadd.f32 %v1023_v7, %v959_v26  ;;  %v965_v7 = vadd.f32 %v6691_v18, %v6748_v21 }
 0x193   : > { %v6720_v32 = vmax.f32 %v927_v39, 0.0  ;;  %v1089_v10 = vadd.f32 %v1088_v29, %v1024_v27  ;;  %v968_v29 = vadd.f32 %v6709_v6, %v6748_v21 }
 0x195   : > { %9806 = vst [vmem:[#allocation11_spill] sm:$0xff] %v6720_v32  ;;  %1188 = vmatmul.f32.gmra.mxu3 %v6455_v3  ;;  %1316 = vmatmul.f32.gmra.mxu0 %v6720_v32  ;;  %v1026_v3 = vpop.f32.mrf.mxu1  ;;  %v1091_v44 = vpop.f32.mrf.mxu2 }
 0x196   : > { %v1027_v34 = vadd.f32 %v1026_v3, %v962_v16 }
 0x197   : > { %v979_v39 = vpop.f32.mrf.mxu0 }
 0x198   : > { %v929_v38 = vpop.f32.mrf.mxu3 }
 0x199   : > { %v930_v35 = vadd.f32 %v929_v38, %v865_v1  ;;  %v1092_v38 = vadd.f32 %v1091_v44, %v1027_v34  ;;  %v971_v44 = vadd.f32 %v6730_v9, %v6748_v21 }
 0x19b   : > { %v6732_v17 = vmax.f32 %v930_v35, 0.0 }
 0x19d   : > { %9808 = vst [vmem:[#allocation9_spill] sm:$0xff] %v6732_v17  ;;  %1191 = vmatmul.f32.gmra.mxu3 %v9809_v56  ;;  %1319 = vmatmul.f32.gmra.mxu0 %v6732_v17  ;;  %v1029_v30 = vpop.f32.mrf.mxu1  ;;  %v1094_v23 = vpop.f32.mrf.mxu2 }
 0x19e   : > { %v1030_v36 = vadd.f32 %v1029_v30, %v965_v7 }
 0x1a0   : > { %v932_v0 = vpop.f32.mrf.mxu3  ;;  %v1095_v3 = vadd.f32 %v1094_v23, %v1030_v36  ;;  %v974_v23 = vadd.f32 %v6739_v40, %v6748_v21  ;;  %v977_v40 = vadd.f32 %v6750_v47, %v6748_v21 }
 0x1a1   : > { %v933_v41 = vadd.f32 %v932_v0, %v868_v28 }
 0x1a3   : > { %v6741_v24 = vmax.f32 %v933_v41, 0.0 }
 0x1a5   : > { %9811 = vst [vmem:[#allocation10_spill] sm:$0xff] %v6741_v24  ;;  %1194 = vmatmul.f32.gmra.mxu3 %v9812_v20  ;;  %1322 = vmatmul.f32.gmra.mxu0 %v6741_v24  ;;  %v1032_v12 = vpop.f32.mrf.mxu1  ;;  %v1097_v49 = vpop.f32.mrf.mxu2 }
 0x1a6   : > { %v1033_v41 = vadd.f32 %v1032_v12, %v968_v29  ;;  %v5424_v12 = vld [vmem:[%s9679_s4 + $0x8] sm:$0xff] }
 0x1a8   : > { %v935_v11 = vpop.f32.mrf.mxu3  ;;  %v1098_v30 = vadd.f32 %v1097_v49, %v1033_v41  ;;  %v982_v49 = vpop.f32.mrf.mxu0 }
 0x1a9   : > { %v936_v14 = vadd.f32 %v935_v11, %v871_v60  ;;  %v2101_v11 = vld [vmem:[%s9679_s4] sm:$0xff]  ;;  %v983_v29 = vadd.f32 %v982_v49, %v6748_v21 }
 0x1aa   : > { %2103 = vst [vmem:[#allocation1] ss:$2 sm:$0xff] %v2101_v11 }
 0x1ab   : > { %v6752_v37 = vmax.f32 %v936_v14, 0.0 }
 0x1ad   : > { %9815 = vst [vmem:[#allocation13_spill] sm:$0xff] %v6752_v37  ;;  %1197 = vmatmul.f32.gmra.mxu3 %v9816_v13  ;;  %1325 = vmatmul.f32.gmra.mxu0 %v6752_v37  ;;  %v1035_v62 = vpop.f32.mrf.mxu1  ;;  %v1100_v2 = vpop.f32.mrf.mxu2 }
 0x1ae   : > { %v1036_v6 = vadd.f32 %v1035_v62, %v971_v44 }
 0x1b0   : > { %v938_v55 = vpop.f32.mrf.mxu3  ;;  %v1101_v9 = vadd.f32 %v1100_v2, %v1036_v6  ;;  %v980_v2 = vadd.f32 %v979_v39, %v6748_v21  ;;  %v985_v47 = vpop.f32.mrf.mxu0 }
 0x1b1   : > { %v939_v59 = vadd.f32 %v938_v55, %v874_v42  ;;  %v2104_v55 = vld.sshfl [vmem:[#allocation1] sm:$0xff pattern:$0x75316420] }
 0x1b2   : > { %5340 = vmatpush.msk.msra.mxu2 %vm2155_vm0, %v2104_v55 }
 0x1b3   : > { %v6758_v4 = vmax.f32 %v939_v59, 0.0  ;;  %v2105_v59 = vld.sshfl [vmem:[#allocation1 + $0x8] sm:$0xff pattern:$0x75316420] }
 0x1b4   : > { %5357 = vmatpush.msk.msrb.mxu3 %vm2155_vm0, %v2105_v59  ;;  %3709 = vst [vmem:[#allocation1] ss:$2 sm:$0xff] %v5424_v12 }
 0x1b5   : > { %9817 = vst [vmem:[#allocation12_spill] sm:$0xff] %v6758_v4  ;;  %1328 = vmatmul.f32.gmra.mxu0 %v6758_v4  ;;  %v1038_v56 = vpop.f32.mrf.mxu1  ;;  %v1103_v50 = vpop.f32.mrf.mxu2 }
 0x1b6   : > { %v1039_v26 = vadd.f32 %v1038_v56, %v974_v23 }
 0x1b8   : > { %v1153_v31 = vpop.f32.mrf.mxu3  ;;  %v1104_v27 = vadd.f32 %v1103_v50, %v1039_v26  ;;  %v988_v39 = vpop.f32.mrf.mxu0 }
 0x1b9   : > { %v1154_v1 = vadd.f32 %v1153_v31, %v1089_v10 }
 0x1bb   : > { %v6763_v19 = vmax.f32 %v1154_v1, 0.0 }
 0x1bd   : > { %1348 = vmatmul.f32.vlgmr.msra.gmra.mxu1 %v6763_v19  ;;  %v1041_v51 = vpop.f32.mrf.mxu1  ;;  %v1106_v60 = vpop.f32.mrf.mxu2 }
 0x1be   : > { %v1042_v62 = vadd.f32 %v1041_v51, %v977_v40 }
 0x1c0   : > { %v1156_v35 = vpop.f32.mrf.mxu3  ;;  %v1107_v7 = vadd.f32 %v1106_v60, %v1042_v62 }
 0x1c1   : > { %v1157_v48 = vadd.f32 %v1156_v35, %v1092_v38 }
 0x1c3   : > { %v6768_v28 = vmax.f32 %v1157_v48, 0.0 }
 0x1c5   : > { %1351 = vmatmul.f32.gmra.mxu1 %v6768_v28  ;;  %v1044_v54 = vpop.f32.mrf.mxu1  ;;  %v1109_v13 = vpop.f32.mrf.mxu2 }
 0x1c6   : > { %v1045_v48 = vadd.f32 %v1044_v54, %v980_v2  ;;  %v989_v54 = vadd.f32 %v988_v39, %v6748_v21 }
 0x1c8   : > { %v1159_v52 = vpop.f32.mrf.mxu3 }
 0x1c9   : > { %v1160_v0 = vadd.f32 %v1159_v52, %v1095_v3  ;;  %v1110_v3 = vadd.f32 %v1109_v13, %v1045_v48 }
 0x1cb   : > { %v6773_v18 = vmax.f32 %v1160_v0, 0.0 }
 0x1cd   : > { %1354 = vmatmul.f32.gmra.mxu1 %v6773_v18  ;;  %v1047_v10 = vpop.f32.mrf.mxu1  ;;  %v1112_v34 = vpop.f32.mrf.mxu2 }
 0x1ce   : > { %v1048_v41 = vadd.f32 %v1047_v10, %v983_v29 }
 0x1d0   : > { %v1162_v20 = vpop.f32.mrf.mxu3 }
 0x1d1   : > { %v1163_v45 = vadd.f32 %v1162_v20, %v1098_v30  ;;  %v986_v30 = vadd.f32 %v985_v47, %v6748_v21  ;;  %v1113_v20 = vadd.f32 %v1112_v34, %v1048_v41 }
 0x1d3   : > { %v6778_v43 = vmax.f32 %v1163_v45, 0.0 }
 0x1d5   : > { %1357 = vmatmul.f32.gmra.mxu1 %v6778_v43  ;;  %v1050_v36 = vpop.f32.mrf.mxu1  ;;  %v1115_v50 = vpop.f32.mrf.mxu2 }
 0x1d6   : > { %v1051_v11 = vadd.f32 %v1050_v36, %v986_v30 }
 0x1d8   : > { %v1165_v14 = vpop.f32.mrf.mxu3 }
 0x1d9   : > { %v1166_v61 = vadd.f32 %v1165_v14, %v1101_v9  ;;  %v991_v9 = vpop.f32.mrf.mxu0  ;;  %v1116_v14 = vadd.f32 %v1115_v50, %v1051_v11 }
 0x1da   : > { %v992_v40 = vadd.f32 %v991_v9, %v6748_v21 }
 0x1db   : > { %v6789_v42 = vmax.f32 %v1166_v61, 0.0 }
 0x1dd   : > { %1360 = vmatmul.f32.gmra.mxu1 %v6789_v42  ;;  %v1053_v44 = vpop.f32.mrf.mxu1  ;;  %v1118_v45 = vpop.f32.mrf.mxu2 }
 0x1de   : > { %v1054_v12 = vadd.f32 %v1053_v44, %v989_v54 }
 0x1e0   : > { %v1168_v16 = vpop.f32.mrf.mxu3 }
 0x1e1   : > { %v1169_v31 = vadd.f32 %v1168_v16, %v1104_v27  ;;  %v1119_v27 = vadd.f32 %v1118_v45, %v1054_v12  ;;  %v994_v49 = vpop.f32.mrf.mxu0 }
 0x1e3   : > { %v6796_v1 = vmax.f32 %v1169_v31, 0.0 }
 0x1e5   : > { %1363 = vmatmul.f32.gmra.mxu1 %v6796_v1  ;;  %v1056_v61 = vpop.f32.mrf.mxu1  ;;  %v1121_v55 = vpop.f32.mrf.mxu2 }
 0x1e6   : > { %v1057_v62 = vadd.f32 %v1056_v61, %v992_v40 }
 0x1e8   : > { %v1171_v38 = vpop.f32.mrf.mxu3  ;;  %v1122_v47 = vadd.f32 %v1121_v55, %v1057_v62 }
 0x1e9   : > { %v1172_v35 = vadd.f32 %v1171_v38, %v1107_v7  ;;  %v995_v7 = vadd.f32 %v994_v49, %v6748_v21  ;;  %v997_v38 = vpop.f32.mrf.mxu0 }
 0x1ea   : > { %v998_v50 = vadd.f32 %v997_v38, %v6748_v21 }
 0x1eb   : > { %v6800_v56 = vmax.f32 %v1172_v35, 0.0 }
 0x1ed   : > { %9818 = vst [vmem:[#allocation16_spill] sm:$0xff] %v6800_v56  ;;  %1366 = vmatmul.f32.gmra.mxu1 %v6800_v56  ;;  %v1059_v10 = vpop.f32.mrf.mxu1  ;;  %v1124_v2 = vpop.f32.mrf.mxu2 }
 0x1ee   : > { %v1060_v36 = vadd.f32 %v1059_v10, %v995_v7 }
 0x1f0   : > { %v1174_v52 = vpop.f32.mrf.mxu3 }
 0x1f1   : > { %v1175_v0 = vadd.f32 %v1174_v52, %v1110_v3  ;;  %v1125_v52 = vadd.f32 %v1124_v2, %v1060_v36  ;;  %v1000_v30 = vpop.f32.mrf.mxu0 }
 0x1f2   : > { %v1001_v45 = vadd.f32 %v1000_v30, %v6748_v21 }
 0x1f3   : > { %v6804_v51 = vmax.f32 %v1175_v0, 0.0 }
 0x1f5   : > { %9819 = vst [vmem:[#allocation14_spill] sm:$0xff] %v6804_v51  ;;  %1369 = vmatmul.f32.gmra.mxu1 %v6804_v51  ;;  %v1062_v29 = vpop.f32.mrf.mxu1  ;;  %v1127_v0 = vpop.f32.mrf.mxu2 }
 0x1f6   : > { %v1063_v44 = vadd.f32 %v1062_v29, %v998_v50 }
 0x1f8   : > { %v1177_v60 = vpop.f32.mrf.mxu3 }
 0x1f9   : > { %v1178_v6 = vadd.f32 %v1177_v60, %v1113_v20 }
 0x1fb   : > { %v6808_v23 = vmax.f32 %v1178_v6, 0.0  ;;  %v1128_v6 = vadd.f32 %v1127_v0, %v1063_v44 }
 0x1fd   : > { %9820 = vst [vmem:[#allocation18_spill] sm:$0xff] %v6808_v23  ;;  %1372 = vmatmul.f32.gmra.mxu1 %v6808_v23  ;;  %v1065_v60 = vpop.f32.mrf.mxu1  ;;  %v1130_v9 = vpop.f32.mrf.mxu2 }
 0x200   : > { %v1180_v26 = vpop.f32.mrf.mxu3 }
 0x201   : > { %v1181_v13 = vadd.f32 %v1180_v26, %v1116_v14  ;;  %v1066_v14 = vadd.f32 %v1065_v60, %v1001_v45  ;;  %v1003_v26 = vpop.f32.mrf.mxu0 }
 0x203   : > { %v6812_v59 = vmax.f32 %v1181_v13, 0.0  ;;  %v1004_v13 = vadd.f32 %v1003_v26, %v6748_v21  ;;  %v1131_v12 = vadd.f32 %v1130_v9, %v1066_v14 }
 0x205   : > { %9821 = vst [vmem:[#allocation15_spill] sm:$0xff] %v6812_v59  ;;  %1375 = vmatmul.f32.gmra.mxu1 %v6812_v59  ;;  %v1068_v55 = vpop.f32.mrf.mxu1 }
 0x206   : > { %v1069_v49 = vadd.f32 %v1068_v55, %v1004_v13 }
 0x208   : > { %v1183_v16 = vpop.f32.mrf.mxu3 }
 0x209   : > { %v1184_v31 = vadd.f32 %v1183_v16, %v1119_v27  ;;  %v1133_v16 = vpop.f32.mrf.mxu2  ;;  %v1284_v2 = vpop.f32.mrf.mxu0 }
 0x20b   : > { %v6816_v34 = vmax.f32 %v1184_v31, 0.0  ;;  %v1134_v31 = vadd.f32 %v1133_v16, %v1069_v49 }
 0x20d   : > { %9822 = vst [vmem:[#allocation17_spill] sm:$0xff] %v6816_v34  ;;  %1378 = vmatmul.f32.gmra.mxu1 %v6816_v34 }
 0x210   : > { %v1186_v35 = vpop.f32.mrf.mxu3 }
 0x211   : > { %v1187_v48 = vadd.f32 %v1186_v35, %v1122_v47  ;;  %v1287_v38 = vpop.f32.mrf.mxu0 }
 0x213   : > { %v6820_v3 = vmax.f32 %v1187_v48, 0.0 }
 0x215   : > { %9823 = vst [vmem:[#allocation22_spill] sm:$0xff] %v6820_v3  ;;  %1381 = vmatmul.f32.gmra.mxu1 %v6820_v3 }
 0x218   : > { %v1189_v41 = vpop.f32.mrf.mxu3 }
 0x219   : > { %v1190_v39 = vadd.f32 %v1189_v41, %v1125_v52 }
 0x21b   : > { %v6824_v20 = vmax.f32 %v1190_v39, 0.0  ;;  %v1290_v39 = vpop.f32.mrf.mxu0 }
 0x21d   : > { %9824 = vst [vmem:[#allocation23_spill] sm:$0xff] %v6824_v20  ;;  %1384 = vmatmul.f32.gmra.mxu1 %v6824_v20 }
 0x220   : > { %v1192_v11 = vpop.f32.mrf.mxu3 }
 0x221   : > { %v1193_v54 = vadd.f32 %v1192_v11, %v1128_v6 }
 0x223   : > { %v6828_v61 = vmax.f32 %v1193_v54, 0.0 }
 0x225   : > { %9825 = vst [vmem:[#allocation24_spill] sm:$0xff] %v6828_v61  ;;  %1387 = vmatmul.f32.gmra.mxu1 %v6828_v61 }
 0x228   : > { %v1195_v40 = vpop.f32.mrf.mxu3 }
 0x229   : > { %v1196_v27 = vadd.f32 %v1195_v40, %v1131_v12 }
 0x22b   : > { %v6832_v10 = vmax.f32 %v1196_v27, 0.0 }
 0x22d   : > { %9826 = vst [vmem:[#allocation25_spill] sm:$0xff] %v6832_v10  ;;  %1390 = vmatmul.f32.gmra.mxu1 %v6832_v10 }
 0x230   : > { %v1198_v62 = vpop.f32.mrf.mxu3 }
 0x231   : > { %v1199_v7 = vadd.f32 %v1198_v62, %v1134_v31 }
 0x233   : > { %v6835_v47 = vmax.f32 %v1199_v7, 0.0  ;;  %v1293_v7 = vpop.f32.mrf.mxu0 }
 0x235   : > { %9827 = vst [vmem:[#allocation26_spill] sm:$0xff] %v6835_v47  ;;  %1393 = vmatmul.f32.gmra.mxu1 %v6835_v47 }
 0x23a   : > { %v1349_v21 = vpop.f32.mrf.mxu1 }
 0x23b   : > { %v6838_v35 = vadd.f32 %v1349_v21, %v1284_v2 }
 0x23d   : > { %v6841_v48 = vmul.f32 0.70710677, %v6838_v35 }
 0x23f   : > { %v1429_v36 = vmul.f32 %v6841_v48, %v6841_v48 }
 0x241   : > { %v1430_v29 = vmin.f32 %v1429_v36, 16.0 }
 0x242   : > { %v1352_v50 = vpop.f32.mrf.mxu1 }
 0x243   : > { %v1431_v52 = vmul.f32 2.1237322e-06, %v1430_v29  ;;  %v1442_v0 = vmul.f32 3.8918573e-05, %v1430_v29  ;;  %v6845_v41 = vadd.f32 %v1352_v50, %v1287_v38 }
 0x245   : > { %v1432_v44 = vadd.f32 0.00028619796, %v1431_v52  ;;  %v1443_v30 = vadd.f32 0.001143296, %v1442_v0  ;;  %v6848_v60 = vmul.f32 0.70710677, %v6845_v41 }
 0x247   : > { %v1433_v45 = vmul.f32 %v1432_v44, %v1430_v29  ;;  %v1444_v6 = vmul.f32 %v1443_v30, %v1430_v29  ;;  %v1469_v11 = vmul.f32 %v6848_v60, %v6848_v60 }
 0x249   : > { %v1434_v9 = vadd.f32 0.0036580483, %v1433_v45  ;;  %v1445_v54 = vadd.f32 0.014752088, %v1444_v6  ;;  %v1470_v14 = vmin.f32 %v1469_v11, 16.0 }
 0x24a   : > { %v1355_v26 = vpop.f32.mrf.mxu1 }
 0x24b   : > { %v1435_v13 = vmul.f32 %v1434_v9, %v1430_v29  ;;  %v1446_v12 = vmul.f32 %v1445_v54, %v1430_v29  ;;  %v6852_v55 = vadd.f32 %v1355_v26, %v1290_v39  ;;  %v1471_v40 = vmul.f32 2.1237322e-06, %v1470_v14 }
 0x24c   : > { %v1482_v27 = vmul.f32 3.8918573e-05, %v1470_v14 }
 0x24d   : > { %v1436_v49 = vadd.f32 0.05243302, %v1435_v13  ;;  %v1447_v16 = vadd.f32 0.112945676, %v1446_v12  ;;  %v1472_v31 = vadd.f32 0.00028619796, %v1471_v40 }
 0x24e   : > { %v1483_v62 = vadd.f32 0.001143296, %v1482_v27  ;;  %v6855_v2 = vmul.f32 0.70710677, %v6852_v55 }
 0x24f   : > { %v1448_v21 = vmul.f32 %v1447_v16, %v1430_v29  ;;  %v1437_v38 = vmul.f32 %v1436_v49, %v1430_v29  ;;  %v1473_v36 = vmul.f32 %v1472_v31, %v1470_v14 }
 0x250   : > { %v1484_v50 = vmul.f32 %v1483_v62, %v1470_v14  ;;  %v1509_v52 = vmul.f32 %v6855_v2, %v6855_v2 }
 0x251   : > { %v1449_v0 = vadd.f32 0.4994258, %v1448_v21  ;;  %v1474_v39 = vadd.f32 0.0036580483, %v1473_v36  ;;  %v1438_v9 = vadd.f32 0.18741608, %v1437_v38  ;;  %v1296_v38 = vpop.f32.mrf.mxu0 }
 0x252   : > { %v1485_v44 = vadd.f32 0.014752088, %v1484_v50  ;;  %v6859_v30 = vmin.f32 %v1509_v52, 16.0  ;;  %v1358_v45 = vpop.f32.mrf.mxu1 }
 0x253   : > { %v1450_v6 = vmul.f32 %v1449_v0, %v1430_v29  ;;  %v6861_v11 = vadd.f32 %v1358_v45, %v1293_v7  ;;  %v1475_v54 = vmul.f32 %v1474_v39, %v1470_v14  ;;  %v1439_v62 = vmul.f32 %v1438_v9, %v1430_v29 }
 0x254   : > { %v1486_v26 = vmul.f32 %v1485_v44, %v1470_v14  ;;  %v1511_v13 = vmul.f32 2.1237322e-06, %v6859_v30  ;;  %v1522_v40 = vmul.f32 3.8918573e-05, %v6859_v30 }
 0x255   : > { %v1451_v12 = vadd.f32 1.0, %v1450_v6  ;;  %v6866_v27 = vmul.f32 0.70710677, %v6861_v11  ;;  %v1476_v49 = vadd.f32 0.05243302, %v1475_v54 }
 0x256   : > { %v1487_v16 = vadd.f32 0.112945676, %v1486_v26  ;;  %v1512_v31 = vadd.f32 0.00028619796, %v1511_v13  ;;  %v1523_v50 = vadd.f32 0.001143296, %v1522_v40 }
 0x257   : > { %5584 = vrcp.f32 %v1451_v12  ;;  %v1477_v21 = vmul.f32 %v1476_v49, %v1470_v14  ;;  %v1549_v52 = vmul.f32 %v6866_v27, %v6866_v27  ;;  %v1440_v26 = vadd.f32 1.1283791, %v1439_v62 }
 0x258   : > { %v1488_v36 = vmul.f32 %v1487_v16, %v1470_v14  ;;  %v1513_v7 = vmul.f32 %v1512_v31, %v6859_v30  ;;  %v1524_v6 = vmul.f32 %v1523_v50, %v6859_v30  ;;  %v1461_v13 = vand.u32 2147483647, %v1451_v12 }
 0x259   : > { %v1478_v0 = vadd.f32 0.18741608, %v1477_v21  ;;  %v6872_v54 = vmin.f32 %v1549_v52, 16.0  ;;  %vm1457_vm1 = vweird.f32 %v1451_v12 }
 0x25a   : > { %v1489_v39 = vadd.f32 0.4994258, %v1488_v36  ;;  %v1361_v44 = vpop.f32.mrf.mxu1  ;;  %v1514_v45 = vadd.f32 0.0036580483, %v1513_v7  ;;  %v1525_v31 = vadd.f32 0.014752088, %v1524_v6 }
 0x25b   : > { %v1479_v29 = vmul.f32 %v1478_v0, %v1470_v14  ;;  %v1551_v40 = vmul.f32 2.1237322e-06, %v6872_v54  ;;  %v1562_v47 = vmul.f32 3.8918573e-05, %v6872_v54  ;;  %v1463_v36 = vand.u32 2147483648, %v1451_v12 }
 0x25c   : > { %v1490_v9 = vmul.f32 %v1489_v39, %v1470_v14  ;;  %v1515_v16 = vmul.f32 %v1514_v45, %v6859_v30  ;;  %v1526_v52 = vmul.f32 %v1525_v31, %v6859_v30  ;;  %v1397_v14 = vmul.f32 0.5, %v6838_v35 }
 0x25d   : > { %v5585_v49 = vpop.eup %5584  ;;  %v1480_v4 = vadd.f32 1.1283791, %v1479_v29  ;;  %v1552_v62 = vadd.f32 0.00028619796, %v1551_v40  ;;  %v1563_v10 = vadd.f32 0.001143296, %v1562_v47  ;;  %v6882_v39 = vadd.f32 %v1361_v44, %v1296_v38  ;;  %v1299_v40 = vpop.f32.mrf.mxu0 }
 0x25e   : > { %v1453_v21 = vmul.f32 %v5585_v49, %v1451_v12  ;;  %v6877_v7 = vadd.f32 1.0, %v1490_v9  ;;  %v1516_v50 = vadd.f32 0.05243302, %v1515_v16  ;;  %v1441_v45 = vmul.f32 %v1440_v26, %v6841_v48 }
 0x25f   : > { %v1527_v29 = vadd.f32 0.112945676, %v1526_v52  ;;  %vm1458_vm2 = vweird.f32 %v5585_v49  ;;  %v1553_v16 = vmul.f32 %v1552_v62, %v6872_v54  ;;  %v1564_v31 = vmul.f32 %v1563_v10, %v6872_v54 }
 0x260   : > { %v1454_v0 = vsub.f32 1.0, %v1453_v21  ;;  %5586 = vrcp.f32 %v6877_v7  ;;  %v1517_v6 = vmul.f32 %v1516_v50, %v6859_v30  ;;  %vm6888_vm3 = vcmp.eq.f32.partialorder %v1461_v13, 8.507059e+37  ;;  %vm1459_vm4 = vmor %vm1457_vm1, %vm1458_vm2 }
 0x261   : > { %v1464_v38 = vor.u32 1.1754944e-38, %v1463_v36  ;;  %v1481_v44 = vmul.f32 %v1480_v4, %v6848_v60  ;;  %v1528_v48 = vmul.f32 %v1527_v29, %v6859_v30  ;;  %v1554_v21 = vadd.f32 0.0036580483, %v1553_v16 }
 0x262   : > { %v1455_v9 = vmul.f32 %v5585_v49, %v1454_v0  ;;  %v1364_v47 = vpop.f32.mrf.mxu1  ;;  %v1565_v50 = vadd.f32 0.014752088, %v1564_v31  ;;  %v6895_v52 = vmul.f32 0.70710677, %v6882_v39  ;;  %vm1497_vm5 = vweird.f32 %v6877_v7 }
 0x263   : > { %v1501_v10 = vand.u32 2147483647, %v6877_v7  ;;  %v1518_v13 = vadd.f32 0.18741608, %v1517_v6  ;;  %v1529_v62 = vadd.f32 0.4994258, %v1528_v48  ;;  %v1555_v4 = vmul.f32 %v1554_v21, %v6872_v54 }
 0x264   : > { %v1456_v26 = vadd.f32 %v5585_v49, %v1455_v9  ;;  %v1566_v60 = vmul.f32 %v1565_v50, %v6872_v54  ;;  %v1589_v29 = vmul.f32 %v6895_v52, %v6895_v52  ;;  %v1503_v16 = vand.u32 2147483648, %v6877_v7 }
 0x265   : > { %v6908_v31 = vadd.f32 %v1364_v47, %v1299_v40  ;;  %v1530_v48 = vmul.f32 %v1529_v62, %v6859_v30  ;;  %vm6911_vm6 = vcmp.eq.f32.partialorder %v1501_v10, 8.507059e+37  ;;  %v1519_v37 = vmul.f32 %v1518_v13, %v6859_v30  ;;  %v1302_v13 = vpop.f32.mrf.mxu0 }
 0x266   : > { %v5587_v0 = vpop.eup %5586  ;;  %v1460_v36 = vsel %vm1459_vm4, %v5585_v49, %v1456_v26  ;;  %v1556_v49 = vadd.f32 0.05243302, %v1555_v4  ;;  %v1567_v26 = vadd.f32 0.112945676, %v1566_v60  ;;  %v6916_v35 = vmin.f32 %v1589_v29, 16.0 }
 0x267   : > { %v1465_v9 = vsel %vm6888_vm3, %v1464_v38, %v1460_v36  ;;  %v1493_v12 = vmul.f32 %v5587_v0, %v6877_v7  ;;  %v6918_v36 = vadd.f32 1.0, %v1530_v48  ;;  %vm1498_vm7 = vweird.f32 %v5587_v0 }
 0x268   : > { %v1466_v6 = vmul.f32 %v1465_v9, %v1441_v45  ;;  %v1557_v47 = vmul.f32 %v1556_v49, %v6872_v54  ;;  %v1568_v45 = vmul.f32 %v1567_v26, %v6872_v54  ;;  %v1591_v62 = vmul.f32 2.1237322e-06, %v6916_v35  ;;  %vm1499_vm9 = vmor %vm1497_vm5, %vm1498_vm7 }
 0x269   : > { %v1494_v21 = vsub.f32 1.0, %v1493_v12  ;;  %v1602_v10 = vmul.f32 3.8918573e-05, %v6916_v35  ;;  %v1504_v9 = vor.u32 1.1754944e-38, %v1503_v16  ;;  %5588 = vrcp.f32 %v6918_v36 }
 0x26a   : > { %v5324_v38 = vclamps-f32 %v1466_v6, 1.0  ;;  %v1367_v4 = vpop.f32.mrf.mxu1  ;;  %v6926_v30 = vmul.f32 0.70710677, %v6908_v31  ;;  %v1558_v12 = vadd.f32 0.18741608, %v1557_v47  ;;  %vm1537_vm10 = vweird.f32 %v6918_v36 }
 0x26b   : > { %v1495_v40 = vmul.f32 %v5587_v0, %v1494_v21  ;;  %v1569_v6 = vadd.f32 0.4994258, %v1568_v45  ;;  %v1520_v49 = vadd.f32 1.1283791, %v1519_v37  ;;  %v1592_v26 = vadd.f32 0.00028619796, %v1591_v62 }
 0x26c   : > { %v2069_v60 = vadd.f32 1.0, %v5324_v38  ;;  %v1603_v21 = vadd.f32 0.001143296, %v1602_v10  ;;  %v1541_v16 = vand.u32 2147483647, %v6918_v36  ;;  %v1559_v38 = vmul.f32 %v1558_v12, %v6872_v54 }
 0x26d   : > { %v1496_v29 = vadd.f32 %v5587_v0, %v1495_v40  ;;  %v1570_v24 = vmul.f32 %v1569_v6, %v6872_v54  ;;  %v1593_v47 = vmul.f32 %v1592_v26, %v6916_v35  ;;  %v1629_v7 = vmul.f32 %v6926_v30, %v6926_v30 }
 0x26e   : > { %v2085_v48 = vmul.f32 %v2069_v60, %v1397_v14  ;;  %v1604_v14 = vmul.f32 %v1603_v21, %v6916_v35  ;;  %v1398_v37 = vmul.f32 0.5, %v6845_v41  ;;  %v6942_v45 = vmul.f32 0.5, %v6852_v55 }
 0x26f   : > { %v1500_v61 = vsel %vm1499_vm9, %v5587_v0, %v1496_v29  ;;  %v6944_v62 = vadd.f32 1.0, %v1570_v24  ;;  %v1543_v54 = vand.u32 2147483648, %v6918_v36  ;;  %v1594_v50 = vadd.f32 0.0036580483, %v1593_v47 }
 0x270   : > { %v1505_v40 = vsel %vm6911_vm6, %v1504_v9, %v1500_v61  ;;  %5341 = vmatmul.msk.f32.vlgmr.msra.gmra.mxu2 %vm2106_vm8, %v2085_v48  ;;  %5358 = vmatmul.msk.f32.vlgmr.msrb.gmra.mxu3 %vm2106_vm8, %v2085_v48  ;;  %v5589_v61 = vpop.eup %5588  ;;  %v1605_v10 = vadd.f32 0.014752088, %v1604_v14  ;;  %v6948_v60 = vmin.f32 %v1629_v7, 16.0  ;;  %v1521_v29 = vmul.f32 %v1520_v49, %v6855_v2 }
 0x271   : > { %v1506_v0 = vmul.f32 %v1505_v40, %v1481_v44  ;;  %v1533_v41 = vmul.f32 %v5589_v61, %v6918_v36  ;;  %vm6953_vm11 = vcmp.eq.f32.partialorder %v1541_v16, 8.507059e+37  ;;  %v1560_v24 = vadd.f32 1.1283791, %v1559_v38  ;;  %v1305_v40 = vpop.f32.mrf.mxu0 }
 0x272   : > { %5590 = vrcp.f32 %v6944_v62  ;;  %v6958_v44 = vadd.f32 %v1367_v4, %v1302_v13  ;;  %v1595_v48 = vmul.f32 %v1594_v50, %v6916_v35  ;;  %v1606_v26 = vmul.f32 %v1605_v10, %v6916_v35  ;;  %v1370_v2 = vpop.f32.mrf.mxu1 }
 0x273   : > { %v5325_v9 = vclamps-f32 %v1506_v0, 1.0  ;;  %v1534_v6 = vsub.f32 1.0, %v1533_v41  ;;  %vm1538_vm12 = vweird.f32 %v5589_v61  ;;  %v1544_v49 = vor.u32 1.1754944e-38, %v1543_v54 }
 0x274   : > { %v1631_v21 = vmul.f32 2.1237322e-06, %v6948_v60  ;;  %v1642_v16 = vmul.f32 3.8918573e-05, %v6948_v60  ;;  %v1596_v14 = vadd.f32 0.05243302, %v1595_v48  ;;  %v1561_v4 = vmul.f32 %v1560_v24, %v6866_v27  ;;  %vm1539_vm13 = vmor %vm1537_vm10, %vm1538_vm12 }
 0x275   : > { %v2070_v12 = vadd.f32 1.0, %v5325_v9  ;;  %v1535_v38 = vmul.f32 %v5589_v61, %v1534_v6  ;;  %v1607_v7 = vadd.f32 0.112945676, %v1606_v26  ;;  %v6965_v9 = vadd.f32 %v1370_v2, %v1305_v40 }
 0x276   : > { %v1632_v13 = vadd.f32 0.00028619796, %v1631_v21  ;;  %v1643_v0 = vadd.f32 0.001143296, %v1642_v16  ;;  %v1597_v10 = vmul.f32 %v1596_v14, %v6916_v35  ;;  %v6970_v41 = vmul.f32 0.70710677, %v6958_v44 }
 0x277   : > { %v2086_v47 = vmul.f32 %v2070_v12, %v1398_v37  ;;  %v1536_v50 = vadd.f32 %v5589_v61, %v1535_v38  ;;  %v1608_v54 = vmul.f32 %v1607_v7, %v6916_v35  ;;  %v1581_v27 = vand.u32 2147483647, %v6944_v62 }
 0x278   : > { %v5591_v37 = vpop.eup %5590  ;;  %v1633_v24 = vmul.f32 %v1632_v13, %v6948_v60  ;;  %v1644_v12 = vmul.f32 %v1643_v0, %v6948_v60  ;;  %v6981_v6 = vmul.f32 0.70710677, %v6965_v9  ;;  %v1583_v2 = vand.u32 2147483648, %v6944_v62 }
 0x279   : > { %5342 = vmatmul.msk.f32.gmra.mxu2 %vm2106_vm8, %v2086_v47  ;;  %5359 = vmatmul.msk.f32.gmra.mxu3 %vm2106_vm8, %v2086_v47  ;;  %v1540_v48 = vsel %vm1539_vm13, %v5589_v61, %v1536_v50  ;;  %v1573_v26 = vmul.f32 %v5591_v37, %v6944_v62  ;;  %v1598_v21 = vadd.f32 0.18741608, %v1597_v10  ;;  %v1609_v36 = vadd.f32 0.4994258, %v1608_v54 }
 0x27a   : > { %v1545_v16 = vsel %vm6953_vm11, %v1544_v49, %v1540_v48  ;;  %v1634_v40 = vadd.f32 0.0036580483, %v1633_v24  ;;  %v1645_v47 = vadd.f32 0.014752088, %v1644_v12  ;;  %v1669_v13 = vmul.f32 %v6970_v41, %v6970_v41 }
 0x27b   : > { %v1546_v38 = vmul.f32 %v1545_v16, %v1521_v29  ;;  %v1574_v14 = vsub.f32 1.0, %v1573_v26  ;;  %v1599_v7 = vmul.f32 %v1598_v21, %v6916_v35  ;;  %v1610_v61 = vmul.f32 %v1609_v36, %v6916_v35  ;;  %v1373_v29 = vpop.f32.mrf.mxu1  ;;  %v1308_v35 = vpop.f32.mrf.mxu0 }
 0x27c   : > { %v1635_v0 = vmul.f32 %v1634_v40, %v6948_v60  ;;  %v1646_v50 = vmul.f32 %v1645_v47, %v6948_v60  ;;  %v1709_v55 = vmul.f32 %v6981_v6, %v6981_v6  ;;  %vm1578_vm14 = vweird.f32 %v5591_v37 }
 0x27d   : > { %v5326_v49 = vclamps-f32 %v1546_v38, 1.0  ;;  %v1575_v10 = vmul.f32 %v5591_v37, %v1574_v14  ;;  %v6995_v54 = vmin.f32 %v1669_v13, 16.0  ;;  %vm1577_vm15 = vweird.f32 %v6944_v62 }
 0x27e   : > { %v6998_v24 = vadd.f32 1.0, %v1610_v61  ;;  %v1636_v12 = vadd.f32 0.05243302, %v1635_v0  ;;  %v1647_v48 = vadd.f32 0.112945676, %v1646_v50  ;;  %vm1582_vm1 = vcmp.eq.f32.partialorder %v1581_v27, 8.507059e+37  ;;  %vm1579_vm2 = vmor %vm1577_vm15, %vm1578_vm14 }
 0x27f   : > { %v2071_v26 = vadd.f32 1.0, %v5326_v49  ;;  %v1576_v21 = vadd.f32 %v5591_v37, %v1575_v10  ;;  %v1671_v16 = vmul.f32 2.1237322e-06, %v6995_v54  ;;  %v1584_v36 = vor.u32 1.1754944e-38, %v1583_v2 }
 0x280   : > { %v1600_v40 = vadd.f32 1.1283791, %v1599_v7  ;;  %5592 = vrcp.f32 %v6998_v24  ;;  %v7002_v47 = vmin.f32 %v1709_v55, 16.0  ;;  %v1637_v14 = vmul.f32 %v1636_v12, %v6948_v60 }
 0x281   : > { %v2087_v38 = vmul.f32 %v2071_v26, %v6942_v45  ;;  %v1580_v62 = vsel %vm1579_vm2, %v5591_v37, %v1576_v21  ;;  %v1648_v13 = vmul.f32 %v1647_v48, %v6948_v60  ;;  %v1400_v61 = vmul.f32 0.5, %v6861_v11 }
 0x282   : > { %v1585_v0 = vsel %vm1582_vm1, %v1584_v36, %v1580_v62  ;;  %v1672_v27 = vadd.f32 0.00028619796, %v1671_v16  ;;  %v1638_v49 = vadd.f32 0.18741608, %v1637_v14  ;;  %v1682_v2 = vmul.f32 3.8918573e-05, %v6995_v54 }
 0x283   : > { %v1586_v50 = vmul.f32 %v1585_v0, %v1561_v4  ;;  %v1649_v10 = vadd.f32 0.4994258, %v1648_v13  ;;  %5343 = vmatmul.msk.f32.gmra.mxu2 %vm2106_vm8, %v2087_v38  ;;  %5360 = vmatmul.msk.f32.gmra.mxu3 %vm2106_vm8, %v2087_v38  ;;  %v7012_v45 = vmul.f32 0.5, %v6882_v39  ;;  %v1711_v7 = vmul.f32 2.1237322e-06, %v7002_v47  ;;  %v1376_v0 = vpop.f32.mrf.mxu1 }
 0x284   : > { %v1673_v37 = vmul.f32 %v1672_v27, %v6995_v54  ;;  %v1722_v11 = vmul.f32 3.8918573e-05, %v7002_v47  ;;  %v1601_v4 = vmul.f32 %v1600_v40, %v6895_v52  ;;  %v1683_v48 = vadd.f32 0.001143296, %v1682_v2 }
 0x285   : > { %v5327_v55 = vclamps-f32 %v1586_v50, 1.0  ;;  %v1650_v12 = vmul.f32 %v1649_v10, %v6948_v60  ;;  %v1639_v21 = vmul.f32 %v1638_v49, %v6948_v60  ;;  %v1712_v36 = vadd.f32 0.00028619796, %v1711_v7  ;;  %v1311_v60 = vpop.f32.mrf.mxu0 }
 0x286   : > { %v5593_v26 = vpop.eup %5592  ;;  %v1674_v16 = vadd.f32 0.0036580483, %v1673_v37  ;;  %v1723_v38 = vadd.f32 0.001143296, %v1722_v11  ;;  %v1621_v14 = vand.u32 2147483647, %v6998_v24  ;;  %v1684_v40 = vmul.f32 %v1683_v48, %v6995_v54 }
 0x287   : > { %v2072_v39 = vadd.f32 1.0, %v5327_v55  ;;  %v1613_v62 = vmul.f32 %v5593_v26, %v6998_v24  ;;  %v1623_v13 = vand.u32 2147483648, %v6998_v24  ;;  %v7023_v27 = vadd.f32 1.0, %v1650_v12 }
 0x288   : > { %v1675_v52 = vmul.f32 %v1674_v16, %v6995_v54  ;;  %v1713_v50 = vmul.f32 %v1712_v36, %v7002_v47  ;;  %v1724_v2 = vmul.f32 %v1723_v38, %v7002_v47  ;;  %v7029_v37 = vadd.f32 %v1373_v29, %v1308_v35 }
 0x289   : > { %v2088_v49 = vmul.f32 %v2072_v39, %v1400_v61  ;;  %v1614_v10 = vsub.f32 1.0, %v1613_v62  ;;  %vm1618_vm3 = vweird.f32 %v5593_v26  ;;  %v1640_v7 = vadd.f32 1.1283791, %v1639_v21 }
 0x28a   : > { %5594 = vrcp.f32 %v7023_v27  ;;  %v7032_v11 = vadd.f32 %v1376_v0, %v1311_v60  ;;  %v1676_v12 = vadd.f32 0.05243302, %v1675_v52  ;;  %v1685_v16 = vadd.f32 0.014752088, %v1684_v40 }
 0x28b   : > { %v1615_v55 = vmul.f32 %v5593_v26, %v1614_v10  ;;  %v1714_v20 = vadd.f32 0.0036580483, %v1713_v50  ;;  %5344 = vmatmul.msk.f32.gmra.mxu2 %vm2106_vm8, %v2088_v49  ;;  %5361 = vmatmul.msk.f32.gmra.mxu3 %vm2106_vm8, %v2088_v49  ;;  %vm1617_vm4 = vweird.f32 %v6998_v24  ;;  %vm7037_vm5 = vcmp.eq.f32.partialorder %v1621_v14, 8.507059e+37 }
 0x28c   : > { %v1624_v29 = vor.u32 1.1754944e-38, %v1623_v13  ;;  %v1725_v35 = vadd.f32 0.014752088, %v1724_v2  ;;  %v1677_v21 = vmul.f32 %v1676_v12, %v6995_v54  ;;  %v1686_v36 = vmul.f32 %v1685_v16, %v6995_v54  ;;  %vm1619_vm6 = vmor %vm1617_vm4, %vm1618_vm3 }
 0x28d   : > { %v1616_v48 = vadd.f32 %v5593_v26, %v1615_v55  ;;  %v1715_v38 = vmul.f32 %v1714_v20, %v7002_v47  ;;  %v1641_v39 = vmul.f32 %v1640_v7, %v6926_v30  ;;  %v7048_v24 = vmul.f32 0.70710677, %v7029_v37 }
 0x28e   : > { %v1726_v62 = vmul.f32 %v1725_v35, %v7002_v47  ;;  %v7051_v14 = vmul.f32 0.70710677, %v7032_v11  ;;  %vm1657_vm7 = vweird.f32 %v7023_v27  ;;  %v1687_v0 = vadd.f32 0.112945676, %v1686_v36 }
 0x28f   : > { %v1620_v13 = vsel %vm1619_vm6, %v5593_v26, %v1616_v48  ;;  %v1716_v52 = vadd.f32 0.05243302, %v1715_v38  ;;  %v1749_v30 = vmul.f32 %v7048_v24, %v7048_v24  ;;  %v1661_v26 = vand.u32 2147483647, %v7023_v27 }
 0x290   : > { %v5595_v40 = vpop.eup %5594  ;;  %v1625_v20 = vsel %vm7037_vm5, %v1624_v29, %v1620_v13  ;;  %v1727_v50 = vadd.f32 0.112945676, %v1726_v62  ;;  %v1789_v60 = vmul.f32 %v7051_v14, %v7051_v14  ;;  %v1678_v2 = vadd.f32 0.18741608, %v1677_v21 }
 0x291   : > { %v1626_v49 = vmul.f32 %v1625_v20, %v1601_v4  ;;  %v1653_v10 = vmul.f32 %v5595_v40, %v7023_v27  ;;  %v1688_v7 = vmul.f32 %v1687_v0, %v6995_v54  ;;  %v1717_v55 = vmul.f32 %v1716_v52, %v7002_v47  ;;  %v1379_v52 = vpop.f32.mrf.mxu1 }
 0x292   : > { %v1728_v12 = vmul.f32 %v1727_v50, %v7002_v47  ;;  %v7065_v16 = vmin.f32 %v1749_v30, 16.0  ;;  %v1663_v35 = vand.u32 2147483648, %v7023_v27  ;;  %v7068_v48 = vmin.f32 %v1789_v60, 16.0 }
 0x293   : > { %v5328_v61 = vclamps-f32 %v1626_v49, 1.0  ;;  %v1654_v29 = vsub.f32 1.0, %v1653_v10  ;;  %vm1658_vm9 = vweird.f32 %v5595_v40  ;;  %v1689_v4 = vadd.f32 0.4994258, %v1688_v7  ;;  %v1314_v49 = vpop.f32.mrf.mxu0 }
 0x294   : > { %v1718_v36 = vadd.f32 0.18741608, %v1717_v55  ;;  %v1729_v38 = vadd.f32 0.4994258, %v1728_v12  ;;  %v1679_v13 = vmul.f32 %v1678_v2, %v6995_v54  ;;  %v1751_v0 = vmul.f32 2.1237322e-06, %v7065_v16  ;;  %vm1659_vm10 = vmor %vm1657_vm7, %vm1658_vm9 }
 0x295   : > { %v2073_v62 = vadd.f32 1.0, %v5328_v61  ;;  %v1655_v21 = vmul.f32 %v5595_v40, %v1654_v29  ;;  %v1690_v20 = vmul.f32 %v1689_v4, %v6995_v54  ;;  %v1762_v60 = vmul.f32 3.8918573e-05, %v7065_v16 }
 0x296   : > { %v1719_v50 = vmul.f32 %v1718_v36, %v7002_v47  ;;  %v1730_v30 = vmul.f32 %v1729_v38, %v7002_v47  ;;  %v1752_v55 = vadd.f32 0.00028619796, %v1751_v0  ;;  %v1791_v12 = vmul.f32 2.1237322e-06, %v7068_v48 }
 0x297   : > { %v2089_v10 = vmul.f32 %v2073_v62, %v7012_v45  ;;  %v1656_v7 = vadd.f32 %v5595_v40, %v1655_v21  ;;  %vm1662_vm11 = vcmp.eq.f32.partialorder %v1661_v26, 8.507059e+37  ;;  %v1664_v2 = vor.u32 1.1754944e-38, %v1663_v35 }
 0x298   : > { %v7081_v54 = vadd.f32 1.0, %v1690_v20  ;;  %v7083_v61 = vadd.f32 1.0, %v1730_v30  ;;  %v1680_v29 = vadd.f32 1.1283791, %v1679_v13  ;;  %v1753_v4 = vmul.f32 %v1752_v55, %v7065_v16 }
 0x299   : > { %v1660_v47 = vsel %vm1659_vm10, %v5595_v40, %v1656_v7  ;;  %v1763_v36 = vadd.f32 0.001143296, %v1762_v60  ;;  %5345 = vmatmul.msk.f32.gmra.mxu2 %vm2106_vm8, %v2089_v10  ;;  %5362 = vmatmul.msk.f32.gmra.mxu3 %vm2106_vm8, %v2089_v10  ;;  %v1792_v27 = vadd.f32 0.00028619796, %v1791_v12  ;;  %v1802_v26 = vmul.f32 3.8918573e-05, %v7068_v48  ;;  %v1382_v55 = vpop.f32.mrf.mxu1 }
 0x29a   : > { %v1665_v45 = vsel %vm1662_vm11, %v1664_v2, %v1660_v47  ;;  %5596 = vrcp.f32 %v7081_v54  ;;  %v1720_v38 = vadd.f32 1.1283791, %v1719_v50  ;;  %v1402_v40 = vmul.f32 0.5, %v6908_v31 }
 0x29b   : > { %v1666_v35 = vmul.f32 %v1665_v45, %v1641_v39  ;;  %5598 = vrcp.f32 %v7083_v61  ;;  %v1701_v62 = vand.u32 2147483647, %v7081_v54  ;;  %v7093_v21 = vadd.f32 %v1379_v52, %v1314_v49 }
 0x29c   : > { %v1703_v0 = vand.u32 2147483648, %v7081_v54  ;;  %v1754_v20 = vadd.f32 0.0036580483, %v1753_v4  ;;  %v1764_v30 = vmul.f32 %v1763_v36, %v7065_v16  ;;  %v7098_v60 = vmul.f32 %v1680_v29, %v6970_v41  ;;  %v1317_v36 = vpop.f32.mrf.mxu0 }
 0x29d   : > { %v5329_v13 = vclamps-f32 %v1666_v35, 1.0  ;;  %v1741_v39 = vand.u32 2147483647, %v7083_v61  ;;  %v1793_v50 = vmul.f32 %v1792_v27, %v7068_v48  ;;  %v1803_v10 = vadd.f32 0.001143296, %v1802_v26 }
 0x29e   : > { %vm1697_vm12 = vweird.f32 %v7081_v54  ;;  %v7104_v31 = vmul.f32 %v1720_v38, %v6981_v6  ;;  %v1755_v52 = vmul.f32 %v1754_v20, %v7065_v16  ;;  %v1765_v49 = vadd.f32 0.014752088, %v1764_v30 }
 0x29f   : > { %v2074_v7 = vadd.f32 1.0, %v5329_v13  ;;  %vm1737_vm13 = vweird.f32 %v7083_v61  ;;  %v1743_v41 = vand.u32 2147483648, %v7083_v61  ;;  %v1794_v2 = vadd.f32 0.0036580483, %v1793_v50 }
 0x2a0   : > { %v5597_v12 = vpop.eup %5596  ;;  %v1804_v47 = vmul.f32 %v1803_v10, %v7068_v48  ;;  %v7111_v29 = vmul.f32 0.70710677, %v7093_v21  ;;  %vm7114_vm14 = vcmp.eq.f32.partialorder %v1701_v62, 8.507059e+37  ;;  %v1704_v26 = vor.u32 1.1754944e-38, %v1703_v0 }
 0x2a1   : > { %v5599_v4 = vpop.eup %5598  ;;  %v2090_v45 = vmul.f32 %v2074_v7, %v1402_v40  ;;  %v1693_v6 = vmul.f32 %v5597_v12, %v7081_v54  ;;  %v1756_v35 = vadd.f32 0.05243302, %v1755_v52  ;;  %vm7119_vm15 = vcmp.eq.f32.partialorder %v1741_v39, 8.507059e+37 }
 0x2a2   : > { %v1733_v38 = vmul.f32 %v5599_v4, %v7083_v61  ;;  %v1766_v20 = vmul.f32 %v1765_v49, %v7065_v16  ;;  %v1795_v30 = vmul.f32 %v1794_v2, %v7068_v48  ;;  %v1805_v10 = vadd.f32 0.014752088, %v1804_v47 }
 0x2a3   : > { %v1694_v50 = vsub.f32 1.0, %v1693_v6  ;;  %v1757_v40 = vmul.f32 %v1756_v35, %v7065_v16  ;;  %v1829_v62 = vmul.f32 %v7111_v29, %v7111_v29  ;;  %5346 = vmatmul.msk.f32.gmra.mxu2 %vm2106_vm8, %v2090_v45  ;;  %5363 = vmatmul.msk.f32.gmra.mxu3 %vm2106_vm8, %v2090_v45  ;;  %vm1698_vm1 = vweird.f32 %v5597_v12 }
 0x2a4   : > { %v1734_v0 = vsub.f32 1.0, %v1733_v38  ;;  %v1767_v39 = vadd.f32 0.112945676, %v1766_v20  ;;  %v1796_v7 = vadd.f32 0.05243302, %v1795_v30  ;;  %vm1738_vm2 = vweird.f32 %v5599_v4  ;;  %vm1699_vm3 = vmor %vm1697_vm12, %vm1698_vm1 }
 0x2a5   : > { %v1695_v52 = vmul.f32 %v5597_v12, %v1694_v50  ;;  %v1806_v49 = vmul.f32 %v1805_v10, %v7068_v48  ;;  %v7131_v2 = vmin.f32 %v1829_v62, 16.0  ;;  %v1758_v35 = vadd.f32 0.18741608, %v1757_v40  ;;  %vm1739_vm4 = vmor %vm1737_vm13, %vm1738_vm2 }
 0x2a6   : > { %v1735_v6 = vmul.f32 %v5599_v4, %v1734_v0  ;;  %v1768_v47 = vmul.f32 %v1767_v39, %v7065_v16  ;;  %v1797_v17 = vmul.f32 %v1796_v7, %v7068_v48  ;;  %v7136_v34 = vadd.f32 %v1382_v55, %v1317_v36  ;;  %v1385_v55 = vpop.f32.mrf.mxu1 }
 0x2a7   : > { %v1696_v3 = vadd.f32 %v5597_v12, %v1695_v52  ;;  %v1807_v32 = vadd.f32 0.112945676, %v1806_v49  ;;  %v1831_v45 = vmul.f32 2.1237322e-06, %v7131_v2  ;;  %v1744_v20 = vor.u32 1.1754944e-38, %v1743_v41 }
 0x2a8   : > { %v1736_v38 = vadd.f32 %v5599_v4, %v1735_v6  ;;  %v1769_v30 = vadd.f32 0.4994258, %v1768_v47  ;;  %v1798_v50 = vadd.f32 0.18741608, %v1797_v17  ;;  %v1842_v0 = vmul.f32 3.8918573e-05, %v7131_v2  ;;  %v1320_v17 = vpop.f32.mrf.mxu0 }
 0x2a9   : > { %v1700_v10 = vsel %vm1699_vm3, %v5597_v12, %v1696_v3  ;;  %v1808_v40 = vmul.f32 %v1807_v32, %v7068_v48  ;;  %v1832_v62 = vadd.f32 0.00028619796, %v1831_v45  ;;  %v1759_v39 = vmul.f32 %v1758_v35, %v7065_v16 }
 0x2aa   : > { %v1705_v36 = vsel %vm7114_vm14, %v1704_v26, %v1700_v10  ;;  %v1740_v54 = vsel %vm1739_vm4, %v5599_v4, %v1736_v38  ;;  %v1770_v41 = vmul.f32 %v1769_v30, %v7065_v16  ;;  %v7154_v32 = vmul.f32 0.70710677, %v7136_v34 }
 0x2ab   : > { %v1706_v3 = vmul.f32 %v1705_v36, %v7098_v60  ;;  %v1745_v61 = vsel %vm7119_vm15, %v1744_v20, %v1740_v54  ;;  %v1809_v12 = vadd.f32 0.4994258, %v1808_v40  ;;  %v1799_v4 = vmul.f32 %v1798_v50, %v7068_v48 }
 0x2ac   : > { %v1746_v7 = vmul.f32 %v1745_v61, %v7104_v31  ;;  %v7157_v52 = vadd.f32 1.0, %v1770_v41  ;;  %v1833_v27 = vmul.f32 %v1832_v62, %v7131_v2  ;;  %v1843_v49 = vadd.f32 0.001143296, %v1842_v0 }
 0x2ad   : > { %v5330_v26 = vclamps-f32 %v1706_v3, 1.0  ;;  %v1810_v16 = vmul.f32 %v1809_v12, %v7068_v48  ;;  %v1403_v60 = vmul.f32 0.5, %v6958_v44  ;;  %v1760_v13 = vadd.f32 1.1283791, %v1759_v39 }
 0x2ae   : > { %5600 = vrcp.f32 %v7157_v52  ;;  %v5331_v35 = vclamps-f32 %v1746_v7, 1.0  ;;  %v1869_v31 = vmul.f32 %v7154_v32, %v7154_v32  ;;  %v1800_v45 = vadd.f32 1.1283791, %v1799_v4  ;;  %v1388_v54 = vpop.f32.mrf.mxu1 }
 0x2af   : > { %v2075_v6 = vadd.f32 1.0, %v5330_v26  ;;  %v7164_v47 = vadd.f32 1.0, %v1810_v16  ;;  %v1834_v38 = vadd.f32 0.0036580483, %v1833_v27  ;;  %v1844_v20 = vmul.f32 %v1843_v49, %v7131_v2 }
 0x2b0   : > { %v1781_v48 = vand.u32 2147483647, %v7157_v52  ;;  %v1783_v50 = vand.u32 2147483648, %v7157_v52  ;;  %v1404_v44 = vmul.f32 0.5, %v6965_v9  ;;  %v1761_v10 = vmul.f32 %v1760_v13, %v7048_v24  ;;  %v1323_v3 = vpop.f32.mrf.mxu0 }
 0x2b1   : > { %v2091_v30 = vmul.f32 %v2075_v6, %v1403_v60  ;;  %5602 = vrcp.f32 %v7164_v47  ;;  %v2076_v40 = vadd.f32 1.0, %v5331_v35  ;;  %v1845_v62 = vadd.f32 0.014752088, %v1844_v20 }
 0x2b2   : > { %v7174_v0 = vmin.f32 %v1869_v31, 16.0  ;;  %v7176_v36 = vadd.f32 %v1385_v55, %v1320_v17  ;;  %vm1777_vm5 = vweird.f32 %v7157_v52  ;;  %v7182_v41 = vmul.f32 %v1800_v45, %v7051_v14 }
 0x2b3   : > { %5347 = vmatmul.msk.f32.gmra.mxu2 %vm2106_vm8, %v2091_v30  ;;  %5364 = vmatmul.msk.f32.gmra.mxu3 %vm2106_vm8, %v2091_v30  ;;  %v1821_v9 = vand.u32 2147483647, %v7164_v47  ;;  %v1835_v24 = vmul.f32 %v1834_v38, %v7131_v2  ;;  %vm7187_vm6 = vcmp.eq.f32.partialorder %v1781_v48, 8.507059e+37  ;;  %v1784_v17 = vor.u32 1.1754944e-38, %v1783_v50 }
 0x2b4   : > { %v5601_v39 = vpop.eup %5600  ;;  %v1846_v12 = vmul.f32 %v1845_v62, %v7131_v2  ;;  %v1871_v7 = vmul.f32 2.1237322e-06, %v7174_v0  ;;  %vm1817_vm7 = vweird.f32 %v7164_v47  ;;  %v1823_v14 = vand.u32 2147483648, %v7164_v47 }
 0x2b5   : > { %v1773_v61 = vmul.f32 %v5601_v39, %v7157_v52  ;;  %v1882_v4 = vmul.f32 3.8918573e-05, %v7174_v0  ;;  %v7197_v27 = vmul.f32 0.70710677, %v7176_v36  ;;  %v7199_v26 = vadd.f32 %v1388_v54, %v1323_v3 }
 0x2b6   : > { %v2092_v49 = vmul.f32 %v2076_v40, %v1404_v44  ;;  %v1847_v13 = vadd.f32 0.112945676, %v1846_v12  ;;  %v1872_v6 = vadd.f32 0.00028619796, %v1871_v7  ;;  %vm1778_vm9 = vweird.f32 %v5601_v39 }
 0x2b7   : > { %v5603_v16 = vpop.eup %5602  ;;  %v1774_v60 = vsub.f32 1.0, %v1773_v61  ;;  %vm7202_vm10 = vcmp.eq.f32.partialorder %v1821_v9, 8.507059e+37  ;;  %v1836_v45 = vadd.f32 0.05243302, %v1835_v24  ;;  %v1883_v38 = vadd.f32 0.001143296, %v1882_v4  ;;  %vm1779_vm11 = vmor %vm1777_vm5, %vm1778_vm9 }
 0x2b8   : > { %v1813_v35 = vmul.f32 %v5603_v16, %v7164_v47  ;;  %v1848_v30 = vmul.f32 %v1847_v13, %v7131_v2  ;;  %v1873_v48 = vmul.f32 %v1872_v6, %v7174_v0  ;;  %v1909_v50 = vmul.f32 %v7197_v27, %v7197_v27 }
 0x2b9   : > { %v1775_v20 = vmul.f32 %v5601_v39, %v1774_v60  ;;  %v1824_v40 = vor.u32 1.1754944e-38, %v1823_v14  ;;  %v1884_v62 = vmul.f32 %v1883_v38, %v7174_v0  ;;  %v7212_v54 = vmul.f32 0.70710677, %v7199_v26 }
 0x2ba   : > { %v1814_v44 = vsub.f32 1.0, %v1813_v35  ;;  %v1849_v3 = vadd.f32 0.4994258, %v1848_v30  ;;  %v1874_v61 = vadd.f32 0.0036580483, %v1873_v48  ;;  %v7214_v24 = vmin.f32 %v1909_v50, 16.0 }
 0x2bb   : > { %v1776_v9 = vadd.f32 %v5601_v39, %v1775_v20  ;;  %5348 = vmatmul.msk.f32.gmra.mxu2 %vm2106_vm8, %v2092_v49  ;;  %5365 = vmatmul.msk.f32.gmra.mxu3 %vm2106_vm8, %v2092_v49  ;;  %vm1818_vm12 = vweird.f32 %v5603_v16  ;;  %v1837_v7 = vmul.f32 %v1836_v45, %v7131_v2  ;;  %v1885_v14 = vadd.f32 0.014752088, %v1884_v62 }
 0x2bc   : > { %v1815_v12 = vmul.f32 %v5603_v16, %v1814_v44  ;;  %v1850_v60 = vmul.f32 %v1849_v3, %v7131_v2  ;;  %v1875_v13 = vmul.f32 %v1874_v61, %v7174_v0  ;;  %v1911_v6 = vmul.f32 2.1237322e-06, %v7214_v24  ;;  %vm1819_vm13 = vmor %vm1817_vm7, %vm1818_vm12 }
 0x2bd   : > { %v1780_v4 = vsel %vm1779_vm11, %v5601_v39, %v1776_v9  ;;  %v1886_v38 = vmul.f32 %v1885_v14, %v7174_v0  ;;  %v1949_v52 = vmul.f32 %v7212_v54, %v7212_v54  ;;  %v1838_v50 = vadd.f32 0.18741608, %v1837_v7  ;;  %v1391_v14 = vpop.f32.mrf.mxu1 }
 0x2be   : > { %v1785_v35 = vsel %vm7187_vm6, %v1784_v17, %v1780_v4  ;;  %v1816_v49 = vadd.f32 %v5603_v16, %v1815_v12  ;;  %v7232_v39 = vadd.f32 1.0, %v1850_v60  ;;  %v1876_v45 = vadd.f32 0.05243302, %v1875_v13 }
 0x2bf   : > { %v1786_v20 = vmul.f32 %v1785_v35, %v1761_v10  ;;  %v1912_v30 = vadd.f32 0.00028619796, %v1911_v6  ;;  %v1887_v44 = vadd.f32 0.112945676, %v1886_v38  ;;  %v1922_v55 = vmul.f32 3.8918573e-05, %v7214_v24 }
 0x2c0   : > { %v1820_v48 = vsel %vm1819_vm13, %v5603_v16, %v1816_v49  ;;  %5604 = vrcp.f32 %v7232_v39  ;;  %v1405_v10 = vmul.f32 0.5, %v7029_v37  ;;  %v1877_v9 = vmul.f32 %v1876_v45, %v7174_v0 }
 0x2c1   : > { %v5332_v17 = vclamps-f32 %v1786_v20, 1.0  ;;  %v1825_v62 = vsel %vm7202_vm10, %v1824_v40, %v1820_v48  ;;  %v7241_v3 = vmin.f32 %v1949_v52, 16.0  ;;  %v1888_v16 = vmul.f32 %v1887_v44, %v7174_v0  ;;  %v1326_v40 = vpop.f32.mrf.mxu0 }
 0x2c2   : > { %v1826_v47 = vmul.f32 %v1825_v62, %v7182_v41  ;;  %v1913_v12 = vmul.f32 %v1912_v30, %v7214_v24  ;;  %v1923_v7 = vadd.f32 0.001143296, %v1922_v55  ;;  %v1839_v31 = vmul.f32 %v1838_v50, %v7131_v2 }
 0x2c3   : > { %v2077_v61 = vadd.f32 1.0, %v5332_v17  ;;  %v1889_v13 = vadd.f32 0.4994258, %v1888_v16  ;;  %v1878_v41 = vadd.f32 0.18741608, %v1877_v9  ;;  %v7249_v49 = vadd.f32 %v1391_v14, %v1326_v40 }
 0x2c4   : > { %v5333_v4 = vclamps-f32 %v1826_v47, 1.0  ;;  %v1924_v37 = vmul.f32 %v1923_v7, %v7214_v24  ;;  %v1951_v6 = vmul.f32 2.1237322e-06, %v7241_v3  ;;  %v1962_v35 = vmul.f32 3.8918573e-05, %v7241_v3 }
 0x2c5   : > { %v2093_v60 = vmul.f32 %v2077_v61, %v1405_v10  ;;  %v1890_v20 = vmul.f32 %v1889_v13, %v7174_v0  ;;  %v1914_v45 = vadd.f32 0.0036580483, %v1913_v12  ;;  %v1406_v2 = vmul.f32 0.5, %v7032_v11 }
 0x2c6   : > { %v5605_v38 = vpop.eup %5604  ;;  %v2078_v52 = vadd.f32 1.0, %v5333_v4  ;;  %v1925_v30 = vadd.f32 0.014752088, %v1924_v37  ;;  %v1840_v48 = vadd.f32 1.1283791, %v1839_v31  ;;  %v1863_v47 = vand.u32 2147483648, %v7232_v39 }
 0x2c7   : > { %5349 = vmatmul.msk.f32.gmra.mxu2 %vm2106_vm8, %v2093_v60  ;;  %5366 = vmatmul.msk.f32.gmra.mxu3 %vm2106_vm8, %v2093_v60  ;;  %v1853_v50 = vmul.f32 %v5605_v38, %v7232_v39  ;;  %v1861_v44 = vand.u32 2147483647, %v7232_v39  ;;  %v7257_v55 = vadd.f32 1.0, %v1890_v20  ;;  %v1952_v62 = vadd.f32 0.00028619796, %v1951_v6 }
 0x2c8   : > { %v1926_v17 = vmul.f32 %v1925_v30, %v7214_v24  ;;  %v1963_v9 = vadd.f32 0.001143296, %v1962_v35  ;;  %v7262_v61 = vmul.f32 0.70710677, %v7249_v49  ;;  %v2094_v16 = vmul.f32 %v2078_v52, %v1406_v2 }
 0x2c9   : > { %v1854_v10 = vsub.f32 1.0, %v1853_v50  ;;  %v1879_v11 = vmul.f32 %v1878_v41, %v7174_v0  ;;  %5606 = vrcp.f32 %v7257_v55  ;;  %v1915_v12 = vmul.f32 %v1914_v45, %v7214_v24 }
 0x2ca   : > { %vm1858_vm14 = vweird.f32 %v5605_v38  ;;  %v1927_v14 = vadd.f32 0.112945676, %v1926_v17  ;;  %v1953_v4 = vmul.f32 %v1952_v62, %v7241_v3  ;;  %v1407_v31 = vmul.f32 0.5, %v7093_v21 }
 0x2cb   : > { %v1855_v7 = vmul.f32 %v5605_v38, %v1854_v10  ;;  %v1841_v40 = vmul.f32 %v1840_v48, %v7111_v29  ;;  %v1964_v60 = vmul.f32 %v1963_v9, %v7241_v3  ;;  %v1989_v13 = vmul.f32 %v7262_v61, %v7262_v61 }
 0x2cc   : > { %vm1857_vm15 = vweird.f32 %v7232_v39  ;;  %vm1862_vm1 = vcmp.eq.f32.partialorder %v1861_v44, 8.507059e+37  ;;  %v1928_v0 = vmul.f32 %v1927_v14, %v7214_v24  ;;  %v1864_v41 = vor.u32 1.1754944e-38, %v1863_v47  ;;  %v1394_v47 = vpop.f32.mrf.mxu1 }
 0x2cd   : > { %v1856_v37 = vadd.f32 %v5605_v38, %v1855_v7  ;;  %vm1859_vm2 = vmor %vm1857_vm15, %vm1858_vm14  ;;  %v1916_v6 = vadd.f32 0.05243302, %v1915_v12  ;;  %v1965_v35 = vadd.f32 0.014752088, %v1964_v60  ;;  %v7275_v52 = vmin.f32 %v1989_v13, 16.0  ;;  %v1329_v12 = vpop.f32.mrf.mxu0 }
 0x2ce   : > { %v1880_v29 = vadd.f32 1.1283791, %v1879_v11  ;;  %v1929_v20 = vadd.f32 0.4994258, %v1928_v0  ;;  %v1954_v45 = vadd.f32 0.0036580483, %v1953_v4  ;;  %v7292_v0 = vadd.f32 %v1394_v47, %v1329_v12 }
 0x2cf   : > { %5350 = vmatmul.msk.f32.gmra.mxu2 %vm2106_vm8, %v2094_v16  ;;  %5367 = vmatmul.msk.f32.gmra.mxu3 %vm2106_vm8, %v2094_v16  ;;  %v1860_v21 = vsel %vm1859_vm2, %v5605_v38, %v1856_v37  ;;  %v5607_v30 = vpop.eup %5606  ;;  %v1966_v39 = vmul.f32 %v1965_v35, %v7241_v3  ;;  %v1991_v48 = vmul.f32 2.1237322e-06, %v7275_v52  ;;  %v2002_v50 = vmul.f32 3.8918573e-05, %v7275_v52 }
 0x2d0   : > { %v1865_v2 = vsel %vm1862_vm1, %v1864_v41, %v1860_v21  ;;  %v1893_v17 = vmul.f32 %v5607_v30, %v7257_v55  ;;  %v1901_v62 = vand.u32 2147483647, %v7257_v55  ;;  %v1903_v10 = vand.u32 2147483648, %v7257_v55 }
 0x2d1   : > { %v1866_v44 = vmul.f32 %v1865_v2, %v1841_v40  ;;  %v1917_v38 = vmul.f32 %v1916_v6, %v7214_v24  ;;  %v1930_v9 = vmul.f32 %v1929_v20, %v7214_v24  ;;  %v1967_v16 = vadd.f32 0.112945676, %v1966_v39 }
 0x2d2   : > { %v1992_v11 = vadd.f32 0.00028619796, %v1991_v48  ;;  %v1894_v14 = vsub.f32 1.0, %v1893_v17  ;;  %v1955_v4 = vmul.f32 %v1954_v45, %v7241_v3  ;;  %v2003_v60 = vadd.f32 0.001143296, %v2002_v50 }
 0x2d3   : > { %v5334_v7 = vclamps-f32 %v1866_v44, 1.0  ;;  %v7288_v40 = vadd.f32 1.0, %v1930_v9  ;;  %v1968_v13 = vmul.f32 %v1967_v16, %v7241_v3  ;;  %vm1898_vm3 = vweird.f32 %v5607_v30 }
 0x2d4   : > { %v1993_v37 = vmul.f32 %v1992_v11, %v7275_v52  ;;  %v1895_v6 = vmul.f32 %v5607_v30, %v1894_v14  ;;  %v2004_v35 = vmul.f32 %v2003_v60, %v7275_v52  ;;  %vm1897_vm4 = vweird.f32 %v7257_v55 }
 0x2d5   : > { %v2079_v41 = vadd.f32 1.0, %v5334_v7  ;;  %v1918_v21 = vadd.f32 0.18741608, %v1917_v38  ;;  %5608 = vrcp.f32 %v7288_v40  ;;  %v1956_v2 = vadd.f32 0.05243302, %v1955_v4  ;;  %vm1899_vm5 = vmor %vm1897_vm4, %vm1898_vm3 }
 0x2d6   : > { %v1896_v45 = vadd.f32 %v5607_v30, %v1895_v6  ;;  %v1969_v39 = vadd.f32 0.4994258, %v1968_v13  ;;  %v1881_v48 = vmul.f32 %v1880_v29, %v7154_v32  ;;  %v1904_v50 = vor.u32 1.1754944e-38, %v1903_v10 }
 0x2d7   : > { %v2095_v20 = vmul.f32 %v2079_v41, %v1407_v31  ;;  %v1994_v44 = vadd.f32 0.0036580483, %v1993_v37  ;;  %v2005_v17 = vadd.f32 0.014752088, %v2004_v35  ;;  %vm1902_vm6 = vcmp.eq.f32.partialorder %v1901_v62, 8.507059e+37 }
 0x2d8   : > { %v1900_v47 = vsel %vm1899_vm5, %v5607_v30, %v1896_v45  ;;  %v1970_v9 = vmul.f32 %v1969_v39, %v7241_v3  ;;  %v7300_v16 = vmul.f32 0.70710677, %v7292_v0  ;;  %v1919_v31 = vmul.f32 %v1918_v21, %v7214_v24 }
 0x2d9   : > { %5351 = vmatmul.msk.f32.gmra.mxu2 %vm2106_vm8, %v2095_v20  ;;  %5368 = vmatmul.msk.f32.gmra.mxu3 %vm2106_vm8, %v2095_v20  ;;  %v1905_v55 = vsel %vm1902_vm6, %v1904_v50, %v1900_v47  ;;  %v2006_v32 = vmul.f32 %v2005_v17, %v7275_v52  ;;  %v1957_v10 = vmul.f32 %v1956_v2, %v7241_v3  ;;  %v1408_v4 = vmul.f32 0.5, %v7136_v34 }
 0x2da   : > { %v1906_v29 = vmul.f32 %v1905_v55, %v1881_v48  ;;  %v7307_v38 = vadd.f32 1.0, %v1970_v9  ;;  %v1995_v62 = vmul.f32 %v1994_v44, %v7275_v52  ;;  %v2029_v12 = vmul.f32 %v7300_v16, %v7300_v16 }
 0x2db   : > { %v5609_v30 = vpop.eup %5608  ;;  %v2007_v11 = vadd.f32 0.112945676, %v2006_v32  ;;  %v1920_v24 = vadd.f32 1.1283791, %v1919_v31  ;;  %v1958_v37 = vadd.f32 0.18741608, %v1957_v10  ;;  %vm1937_vm9 = vweird.f32 %v7288_v40 }
 0x2dc   : > { %v5335_v7 = vclamps-f32 %v1906_v29, 1.0  ;;  %v1933_v14 = vmul.f32 %v5609_v30, %v7288_v40  ;;  %5610 = vrcp.f32 %v7307_v38  ;;  %v1941_v6 = vand.u32 2147483647, %v7288_v40 }
 0x2dd   : > { %v2008_v41 = vmul.f32 %v2007_v11, %v7275_v52  ;;  %v1943_v35 = vand.u32 2147483648, %v7288_v40  ;;  %v1996_v21 = vadd.f32 0.05243302, %v1995_v62  ;;  %v7318_v20 = vmin.f32 %v2029_v12, 16.0 }
 0x2de   : > { %v2080_v60 = vadd.f32 1.0, %v5335_v7  ;;  %v1934_v13 = vsub.f32 1.0, %v1933_v14  ;;  %vm1938_vm7 = vweird.f32 %v5609_v30  ;;  %v1959_v44 = vmul.f32 %v1958_v37, %v7241_v3 }
 0x2df   : > { %v2009_v39 = vadd.f32 0.4994258, %v2008_v41  ;;  %v2031_v34 = vmul.f32 2.1237322e-06, %v7318_v20  ;;  %v2042_v48 = vmul.f32 3.8918573e-05, %v7318_v20  ;;  %vm1939_vm10 = vmor %vm1937_vm9, %vm1938_vm7  ;;  %v1997_v55 = vmul.f32 %v1996_v21, %v7275_v52 }
 0x2e0   : > { %v2096_v45 = vmul.f32 %v2080_v60, %v1408_v4  ;;  %v1935_v2 = vmul.f32 %v5609_v30, %v1934_v13  ;;  %v1944_v9 = vor.u32 1.1754944e-38, %v1943_v35  ;;  %v1921_v29 = vmul.f32 %v1920_v24, %v7197_v27 }
 0x2e1   : > { %v2010_v17 = vmul.f32 %v2009_v39, %v7275_v52  ;;  %v2032_v31 = vadd.f32 0.00028619796, %v2031_v34  ;;  %v2043_v32 = vadd.f32 0.001143296, %v2042_v48  ;;  %vm1942_vm11 = vcmp.eq.f32.partialorder %v1941_v6, 8.507059e+37 }
 0x2e2   : > { %v1936_v50 = vadd.f32 %v5609_v30, %v1935_v2  ;;  %5352 = vmatmul.msk.f32.gmra.mxu2 %vm2106_vm8, %v2096_v45  ;;  %5369 = vmatmul.msk.f32.gmra.mxu3 %vm2106_vm8, %v2096_v45  ;;  %v5611_v47 = vpop.eup %5610  ;;  %v1960_v7 = vadd.f32 1.1283791, %v1959_v44  ;;  %v1981_v60 = vand.u32 2147483647, %v7307_v38  ;;  %v1983_v13 = vand.u32 2147483648, %v7307_v38 }
 0x2e3   : > { %v1973_v40 = vmul.f32 %v5611_v47, %v7307_v38  ;;  %v7330_v62 = vadd.f32 1.0, %v2010_v17  ;;  %v2044_v11 = vmul.f32 %v2043_v32, %v7318_v20  ;;  %v2033_v4 = vmul.f32 %v2032_v31, %v7318_v20 }
 0x2e4   : > { %v1940_v10 = vsel %vm1939_vm10, %v5609_v30, %v1936_v50  ;;  %v1998_v37 = vadd.f32 0.18741608, %v1997_v55  ;;  %vm1978_vm12 = vweird.f32 %v5611_v47  ;;  %v1409_v41 = vmul.f32 0.5, %v7176_v36 }
 0x2e5   : > { %v1945_v3 = vsel %vm1942_vm11, %v1944_v9, %v1940_v10  ;;  %v1974_v14 = vsub.f32 1.0, %v1973_v40  ;;  %5612 = vrcp.f32 %v7330_v62  ;;  %v2045_v24 = vadd.f32 0.014752088, %v2044_v11 }
 0x2e6   : > { %v1946_v12 = vmul.f32 %v1945_v3, %v1921_v29  ;;  %vm1977_vm13 = vweird.f32 %v7307_v38  ;;  %v2034_v21 = vadd.f32 0.0036580483, %v2033_v4  ;;  %v1961_v2 = vmul.f32 %v1960_v7, %v7212_v54 }
 0x2e7   : > { %v1975_v30 = vmul.f32 %v5611_v47, %v1974_v14  ;;  %v2046_v45 = vmul.f32 %v2045_v24, %v7318_v20  ;;  %vm1979_vm14 = vmor %vm1977_vm13, %vm1978_vm12  ;;  %vm1982_vm15 = vcmp.eq.f32.partialorder %v1981_v60, 8.507059e+37  ;;  %v1984_v39 = vor.u32 1.1754944e-38, %v1983_v13 }
 0x2e8   : > { %v5336_v27 = vclamps-f32 %v1946_v12, 1.0  ;;  %v1999_v50 = vmul.f32 %v1998_v37, %v7275_v52  ;;  %v2035_v55 = vmul.f32 %v2034_v21, %v7318_v20  ;;  %v1410_v54 = vmul.f32 0.5, %v7199_v26 }
 0x2e9   : > { %v1976_v35 = vadd.f32 %v5611_v47, %v1975_v30  ;;  %v2047_v44 = vadd.f32 0.112945676, %v2046_v45  ;;  %v2021_v52 = vand.u32 2147483647, %v7330_v62  ;;  %v2023_v3 = vand.u32 2147483648, %v7330_v62 }
 0x2ea   : > { %v2081_v6 = vadd.f32 1.0, %v5336_v27  ;;  %v2036_v4 = vadd.f32 0.05243302, %v2035_v55  ;;  %vm2017_vm2 = vweird.f32 %v7330_v62 }
 0x2eb   : > { %v1980_v48 = vsel %vm1979_vm14, %v5611_v47, %v1976_v35  ;;  %v5613_v17 = vpop.eup %5612  ;;  %v2048_v31 = vmul.f32 %v2047_v44, %v7318_v20  ;;  %v2000_v47 = vadd.f32 1.1283791, %v1999_v50  ;;  %v2024_v30 = vor.u32 1.1754944e-38, %v2023_v3 }
 0x2ec   : > { %v2097_v34 = vmul.f32 %v2081_v6, %v1409_v41  ;;  %v1985_v9 = vsel %vm1982_vm15, %v1984_v39, %v1980_v48  ;;  %v2013_v38 = vmul.f32 %v5613_v17, %v7330_v62  ;;  %vm2018_vm1 = vweird.f32 %v5613_v17 }
 0x2ed   : > { %v1986_v36 = vmul.f32 %v1985_v9, %v1961_v2  ;;  %v2049_v11 = vadd.f32 0.4994258, %v2048_v31  ;;  %vm2019_vm3 = vmor %vm2017_vm2, %vm2018_vm1  ;;  %v2001_v41 = vmul.f32 %v2000_v47, %v7262_v61  ;;  %vm2022_vm4 = vcmp.eq.f32.partialorder %v2021_v52, 8.507059e+37 }
 0x2ee   : > { %5353 = vmatmul.msk.f32.gmra.mxu2 %vm2106_vm8, %v2097_v34  ;;  %5370 = vmatmul.msk.f32.gmra.mxu3 %vm2106_vm8, %v2097_v34  ;;  %v2014_v29 = vsub.f32 1.0, %v2013_v38  ;;  %v2037_v35 = vmul.f32 %v2036_v4, %v7318_v20  ;;  %v1411_v44 = vmul.f32 0.5, %v7249_v49 }
 0x2ef   : > { %v5337_v32 = vclamps-f32 %v1986_v36, 1.0  ;;  %v2050_v60 = vmul.f32 %v2049_v11, %v7318_v20 }
 0x2f0   : > { %v2015_v26 = vmul.f32 %v5613_v17, %v2014_v29  ;;  %v2038_v48 = vadd.f32 0.18741608, %v2037_v35 }
 0x2f1   : > { %v2082_v14 = vadd.f32 1.0, %v5337_v32  ;;  %v2051_v24 = vadd.f32 1.0, %v2050_v60 }
 0x2f2   : > { %v2016_v27 = vadd.f32 %v5613_v17, %v2015_v26  ;;  %v2039_v38 = vmul.f32 %v2038_v48, %v7318_v20 }
 0x2f3   : > { %v2177_v10 = vpop.f32.mrf.mxu2  ;;  %v2242_v40 = vpop.f32.mrf.mxu3  ;;  %v2098_v37 = vmul.f32 %v2082_v14, %v1410_v54  ;;  %5614 = vrcp.f32 %v2051_v24  ;;  %v2063_v31 = vand.u32 2147483648, %v2051_v24  ;;  %v2061_v29 = vand.u32 2147483647, %v2051_v24 }
 0x2f4   : > { %v7351_v12 = vadd.f32 %v2177_v10, %v6550_v53  ;;  %v7354_v7 = vadd.f32 %v2242_v40, %v6763_v19  ;;  %v2020_v6 = vsel %vm2019_vm3, %v5613_v17, %v2016_v27  ;;  %v2040_v32 = vadd.f32 1.1283791, %v2039_v38 }
 0x2f5   : > { %v2025_v21 = vsel %vm2022_vm4, %v2024_v30, %v2020_v6  ;;  %vm2057_vm6 = vweird.f32 %v2051_v24  ;;  %v2064_v40 = vor.u32 1.1754944e-38, %v2063_v31  ;;  %vm2062_vm9 = vcmp.eq.f32.partialorder %v2061_v29, 8.507059e+37 }
 0x2f6   : > { %v2322_v13 = vadd.f32 %v7354_v7, %v7351_v12  ;;  %5354 = vmatmul.msk.f32.gmra.mxu2 %vm2106_vm8, %v2098_v37  ;;  %5371 = vmatmul.msk.f32.gmra.mxu3 %vm2106_vm8, %v2098_v37  ;;  %v2026_v45 = vmul.f32 %v2025_v21, %v2001_v41  ;;  %v2041_v11 = vmul.f32 %v2040_v32, %v7300_v16  ;;  %v1412_v37 = vmul.f32 0.5, %v7292_v0 }
 0x2f8   : > { %2323 = vadd.xlane.f32.xlu0 %v2322_v13  ;;  %v5338_v61 = vclamps-f32 %v2026_v45, 1.0 }
 0x2f9   : > { %v5615_v9 = vpop.eup %5614 }
 0x2fa   : > { %v2083_v17 = vadd.f32 1.0, %v5338_v61  ;;  %v2053_v55 = vmul.f32 %v5615_v9, %v2051_v24  ;;  %vm2058_vm5 = vweird.f32 %v5615_v9 }
 0x2fb   : > { %vm2059_vm7 = vmor %vm2057_vm6, %vm2058_vm5 }
 0x2fc   : > { %v2180_v2 = vpop.f32.mrf.mxu2  ;;  %v2245_v39 = vpop.f32.mrf.mxu3  ;;  %v2099_v36 = vmul.f32 %v2083_v17, %v1411_v44  ;;  %v2054_v54 = vsub.f32 1.0, %v2053_v55 }
 0x2fd   : > { %v7365_v62 = vadd.f32 %v2180_v2, %v6564_v33  ;;  %v7368_v34 = vadd.f32 %v2245_v39, %v6768_v28 }
 0x2fe   : > { %5355 = vmatmul.msk.f32.gmra.mxu2 %vm2106_vm8, %v2099_v36  ;;  %5372 = vmatmul.msk.f32.gmra.mxu3 %vm2106_vm8, %v2099_v36  ;;  %v2055_v47 = vmul.f32 %v5615_v9, %v2054_v54 }
 0x2ff   : > { %v2325_v50 = vadd.f32 %v7368_v34, %v7365_v62 }
 0x300   : > { %v2056_v52 = vadd.f32 %v5615_v9, %v2055_v47 }
 0x301   : > { %2326 = vadd.xlane.f32.xlu0 %v2325_v50 }
 0x302   : > { %v2060_v14 = vsel %vm2059_vm7, %v5615_v9, %v2056_v52 }
 0x303   : > { %v2065_v26 = vsel %vm2062_vm9, %v2064_v40, %v2060_v14 }
 0x304   : > { %v2066_v60 = vmul.f32 %v2065_v26, %v2041_v11 }
 0x306   : > { %v2183_v49 = vpop.f32.mrf.mxu2  ;;  %v2248_v10 = vpop.f32.mrf.mxu3  ;;  %v5339_v13 = vclamps-f32 %v2066_v60, 1.0 }
 0x307   : > { %v7377_v3 = vadd.f32 %v2183_v49, %v6579_v5  ;;  %v7380_v20 = vadd.f32 %v2248_v10, %v6773_v18  ;;  %v5851_v49 = vmov 256.0  }
 0x308   : > { %v2084_v27 = vadd.f32 1.0, %v5339_v13  ;;  %5616 = vrcp.f32 %v5851_v49 }
 0x309   : > { %v2328_v4 = vadd.f32 %v7380_v20, %v7377_v3 }
 0x30a   : > { %v2100_v16 = vmul.f32 %v2084_v27, %v1412_v37 }
 0x30b   : > { %2329 = vadd.xlane.f32.xlu1 %v2328_v4 }
 0x30c   : > { %5356 = vmatmul.msk.f32.gmra.mxu2 %vm2106_vm8, %v2100_v16  ;;  %5373 = vmatmul.msk.f32.gmra.mxu3 %vm2106_vm8, %v2100_v16 }
 0x30e   : > { %v2186_v30 = vpop.f32.mrf.mxu2  ;;  %v2251_v24 = vpop.f32.mrf.mxu3 }
 0x30f   : > { %v7387_v41 = vadd.f32 %v2186_v30, %v6595_v57  ;;  %v7390_v6 = vadd.f32 %v2251_v24, %v6778_v43  ;;  %v5617_v40 = vpop.eup %5616  ;;  %v5391_v30 = vld [vmem:[%s9678_s3 + $0x178] sm:$0xff] }
 0x310   : > { %v2371_v11 = vmul.f32 256.0, %v5617_v40  ;;  %vm2375_vm10 = vweird.f32 %v5617_v40  ;;  %v5407_v24 = vld [vmem:[%s9678_s3 + $0x1f8] sm:$0xff]  ;;  %2872 = vmatpush.msrb.mxu0 %v5391_v30 }
 0x311   : > { %v2331_v35 = vadd.f32 %v7390_v6, %v7387_v41  ;;  %2937 = vmatpush.msrb.mxu1 %v5407_v24 }
 0x312   : > { %v2372_v4 = vsub.f32 1.0, %v2371_v11 }
 0x313   : > { %2332 = vadd.xlane.f32.xlu1 %v2331_v35 }
 0x314   : > { %v2373_v60 = vmul.f32 %v5617_v40, %v2372_v4  ;;  %v5389_v4 = vld [vmem:[%s9678_s3 + $0x168] sm:$0xff] }
 0x316   : > { %v2374_v13 = vadd.f32 %v5617_v40, %v2373_v60  ;;  %v5405_v60 = vld [vmem:[%s9678_s3 + $0x1e8] sm:$0xff] }
 0x318   : > { %v7428_v37 = vsel %vm2375_vm10, %v5617_v40, %v2374_v13 }
 0x31c   : > { %v2189_v21 = vpop.f32.mrf.mxu2  ;;  %v2254_v0 = vpop.f32.mrf.mxu3 }
 0x31d   : > { %v7397_v45 = vadd.f32 %v2189_v21, %v6612_v22  ;;  %v7400_v2 = vadd.f32 %v2254_v0, %v6789_v42  ;;  %v5390_v21 = vld [vmem:[%s9678_s3 + $0x170] sm:$0xff] }
 0x31e   : > { %v5406_v0 = vld [vmem:[%s9678_s3 + $0x1f0] sm:$0xff]  ;;  %2873 = vmatpush.msrb.mxu0 %v5390_v21 }
 0x31f   : > { %v2334_v39 = vadd.f32 %v7400_v2, %v7397_v45  ;;  %2938 = vmatpush.msrb.mxu1 %v5406_v0 }
 0x320   : > { %2874 = vmatpush.msrb.mxu0 %v5389_v4  ;;  %v9845_v4 = vld [vmem:[#allocation11_spill] sm:$0xff] }
 0x321   : > { %2335 = vadd.xlane.f32.xlu2 %v2334_v39  ;;  %2939 = vmatpush.msrb.mxu1 %v5405_v60  ;;  %v9846_v60 = vld [vmem:[#allocation22_spill] sm:$0xff] }
 0x326   : > { %v2192_v61 = vpop.f32.mrf.mxu2  ;;  %v2257_v48 = vpop.f32.mrf.mxu3 }
 0x327   : > { %v7405_v50 = vadd.f32 %v2192_v61, %v6627_v63  ;;  %v7408_v44 = vadd.f32 %v2257_v48, %v6796_v1 }
 0x329   : > { %v2337_v17 = vadd.f32 %v7408_v44, %v7405_v50 }
 0x32b   : > { %2338 = vadd.xlane.f32.xlu2 %v2337_v17 }
 0x336   : > { %v2195_v9 = vpop.f32.mrf.mxu2  ;;  %v2260_v36 = vpop.f32.mrf.mxu3 }
 0x337   : > { %v7413_v38 = vadd.f32 %v2195_v9, %v6642_v8  ;;  %v7416_v55 = vadd.f32 %v2260_v36, %v6800_v56 }
 0x339   : > { %v2340_v54 = vadd.f32 %v7416_v55, %v7413_v38 }
 0x33b   : > { %2341 = vadd.xlane.f32.xlu0 %v2340_v54 }
 0x33e   : > { %v2198_v31 = vpop.f32.mrf.mxu2  ;;  %v2263_v32 = vpop.f32.mrf.mxu3 }
 0x33f   : > { %v7421_v47 = vadd.f32 %v2198_v31, %v6661_v15  ;;  %v7424_v29 = vadd.f32 %v2263_v32, %v6804_v51 }
 0x341   : > { %v2343_v52 = vadd.f32 %v7424_v29, %v7421_v47 }
 0x343   : > { %2344 = vadd.xlane.f32.xlu2 %v2343_v52 }
 0x34a   : > { %v2201_v14 = vpop.f32.mrf.mxu2  ;;  %v2266_v26 = vpop.f32.mrf.mxu3 }
 0x34b   : > { %v7466_v49 = vadd.f32 %v2201_v14, %v6678_v58 }
 0x352   : > { %v2204_v9 = vpop.f32.mrf.mxu2  ;;  %v2269_v36 = vpop.f32.mrf.mxu3 }
 0x353   : > { %v7484_v14 = vadd.f32 %v2204_v9, %v6693_v46  ;;  %v9844_v9 = vld [vmem:[#allocation17_spill] sm:$0xff] }
 0x35c   : > { %v2207_v13 = vpop.f32.mrf.mxu2 }
 0x35d   : > { %v7499_v0 = vadd.f32 %v2207_v13, %v6706_v25 }
 0x36b   : > { %v2324_v10 = vpop.xlane.xlu0 %2323 }
 0x36c   : > { %v2377_v16 = vmul.f32 %v7428_v37, %v2324_v10  ;;  %v7469_v10 = vadd.f32 %v2266_v26, %v6808_v23  ;;  %v7487_v26 = vadd.f32 %v2269_v36, %v6812_v59 }
 0x36e   : > { %v7445_v39 = vsub.f32 %v7351_v12, %v2377_v16  ;;  %v7448_v61 = vsub.f32 %v7354_v7, %v2377_v16  ;;  %v2346_v30 = vadd.f32 %v7469_v10, %v7466_v49 }
 0x370   : > { %v2425_v54 = vmul.f32 %v7445_v39, %v7445_v39  ;;  %v2426_v12 = vmul.f32 %v7448_v61, %v7448_v61 }
 0x372   : > { %v2457_v31 = vadd.f32 %v2426_v12, %v2425_v54 }
 0x374   : > { %v2327_v27 = vpop.xlane.xlu0 %2326  ;;  %2458 = vadd.xlane.f32.xlu1 %v2457_v31 }
 0x375   : > { %v2378_v35 = vmul.f32 %v7428_v37, %v2327_v27  ;;  %v2272_v27 = vpop.f32.mrf.mxu3 }
 0x376   : > { %v7502_v36 = vadd.f32 %v2272_v27, %v9844_v9 }
 0x377   : > { %v7451_v48 = vsub.f32 %v7365_v62, %v2378_v35  ;;  %v7454_v17 = vsub.f32 %v7368_v34, %v2378_v35  ;;  %v2349_v35 = vadd.f32 %v7487_v26, %v7484_v14 }
 0x379   : > { %v2427_v7 = vmul.f32 %v7451_v48, %v7451_v48  ;;  %v2428_v62 = vmul.f32 %v7454_v17, %v7454_v17 }
 0x37b   : > { %v2460_v32 = vadd.f32 %v2428_v62, %v2427_v7 }
 0x37c   : > { %2347 = vadd.xlane.f32.xlu1 %v2346_v30 }
 0x37d   : > { %2461 = vadd.xlane.f32.xlu0 %v2460_v32  ;;  %v2352_v32 = vadd.f32 %v7502_v36, %v7499_v0 }
 0x37e   : > { %v2330_v34 = vpop.xlane.xlu1 %2329 }
 0x37f   : > { %v2379_v52 = vmul.f32 %v7428_v37, %v2330_v34  ;;  %v2210_v34 = vpop.f32.mrf.mxu2 }
 0x381   : > { %v7472_v40 = vsub.f32 %v7377_v3, %v2379_v52  ;;  %v7475_v11 = vsub.f32 %v7380_v20, %v2379_v52  ;;  %v2275_v52 = vpop.f32.mrf.mxu3 }
 0x383   : > { %v2429_v3 = vmul.f32 %v7472_v40, %v7472_v40  ;;  %v2430_v20 = vmul.f32 %v7475_v11, %v7475_v11 }
 0x385   : > { %v2463_v24 = vadd.f32 %v2430_v20, %v2429_v3  ;;  %2350 = vadd.xlane.f32.xlu0 %v2349_v35  ;;  %v5388_v3 = vld [vmem:[%s9678_s3 + $0x160] sm:$0xff] }
 0x386   : > { %v2333_v16 = vpop.xlane.xlu1 %2332  ;;  %v5404_v20 = vld [vmem:[%s9678_s3 + $0x1e0] sm:$0xff]  ;;  %2875 = vmatpush.msrb.mxu0 %v5388_v3 }
 0x387   : > { %v2380_v21 = vmul.f32 %v7428_v37, %v2333_v16  ;;  %2464 = vadd.xlane.f32.xlu2 %v2463_v24  ;;  %2940 = vmatpush.msrb.mxu1 %v5404_v20  ;;  %v9848_v3 = vld [vmem:[#allocation23_spill] sm:$0xff] }
 0x389   : > { %v7505_v54 = vsub.f32 %v7387_v41, %v2380_v21  ;;  %v7508_v12 = vsub.f32 %v7390_v6, %v2380_v21  ;;  %v7517_v41 = vadd.f32 %v2210_v34, %v9845_v4  ;;  %v7520_v6 = vadd.f32 %v2275_v52, %v9846_v60  ;;  %v9847_v34 = vld [vmem:[#allocation9_spill] sm:$0xff] }
 0x38a   : > { %v9851_v60 = vld [vmem:[#allocation13_spill] sm:$0xff] }
 0x38b   : > { %v2431_v7 = vmul.f32 %v7505_v54, %v7505_v54  ;;  %v2432_v62 = vmul.f32 %v7508_v12, %v7508_v12  ;;  %v2355_v30 = vadd.f32 %v7520_v6, %v7517_v41 }
 0x38d   : > { %v2466_v31 = vadd.f32 %v2432_v62, %v2431_v7  ;;  %v5387_v7 = vld [vmem:[%s9678_s3 + $0x158] sm:$0xff] }
 0x38e   : > { %v5403_v62 = vld [vmem:[%s9678_s3 + $0x1d8] sm:$0xff]  ;;  %2876 = vmatpush.msrb.mxu0 %v5387_v7 }
 0x38f   : > { %2467 = vadd.xlane.f32.xlu1 %v2466_v31  ;;  %2353 = vadd.xlane.f32.xlu2 %v2352_v32  ;;  %v2278_v31 = vpop.f32.mrf.mxu3 }
 0x390   : > { %2941 = vmatpush.msrb.mxu1 %v5403_v62  ;;  %v7551_v20 = vadd.f32 %v2278_v31, %v9848_v3  ;;  %v5399_v3 = vld [vmem:[%s9678_s3 + $0x1b8] sm:$0xff] }
 0x394   : > { %v2336_v13 = vpop.xlane.xlu2 %2335 }
 0x395   : > { %v2381_v27 = vmul.f32 %v7428_v37, %v2336_v13 }
 0x397   : > { %v7532_v24 = vsub.f32 %v7397_v45, %v2381_v27  ;;  %v7535_v16 = vsub.f32 %v7400_v2, %v2381_v27  ;;  %2356 = vadd.xlane.f32.xlu1 %v2355_v30  ;;  %v2213_v2 = vpop.f32.mrf.mxu2  ;;  %v5386_v27 = vld [vmem:[%s9678_s3 + $0x150] sm:$0xff] }
 0x398   : > { %v7548_v52 = vadd.f32 %v2213_v2, %v9847_v34  ;;  %v5402_v30 = vld [vmem:[%s9678_s3 + $0x1d0] sm:$0xff]  ;;  %2877 = vmatpush.msrb.mxu0 %v5386_v27  ;;  %v5400_v27 = vld [vmem:[%s9678_s3 + $0x1c0] sm:$0xff] }
 0x399   : > { %v2433_v35 = vmul.f32 %v7532_v24, %v7532_v24  ;;  %v2434_v21 = vmul.f32 %v7535_v16, %v7535_v16  ;;  %2942 = vmatpush.msrb.mxu1 %v5402_v30  ;;  %v9849_v30 = vld [vmem:[#allocation10_spill] sm:$0xff] }
 0x39b   : > { %v2469_v45 = vadd.f32 %v2434_v21, %v2433_v35 }
 0x39d   : > { %2470 = vadd.xlane.f32.xlu0 %v2469_v45  ;;  %v2358_v45 = vadd.f32 %v7551_v20, %v7548_v52 }
 0x39e   : > { %v2339_v32 = vpop.xlane.xlu2 %2338 }
 0x39f   : > { %v2382_v13 = vmul.f32 %v7428_v37, %v2339_v32  ;;  %v2216_v31 = vpop.f32.mrf.mxu2  ;;  %v2281_v32 = vpop.f32.mrf.mxu3 }
 0x3a1   : > { %v7561_v35 = vsub.f32 %v7405_v50, %v2382_v13  ;;  %v7564_v21 = vsub.f32 %v7408_v44, %v2382_v13  ;;  %v5385_v50 = vld [vmem:[%s9678_s3 + $0x148] sm:$0xff]  ;;  %v5384_v13 = vld [vmem:[%s9678_s3 + $0x140] sm:$0xff] }
 0x3a2   : > { %v5401_v44 = vld [vmem:[%s9678_s3 + $0x1c8] sm:$0xff]  ;;  %2878 = vmatpush.msrb.mxu0 %v5385_v50  ;;  %v5382_v50 = vld [vmem:[%s9678_s3 + $0x130] sm:$0xff] }
 0x3a3   : > { %v2435_v7 = vmul.f32 %v7561_v35, %v7561_v35  ;;  %v2436_v62 = vmul.f32 %v7564_v21, %v7564_v21  ;;  %2943 = vmatpush.msrb.mxu1 %v5401_v44  ;;  %v5381_v44 = vld [vmem:[%s9678_s3 + $0x128] sm:$0xff] }
 0x3a4   : > { %2879 = vmatpush.msrb.mxu0 %v5384_v13  ;;  %v5397_v13 = vld [vmem:[%s9678_s3 + $0x1a8] sm:$0xff] }
 0x3a5   : > { %v2472_v2 = vadd.f32 %v2436_v62, %v2435_v7  ;;  %2359 = vadd.xlane.f32.xlu0 %v2358_v45  ;;  %v7585_v7 = vadd.f32 %v2216_v31, %v9849_v30  ;;  %v9850_v62 = vld [vmem:[#allocation24_spill] sm:$0xff]  ;;  %2944 = vmatpush.msrb.mxu1 %v5400_v27  ;;  %v5398_v31 = vld [vmem:[%s9678_s3 + $0x1b0] sm:$0xff] }
 0x3a6   : > { %v7588_v45 = vadd.f32 %v2281_v32, %v9850_v62 }
 0x3a7   : > { %2473 = vadd.xlane.f32.xlu2 %v2472_v2  ;;  %v5383_v2 = vld [vmem:[%s9678_s3 + $0x138] sm:$0xff]  ;;  %2945 = vmatpush.msrb.mxu1 %v5399_v3  ;;  %v5380_v3 = vld [vmem:[%s9678_s3 + $0x120] sm:$0xff] }
 0x3a8   : > { %2880 = vmatpush.msrb.mxu0 %v5383_v2  ;;  %v2361_v32 = vadd.f32 %v7588_v45, %v7585_v7  ;;  %v5396_v2 = vld [vmem:[%s9678_s3 + $0x1a0] sm:$0xff] }
 0x3a9   : > { %2946 = vmatpush.msrb.mxu1 %v5398_v31  ;;  %v5395_v31 = vld [vmem:[%s9678_s3 + $0x198] sm:$0xff] }
 0x3aa   : > { %2881 = vmatpush.msrb.mxu0 %v5382_v50  ;;  %v5379_v50 = vld [vmem:[%s9678_s3 + $0x118] sm:$0xff] }
 0x3ab   : > { %2947 = vmatpush.msrb.mxu1 %v5397_v13  ;;  %v2284_v13 = vpop.f32.mrf.mxu3 }
 0x3ac   : > { %2882 = vmatpush.msrb.mxu0 %v5381_v44  ;;  %v2219_v44 = vpop.f32.mrf.mxu2 }
 0x3ad   : > { %2948 = vmatpush.msrb.mxu1 %v5396_v2  ;;  %v7635_v4 = vadd.f32 %v2219_v44, %v9851_v60 }
 0x3ae   : > { %v2342_v27 = vpop.xlane.xlu0 %2341  ;;  %2883 = vmatpush.msrb.mxu0 %v5380_v3  ;;  %v9852_v3 = vld [vmem:[#allocation25_spill] sm:$0xff] }
 0x3af   : > { %v2383_v62 = vmul.f32 %v7428_v37, %v2342_v27  ;;  %2362 = vadd.xlane.f32.xlu2 %v2361_v32  ;;  %2949 = vmatpush.msrb.mxu1 %v5395_v31  ;;  %v7638_v2 = vadd.f32 %v2284_v13, %v9852_v3  ;;  %v9855_v13 = vld [vmem:[#allocation12_spill] sm:$0xff] }
 0x3b0   : > { %2884 = vmatpush.msrb.mxu0 %v5379_v50 }
 0x3b1   : > { %v7618_v30 = vsub.f32 %v7413_v38, %v2383_v62  ;;  %v7621_v34 = vsub.f32 %v7416_v55, %v2383_v62 }
 0x3b3   : > { %v2437_v32 = vmul.f32 %v7618_v30, %v7618_v30  ;;  %v2438_v38 = vmul.f32 %v7621_v34, %v7621_v34 }
 0x3b4   : > { %v2222_v44 = vpop.f32.mrf.mxu2 }
 0x3b5   : > { %v2475_v55 = vadd.f32 %v2438_v38, %v2437_v32  ;;  %v2364_v38 = vadd.f32 %v7638_v2, %v7635_v4 }
 0x3b6   : > { %v2345_v62 = vpop.xlane.xlu2 %2344 }
 0x3b7   : > { %v2384_v27 = vmul.f32 %v7428_v37, %v2345_v62  ;;  %2476 = vadd.xlane.f32.xlu1 %v2475_v55  ;;  %v2287_v55 = vpop.f32.mrf.mxu3  ;;  %v9856_v62 = vld [vmem:[#allocation26_spill] sm:$0xff] }
 0x3b9   : > { %v7641_v9 = vsub.f32 %v7421_v47, %v2384_v27  ;;  %v7644_v25 = vsub.f32 %v7424_v29, %v2384_v27  ;;  %v7653_v47 = vadd.f32 %v2222_v44, %v9855_v13  ;;  %v7656_v29 = vadd.f32 %v2287_v55, %v9856_v62  ;;  %v5376_v44 = vld [vmem:[%s9678_s3 + $0x100] sm:$0xff] }
 0x3ba   : > { %v5392_v55 = vld [vmem:[%s9678_s3 + $0x180] sm:$0xff] }
 0x3bb   : > { %9853 = vst [vmem:[#allocation27_spill] sm:$0xff] %v7641_v9  ;;  %v2439_v50 = vmul.f32 %v7641_v9, %v7641_v9  ;;  %v2440_v31 = vmul.f32 %v7644_v25, %v7644_v25  ;;  %v2367_v27 = vadd.f32 %v7656_v29, %v7653_v47 }
 0x3bc   : > { %9854 = vst [vmem:[#allocation28_spill] sm:$0xff] %v7644_v25 }
 0x3bd   : > { %v2478_v32 = vadd.f32 %v2440_v31, %v2439_v50  ;;  %v5378_v50 = vld [vmem:[%s9678_s3 + $0x110] sm:$0xff] }
 0x3be   : > { %v5394_v31 = vld [vmem:[%s9678_s3 + $0x190] sm:$0xff]  ;;  %2885 = vmatpush.msrb.mxu0 %v5378_v50 }
 0x3bf   : > { %2479 = vadd.xlane.f32.xlu0 %v2478_v32  ;;  %2365 = vadd.xlane.f32.xlu1 %v2364_v38  ;;  %v5377_v32 = vld [vmem:[%s9678_s3 + $0x108] sm:$0xff] }
 0x3c0   : > { %2950 = vmatpush.msrb.mxu1 %v5394_v31  ;;  %v5393_v38 = vld [vmem:[%s9678_s3 + $0x188] sm:$0xff]  ;;  %2886 = vmatpush.msrb.mxu0 %v5377_v32 }
 0x3c2   : > { %2951 = vmatpush.msrb.mxu1 %v5393_v38  ;;  %2887 = vmatpush.msrb.mxu0 %v5376_v44 }
 0x3c4   : > { %2952 = vmatpush.msrb.mxu1 %v5392_v55 }
 0x3c7   : > { %2368 = vadd.xlane.f32.xlu0 %v2367_v27 }
 0x3e7   : > { %v2459_v27 = vpop.xlane.xlu1 %2458 }
 0x3e8   : > { %v2505_v50 = vmul.f32 %v2459_v27, %v7428_v37 }
 0x3ea   : > { %v2521_v13 = vadd.f32 1e-05, %v2505_v50 }
 0x3ec   : > { %5618 = vrsqrt.f32 %v2521_v13  ;;  %vm2543_vm13 = vweird.f32 %v2521_v13 }
 0x3ef   : > { %v2348_v32 = vpop.xlane.xlu1 %2347 }
 0x3f0   : > { %v2462_v62 = vpop.xlane.xlu0 %2461  ;;  %v2385_v60 = vmul.f32 %v7428_v37, %v2348_v32 }
 0x3f1   : > { %v2506_v31 = vmul.f32 %v2462_v62, %v7428_v37 }
 0x3f2   : > { %v5619_v58 = vpop.eup %5618  ;;  %v7684_v44 = vsub.f32 %v7466_v49, %v2385_v60  ;;  %v7687_v55 = vsub.f32 %v7469_v10, %v2385_v60 }
 0x3f3   : > { %v2522_v3 = vadd.f32 1e-05, %v2506_v31  ;;  %v2538_v50 = vmul.f32 %v5619_v58, %v2521_v13  ;;  %vm2544_vm11 = vweird.f32 %v5619_v58 }
 0x3f4   : > { %9857 = vst [vmem:[#allocation29_spill] sm:$0xff] %v7684_v44  ;;  %v2441_v49 = vmul.f32 %v7684_v44, %v7684_v44  ;;  %v2442_v10 = vmul.f32 %v7687_v55, %v7687_v55  ;;  %vm2545_vm14 = vmor %vm2543_vm13, %vm2544_vm11 }
 0x3f5   : > { %5620 = vrsqrt.f32 %v2522_v3  ;;  %9858 = vst [vmem:[#allocation30_spill] sm:$0xff] %v7687_v55  ;;  %vm2553_vm15 = vweird.f32 %v2522_v3 }
 0x3f6   : > { %v2481_v51 = vadd.f32 %v2442_v10, %v2441_v49 }
 0x3f8   : > { %v2351_v46 = vpop.xlane.xlu0 %2350  ;;  %2482 = vadd.xlane.f32.xlu2 %v2481_v51 }
 0x3f9   : > { %v2386_v23 = vmul.f32 %v7428_v37, %v2351_v46  ;;  %v2539_v46 = vmul.f32 %v5619_v58, %v2538_v50 }
 0x3fa   : > { %v2465_v38 = vpop.xlane.xlu2 %2464 }
 0x3fb   : > { %v2507_v59 = vmul.f32 %v2465_v38, %v7428_v37  ;;  %v5621_v27 = vpop.eup %5620  ;;  %v7692_v31 = vsub.f32 %v7484_v14, %v2386_v23  ;;  %v7695_v32 = vsub.f32 %v7487_v26, %v2386_v23  ;;  %v1233_v14 = vld [vmem:[%s9680_s5] ss:$2 sm:$0x3]  ;;  %v2540_v26 = vmul.f32 0.5, %v2539_v46 }
 0x3fc   : > { %v2548_v38 = vmul.f32 %v5621_v27, %v2522_v3  ;;  %v7711_v56 = vperm.slane %v1233_v14, 0  ;;  %vm2554_vm12 = vweird.f32 %v5621_v27  ;;  %v1234_v46 = vld [vmem:[%s9681_s6] ss:$2 sm:$0x3] }
 0x3fd   : > { %v7689_v62 = vadd.f32 1e-05, %v2507_v59  ;;  %9859 = vst [vmem:[#allocation31_spill] sm:$0xff] %v7692_v31  ;;  %v2443_v59 = vmul.f32 %v7692_v31, %v7692_v31  ;;  %v2444_v23 = vmul.f32 %v7695_v32, %v7695_v32  ;;  %v2541_v31 = vsub.f32 1.5, %v2540_v26  ;;  %vm2555_vm1 = vmor %vm2553_vm15, %vm2554_vm12 }
 0x3fe   : > { %v2549_v60 = vmul.f32 %v5621_v27, %v2548_v38  ;;  %v7735_v13 = vperm.slane %v1234_v46, 1 }
 0x3ff   : > { %5622 = vrsqrt.f32 %v7689_v62  ;;  %v2484_v9 = vadd.f32 %v2444_v23, %v2443_v59  ;;  %v7724_v59 = vperm.slane %v1233_v14, 1  ;;  %v2542_v23 = vmul.f32 %v5619_v58, %v2541_v31 }
 0x400   : > { %v2550_v25 = vmul.f32 0.5, %v2549_v60  ;;  %vm2563_vm3 = vweird.f32 %v7689_v62 }
 0x401   : > { %2485 = vadd.xlane.f32.xlu1 %v2484_v9 }
 0x402   : > { %v2468_v50 = vpop.xlane.xlu1 %2467  ;;  %v2354_v15 = vpop.xlane.xlu2 %2353  ;;  %v2551_v49 = vsub.f32 1.5, %v2550_v25 }
 0x403   : > { %v2508_v44 = vmul.f32 %v2468_v50, %v7428_v37  ;;  %v2387_v55 = vmul.f32 %v7428_v37, %v2354_v15 }
 0x404   : > { %v2552_v26 = vmul.f32 %v5621_v27, %v2551_v49 }
 0x405   : > { %v5623_v38 = vpop.eup %5622  ;;  %v7716_v10 = vadd.f32 1e-05, %v2508_v44  ;;  %v7719_v60 = vsub.f32 %v7499_v0, %v2387_v55  ;;  %v7722_v15 = vsub.f32 %v7502_v36, %v2387_v55  ;;  %v7730_v0 = vperm.slane %v1234_v46, 0 }
 0x406   : > { %v2558_v51 = vmul.f32 %v5623_v38, %v7689_v62  ;;  %v2546_v44 = vsel %vm2545_vm14, %v5619_v58, %v2542_v23  ;;  %v2556_v31 = vsel %vm2555_vm1, %v5621_v27, %v2552_v26  ;;  %vm2564_vm2 = vweird.f32 %v5623_v38 }
 0x407   : > { %9860 = vst [vmem:[#allocation32_spill] sm:$0xff] %v7719_v60  ;;  %5624 = vrsqrt.f32 %v7716_v10  ;;  %v2445_v25 = vmul.f32 %v7719_v60, %v7719_v60  ;;  %v2446_v36 = vmul.f32 %v7722_v15, %v7722_v15  ;;  %v2697_v55 = vmul.f32 %v2546_v44, %v7445_v39  ;;  %vm2565_vm4 = vmor %vm2563_vm3, %vm2564_vm2 }
 0x408   : > { %9861 = vst [vmem:[#allocation33_spill] sm:$0xff] %v7722_v15  ;;  %v2559_v9 = vmul.f32 %v5623_v38, %v2558_v51  ;;  %v2698_v3 = vmul.f32 %v2546_v44, %v7448_v61  ;;  %v2699_v14 = vmul.f32 %v2556_v31, %v7451_v48  ;;  %v2700_v50 = vmul.f32 %v2556_v31, %v7454_v17 }
 0x409   : > { %v2487_v58 = vadd.f32 %v2446_v36, %v2445_v25  ;;  %v2734_v23 = vmul.f32 %v7711_v56, %v2697_v55  ;;  %vm2573_vm6 = vweird.f32 %v7716_v10 }
 0x40a   : > { %v2560_v49 = vmul.f32 0.5, %v2559_v9  ;;  %v2357_v60 = vpop.xlane.xlu1 %2356  ;;  %v2735_v51 = vmul.f32 %v7724_v59, %v2698_v3  ;;  %v2736_v39 = vmul.f32 %v7711_v56, %v2699_v14  ;;  %v2737_v61 = vmul.f32 %v7724_v59, %v2700_v50 }
 0x40b   : > { %v2388_v15 = vmul.f32 %v7428_v37, %v2357_v60  ;;  %2488 = vadd.xlane.f32.xlu2 %v2487_v58  ;;  %v2771_v48 = vadd.f32 %v7730_v0, %v2734_v23 }
 0x40c   : > { %v2561_v46 = vsub.f32 1.5, %v2560_v49  ;;  %v2772_v17 = vadd.f32 %v7735_v13, %v2735_v51  ;;  %v2773_v62 = vadd.f32 %v7730_v0, %v2736_v39  ;;  %v2774_v14 = vadd.f32 %v7735_v13, %v2737_v61 }
 0x40d   : > { %v5625_v27 = vpop.eup %5624  ;;  %v7751_v44 = vsub.f32 %v7517_v41, %v2388_v15  ;;  %v7754_v60 = vsub.f32 %v7520_v6, %v2388_v15  ;;  %v7757_v9 = vadd.f32 %v2771_v48, %v6550_v53 }
 0x40e   : > { %v2562_v26 = vmul.f32 %v5623_v38, %v2561_v46  ;;  %v2568_v25 = vmul.f32 %v5625_v27, %v7716_v10  ;;  %v7760_v36 = vadd.f32 %v2772_v17, %v6763_v19  ;;  %v7778_v23 = vadd.f32 %v2774_v14, %v6768_v28 }
 0x40f   : > { %2888 = vmatmul.f32.vlgmr.msrb.gmra.mxu0 %v7757_v9  ;;  %v2447_v19 = vmul.f32 %v7751_v44, %v7751_v44  ;;  %vm2574_vm5 = vweird.f32 %v5625_v27 }
 0x410   : > { %v2566_v55 = vsel %vm2565_vm4, %v5623_v38, %v2562_v26  ;;  %v2569_v3 = vmul.f32 %v5625_v27, %v2568_v25  ;;  %v2471_v31 = vpop.xlane.xlu0 %2470  ;;  %2953 = vmatmul.f32.vlgmr.msrb.gmra.mxu1 %v7760_v36  ;;  %v2448_v38 = vmul.f32 %v7754_v60, %v7754_v60  ;;  %vm2575_vm7 = vmor %vm2573_vm6, %vm2574_vm5 }
 0x411   : > { %v2701_v41 = vmul.f32 %v2566_v55, %v7472_v40  ;;  %v2702_v50 = vmul.f32 %v2566_v55, %v7475_v11  ;;  %v2509_v53 = vmul.f32 %v2471_v31, %v7428_v37  ;;  %v7775_v11 = vadd.f32 %v2773_v62, %v6564_v33 }
 0x412   : > { %v2570_v6 = vmul.f32 0.5, %v2569_v3  ;;  %v2490_v58 = vadd.f32 %v2448_v38, %v2447_v19 }
 0x413   : > { %v2525_v15 = vadd.f32 1e-05, %v2509_v53  ;;  %v2738_v40 = vmul.f32 %v7711_v56, %v2701_v41  ;;  %v2739_v51 = vmul.f32 %v7724_v59, %v2702_v50 }
 0x414   : > { %v2571_v49 = vsub.f32 1.5, %v2570_v6  ;;  %2491 = vadd.xlane.f32.xlu0 %v2490_v58 }
 0x415   : > { %5626 = vrsqrt.f32 %v2525_v15  ;;  %v2775_v61 = vadd.f32 %v7730_v0, %v2738_v40  ;;  %v2776_v28 = vadd.f32 %v7735_v13, %v2739_v51  ;;  %vm2583_vm10 = vweird.f32 %v2525_v15 }
 0x416   : > { %v2572_v46 = vmul.f32 %v5625_v27, %v2571_v49 }
 0x417   : > { %2891 = vmatmul.f32.gmra.mxu0 %v7775_v11  ;;  %v7795_v31 = vadd.f32 %v2775_v61, %v6579_v5 }
 0x418   : > { %v2360_v39 = vpop.xlane.xlu0 %2359  ;;  %2956 = vmatmul.f32.gmra.mxu1 %v7778_v23  ;;  %v2576_v48 = vsel %vm2575_vm7, %v5625_v27, %v2572_v46  ;;  %v7800_v27 = vadd.f32 %v2776_v28, %v6773_v18 }
 0x419   : > { %v2389_v33 = vmul.f32 %v7428_v37, %v2360_v39  ;;  %v2703_v62 = vmul.f32 %v2576_v48, %v7505_v54  ;;  %v2704_v14 = vmul.f32 %v2576_v48, %v7508_v12 }
 0x41a   : > { %v2474_v17 = vpop.xlane.xlu2 %2473 }
 0x41b   : > { %v5627_v26 = vpop.eup %5626  ;;  %v2510_v25 = vmul.f32 %v2474_v17, %v7428_v37  ;;  %v7789_v55 = vsub.f32 %v7548_v52, %v2389_v33  ;;  %v7792_v10 = vsub.f32 %v7551_v20, %v2389_v33  ;;  %v2740_v54 = vmul.f32 %v7711_v56, %v2703_v62 }
 0x41c   : > { %v2578_v3 = vmul.f32 %v5627_v26, %v2525_v15  ;;  %v2741_v12 = vmul.f32 %v7724_v59, %v2704_v14  ;;  %vm2584_vm9 = vweird.f32 %v5627_v26 }
 0x41d   : > { %v2526_v41 = vadd.f32 1e-05, %v2510_v25  ;;  %v2449_v52 = vmul.f32 %v7789_v55, %v7789_v55  ;;  %v2450_v20 = vmul.f32 %v7792_v10, %v7792_v10  ;;  %v2777_v38 = vadd.f32 %v7730_v0, %v2740_v54  ;;  %vm2585_vm11 = vmor %vm2583_vm10, %vm2584_vm9  ;;  %v3710_v25 = vld.sshfl [vmem:[#allocation1] sm:$0xff pattern:$0x75316420] }
 0x41e   : > { %v2579_v50 = vmul.f32 %v5627_v26, %v2578_v3  ;;  %v2778_v49 = vadd.f32 %v7735_v13, %v2741_v12  ;;  %5425 = vmatpush.msk.msrb.mxu2 %vm2155_vm0, %v3710_v25 }
 0x41f   : > { %5628 = vrsqrt.f32 %v2526_v41  ;;  %2894 = vmatmul.f32.gmra.mxu0 %v7795_v31  ;;  %v2493_v5 = vadd.f32 %v2450_v20, %v2449_v52  ;;  %v7820_v39 = vadd.f32 %v2777_v38, %v6595_v57  ;;  %vm2593_vm13 = vweird.f32 %v2526_v41 }
 0x420   : > { %v2580_v53 = vmul.f32 0.5, %v2579_v50  ;;  %2959 = vmatmul.f32.gmra.mxu1 %v7800_v27  ;;  %v7823_v61 = vadd.f32 %v2778_v49, %v6778_v43 }
 0x421   : > { %2494 = vadd.xlane.f32.xlu1 %v2493_v5  ;;  %9862 = vst [vmem:[#allocation34_spill] sm:$0xff] %v7820_v39 }
 0x422   : > { %v2581_v18 = vsub.f32 1.5, %v2580_v53  ;;  %v2363_v6 = vpop.xlane.xlu2 %2362  ;;  %9863 = vst [vmem:[#allocation35_spill] sm:$0xff] %v7823_v61 }
 0x423   : > { %v2390_v19 = vmul.f32 %v7428_v37, %v2363_v6 }
 0x424   : > { %v2582_v58 = vmul.f32 %v5627_v26, %v2581_v18 }
 0x425   : > { %v5629_v40 = vpop.eup %5628  ;;  %v7814_v51 = vsub.f32 %v7585_v7, %v2390_v19  ;;  %v7817_v46 = vsub.f32 %v7588_v45, %v2390_v19 }
 0x426   : > { %v2586_v33 = vsel %vm2585_vm11, %v5627_v26, %v2582_v58  ;;  %v2588_v28 = vmul.f32 %v5629_v40, %v2526_v41  ;;  %vm2594_vm12 = vweird.f32 %v5629_v40 }
 0x427   : > { %v2705_v48 = vmul.f32 %v2586_v33, %v7532_v24  ;;  %v2706_v15 = vmul.f32 %v2586_v33, %v7535_v16  ;;  %v2451_v17 = vmul.f32 %v7814_v51, %v7814_v51  ;;  %v2452_v7 = vmul.f32 %v7817_v46, %v7817_v46  ;;  %2897 = vmatmul.f32.gmra.mxu0 %v7820_v39  ;;  %v3711_v24 = vld.sshfl [vmem:[#allocation1 + $0x8] sm:$0xff pattern:$0x75316420]  ;;  %vm2595_vm14 = vmor %vm2593_vm13, %vm2594_vm12 }
 0x428   : > { %v2589_v45 = vmul.f32 %v5629_v40, %v2588_v28  ;;  %2962 = vmatmul.f32.gmra.mxu1 %v7823_v61  ;;  %5442 = vmatpush.msk.msra.mxu3 %vm2155_vm0, %v3711_v24 }
 0x429   : > { %v2496_v57 = vadd.f32 %v2452_v7, %v2451_v17  ;;  %v2742_v43 = vmul.f32 %v7711_v56, %v2705_v48  ;;  %v2743_v26 = vmul.f32 %v7724_v59, %v2706_v15 }
 0x42a   : > { %v2590_v3 = vmul.f32 0.5, %v2589_v45  ;;  %v2477_v16 = vpop.xlane.xlu1 %2476 }
 0x42b   : > { %v2511_v62 = vmul.f32 %v2477_v16, %v7428_v37  ;;  %2497 = vadd.xlane.f32.xlu2 %v2496_v57  ;;  %v2779_v14 = vadd.f32 %v7730_v0, %v2742_v43  ;;  %v2780_v50 = vadd.f32 %v7735_v13, %v2743_v26 }
 0x42c   : > { %v2591_v52 = vsub.f32 1.5, %v2590_v3 }
 0x42d   : > { %v2527_v20 = vadd.f32 1e-05, %v2511_v62  ;;  %v7841_v53 = vadd.f32 %v2779_v14, %v6612_v22  ;;  %v7844_v5 = vadd.f32 %v2780_v50, %v6789_v42 }
 0x42e   : > { %v2592_v54 = vmul.f32 %v5629_v40, %v2591_v52 }
 0x42f   : > { %5630 = vrsqrt.f32 %v2527_v20  ;;  %2900 = vmatmul.f32.gmra.mxu0 %v7841_v53  ;;  %vm2603_vm15 = vweird.f32 %v2527_v20 }
 0x430   : > { %v2596_v12 = vsel %vm2595_vm14, %v5629_v40, %v2592_v54  ;;  %2965 = vmatmul.f32.gmra.mxu1 %v7844_v5 }
 0x431   : > { %v2707_v18 = vmul.f32 %v2596_v12, %v7561_v35  ;;  %v2708_v6 = vmul.f32 %v2596_v12, %v7564_v21 }
 0x432   : > { %v2480_v19 = vpop.xlane.xlu0 %2479  ;;  %v2366_v38 = vpop.xlane.xlu1 %2365 }
 0x433   : > { %v2512_v22 = vmul.f32 %v2480_v19, %v7428_v37  ;;  %v2391_v42 = vmul.f32 %v7428_v37, %v2366_v38  ;;  %v2744_v49 = vmul.f32 %v7711_v56, %v2707_v18  ;;  %v2745_v41 = vmul.f32 %v7724_v59, %v2708_v6 }
 0x435   : > { %v5631_v58 = vpop.eup %5630  ;;  %v2528_v40 = vadd.f32 1e-05, %v2512_v22  ;;  %v7855_v35 = vsub.f32 %v7635_v4, %v2391_v42  ;;  %v7858_v21 = vsub.f32 %v7638_v2, %v2391_v42  ;;  %v2781_v33 = vadd.f32 %v7730_v0, %v2744_v49 }
 0x436   : > { %v2598_v28 = vmul.f32 %v5631_v58, %v2527_v20  ;;  %v2782_v48 = vadd.f32 %v7735_v13, %v2745_v41  ;;  %vm2604_vm0 = vweird.f32 %v5631_v58  ;;  %v9869_v41 = vld [vmem:[#allocation27_spill] sm:$0xff] }
 0x437   : > { %5632 = vrsqrt.f32 %v2528_v40  ;;  %v2453_v15 = vmul.f32 %v7855_v35, %v7855_v35  ;;  %v2454_v17 = vmul.f32 %v7858_v21, %v7858_v21  ;;  %v7867_v45 = vadd.f32 %v2781_v33, %v6627_v63  ;;  %vm2605_vm1 = vmor %vm2603_vm15, %vm2604_vm0  ;;  %v9870_v33 = vld [vmem:[#allocation28_spill] sm:$0xff] }
 0x438   : > { %v2599_v7 = vmul.f32 %v5631_v58, %v2598_v28  ;;  %v7870_v4 = vadd.f32 %v2782_v48, %v6796_v1  ;;  %vm2613_vm3 = vweird.f32 %v2528_v40 }
 0x439   : > { %9864 = vst [vmem:[#allocation36_spill] sm:$0xff] %v7867_v45  ;;  %v2499_v2 = vadd.f32 %v2454_v17, %v2453_v15  ;;  %2903 = vmatmul.f32.gmra.mxu0 %v7867_v45  ;;  %v9871_v17 = vld [vmem:[#allocation19_spill] sm:$0xff] }
 0x43a   : > { %9865 = vst [vmem:[#allocation37_spill] sm:$0xff] %v7870_v4  ;;  %v2600_v57 = vmul.f32 0.5, %v2599_v7  ;;  %v2369_v43 = vpop.xlane.xlu0 %2368  ;;  %2968 = vmatmul.f32.gmra.mxu1 %v7870_v4 }
 0x43b   : > { %v2392_v26 = vmul.f32 %v7428_v37, %v2369_v43  ;;  %2500 = vadd.xlane.f32.xlu0 %v2499_v2  ;;  %v9873_v2 = vld [vmem:[#allocation14_spill] sm:$0xff] }
 0x43c   : > { %v2601_v25 = vsub.f32 1.5, %v2600_v57 }
 0x43d   : > { %v5633_v24 = vpop.eup %5632  ;;  %v7876_v3 = vsub.f32 %v7653_v47, %v2392_v26  ;;  %v7879_v63 = vsub.f32 %v7656_v29, %v2392_v26 }
 0x43e   : > { %v2602_v1 = vmul.f32 %v5631_v58, %v2601_v25  ;;  %v2608_v16 = vmul.f32 %v5633_v24, %v2528_v40  ;;  %vm2614_vm2 = vweird.f32 %v5633_v24 }
 0x43f   : > { %v2455_v62 = vmul.f32 %v7876_v3, %v7876_v3  ;;  %v2456_v14 = vmul.f32 %v7879_v63, %v7879_v63  ;;  %vm2615_vm4 = vmor %vm2613_vm3, %vm2614_vm2 }
 0x440   : > { %v2606_v50 = vsel %vm2605_vm1, %v5631_v58, %v2602_v1  ;;  %v2609_v52 = vmul.f32 %v5633_v24, %v2608_v16 }
 0x441   : > { %v2709_v54 = vmul.f32 %v2606_v50, %v7618_v30  ;;  %v2710_v47 = vmul.f32 %v2606_v50, %v7621_v34  ;;  %v2502_v12 = vadd.f32 %v2456_v14, %v2455_v62  ;;  %v9867_v34 = vld [vmem:[#allocation16_spill] sm:$0xff] }
 0x442   : > { %v2610_v18 = vmul.f32 0.5, %v2609_v52 }
 0x443   : > { %2503 = vadd.xlane.f32.xlu1 %v2502_v12  ;;  %v2746_v29 = vmul.f32 %v7711_v56, %v2709_v54  ;;  %v2747_v20 = vmul.f32 %v7724_v59, %v2710_v47 }
 0x444   : > { %v2611_v6 = vsub.f32 1.5, %v2610_v18 }
 0x445   : > { %v2783_v19 = vadd.f32 %v7730_v0, %v2746_v29  ;;  %v2784_v38 = vadd.f32 %v7735_v13, %v2747_v20 }
 0x446   : > { %v2612_v22 = vmul.f32 %v5633_v24, %v2611_v6 }
 0x447   : > { %v7892_v30 = vadd.f32 %v2783_v19, %v6642_v8  ;;  %v7895_v42 = vadd.f32 %v2784_v38, %v9867_v34 }
 0x448   : > { %v2616_v49 = vsel %vm2615_vm4, %v5633_v24, %v2612_v22 }
 0x449   : > { %9866 = vst [vmem:[#allocation38_spill] sm:$0xff] %v7892_v30  ;;  %v2711_v58 = vmul.f32 %v2616_v49, %v9869_v41  ;;  %v2712_v28 = vmul.f32 %v2616_v49, %v9870_v33  ;;  %2906 = vmatmul.f32.gmra.mxu0 %v7892_v30  ;;  %2971 = vmatmul.f32.gmra.mxu1 %v7895_v42 }
 0x44a   : > { %9868 = vst [vmem:[#allocation16_spill] sm:$0xff] %v7895_v42 }
 0x44b   : > { %v2748_v48 = vmul.f32 %v7711_v56, %v2711_v58  ;;  %v2749_v40 = vmul.f32 %v7724_v59, %v2712_v28  ;;  %v9875_v28 = vld [vmem:[#allocation29_spill] sm:$0xff] }
 0x44d   : > { %v2785_v15 = vadd.f32 %v7730_v0, %v2748_v48  ;;  %v2786_v8 = vadd.f32 %v7735_v13, %v2749_v40  ;;  %v9876_v40 = vld [vmem:[#allocation30_spill] sm:$0xff] }
 0x44f   : > { %v7906_v7 = vadd.f32 %v2785_v15, %v9871_v17  ;;  %v7909_v57 = vadd.f32 %v2786_v8, %v9873_v2 }
 0x451   : > { %9872 = vst [vmem:[#allocation27_spill] sm:$0xff] %v7906_v7  ;;  %2909 = vmatmul.f32.gmra.mxu0 %v7906_v7  ;;  %2974 = vmatmul.f32.gmra.mxu1 %v7909_v57 }
 0x452   : > { %9874 = vst [vmem:[#allocation28_spill] sm:$0xff] %v7909_v57 }
 0x46b   : > { %v2483_v43 = vpop.xlane.xlu2 %2482 }
 0x46c   : > { %v2513_v26 = vmul.f32 %v2483_v43, %v7428_v37 }
 0x46e   : > { %v2529_v1 = vadd.f32 1e-05, %v2513_v26 }
 0x470   : > { %5634 = vrsqrt.f32 %v2529_v1  ;;  %vm2623_vm6 = vweird.f32 %v2529_v1 }
 0x474   : > { %v2486_v25 = vpop.xlane.xlu1 %2485 }
 0x475   : > { %v2514_v24 = vmul.f32 %v2486_v25, %v7428_v37 }
 0x476   : > { %v5635_v50 = vpop.eup %5634 }
 0x477   : > { %v2530_v16 = vadd.f32 1e-05, %v2514_v24  ;;  %v2618_v47 = vmul.f32 %v5635_v50, %v2529_v1  ;;  %vm2624_vm5 = vweird.f32 %v5635_v50 }
 0x478   : > { %vm2625_vm7 = vmor %vm2623_vm6, %vm2624_vm5 }
 0x479   : > { %5636 = vrsqrt.f32 %v2530_v16  ;;  %v2619_v18 = vmul.f32 %v5635_v50, %v2618_v47  ;;  %vm2633_vm10 = vweird.f32 %v2530_v16 }
 0x47b   : > { %v2620_v20 = vmul.f32 0.5, %v2619_v18  ;;  %v9877_v18 = vld [vmem:[#allocation31_spill] sm:$0xff] }
 0x47d   : > { %v2621_v19 = vsub.f32 1.5, %v2620_v20 }
 0x47e   : > { %v2489_v62 = vpop.xlane.xlu2 %2488 }
 0x47f   : > { %v2515_v14 = vmul.f32 %v2489_v62, %v7428_v37  ;;  %v5637_v54 = vpop.eup %5636  ;;  %v2622_v34 = vmul.f32 %v5635_v50, %v2621_v19  ;;  %v9878_v19 = vld [vmem:[#allocation20_spill] sm:$0xff] }
 0x480   : > { %v2628_v12 = vmul.f32 %v5637_v54, %v2530_v16  ;;  %vm2634_vm9 = vweird.f32 %v5637_v54 }
 0x481   : > { %v2531_v52 = vadd.f32 1e-05, %v2515_v14  ;;  %v2626_v58 = vsel %vm2625_vm7, %v5635_v50, %v2622_v34  ;;  %vm2635_vm11 = vmor %vm2633_vm10, %vm2634_vm9  ;;  %v9880_v34 = vld [vmem:[#allocation18_spill] sm:$0xff] }
 0x482   : > { %v2629_v29 = vmul.f32 %v5637_v54, %v2628_v12  ;;  %v2713_v48 = vmul.f32 %v2626_v58, %v9875_v28  ;;  %v2714_v15 = vmul.f32 %v2626_v58, %v9876_v40 }
 0x483   : > { %5638 = vrsqrt.f32 %v2531_v52  ;;  %vm2643_vm13 = vweird.f32 %v2531_v52 }
 0x484   : > { %v2630_v6 = vmul.f32 0.5, %v2629_v29  ;;  %v2750_v1 = vmul.f32 %v7711_v56, %v2713_v48  ;;  %v2751_v62 = vmul.f32 %v7724_v59, %v2714_v15 }
 0x486   : > { %v2631_v22 = vsub.f32 1.5, %v2630_v6  ;;  %v2787_v16 = vadd.f32 %v7730_v0, %v2750_v1  ;;  %v2788_v12 = vadd.f32 %v7735_v13, %v2751_v62 }
 0x487   : > { %v2492_v26 = vpop.xlane.xlu0 %2491 }
 0x488   : > { %v2632_v41 = vmul.f32 %v5637_v54, %v2631_v22  ;;  %v2516_v24 = vmul.f32 %v2492_v26, %v7428_v37  ;;  %v7936_v22 = vadd.f32 %v2787_v16, %v9878_v19 }
 0x489   : > { %v5639_v38 = vpop.eup %5638 }
 0x48a   : > { %v2638_v49 = vmul.f32 %v5639_v38, %v2531_v52  ;;  %v2636_v25 = vsel %vm2635_vm11, %v5637_v54, %v2632_v41  ;;  %v7926_v47 = vadd.f32 1e-05, %v2516_v24  ;;  %vm2644_vm12 = vweird.f32 %v5639_v38  ;;  %9879 = vst [vmem:[#allocation19_spill] sm:$0xff] %v7936_v22  ;;  %2912 = vmatmul.f32.gmra.mxu0 %v7936_v22  ;;  %v9890_v22 = vld [vmem:[#allocation17_spill] sm:$0xff] }
 0x48b   : > { %v2715_v29 = vmul.f32 %v2636_v25, %v9877_v18  ;;  %v2716_v54 = vmul.f32 %v2636_v25, %v7695_v32  ;;  %vm2645_vm14 = vmor %vm2643_vm13, %vm2644_vm12  ;;  %v9882_v18 = vld [vmem:[#allocation32_spill] sm:$0xff] }
 0x48c   : > { %v2639_v33 = vmul.f32 %v5639_v38, %v2638_v49  ;;  %v2889_v8 = vpop.f32.mrf.mxu0  ;;  %5640 = vrsqrt.f32 %v7926_v47  ;;  %v7939_v49 = vadd.f32 %v2788_v12, %v9880_v34  ;;  %vm2653_vm15 = vweird.f32 %v7926_v47 }
 0x48d   : > { %v2954_v17 = vpop.f32.mrf.mxu1  ;;  %v2752_v15 = vmul.f32 %v7711_v56, %v2715_v29  ;;  %v2753_v52 = vmul.f32 %v7724_v59, %v2716_v54 }
 0x48e   : > { %v2640_v2 = vmul.f32 0.5, %v2639_v33  ;;  %v7918_v43 = vadd.f32 %v2954_v17, %v2889_v8  ;;  %9881 = vst [vmem:[#allocation14_spill] sm:$0xff] %v7939_v49  ;;  %2977 = vmatmul.f32.gmra.mxu1 %v7939_v49 }
 0x48f   : > { %v2789_v24 = vadd.f32 %v7730_v0, %v2752_v15 }
 0x490   : > { %v2641_v14 = vsub.f32 1.5, %v2640_v2  ;;  %v7924_v50 = vmul.f32 0.70710677, %v7918_v43 }
 0x492   : > { %v3034_v20 = vmul.f32 %v7924_v50, %v7924_v50  ;;  %v2642_v6 = vmul.f32 %v5639_v38, %v2641_v14  ;;  %v7955_v1 = vpop.eup %5640  ;;  %v2790_v14 = vadd.f32 %v7735_v13, %v2753_v52 }
 0x493   : > { %v2648_v12 = vmul.f32 %v7955_v1, %v7926_v47  ;;  %vm2654_vm0 = vweird.f32 %v7955_v1 }
 0x494   : > { %v7941_v41 = vmin.f32 %v3034_v20, 16.0  ;;  %v2495_v58 = vpop.xlane.xlu1 %2494  ;;  %v2892_v40 = vpop.f32.mrf.mxu0  ;;  %v2646_v8 = vsel %vm2645_vm14, %v5639_v38, %v2642_v6  ;;  %v9883_v20 = vld [vmem:[#allocation21_spill] sm:$0xff]  ;;  %vm2655_vm1 = vmor %vm2653_vm15, %vm2654_vm0 }
 0x495   : > { %v2957_v32 = vpop.f32.mrf.mxu1  ;;  %v2517_v48 = vmul.f32 %v2495_v58, %v7428_v37  ;;  %v2717_v29 = vmul.f32 %v2646_v8, %v9882_v18  ;;  %v7970_v6 = vadd.f32 %v2789_v24, %v9883_v20  ;;  %v9885_v58 = vld [vmem:[#allocation15_spill] sm:$0xff]  ;;  %v9887_v20 = vld [vmem:[#allocation33_spill] sm:$0xff] }
 0x496   : > { %v3036_v33 = vmul.f32 2.1237322e-06, %v7941_v41  ;;  %v3047_v28 = vmul.f32 3.8918573e-05, %v7941_v41  ;;  %v7949_v17 = vadd.f32 %v2957_v32, %v2892_v40  ;;  %v2649_v32 = vmul.f32 %v7955_v1, %v2648_v12 }
 0x497   : > { %v7952_v25 = vadd.f32 1e-05, %v2517_v48  ;;  %9884 = vst [vmem:[#allocation29_spill] sm:$0xff] %v7970_v6  ;;  %2915 = vmatmul.f32.gmra.mxu0 %v7970_v6  ;;  %v2754_v18 = vmul.f32 %v7711_v56, %v2717_v29 }
 0x498   : > { %v3037_v2 = vadd.f32 0.00028619796, %v3036_v33  ;;  %v3048_v26 = vadd.f32 0.001143296, %v3047_v28  ;;  %v7958_v62 = vmul.f32 0.70710677, %v7949_v17  ;;  %v7974_v33 = vadd.f32 %v2790_v14, %v9885_v58 }
 0x499   : > { %5642 = vrsqrt.f32 %v7952_v25  ;;  %vm2663_vm2 = vweird.f32 %v7952_v25 }
 0x49a   : > { %v3038_v16 = vmul.f32 %v3037_v2, %v7941_v41  ;;  %v3049_v38 = vmul.f32 %v3048_v26, %v7941_v41  ;;  %v3074_v54 = vmul.f32 %v7958_v62, %v7958_v62  ;;  %9886 = vst [vmem:[#allocation30_spill] sm:$0xff] %v7974_v33  ;;  %2980 = vmatmul.f32.gmra.mxu1 %v7974_v33  ;;  %v2650_v2 = vmul.f32 0.5, %v2649_v32 }
 0x49c   : > { %v3039_v19 = vadd.f32 0.0036580483, %v3038_v16  ;;  %v3050_v34 = vadd.f32 0.014752088, %v3049_v38  ;;  %v7976_v28 = vmin.f32 %v3074_v54, 16.0  ;;  %v2895_v16 = vpop.f32.mrf.mxu0 }
 0x49d   : > { %v2960_v14 = vpop.f32.mrf.mxu1 }
 0x49e   : > { %v2498_v48 = vpop.xlane.xlu2 %2497  ;;  %v3040_v40 = vmul.f32 %v3039_v19, %v7941_v41  ;;  %v3051_v15 = vmul.f32 %v3050_v34, %v7941_v41  ;;  %v3076_v26 = vmul.f32 2.1237322e-06, %v7976_v28  ;;  %v3087_v24 = vmul.f32 3.8918573e-05, %v7976_v28 }
 0x49f   : > { %v2518_v52 = vmul.f32 %v2498_v48, %v7428_v37  ;;  %v7986_v54 = vpop.eup %5642  ;;  %v2718_v19 = vmul.f32 %v2646_v8, %v9887_v20  ;;  %v7995_v49 = vadd.f32 %v2960_v14, %v2895_v16 }
 0x4a0   : > { %v3041_v38 = vadd.f32 0.05243302, %v3040_v40  ;;  %v3052_v12 = vadd.f32 0.112945676, %v3051_v15  ;;  %v3077_v34 = vadd.f32 0.00028619796, %v3076_v26  ;;  %v2658_v6 = vmul.f32 %v7986_v54, %v7952_v25 }
 0x4a1   : > { %v3088_v58 = vadd.f32 0.001143296, %v3087_v24  ;;  %v7989_v33 = vadd.f32 1e-05, %v2518_v52  ;;  %v2651_v40 = vsub.f32 1.5, %v2650_v2  ;;  %v2791_v52 = vadd.f32 %v7730_v0, %v2754_v18 }
 0x4a2   : > { %v3042_v32 = vmul.f32 %v3041_v38, %v7941_v41  ;;  %v3053_v48 = vmul.f32 %v3052_v12, %v7941_v41  ;;  %v3078_v29 = vmul.f32 %v3077_v34, %v7976_v28  ;;  %v2659_v14 = vmul.f32 %v7986_v54, %v2658_v6 }
 0x4a3   : > { %v3089_v15 = vmul.f32 %v3088_v58, %v7976_v28  ;;  %5644 = vrsqrt.f32 %v7989_v33  ;;  %v2755_v2 = vmul.f32 %v7724_v59, %v2718_v19  ;;  %v2652_v16 = vmul.f32 %v7955_v1, %v2651_v40 }
 0x4a4   : > { %v3043_v8 = vadd.f32 0.18741608, %v3042_v32  ;;  %v3054_v26 = vadd.f32 0.4994258, %v3053_v48  ;;  %v3079_v24 = vadd.f32 0.0036580483, %v3078_v29  ;;  %vm2664_vm3 = vweird.f32 %v7986_v54 }
 0x4a5   : > { %v3090_v38 = vadd.f32 0.014752088, %v3089_v15  ;;  %v8009_v58 = vmul.f32 0.70710677, %v7995_v49  ;;  %v9888_v48 = vld [vmem:[#allocation8_spill] sm:$0xff]  ;;  %vm2665_vm7 = vmor %vm2663_vm2, %vm2664_vm3  ;;  %vm2673_vm10 = vweird.f32 %v7989_v33 }
 0x4a6   : > { %v3055_v12 = vmul.f32 %v3054_v26, %v7941_v41  ;;  %v3080_v20 = vmul.f32 %v3079_v24, %v7976_v28  ;;  %v3044_v18 = vmul.f32 %v3043_v8, %v7941_v41  ;;  %v8015_v29 = vadd.f32 %v2791_v52, %v9888_v48 }
 0x4a7   : > { %v3091_v34 = vmul.f32 %v3090_v38, %v7976_v28  ;;  %v3114_v40 = vmul.f32 %v8009_v58, %v8009_v58  ;;  %v8023_v26 = vmul.f32 0.5, %v7918_v43  ;;  %v2660_v41 = vmul.f32 0.5, %v2659_v14 }
 0x4a8   : > { %v8012_v32 = vadd.f32 1.0, %v3055_v12  ;;  %9889 = vst [vmem:[#allocation31_spill] sm:$0xff] %v8015_v29  ;;  %v3081_v6 = vadd.f32 0.05243302, %v3080_v20  ;;  %2918 = vmatmul.f32.gmra.mxu0 %v8015_v29  ;;  %v2656_v8 = vsel %vm2655_vm1, %v7955_v1, %v2652_v16  ;;  %v2792_v24 = vadd.f32 %v7735_v13, %v2755_v2  ;;  %v2963_v16 = vpop.f32.mrf.mxu1 }
 0x4a9   : > { %v8017_v15 = vpop.eup %5644  ;;  %v3092_v19 = vadd.f32 0.112945676, %v3091_v34  ;;  %v3045_v38 = vadd.f32 1.1283791, %v3044_v18  ;;  %v8034_v43 = vmul.f32 0.5, %v7949_v17  ;;  %v8038_v20 = vmin.f32 %v3114_v40, 16.0  ;;  %v2898_v18 = vpop.f32.mrf.mxu0 }
 0x4aa   : > { %5646 = vrcp.f32 %v8012_v32  ;;  %v3082_v47 = vmul.f32 %v3081_v6, %v7976_v28  ;;  %v2668_v12 = vmul.f32 %v8017_v15, %v7989_v33  ;;  %v2719_v34 = vmul.f32 %v2656_v8, %v7751_v44 }
 0x4ab   : > { %v3093_v52 = vmul.f32 %v3092_v19, %v7976_v28  ;;  %v2661_v48 = vsub.f32 1.5, %v2660_v41  ;;  %v3116_v17 = vmul.f32 2.1237322e-06, %v8038_v20  ;;  %v3127_v29 = vmul.f32 3.8918573e-05, %v8038_v20 }
 0x4ac   : > { %v3083_v1 = vadd.f32 0.18741608, %v3082_v47  ;;  %v2669_v2 = vmul.f32 %v8017_v15, %v2668_v12  ;;  %v8049_v57 = vadd.f32 %v2792_v24, %v9890_v22  ;;  %v3066_v44 = vand.u32 2147483647, %v8012_v32 }
 0x4ad   : > { %v3094_v14 = vadd.f32 0.4994258, %v3093_v52  ;;  %v3046_v52 = vmul.f32 %v3045_v38, %v7924_v50  ;;  %v2720_v41 = vmul.f32 %v2656_v8, %v7754_v60  ;;  %v3117_v12 = vadd.f32 0.00028619796, %v3116_v17 }
 0x4ae   : > { %v2501_v6 = vpop.xlane.xlu0 %2500  ;;  %v3084_v19 = vmul.f32 %v3083_v1, %v7976_v28  ;;  %9891 = vst [vmem:[#allocation20_spill] sm:$0xff] %v8049_v57  ;;  %2983 = vmatmul.f32.gmra.mxu1 %v8049_v57  ;;  %v3068_v22 = vand.u32 2147483648, %v8012_v32  ;;  %v2670_v24 = vmul.f32 0.5, %v2669_v2  ;;  %v3128_v38 = vadd.f32 0.001143296, %v3127_v29 }
 0x4af   : > { %v3095_v40 = vmul.f32 %v3094_v14, %v7976_v28  ;;  %v8058_v28 = vadd.f32 %v2963_v16, %v2898_v18  ;;  %v2519_v1 = vmul.f32 %v2501_v6, %v7428_v37  ;;  %v3118_v50 = vmul.f32 %v3117_v12, %v8038_v20 }
 0x4b0   : > { %v5647_v47 = vpop.eup %5646  ;;  %v2662_v60 = vmul.f32 %v7986_v54, %v2661_v48  ;;  %v3085_v8 = vadd.f32 1.1283791, %v3084_v19  ;;  %vm3062_vm4 = vweird.f32 %v8012_v32  ;;  %vm8066_vm6 = vcmp.eq.f32.partialorder %v3066_v44, 8.507059e+37 }
 0x4b1   : > { %v3058_v7 = vmul.f32 %v5647_v47, %v8012_v32  ;;  %v8055_v42 = vadd.f32 1.0, %v3095_v40  ;;  %vm3063_vm5 = vweird.f32 %v5647_v47  ;;  %v3119_v17 = vadd.f32 0.0036580483, %v3118_v50 }
 0x4b2   : > { %v3129_v2 = vmul.f32 %v3128_v38, %v8038_v20  ;;  %v8072_v6 = vmul.f32 0.70710677, %v8058_v28  ;;  %v3069_v29 = vor.u32 1.1754944e-38, %v3068_v22  ;;  %v2671_v48 = vsub.f32 1.5, %v2670_v24  ;;  %vm3064_vm11 = vmor %vm3062_vm4, %vm3063_vm5 }
 0x4b3   : > { %v3059_v14 = vsub.f32 1.0, %v3058_v7  ;;  %5648 = vrcp.f32 %v8055_v42  ;;  %v8074_v7 = vadd.f32 1e-05, %v2519_v1  ;;  %vm2674_vm9 = vweird.f32 %v8017_v15 }
 0x4b4   : > { %v3120_v19 = vmul.f32 %v3119_v17, %v8038_v20  ;;  %v8083_v44 = vsel %vm2665_vm7, %v7986_v54, %v2662_v60  ;;  %v8086_v12 = vmul.f32 %v3085_v8, %v7958_v62  ;;  %v3130_v1 = vadd.f32 0.014752088, %v3129_v2  ;;  %vm2675_vm0 = vmor %vm2673_vm10, %vm2674_vm9 }
 0x4b5   : > { %v3060_v18 = vmul.f32 %v5647_v47, %v3059_v14  ;;  %vm3102_vm12 = vweird.f32 %v8055_v42  ;;  %v3106_v25 = vand.u32 2147483647, %v8055_v42  ;;  %v3108_v22 = vand.u32 2147483648, %v8055_v42 }
 0x4b6   : > { %v3154_v54 = vmul.f32 %v8072_v6, %v8072_v6  ;;  %5650 = vrsqrt.f32 %v8074_v7  ;;  %v3131_v50 = vmul.f32 %v3130_v1, %v8038_v20  ;;  %v2756_v38 = vmul.f32 %v7711_v56, %v2719_v34  ;;  %v2966_v1 = vpop.f32.mrf.mxu1 }
 0x4b7   : > { %v3061_v40 = vadd.f32 %v5647_v47, %v3060_v18  ;;  %v2757_v32 = vmul.f32 %v7724_v59, %v2720_v41  ;;  %v2672_v8 = vmul.f32 %v8017_v15, %v2671_v48  ;;  %v3121_v17 = vadd.f32 0.05243302, %v3120_v19  ;;  %v2901_v19 = vpop.f32.mrf.mxu0 }
 0x4b8   : > { %v3132_v2 = vadd.f32 0.112945676, %v3131_v50  ;;  %v8105_v57 = vmin.f32 %v3154_v54, 16.0  ;;  %vm8108_vm14 = vcmp.eq.f32.partialorder %v3106_v25, 8.507059e+37  ;;  %v9896_v25 = vld [vmem:[#allocation11_spill] sm:$0xff]  ;;  %v3109_v45 = vor.u32 1.1754944e-38, %v3108_v22 }
 0x4b9   : > { %v5649_v62 = vpop.eup %5648  ;;  %v3065_v24 = vsel %vm3064_vm11, %v5647_v47, %v3061_v40  ;;  %v2793_v47 = vadd.f32 %v7730_v0, %v2756_v38  ;;  %v2794_v41 = vadd.f32 %v7735_v13, %v2757_v32  ;;  %v3122_v50 = vmul.f32 %v3121_v17, %v8038_v20 }
 0x4ba   : > { %v3070_v14 = vsel %vm8066_vm6, %v3069_v29, %v3065_v24  ;;  %v3098_v60 = vmul.f32 %v5649_v62, %v8055_v42  ;;  %vm3103_vm13 = vweird.f32 %v5649_v62  ;;  %v3133_v29 = vmul.f32 %v3132_v2, %v8038_v20 }
 0x4bb   : > { %v3071_v18 = vmul.f32 %v3070_v14, %v3046_v52  ;;  %v3156_v48 = vmul.f32 2.1237322e-06, %v8105_v57  ;;  %v3167_v52 = vmul.f32 3.8918573e-05, %v8105_v57  ;;  %v8120_v38 = vadd.f32 %v2793_v47, %v9896_v25  ;;  %v9898_v14 = vld [vmem:[#allocation22_spill] sm:$0xff]  ;;  %vm3104_vm15 = vmor %vm3102_vm12, %vm3103_vm13 }
 0x4bc   : > { %v3099_v40 = vsub.f32 1.0, %v3098_v60  ;;  %v8116_v54 = vpop.eup %5650  ;;  %v8123_v60 = vadd.f32 %v2794_v41, %v9898_v14  ;;  %v8133_v47 = vadd.f32 %v2966_v1, %v2901_v19  ;;  %vm2683_vm1 = vweird.f32 %v8074_v7 }
 0x4bd   : > { %v5408_v16 = vclamps-f32 %v3071_v18, 1.0  ;;  %9897 = vst [vmem:[#allocation18_spill] sm:$0xff] %v8120_v38  ;;  %v3134_v18 = vadd.f32 0.4994258, %v3133_v29  ;;  %v3157_v2 = vadd.f32 0.00028619796, %v3156_v48  ;;  %v2678_v30 = vmul.f32 %v8116_v54, %v8074_v7  ;;  %2921 = vmatmul.f32.gmra.mxu0 %v8120_v38 }
 0x4be   : > { %v3100_v24 = vmul.f32 %v5649_v62, %v3099_v40  ;;  %9899 = vst [vmem:[#allocation32_spill] sm:$0xff] %v8123_v60  ;;  %v3168_v17 = vadd.f32 0.001143296, %v3167_v52  ;;  %2986 = vmatmul.f32.gmra.mxu1 %v8123_v60  ;;  %v2676_v48 = vsel %vm2675_vm0, %v8017_v15, %v2672_v8  ;;  %v3123_v52 = vadd.f32 0.18741608, %v3122_v50 }
 0x4bf   : > { %v3674_v32 = vadd.f32 1.0, %v5408_v16  ;;  %v3135_v22 = vmul.f32 %v3134_v18, %v8038_v20  ;;  %v3158_v41 = vmul.f32 %v3157_v2, %v8105_v57  ;;  %v2679_v33 = vmul.f32 %v8116_v54, %v2678_v30  ;;  %v2504_v16 = vpop.xlane.xlu1 %2503 }
 0x4c0   : > { %v3101_v4 = vadd.f32 %v5649_v62, %v3100_v24  ;;  %v3169_v19 = vmul.f32 %v3168_v17, %v8105_v57  ;;  %v2520_v15 = vmul.f32 %v2504_v16, %v7428_v37  ;;  %v8160_v8 = vmul.f32 0.5, %v7995_v49 }
 0x4c1   : > { %v3690_v40 = vmul.f32 %v3674_v32, %v8023_v26  ;;  %v8146_v1 = vadd.f32 1.0, %v3135_v22  ;;  %v3159_v42 = vadd.f32 0.0036580483, %v3158_v41  ;;  %v2680_v24 = vmul.f32 0.5, %v2679_v33 }
 0x4c2   : > { %v3105_v29 = vsel %vm3104_vm15, %v5649_v62, %v3101_v4  ;;  %v3170_v25 = vadd.f32 0.014752088, %v3169_v19  ;;  %v8152_v4 = vmul.f32 0.70710677, %v8133_v47  ;;  %v2721_v62 = vmul.f32 %v8083_v44, %v7789_v55 }
 0x4c3   : > { %v3110_v26 = vsel %vm8108_vm14, %v3109_v45, %v3105_v29  ;;  %5426 = vmatmul.msk.f32.vlgmr.msrb.gmra.mxu2 %vm2106_vm8, %v3690_v40  ;;  %5443 = vmatmul.msk.f32.vlgmr.msra.gmra.mxu3 %vm2106_vm8, %v3690_v40  ;;  %v2722_v45 = vmul.f32 %v8083_v44, %v7792_v10  ;;  %5652 = vrcp.f32 %v8146_v1  ;;  %v3160_v50 = vmul.f32 %v3159_v42, %v8105_v57 }
 0x4c4   : > { %v3111_v30 = vmul.f32 %v3110_v26, %v8086_v12  ;;  %v3124_v12 = vmul.f32 %v3123_v52, %v8038_v20  ;;  %v3171_v14 = vmul.f32 %v3170_v25, %v8105_v57  ;;  %v8167_v32 = vmul.f32 %v2676_v48, %v7814_v51 }
 0x4c5   : > { %v8170_v55 = vmul.f32 %v2676_v48, %v7817_v46  ;;  %v3194_v10 = vmul.f32 %v8152_v4, %v8152_v4  ;;  %v8174_v49 = vadd.f32 1e-05, %v2520_v15  ;;  %v3161_v18 = vadd.f32 0.05243302, %v3160_v50  ;;  %v2904_v15 = vpop.f32.mrf.mxu0 }
 0x4c6   : > { %v5409_v34 = vclamps-f32 %v3111_v30, 1.0  ;;  %v3172_v2 = vadd.f32 0.112945676, %v3171_v14  ;;  %v2681_v17 = vsub.f32 1.5, %v2680_v24  ;;  %v2758_v51 = vmul.f32 %v7711_v56, %v2721_v62  ;;  %v2969_v62 = vpop.f32.mrf.mxu1 }
 0x4c7   : > { %v8177_v20 = vmin.f32 %v3194_v10, 16.0  ;;  %5654 = vrsqrt.f32 %v8174_v49  ;;  %v3125_v40 = vadd.f32 1.1283791, %v3124_v12  ;;  %v3162_v22 = vmul.f32 %v3161_v18, %v8105_v57  ;;  %v9900_v18 = vld [vmem:[#allocation9_spill] sm:$0xff] }
 0x4c8   : > { %v3675_v44 = vadd.f32 1.0, %v5409_v34  ;;  %v3173_v41 = vmul.f32 %v3172_v2, %v8105_v57  ;;  %v3146_v16 = vand.u32 2147483647, %v8146_v1  ;;  %vm2684_vm2 = vweird.f32 %v8116_v54 }
 0x4c9   : > { %v5653_v33 = vpop.eup %5652  ;;  %v3196_v29 = vmul.f32 2.1237322e-06, %v8177_v20  ;;  %v3207_v48 = vmul.f32 3.8918573e-05, %v8177_v20  ;;  %v3148_v19 = vand.u32 2147483648, %v8146_v1  ;;  %v2795_v30 = vadd.f32 %v7730_v0, %v2758_v51  ;;  %vm2685_vm4 = vmor %vm2683_vm1, %vm2684_vm2 }
 0x4ca   : > { %v3691_v46 = vmul.f32 %v3675_v44, %v8034_v43  ;;  %v3138_v52 = vmul.f32 %v5653_v33, %v8146_v1  ;;  %v3174_v26 = vadd.f32 0.4994258, %v3173_v41  ;;  %v2682_v43 = vmul.f32 %v8116_v54, %v2681_v17 }
 0x4cb   : > { %v3197_v42 = vadd.f32 0.00028619796, %v3196_v29  ;;  %v3208_v24 = vadd.f32 0.001143296, %v3207_v48  ;;  %v2759_v25 = vmul.f32 %v7724_v59, %v2722_v45  ;;  %vm3143_vm3 = vweird.f32 %v5653_v33 }
 0x4cc   : > { %5427 = vmatmul.msk.f32.gmra.mxu2 %vm2106_vm8, %v3691_v46  ;;  %5444 = vmatmul.msk.f32.gmra.mxu3 %vm2106_vm8, %v3691_v46  ;;  %v3139_v34 = vsub.f32 1.0, %v3138_v52  ;;  %v3163_v12 = vadd.f32 0.18741608, %v3162_v22  ;;  %v3175_v50 = vmul.f32 %v3174_v26, %v8105_v57  ;;  %v8201_v2 = vadd.f32 %v2795_v30, %v9900_v18  ;;  %v9902_v52 = vld [vmem:[#allocation23_spill] sm:$0xff] }
 0x4cd   : > { %v8196_v14 = vpop.eup %5654  ;;  %v3198_v10 = vmul.f32 %v3197_v42, %v8177_v20  ;;  %v3209_v44 = vmul.f32 %v3208_v24, %v8177_v20  ;;  %v2796_v17 = vadd.f32 %v7735_v13, %v2759_v25  ;;  %v8208_v22 = vadd.f32 %v2969_v62, %v2904_v15 }
 0x4ce   : > { %9901 = vst [vmem:[#allocation21_spill] sm:$0xff] %v8201_v2  ;;  %v3140_v51 = vmul.f32 %v5653_v33, %v3139_v34  ;;  %v8204_v45 = vadd.f32 1.0, %v3175_v50  ;;  %v2688_v46 = vmul.f32 %v8196_v14, %v8174_v49  ;;  %v3126_v41 = vmul.f32 %v3125_v40, %v8009_v58  ;;  %2924 = vmatmul.f32.gmra.mxu0 %v8201_v2 }
 0x4cf   : > { %v3199_v29 = vadd.f32 0.0036580483, %v3198_v10  ;;  %v3210_v48 = vadd.f32 0.014752088, %v3209_v44  ;;  %v8217_v26 = vadd.f32 %v2796_v17, %v9902_v52  ;;  %vm3142_vm5 = vweird.f32 %v8146_v1  ;;  %v2907_v10 = vpop.f32.mrf.mxu0 }
 0x4d0   : > { %v3141_v42 = vadd.f32 %v5653_v33, %v3140_v51  ;;  %5656 = vrcp.f32 %v8204_v45  ;;  %v2686_v24 = vsel %vm2685_vm4, %v8116_v54, %v2682_v43  ;;  %vm3144_vm6 = vmor %vm3142_vm5, %vm3143_vm3  ;;  %v3149_v58 = vor.u32 1.1754944e-38, %v3148_v19 }
 0x4d1   : > { %9903 = vst [vmem:[#allocation15_spill] sm:$0xff] %v8217_v26  ;;  %v3164_v7 = vmul.f32 %v3163_v12, %v8105_v57  ;;  %v3200_v40 = vmul.f32 %v3199_v29, %v8177_v20  ;;  %v3211_v30 = vmul.f32 %v3210_v48, %v8177_v20  ;;  %2989 = vmatmul.f32.gmra.mxu1 %v8217_v26  ;;  %vm3147_vm7 = vcmp.eq.f32.partialorder %v3146_v16, 8.507059e+37 }
 0x4d2   : > { %v3145_v25 = vsel %vm3144_vm6, %v5653_v33, %v3141_v42  ;;  %v2689_v15 = vmul.f32 %v8196_v14, %v2688_v46  ;;  %v8229_v1 = vmul.f32 0.70710677, %v8208_v22  ;;  %v8232_v54 = vmul.f32 %v2686_v24, %v7855_v35  ;;  %v2972_v35 = vpop.f32.mrf.mxu1 }
 0x4d3   : > { %v3150_v62 = vsel %vm3147_vm7, %v3149_v58, %v3145_v25  ;;  %v3201_v19 = vadd.f32 0.05243302, %v3200_v40  ;;  %vm2693_vm9 = vweird.f32 %v8174_v49  ;;  %v3212_v43 = vadd.f32 0.112945676, %v3211_v30 }
 0x4d4   : > { %v3151_v57 = vmul.f32 %v3150_v62, %v3126_v41  ;;  %v2690_v34 = vmul.f32 0.5, %v2689_v15  ;;  %v3234_v12 = vmul.f32 %v8229_v1, %v8229_v1  ;;  %v3165_v33 = vadd.f32 1.1283791, %v3164_v7  ;;  %v9904_v15 = vld [vmem:[#allocation10_spill] sm:$0xff] }
 0x4d5   : > { %v3202_v16 = vmul.f32 %v3201_v19, %v8177_v20  ;;  %vm2694_vm10 = vweird.f32 %v8196_v14  ;;  %v2760_v50 = vmul.f32 %v7711_v56, %v8167_v32  ;;  %v3213_v17 = vmul.f32 %v3212_v43, %v8177_v20 }
 0x4d6   : > { %v5657_v44 = vpop.eup %5656  ;;  %v5410_v18 = vclamps-f32 %v3151_v57, 1.0  ;;  %v2691_v51 = vsub.f32 1.5, %v2690_v34  ;;  %v8242_v46 = vmin.f32 %v3234_v12, 16.0  ;;  %v3188_v29 = vand.u32 2147483648, %v8204_v45  ;;  %vm2695_vm13 = vmor %vm2693_vm9, %vm2694_vm10 }
 0x4d7   : > { %v3178_v41 = vmul.f32 %v5657_v44, %v8204_v45  ;;  %v2797_v48 = vadd.f32 %v7730_v0, %v2760_v50  ;;  %v2761_v52 = vmul.f32 %v7724_v59, %v8170_v55  ;;  %v3214_v32 = vadd.f32 0.4994258, %v3213_v17 }
 0x4d8   : > { %v3676_v42 = vadd.f32 1.0, %v5410_v18  ;;  %v3236_v58 = vmul.f32 2.1237322e-06, %v8242_v46  ;;  %v8250_v7 = vadd.f32 %v2972_v35, %v2907_v10  ;;  %v2692_v30 = vmul.f32 %v8196_v14, %v2691_v51 }
 0x4d9   : > { %v3179_v40 = vsub.f32 1.0, %v3178_v41  ;;  %v3247_v25 = vmul.f32 3.8918573e-05, %v8242_v46  ;;  %v8255_v62 = vadd.f32 %v2797_v48, %v9904_v15  ;;  %v3203_v57 = vadd.f32 0.18741608, %v3202_v16  ;;  %v9906_v48 = vld [vmem:[#allocation24_spill] sm:$0xff] }
 0x4da   : > { %v3692_v19 = vmul.f32 %v3676_v42, %v8160_v8  ;;  %v3215_v43 = vmul.f32 %v3214_v32, %v8177_v20  ;;  %v3237_v55 = vadd.f32 0.00028619796, %v3236_v58  ;;  %vm3183_vm11 = vweird.f32 %v5657_v44  ;;  %v2910_v58 = vpop.f32.mrf.mxu0 }
 0x4db   : > { %9905 = vst [vmem:[#allocation33_spill] sm:$0xff] %v8255_v62  ;;  %v3180_v34 = vmul.f32 %v5657_v44, %v3179_v40  ;;  %v3186_v12 = vand.u32 2147483647, %v8204_v45  ;;  %v2726_v50 = vmul.f32 %v2686_v24, %v7858_v21  ;;  %2927 = vmatmul.f32.gmra.mxu0 %v8255_v62  ;;  %vm3182_vm12 = vweird.f32 %v8204_v45  ;;  %v2975_v40 = vpop.f32.mrf.mxu1 }
 0x4dc   : > { %v8263_v10 = vadd.f32 1.0, %v3215_v43  ;;  %v3248_v8 = vadd.f32 0.001143296, %v3247_v25  ;;  %v2798_v16 = vadd.f32 %v7735_v13, %v2761_v52  ;;  %5428 = vmatmul.msk.f32.gmra.mxu2 %vm2106_vm8, %v3692_v19  ;;  %5445 = vmatmul.msk.f32.gmra.mxu3 %vm2106_vm8, %v3692_v19  ;;  %v2696_v21 = vsel %vm2695_vm13, %v8196_v14, %v2692_v30  ;;  %vm3184_vm14 = vmor %vm3182_vm12, %vm3183_vm11 }
 0x4dd   : > { %v3181_v35 = vadd.f32 %v5657_v44, %v3180_v34  ;;  %v3238_v24 = vmul.f32 %v3237_v55, %v8242_v46  ;;  %v8275_v45 = vmul.f32 0.70710677, %v8250_v7  ;;  %v3166_v18 = vmul.f32 %v3165_v33, %v8072_v6 }
 0x4de   : > { %v3189_v49 = vor.u32 1.1754944e-38, %v3188_v29  ;;  %v3204_v17 = vmul.f32 %v3203_v57, %v8177_v20  ;;  %5658 = vrcp.f32 %v8263_v10  ;;  %vm3187_vm0 = vcmp.eq.f32.partialorder %v3186_v12, 8.507059e+37 }
 0x4df   : > { %v3185_v51 = vsel %vm3184_vm14, %v5657_v44, %v3181_v35  ;;  %v3249_v41 = vmul.f32 %v3248_v8, %v8242_v46  ;;  %v8283_v14 = vadd.f32 %v2798_v16, %v9906_v48  ;;  %v3005_v52 = vmul.f32 0.5, %v8058_v28 }
 0x4e0   : > { %v3190_v42 = vsel %vm3187_vm0, %v3189_v49, %v3185_v51  ;;  %v2727_v32 = vmul.f32 %v2696_v21, %v7876_v3  ;;  %v3274_v6 = vmul.f32 %v8275_v45, %v8275_v45  ;;  %v3239_v29 = vadd.f32 0.0036580483, %v3238_v24  ;;  %v9908_v49 = vld [vmem:[#allocation13_spill] sm:$0xff] }
 0x4e1   : > { %9907 = vst [vmem:[#allocation8_spill] sm:$0xff] %v8283_v14  ;;  %v3191_v33 = vmul.f32 %v3190_v42, %v3166_v18  ;;  %v3250_v20 = vadd.f32 0.014752088, %v3249_v41  ;;  %2992 = vmatmul.f32.gmra.mxu1 %v8283_v14  ;;  %v2762_v44 = vmul.f32 %v7711_v56, %v8232_v54  ;;  %v3205_v30 = vadd.f32 1.1283791, %v3204_v17  ;;  %v9910_v42 = vld [vmem:[#allocation25_spill] sm:$0xff] }
 0x4e2   : > { %v2728_v25 = vmul.f32 %v2696_v21, %v7879_v63  ;;  %v8293_v28 = vmin.f32 %v3274_v6, 16.0  ;;  %v2763_v3 = vmul.f32 %v7724_v59, %v2726_v50  ;;  %vm3222_vm15 = vweird.f32 %v8263_v10 }
 0x4e3   : > { %v5411_v15 = vclamps-f32 %v3191_v33, 1.0  ;;  %v3226_v19 = vand.u32 2147483647, %v8263_v10  ;;  %v3251_v57 = vmul.f32 %v3250_v20, %v8242_v46  ;;  %v2799_v43 = vadd.f32 %v7730_v0, %v2762_v44 }
 0x4e4   : > { %v5659_v55 = vpop.eup %5658  ;;  %v3276_v54 = vmul.f32 2.1237322e-06, %v8293_v28  ;;  %v3287_v34 = vmul.f32 3.8918573e-05, %v8293_v28  ;;  %v2800_v63 = vadd.f32 %v7735_v13, %v2763_v3  ;;  %v8303_v12 = vadd.f32 %v2975_v40, %v2910_v58 }
 0x4e5   : > { %v3677_v8 = vadd.f32 1.0, %v5411_v15  ;;  %v3218_v50 = vmul.f32 %v5659_v55, %v8263_v10  ;;  %v3240_v16 = vmul.f32 %v3239_v29, %v8242_v46  ;;  %v2764_v35 = vmul.f32 %v7711_v56, %v2727_v32 }
 0x4e6   : > { %v3252_v21 = vadd.f32 0.112945676, %v3251_v57  ;;  %v3277_v24 = vadd.f32 0.00028619796, %v3276_v54  ;;  %v3288_v18 = vadd.f32 0.001143296, %v3287_v34  ;;  %v8309_v17 = vadd.f32 %v2799_v43, %v9908_v49 }
 0x4e7   : > { %v3693_v51 = vmul.f32 %v3677_v8, %v3005_v52  ;;  %v3219_v41 = vsub.f32 1.0, %v3218_v50  ;;  %v3228_v48 = vand.u32 2147483648, %v8263_v10  ;;  %v8313_v6 = vadd.f32 %v2800_v63, %v9910_v42  ;;  %v9912_v63 = vld [vmem:[#allocation12_spill] sm:$0xff] }
 0x4e8   : > { %9909 = vst [vmem:[#allocation17_spill] sm:$0xff] %v8309_v17  ;;  %v3253_v33 = vmul.f32 %v3252_v21, %v8242_v46  ;;  %v3278_v20 = vmul.f32 %v3277_v24, %v8293_v28  ;;  %v3289_v29 = vmul.f32 %v3288_v18, %v8293_v28  ;;  %2930 = vmatmul.f32.gmra.mxu0 %v8309_v17  ;;  %v8320_v56 = vmul.f32 0.70710677, %v8303_v12 }
 0x4e9   : > { %9911 = vst [vmem:[#allocation11_spill] sm:$0xff] %v8313_v6  ;;  %v3220_v32 = vmul.f32 %v5659_v55, %v3219_v41  ;;  %vm3223_vm1 = vweird.f32 %v5659_v55  ;;  %2995 = vmatmul.f32.gmra.mxu1 %v8313_v6  ;;  %v2801_v52 = vadd.f32 %v7730_v0, %v2764_v35  ;;  %v2765_v44 = vmul.f32 %v7724_v59, %v2728_v25  ;;  %v9914_v35 = vld [vmem:[#allocation26_spill] sm:$0xff] }
 0x4ea   : > { %v3241_v58 = vadd.f32 0.05243302, %v3240_v16  ;;  %v3254_v40 = vadd.f32 0.4994258, %v3253_v33  ;;  %v3290_v3 = vadd.f32 0.014752088, %v3289_v29  ;;  %v3314_v15 = vmul.f32 %v8320_v56, %v8320_v56  ;;  %5429 = vmatmul.msk.f32.gmra.mxu2 %vm2106_vm8, %v3693_v51  ;;  %5446 = vmatmul.msk.f32.gmra.mxu3 %vm2106_vm8, %v3693_v51  ;;  %vm3224_vm2 = vmor %vm3222_vm15, %vm3223_vm1 }
 0x4eb   : > { %v3221_v57 = vadd.f32 %v5659_v55, %v3220_v32  ;;  %v3229_v43 = vor.u32 1.1754944e-38, %v3228_v48  ;;  %v3279_v54 = vadd.f32 0.0036580483, %v3278_v20  ;;  %v2802_v34 = vadd.f32 %v7735_v13, %v2765_v44 }
 0x4ec   : > { %v3255_v59 = vmul.f32 %v3254_v40, %v8242_v46  ;;  %v3291_v0 = vmul.f32 %v3290_v3, %v8293_v28  ;;  %v8334_v25 = vmin.f32 %v3314_v15, 16.0  ;;  %v8337_v8 = vadd.f32 %v2801_v52, %v9912_v63 }
 0x4ed   : > { %v3206_v50 = vmul.f32 %v3205_v30, %v8152_v4  ;;  %v3225_v16 = vsel %vm3224_vm2, %v5659_v55, %v3221_v57  ;;  %vm3227_vm3 = vcmp.eq.f32.partialorder %v3226_v19, 8.507059e+37  ;;  %v8341_v21 = vadd.f32 %v2802_v34, %v9914_v35 }
 0x4ee   : > { %9913 = vst [vmem:[#allocation22_spill] sm:$0xff] %v8337_v8  ;;  %v3230_v13 = vsel %vm3227_vm3, %v3229_v43, %v3225_v16  ;;  %v3242_v10 = vmul.f32 %v3241_v58, %v8242_v46  ;;  %v3256_v24 = vadd.f32 1.0, %v3255_v59  ;;  %v3292_v18 = vadd.f32 0.112945676, %v3291_v0 }
 0x4ef   : > { %9915 = vst [vmem:[#allocation9_spill] sm:$0xff] %v8341_v21  ;;  %v3231_v49 = vmul.f32 %v3230_v13, %v3206_v50  ;;  %v3316_v51 = vmul.f32 2.1237322e-06, %v8334_v25  ;;  %v3327_v41 = vmul.f32 3.8918573e-05, %v8334_v25  ;;  %v3280_v48 = vmul.f32 %v3279_v54, %v8293_v28 }
 0x4f0   : > { %5660 = vrcp.f32 %v3256_v24  ;;  %2933 = vmatmul.f32.gmra.mxu0 %v8337_v8  ;;  %v3293_v30 = vmul.f32 %v3292_v18, %v8293_v28  ;;  %v3243_v55 = vadd.f32 0.18741608, %v3242_v10  ;;  %v3006_v33 = vmul.f32 0.5, %v8133_v47 }
 0x4f1   : > { %v5412_v4 = vclamps-f32 %v3231_v49, 1.0  ;;  %v3317_v19 = vadd.f32 0.00028619796, %v3316_v51  ;;  %2998 = vmatmul.f32.gmra.mxu1 %v8341_v21  ;;  %v3328_v42 = vadd.f32 0.001143296, %v3327_v41  ;;  %v3268_v16 = vand.u32 2147483648, %v3256_v24 }
 0x4f2   : > { %v3294_v29 = vadd.f32 0.4994258, %v3293_v30  ;;  %v3281_v52 = vadd.f32 0.05243302, %v3280_v48  ;;  %v3244_v15 = vmul.f32 %v3243_v55, %v8242_v46  ;;  %v3266_v50 = vand.u32 2147483647, %v3256_v24 }
 0x4f3   : > { %v3678_v20 = vadd.f32 1.0, %v5412_v4  ;;  %v3318_v32 = vmul.f32 %v3317_v19, %v8334_v25  ;;  %v3329_v44 = vmul.f32 %v3328_v42, %v8334_v25  ;;  %vm3262_vm5 = vweird.f32 %v3256_v24 }
 0x4f4   : > { %v3295_v40 = vmul.f32 %v3294_v29, %v8293_v28  ;;  %v3282_v47 = vmul.f32 %v3281_v52, %v8293_v28  ;;  %v3245_v63 = vadd.f32 1.1283791, %v3244_v15  ;;  %v3269_v41 = vor.u32 1.1754944e-38, %v3268_v16 }
 0x4f5   : > { %v3694_v58 = vmul.f32 %v3678_v20, %v3006_v33  ;;  %v3330_v57 = vadd.f32 0.014752088, %v3329_v44  ;;  %v3319_v34 = vadd.f32 0.0036580483, %v3318_v32  ;;  %vm3267_vm7 = vcmp.eq.f32.partialorder %v3266_v50, 8.507059e+37 }
 0x4f6   : > { %v5661_v3 = vpop.eup %5660  ;;  %v3296_v54 = vadd.f32 1.0, %v3295_v40  ;;  %v3283_v10 = vadd.f32 0.18741608, %v3282_v47  ;;  %v3246_v51 = vmul.f32 %v3245_v63, %v8229_v1  ;;  %v3007_v15 = vmul.f32 0.5, %v8208_v22 }
 0x4f7   : > { %v3258_v43 = vmul.f32 %v5661_v3, %v3256_v24  ;;  %5430 = vmatmul.msk.f32.gmra.mxu2 %vm2106_vm8, %v3694_v58  ;;  %5447 = vmatmul.msk.f32.gmra.mxu3 %vm2106_vm8, %v3694_v58  ;;  %v3331_v59 = vmul.f32 %v3330_v57, %v8334_v25  ;;  %vm3263_vm4 = vweird.f32 %v5661_v3  ;;  %v3320_v46 = vmul.f32 %v3319_v34, %v8334_v25 }
 0x4f8   : > { %5662 = vrcp.f32 %v3296_v54  ;;  %vm3264_vm6 = vmor %vm3262_vm5, %vm3263_vm4  ;;  %v3284_v42 = vmul.f32 %v3283_v10, %v8293_v28  ;;  %v3308_v52 = vand.u32 2147483648, %v3296_v54  ;;  %vm3302_vm10 = vweird.f32 %v3296_v54 }
 0x4f9   : > { %v3259_v0 = vsub.f32 1.0, %v3258_v43  ;;  %v3332_v13 = vadd.f32 0.112945676, %v3331_v59  ;;  %v3321_v30 = vadd.f32 0.05243302, %v3320_v46 }
 0x4fa   : > { %v3285_v58 = vadd.f32 1.1283791, %v3284_v42  ;;  %v3309_v34 = vor.u32 1.1754944e-38, %v3308_v52 }
 0x4fb   : > { %v3260_v35 = vmul.f32 %v5661_v3, %v3259_v0  ;;  %v3333_v49 = vmul.f32 %v3332_v13, %v8334_v25  ;;  %v3322_v44 = vmul.f32 %v3321_v30, %v8334_v25 }
 0x4fc   : > { %v3286_v59 = vmul.f32 %v3285_v58, %v8275_v45 }
 0x4fd   : > { %v3261_v18 = vadd.f32 %v5661_v3, %v3260_v35  ;;  %v3334_v19 = vadd.f32 0.4994258, %v3333_v49  ;;  %v3323_v47 = vadd.f32 0.18741608, %v3322_v44 }
 0x4fe   : > { %v5663_v48 = vpop.eup %5662 }
 0x4ff   : > { %v3265_v4 = vsel %vm3264_vm6, %v5661_v3, %v3261_v18  ;;  %v3298_v33 = vmul.f32 %v5663_v48, %v3296_v54  ;;  %v3335_v29 = vmul.f32 %v3334_v19, %v8334_v25  ;;  %vm3303_vm9 = vweird.f32 %v5663_v48 }
 0x500   : > { %v3270_v55 = vsel %vm3267_vm7, %v3269_v41, %v3265_v4  ;;  %v3306_v3 = vand.u32 2147483647, %v3296_v54  ;;  %vm3304_vm11 = vmor %vm3302_vm10, %vm3303_vm9  ;;  %v3324_v22 = vmul.f32 %v3323_v47, %v8334_v25  ;;  %v3008_v54 = vmul.f32 0.5, %v8250_v7 }
 0x501   : > { %v3271_v20 = vmul.f32 %v3270_v55, %v3246_v51  ;;  %v3299_v32 = vsub.f32 1.0, %v3298_v33  ;;  %v3336_v1 = vadd.f32 1.0, %v3335_v29 }
 0x502   : > { %vm3307_vm12 = vcmp.eq.f32.partialorder %v3306_v3, 8.507059e+37  ;;  %v3325_v18 = vadd.f32 1.1283791, %v3324_v22 }
 0x503   : > { %v5413_v24 = vclamps-f32 %v3271_v20, 1.0  ;;  %v3300_v40 = vmul.f32 %v5663_v48, %v3299_v32  ;;  %5664 = vrcp.f32 %v3336_v1  ;;  %v3348_v49 = vand.u32 2147483648, %v3336_v1 }
 0x504   : > { %v3346_v41 = vand.u32 2147483647, %v3336_v1  ;;  %vm3342_vm14 = vweird.f32 %v3336_v1  ;;  %v3326_v55 = vmul.f32 %v3325_v18, %v8320_v56 }
 0x505   : > { %v3679_v57 = vadd.f32 1.0, %v5413_v24  ;;  %v3301_v43 = vadd.f32 %v5663_v48, %v3300_v40  ;;  %v3349_v7 = vor.u32 1.1754944e-38, %v3348_v49 }
 0x506   : > { %vm3347_vm15 = vcmp.eq.f32.partialorder %v3346_v41, 8.507059e+37 }
 0x507   : > { %v3695_v28 = vmul.f32 %v3679_v57, %v3007_v15  ;;  %v3305_v0 = vsel %vm3304_vm11, %v5663_v48, %v3301_v43  ;;  %v2913_v48 = vpop.f32.mrf.mxu0 }
 0x508   : > { %v3310_v63 = vsel %vm3307_vm12, %v3309_v34, %v3305_v0 }
 0x509   : > { %5431 = vmatmul.msk.f32.gmra.mxu2 %vm2106_vm8, %v3695_v28  ;;  %5448 = vmatmul.msk.f32.gmra.mxu3 %vm2106_vm8, %v3695_v28  ;;  %v3311_v50 = vmul.f32 %v3310_v63, %v3286_v59  ;;  %v5665_v16 = vpop.eup %5664 }
 0x50a   : > { %v3338_v46 = vmul.f32 %v5665_v16, %v3336_v1  ;;  %vm3343_vm13 = vweird.f32 %v5665_v16  ;;  %v3009_v1 = vmul.f32 0.5, %v8303_v12 }
 0x50b   : > { %v5414_v35 = vclamps-f32 %v3311_v50, 1.0  ;;  %v2978_v4 = vpop.f32.mrf.mxu1  ;;  %vm3344_vm0 = vmor %vm3342_vm14, %vm3343_vm13 }
 0x50c   : > { %v3339_v10 = vsub.f32 1.0, %v3338_v46  ;;  %v8371_v30 = vadd.f32 %v2978_v4, %v2913_v48 }
 0x50d   : > { %v3680_v13 = vadd.f32 1.0, %v5414_v35 }
 0x50e   : > { %v3340_v51 = vmul.f32 %v5665_v16, %v3339_v10  ;;  %v8376_v25 = vmul.f32 0.70710677, %v8371_v30 }
 0x50f   : > { %v3696_v45 = vmul.f32 %v3680_v13, %v3008_v54 }
 0x510   : > { %v3341_v19 = vadd.f32 %v5665_v16, %v3340_v51  ;;  %v3354_v20 = vmul.f32 %v8376_v25, %v8376_v25 }
 0x511   : > { %5432 = vmatmul.msk.f32.gmra.mxu2 %vm2106_vm8, %v3696_v45  ;;  %5449 = vmatmul.msk.f32.gmra.mxu3 %vm2106_vm8, %v3696_v45 }
 0x512   : > { %v3345_v42 = vsel %vm3344_vm0, %v5665_v16, %v3341_v19  ;;  %v3355_v32 = vmin.f32 %v3354_v20, 16.0 }
 0x513   : > { %v3350_v33 = vsel %vm3347_vm15, %v3349_v7, %v3345_v42 }
 0x514   : > { %v3351_v29 = vmul.f32 %v3350_v33, %v3326_v55  ;;  %v3356_v52 = vmul.f32 2.1237322e-06, %v3355_v32  ;;  %v3367_v44 = vmul.f32 3.8918573e-05, %v3355_v32  ;;  %v2916_v56 = vpop.f32.mrf.mxu0 }
 0x516   : > { %v5415_v24 = vclamps-f32 %v3351_v29, 1.0  ;;  %v3357_v40 = vadd.f32 0.00028619796, %v3356_v52  ;;  %v3368_v3 = vadd.f32 0.001143296, %v3367_v44 }
 0x517   : > { %v2981_v28 = vpop.f32.mrf.mxu1 }
 0x518   : > { %v3681_v58 = vadd.f32 1.0, %v5415_v24  ;;  %v3358_v57 = vmul.f32 %v3357_v40, %v3355_v32  ;;  %v3369_v43 = vmul.f32 %v3368_v3, %v3355_v32  ;;  %v8384_v59 = vadd.f32 %v2981_v28, %v2916_v56 }
 0x51a   : > { %v3697_v15 = vmul.f32 %v3681_v58, %v3009_v1  ;;  %v3359_v34 = vadd.f32 0.0036580483, %v3358_v57  ;;  %v3370_v47 = vadd.f32 0.014752088, %v3369_v43  ;;  %v8387_v63 = vmul.f32 0.70710677, %v8384_v59 }
 0x51c   : > { %5433 = vmatmul.msk.f32.gmra.mxu2 %vm2106_vm8, %v3697_v15  ;;  %5450 = vmatmul.msk.f32.gmra.mxu3 %vm2106_vm8, %v3697_v15  ;;  %v3371_v0 = vmul.f32 %v3370_v47, %v3355_v32  ;;  %v3360_v12 = vmul.f32 %v3359_v34, %v3355_v32  ;;  %v3394_v16 = vmul.f32 %v8387_v63, %v8387_v63 }
 0x51e   : > { %v3372_v50 = vadd.f32 0.112945676, %v3371_v0  ;;  %v8391_v35 = vmin.f32 %v3394_v16, 16.0  ;;  %v3361_v46 = vadd.f32 0.05243302, %v3360_v12 }
 0x520   : > { %v3373_v22 = vmul.f32 %v3372_v50, %v3355_v32  ;;  %v3396_v13 = vmul.f32 2.1237322e-06, %v8391_v35  ;;  %v3407_v10 = vmul.f32 3.8918573e-05, %v8391_v35  ;;  %v3362_v45 = vmul.f32 %v3361_v46, %v3355_v32 }
 0x522   : > { %v3374_v54 = vadd.f32 0.4994258, %v3373_v22  ;;  %v3397_v49 = vadd.f32 0.00028619796, %v3396_v13  ;;  %v3408_v51 = vadd.f32 0.001143296, %v3407_v10 }
 0x523   : > { %v3363_v55 = vadd.f32 0.18741608, %v3362_v45 }
 0x524   : > { %v3375_v18 = vmul.f32 %v3374_v54, %v3355_v32  ;;  %v3398_v48 = vmul.f32 %v3397_v49, %v8391_v35  ;;  %v3409_v19 = vmul.f32 %v3408_v51, %v8391_v35 }
 0x525   : > { %v2919_v4 = vpop.f32.mrf.mxu0  ;;  %v3364_v44 = vmul.f32 %v3363_v55, %v3355_v32 }
 0x526   : > { %v3376_v41 = vadd.f32 1.0, %v3375_v18  ;;  %v3399_v42 = vadd.f32 0.0036580483, %v3398_v48  ;;  %v3410_v33 = vadd.f32 0.014752088, %v3409_v19 }
 0x527   : > { %v3365_v56 = vadd.f32 1.1283791, %v3364_v44 }
 0x528   : > { %5666 = vrcp.f32 %v3376_v41  ;;  %v3411_v29 = vmul.f32 %v3410_v33, %v8391_v35  ;;  %v3400_v24 = vmul.f32 %v3399_v42, %v8391_v35  ;;  %v3388_v47 = vand.u32 2147483648, %v3376_v41 }
 0x529   : > { %v3386_v50 = vand.u32 2147483647, %v3376_v41  ;;  %vm3382_vm2 = vweird.f32 %v3376_v41 }
 0x52a   : > { %v3412_v1 = vadd.f32 0.112945676, %v3411_v29  ;;  %v3401_v57 = vadd.f32 0.05243302, %v3400_v24  ;;  %v3389_v18 = vor.u32 1.1754944e-38, %v3388_v47 }
 0x52b   : > { %v2984_v7 = vpop.f32.mrf.mxu1  ;;  %vm3387_vm4 = vcmp.eq.f32.partialorder %v3386_v50, 8.507059e+37 }
 0x52c   : > { %v8397_v20 = vadd.f32 %v2984_v7, %v2919_v4  ;;  %v3413_v15 = vmul.f32 %v3412_v1, %v8391_v35  ;;  %v3402_v22 = vmul.f32 %v3401_v57, %v8391_v35  ;;  %v3366_v4 = vmul.f32 %v3365_v56, %v8376_v25 }
 0x52d   : > { %v3010_v25 = vmul.f32 0.5, %v8371_v30 }
 0x52e   : > { %v8402_v52 = vmul.f32 0.70710677, %v8397_v20  ;;  %v5667_v58 = vpop.eup %5666  ;;  %v3414_v34 = vadd.f32 0.4994258, %v3413_v15  ;;  %v3403_v55 = vadd.f32 0.18741608, %v3402_v22 }
 0x52f   : > { %v3378_v3 = vmul.f32 %v5667_v58, %v3376_v41  ;;  %vm3383_vm1 = vweird.f32 %v5667_v58 }
 0x530   : > { %v3434_v40 = vmul.f32 %v8402_v52, %v8402_v52  ;;  %v3415_v16 = vmul.f32 %v3414_v34, %v8391_v35  ;;  %vm3384_vm3 = vmor %vm3382_vm2, %vm3383_vm1 }
 0x531   : > { %v3379_v28 = vsub.f32 1.0, %v3378_v3 }
 0x532   : > { %v8407_v43 = vmin.f32 %v3434_v40, 16.0  ;;  %v3416_v10 = vadd.f32 1.0, %v3415_v16  ;;  %v3404_v40 = vmul.f32 %v3403_v55, %v8391_v35 }
 0x533   : > { %v3380_v32 = vmul.f32 %v5667_v58, %v3379_v28 }
 0x534   : > { %v3436_v0 = vmul.f32 2.1237322e-06, %v8407_v43  ;;  %v3447_v12 = vmul.f32 3.8918573e-05, %v8407_v43  ;;  %5668 = vrcp.f32 %v3416_v10  ;;  %v3428_v50 = vand.u32 2147483648, %v3416_v10 }
 0x535   : > { %v3381_v13 = vadd.f32 %v5667_v58, %v3380_v32  ;;  %vm3422_vm6 = vweird.f32 %v3416_v10 }
 0x536   : > { %v3437_v46 = vadd.f32 0.00028619796, %v3436_v0  ;;  %v3448_v54 = vadd.f32 0.001143296, %v3447_v12  ;;  %v3405_v12 = vadd.f32 1.1283791, %v3404_v40 }
 0x537   : > { %v3385_v19 = vsel %vm3384_vm3, %v5667_v58, %v3381_v13 }
 0x538   : > { %v3438_v49 = vmul.f32 %v3437_v46, %v8407_v43  ;;  %v3449_v45 = vmul.f32 %v3448_v54, %v8407_v43  ;;  %v3390_v7 = vsel %vm3387_vm4, %v3389_v18, %v3385_v19  ;;  %v3426_v46 = vand.u32 2147483647, %v3416_v10 }
 0x539   : > { %v3391_v42 = vmul.f32 %v3390_v7, %v3366_v4  ;;  %v3406_v7 = vmul.f32 %v3405_v12, %v8387_v63 }
 0x53a   : > { %v2922_v51 = vpop.f32.mrf.mxu0  ;;  %v3450_v33 = vadd.f32 0.014752088, %v3449_v45  ;;  %v3439_v41 = vadd.f32 0.0036580483, %v3438_v49  ;;  %v5669_v3 = vpop.eup %5668  ;;  %vm3427_vm9 = vcmp.eq.f32.partialorder %v3426_v46, 8.507059e+37 }
 0x53b   : > { %v2987_v48 = vpop.f32.mrf.mxu1  ;;  %v5416_v24 = vclamps-f32 %v3391_v42, 1.0  ;;  %v3418_v56 = vmul.f32 %v5669_v3, %v3416_v10  ;;  %vm3423_vm5 = vweird.f32 %v5669_v3 }
 0x53c   : > { %v8416_v29 = vadd.f32 %v2987_v48, %v2922_v51  ;;  %v3451_v44 = vmul.f32 %v3450_v33, %v8407_v43  ;;  %v3440_v28 = vmul.f32 %v3439_v41, %v8407_v43  ;;  %vm3424_vm7 = vmor %vm3422_vm6, %vm3423_vm5  ;;  %v3429_v51 = vor.u32 1.1754944e-38, %v3428_v50 }
 0x53d   : > { %v3682_v58 = vadd.f32 1.0, %v5416_v24  ;;  %v3419_v32 = vsub.f32 1.0, %v3418_v56 }
 0x53e   : > { %v8420_v1 = vmul.f32 0.70710677, %v8416_v29  ;;  %v3452_v15 = vadd.f32 0.112945676, %v3451_v44  ;;  %v3441_v54 = vadd.f32 0.05243302, %v3440_v28 }
 0x53f   : > { %v3698_v34 = vmul.f32 %v3682_v58, %v3010_v25  ;;  %v3420_v22 = vmul.f32 %v5669_v3, %v3419_v32 }
 0x540   : > { %v3474_v57 = vmul.f32 %v8420_v1, %v8420_v1  ;;  %v3453_v47 = vmul.f32 %v3452_v15, %v8407_v43  ;;  %v3442_v42 = vmul.f32 %v3441_v54, %v8407_v43 }
 0x541   : > { %5434 = vmatmul.msk.f32.gmra.mxu2 %vm2106_vm8, %v3698_v34  ;;  %5451 = vmatmul.msk.f32.gmra.mxu3 %vm2106_vm8, %v3698_v34  ;;  %v3421_v45 = vadd.f32 %v5669_v3, %v3420_v22  ;;  %v3011_v34 = vmul.f32 0.5, %v8384_v59 }
 0x542   : > { %v8428_v0 = vmin.f32 %v3474_v57, 16.0  ;;  %v3454_v35 = vadd.f32 0.4994258, %v3453_v47  ;;  %v3443_v15 = vadd.f32 0.18741608, %v3442_v42 }
 0x543   : > { %v3425_v55 = vsel %vm3424_vm7, %v5669_v3, %v3421_v45 }
 0x544   : > { %v3476_v16 = vmul.f32 2.1237322e-06, %v8428_v0  ;;  %v3487_v30 = vmul.f32 3.8918573e-05, %v8428_v0  ;;  %v3455_v13 = vmul.f32 %v3454_v35, %v8407_v43  ;;  %v3430_v33 = vsel %vm3427_vm9, %v3429_v51, %v3425_v55 }
 0x545   : > { %v3431_v41 = vmul.f32 %v3430_v33, %v3406_v7 }
 0x546   : > { %v3477_v18 = vadd.f32 0.00028619796, %v3476_v16  ;;  %v3488_v49 = vadd.f32 0.001143296, %v3487_v30  ;;  %v8435_v48 = vadd.f32 1.0, %v3455_v13  ;;  %v3781_v25 = vpop.f32.mrf.mxu2  ;;  %v3846_v56 = vpop.f32.mrf.mxu3  ;;  %v3444_v30 = vmul.f32 %v3443_v15, %v8407_v43 }
 0x547   : > { %v5417_v58 = vclamps-f32 %v3431_v41, 1.0  ;;  %v8446_v63 = vadd.f32 %v3781_v25, %v7757_v9  ;;  %v8449_v3 = vadd.f32 %v3846_v56, %v7760_v36 }
 0x548   : > { %v3478_v4 = vmul.f32 %v3477_v18, %v8428_v0  ;;  %v3489_v19 = vmul.f32 %v3488_v49, %v8428_v0  ;;  %5670 = vrcp.f32 %v8435_v48  ;;  %v3468_v18 = vand.u32 2147483648, %v8435_v48 }
 0x549   : > { %v3683_v47 = vadd.f32 1.0, %v5417_v58  ;;  %v3926_v59 = vadd.f32 %v8449_v3, %v8446_v63  ;;  %v3445_v51 = vadd.f32 1.1283791, %v3444_v30  ;;  %vm3462_vm11 = vweird.f32 %v8435_v48 }
 0x54a   : > { %v3479_v24 = vadd.f32 0.0036580483, %v3478_v4  ;;  %v3490_v10 = vadd.f32 0.014752088, %v3489_v19  ;;  %v3466_v19 = vand.u32 2147483647, %v8435_v48 }
 0x54b   : > { %v2925_v44 = vpop.f32.mrf.mxu0  ;;  %v3699_v16 = vmul.f32 %v3683_v47, %v3011_v34  ;;  %3927 = vadd.xlane.f32.xlu2 %v3926_v59  ;;  %v3469_v41 = vor.u32 1.1754944e-38, %v3468_v18 }
 0x54c   : > { %v3491_v57 = vmul.f32 %v3490_v10, %v8428_v0  ;;  %v3480_v12 = vmul.f32 %v3479_v24, %v8428_v0  ;;  %vm3467_vm13 = vcmp.eq.f32.partialorder %v3466_v19, 8.507059e+37 }
 0x54d   : > { %5435 = vmatmul.msk.f32.gmra.mxu2 %vm2106_vm8, %v3699_v16  ;;  %5452 = vmatmul.msk.f32.gmra.mxu3 %vm2106_vm8, %v3699_v16 }
 0x54e   : > { %v2990_v40 = vpop.f32.mrf.mxu1  ;;  %v3492_v32 = vadd.f32 0.112945676, %v3491_v57  ;;  %v5671_v50 = vpop.eup %5670  ;;  %v3481_v49 = vadd.f32 0.05243302, %v3480_v12  ;;  %v3446_v57 = vmul.f32 %v3445_v51, %v8402_v52 }
 0x54f   : > { %v8443_v28 = vadd.f32 %v2990_v40, %v2925_v44  ;;  %v3458_v22 = vmul.f32 %v5671_v50, %v8435_v48  ;;  %vm3463_vm10 = vweird.f32 %v5671_v50  ;;  %v3784_v10 = vpop.f32.mrf.mxu2  ;;  %v3849_v44 = vpop.f32.mrf.mxu3 }
 0x550   : > { %v3493_v46 = vmul.f32 %v3492_v32, %v8428_v0  ;;  %v3482_v24 = vmul.f32 %v3481_v49, %v8428_v0  ;;  %vm3464_vm12 = vmor %vm3462_vm11, %vm3463_vm10  ;;  %v8477_v15 = vadd.f32 %v3784_v10, %v7775_v11  ;;  %v8481_v48 = vadd.f32 %v3849_v44, %v7778_v23 }
 0x551   : > { %v8454_v35 = vmul.f32 0.70710677, %v8443_v28  ;;  %v3459_v13 = vsub.f32 1.0, %v3458_v22 }
 0x552   : > { %v3494_v45 = vadd.f32 0.4994258, %v3493_v46  ;;  %v3483_v32 = vadd.f32 0.18741608, %v3482_v24  ;;  %v3929_v46 = vadd.f32 %v8481_v48, %v8477_v15 }
 0x553   : > { %v3514_v54 = vmul.f32 %v8454_v35, %v8454_v35  ;;  %v3460_v4 = vmul.f32 %v5671_v50, %v3459_v13  ;;  %v3012_v13 = vmul.f32 0.5, %v8397_v20 }
 0x554   : > { %v3495_v7 = vmul.f32 %v3494_v45, %v8428_v0  ;;  %3930 = vadd.xlane.f32.xlu0 %v3929_v46  ;;  %v3484_v49 = vmul.f32 %v3483_v32, %v8428_v0 }
 0x555   : > { %v8466_v43 = vmin.f32 %v3514_v54, 16.0  ;;  %v3461_v33 = vadd.f32 %v5671_v50, %v3460_v4 }
 0x556   : > { %v8474_v40 = vadd.f32 1.0, %v3495_v7 }
 0x557   : > { %v3516_v55 = vmul.f32 2.1237322e-06, %v8466_v43  ;;  %v3527_v42 = vmul.f32 3.8918573e-05, %v8466_v43  ;;  %v3465_v56 = vsel %vm3464_vm12, %v5671_v50, %v3461_v33 }
 0x558   : > { %v2928_v34 = vpop.f32.mrf.mxu0  ;;  %v3470_v47 = vsel %vm3467_vm13, %v3469_v41, %v3465_v56  ;;  %5672 = vrcp.f32 %v8474_v40  ;;  %vm3502_vm0 = vweird.f32 %v8474_v40 }
 0x559   : > { %v3517_v25 = vadd.f32 0.00028619796, %v3516_v55  ;;  %v3528_v58 = vadd.f32 0.001143296, %v3527_v42  ;;  %v3471_v12 = vmul.f32 %v3470_v47, %v3446_v57  ;;  %v3485_v57 = vadd.f32 1.1283791, %v3484_v49 }
 0x55b   : > { %v3518_v16 = vmul.f32 %v3517_v25, %v8466_v43  ;;  %v3529_v30 = vmul.f32 %v3528_v58, %v8466_v43  ;;  %v5418_v52 = vclamps-f32 %v3471_v12, 1.0  ;;  %v3508_v25 = vand.u32 2147483648, %v8474_v40 }
 0x55d   : > { %v3519_v50 = vadd.f32 0.0036580483, %v3518_v16  ;;  %v3530_v54 = vadd.f32 0.014752088, %v3529_v30  ;;  %v3684_v18 = vadd.f32 1.0, %v5418_v52 }
 0x55e   : > { %v2993_v22 = vpop.f32.mrf.mxu1  ;;  %v5673_v19 = vpop.eup %5672  ;;  %v3506_v16 = vand.u32 2147483647, %v8474_v40 }
 0x55f   : > { %v8488_v59 = vadd.f32 %v2993_v22, %v2928_v34  ;;  %v3531_v45 = vmul.f32 %v3530_v54, %v8466_v43  ;;  %v3787_v51 = vpop.f32.mrf.mxu2  ;;  %v3852_v4 = vpop.f32.mrf.mxu3  ;;  %v3520_v7 = vmul.f32 %v3519_v50, %v8466_v43  ;;  %v3700_v20 = vmul.f32 %v3684_v18, %v3012_v13 }
 0x560   : > { %v8498_v42 = vadd.f32 %v3787_v51, %v7795_v31  ;;  %v8501_v33 = vadd.f32 %v3852_v4, %v7800_v27  ;;  %v3498_v41 = vmul.f32 %v5673_v19, %v8474_v40  ;;  %vm3503_vm14 = vweird.f32 %v5673_v19 }
 0x561   : > { %v8495_v55 = vmul.f32 0.70710677, %v8488_v59  ;;  %v3532_v0 = vadd.f32 0.112945676, %v3531_v45  ;;  %5436 = vmatmul.msk.f32.gmra.mxu2 %vm2106_vm8, %v3700_v20  ;;  %5453 = vmatmul.msk.f32.gmra.mxu3 %vm2106_vm8, %v3700_v20  ;;  %v3521_v56 = vadd.f32 0.05243302, %v3520_v7  ;;  %vm3504_vm15 = vmor %vm3502_vm0, %vm3503_vm14  ;;  %v3486_v4 = vmul.f32 %v3485_v57, %v8420_v1 }
 0x562   : > { %v3932_v10 = vadd.f32 %v8501_v33, %v8498_v42  ;;  %v3499_v44 = vsub.f32 1.0, %v3498_v41  ;;  %v3509_v54 = vor.u32 1.1754944e-38, %v3508_v25  ;;  %vm3507_vm1 = vcmp.eq.f32.partialorder %v3506_v16, 8.507059e+37 }
 0x563   : > { %v3554_v24 = vmul.f32 %v8495_v55, %v8495_v55  ;;  %v3533_v34 = vmul.f32 %v3532_v0, %v8466_v43  ;;  %v3522_v18 = vmul.f32 %v3521_v56, %v8466_v43 }
 0x564   : > { %3933 = vadd.xlane.f32.xlu1 %v3932_v10  ;;  %v3500_v32 = vmul.f32 %v5673_v19, %v3499_v44 }
 0x565   : > { %v2931_v58 = vpop.f32.mrf.mxu0  ;;  %v8512_v47 = vmin.f32 %v3554_v24, 16.0  ;;  %v3534_v22 = vadd.f32 0.4994258, %v3533_v34 }
 0x566   : > { %v2996_v12 = vpop.f32.mrf.mxu1  ;;  %v3501_v50 = vadd.f32 %v5673_v19, %v3500_v32 }
 0x567   : > { %v8515_v30 = vadd.f32 %v2996_v12, %v2931_v58  ;;  %v3556_v46 = vmul.f32 2.1237322e-06, %v8512_v47  ;;  %v3567_v52 = vmul.f32 3.8918573e-05, %v8512_v47  ;;  %v3535_v49 = vmul.f32 %v3534_v22, %v8466_v43 }
 0x568   : > { %v3505_v7 = vsel %vm3504_vm15, %v5673_v19, %v3501_v50  ;;  %v3523_v58 = vadd.f32 0.18741608, %v3522_v18 }
 0x569   : > { %v8521_v13 = vmul.f32 0.70710677, %v8515_v30  ;;  %v3557_v45 = vadd.f32 0.00028619796, %v3556_v46  ;;  %v3568_v51 = vadd.f32 0.001143296, %v3567_v52  ;;  %v3510_v41 = vsel %vm3507_vm1, %v3509_v54, %v3505_v7 }
 0x56a   : > { %v8528_v40 = vadd.f32 1.0, %v3535_v49  ;;  %v3511_v10 = vmul.f32 %v3510_v41, %v3486_v4  ;;  %v3013_v46 = vmul.f32 0.5, %v8416_v29  ;;  %v3524_v7 = vmul.f32 %v3523_v58, %v8466_v43 }
 0x56b   : > { %v3594_v20 = vmul.f32 %v8521_v13, %v8521_v13  ;;  %v3558_v0 = vmul.f32 %v3557_v45, %v8512_v47  ;;  %v3569_v24 = vmul.f32 %v3568_v51, %v8512_v47 }
 0x56c   : > { %5674 = vrcp.f32 %v8528_v40  ;;  %v5419_v19 = vclamps-f32 %v3511_v10, 1.0  ;;  %vm3542_vm3 = vweird.f32 %v8528_v40 }
 0x56d   : > { %v8532_v44 = vmin.f32 %v3594_v20, 16.0  ;;  %v2934_v25 = vpop.f32.mrf.mxu0  ;;  %v3559_v57 = vadd.f32 0.0036580483, %v3558_v0  ;;  %v3570_v56 = vadd.f32 0.014752088, %v3569_v24  ;;  %v3790_v12 = vpop.f32.mrf.mxu2 }
 0x56e   : > { %v2999_v1 = vpop.f32.mrf.mxu1  ;;  %v3855_v22 = vpop.f32.mrf.mxu3  ;;  %v3685_v52 = vadd.f32 1.0, %v5419_v19  ;;  %v8546_v51 = vadd.f32 %v3790_v12, %v7820_v39  ;;  %v3525_v12 = vadd.f32 1.1283791, %v3524_v7 }
 0x56f   : > { %v8535_v34 = vadd.f32 %v2999_v1, %v2934_v25  ;;  %v3596_v32 = vmul.f32 2.1237322e-06, %v8532_v44  ;;  %v3607_v16 = vmul.f32 3.8918573e-05, %v8532_v44  ;;  %v3560_v50 = vmul.f32 %v3559_v57, %v8512_v47 }
 0x570   : > { %v3571_v54 = vmul.f32 %v3570_v56, %v8512_v47  ;;  %v3701_v4 = vmul.f32 %v3685_v52, %v3013_v46  ;;  %v8550_v41 = vadd.f32 %v3855_v22, %v7823_v61  ;;  %v3548_v22 = vand.u32 2147483648, %v8528_v40 }
 0x571   : > { %v3597_v18 = vadd.f32 0.00028619796, %v3596_v32  ;;  %v3608_v49 = vadd.f32 0.001143296, %v3607_v16  ;;  %v8543_v45 = vmul.f32 0.70710677, %v8535_v34 }
 0x572   : > { %v3572_v20 = vadd.f32 0.112945676, %v3571_v54  ;;  %v5675_v29 = vpop.eup %5674  ;;  %v3561_v1 = vadd.f32 0.05243302, %v3560_v50  ;;  %5437 = vmatmul.msk.f32.gmra.mxu2 %vm2106_vm8, %v3701_v4  ;;  %5454 = vmatmul.msk.f32.gmra.mxu3 %vm2106_vm8, %v3701_v4  ;;  %v3935_v56 = vadd.f32 %v8550_v41, %v8546_v51 }
 0x573   : > { %v3598_v0 = vmul.f32 %v3597_v18, %v8532_v44  ;;  %v3609_v24 = vmul.f32 %v3608_v49, %v8532_v44  ;;  %v3634_v10 = vmul.f32 %v8543_v45, %v8543_v45  ;;  %v3538_v25 = vmul.f32 %v5675_v29, %v8528_v40 }
 0x574   : > { %v3573_v19 = vmul.f32 %v3572_v20, %v8512_v47  ;;  %3936 = vadd.xlane.f32.xlu2 %v3935_v56  ;;  %vm3543_vm2 = vweird.f32 %v5675_v29  ;;  %v3546_v18 = vand.u32 2147483647, %v8528_v40  ;;  %v3562_v4 = vmul.f32 %v3561_v1, %v8512_v47 }
 0x575   : > { %v3599_v43 = vadd.f32 0.0036580483, %v3598_v0  ;;  %v3610_v58 = vadd.f32 0.014752088, %v3609_v24  ;;  %v8560_v57 = vmin.f32 %v3634_v10, 16.0  ;;  %v3539_v32 = vsub.f32 1.0, %v3538_v25  ;;  %vm3544_vm4 = vmor %vm3542_vm3, %vm3543_vm2 }
 0x576   : > { %v3574_v16 = vadd.f32 0.4994258, %v3573_v19  ;;  %vm3547_vm5 = vcmp.eq.f32.partialorder %v3546_v18, 8.507059e+37  ;;  %v3563_v1 = vadd.f32 0.18741608, %v3562_v4 }
 0x577   : > { %v3611_v46 = vmul.f32 %v3610_v58, %v8532_v44  ;;  %v3636_v52 = vmul.f32 2.1237322e-06, %v8560_v57  ;;  %v3647_v50 = vmul.f32 3.8918573e-05, %v8560_v57  ;;  %v3540_v54 = vmul.f32 %v5675_v29, %v3539_v32 }
 0x578   : > { %v3575_v49 = vmul.f32 %v3574_v16, %v8512_v47  ;;  %v3600_v7 = vmul.f32 %v3599_v43, %v8532_v44  ;;  %v3549_v58 = vor.u32 1.1754944e-38, %v3548_v22  ;;  %v3526_v32 = vmul.f32 %v3525_v12, %v8454_v35 }
 0x579   : > { %v3612_v20 = vadd.f32 0.112945676, %v3611_v46  ;;  %v3541_v0 = vadd.f32 %v5675_v29, %v3540_v54  ;;  %v3637_v10 = vadd.f32 0.00028619796, %v3636_v52  ;;  %v3648_v25 = vadd.f32 0.001143296, %v3647_v50 }
 0x57a   : > { %v3576_v24 = vadd.f32 1.0, %v3575_v49  ;;  %v3793_v19 = vpop.f32.mrf.mxu2  ;;  %v3858_v40 = vpop.f32.mrf.mxu3  ;;  %v3601_v39 = vadd.f32 0.05243302, %v3600_v7  ;;  %v3564_v18 = vmul.f32 %v3563_v1, %v8512_v47 }
 0x57b   : > { %v3613_v56 = vmul.f32 %v3612_v20, %v8532_v44  ;;  %v3545_v61 = vsel %vm3544_vm4, %v5675_v29, %v3541_v0  ;;  %v8576_v43 = vadd.f32 %v3793_v19, %v7841_v53  ;;  %v3638_v50 = vmul.f32 %v3637_v10, %v8560_v57 }
 0x57c   : > { %5676 = vrcp.f32 %v3576_v24  ;;  %v3550_v16 = vsel %vm3547_vm5, %v3549_v58, %v3545_v61  ;;  %v3649_v22 = vmul.f32 %v3648_v25, %v8560_v57  ;;  %v8581_v54 = vadd.f32 %v3858_v40, %v7844_v5 }
 0x57d   : > { %v3551_v46 = vmul.f32 %v3550_v16, %v3526_v32  ;;  %v3614_v52 = vadd.f32 0.4994258, %v3613_v56  ;;  %v3014_v61 = vmul.f32 0.5, %v8443_v28  ;;  %v3602_v49 = vmul.f32 %v3601_v39, %v8532_v44 }
 0x57e   : > { %v3650_v12 = vadd.f32 0.014752088, %v3649_v22  ;;  %v3938_v4 = vadd.f32 %v8581_v54, %v8576_v43  ;;  %v3639_v10 = vadd.f32 0.0036580483, %v3638_v50  ;;  %v3565_v40 = vadd.f32 1.1283791, %v3564_v18 }
 0x57f   : > { %v5420_v35 = vclamps-f32 %v3551_v46, 1.0  ;;  %v3615_v29 = vmul.f32 %v3614_v52, %v8532_v44  ;;  %v3603_v32 = vadd.f32 0.18741608, %v3602_v49  ;;  %v3588_v47 = vand.u32 2147483648, %v3576_v24 }
 0x580   : > { %v3651_v25 = vmul.f32 %v3650_v12, %v8560_v57  ;;  %3939 = vadd.xlane.f32.xlu0 %v3938_v4  ;;  %v3640_v39 = vmul.f32 %v3639_v10, %v8560_v57  ;;  %v3586_v1 = vand.u32 2147483647, %v3576_v24  ;;  %vm3582_vm7 = vweird.f32 %v3576_v24 }
 0x581   : > { %v3686_v20 = vadd.f32 1.0, %v5420_v35  ;;  %v3616_v0 = vadd.f32 1.0, %v3615_v29  ;;  %v3604_v50 = vmul.f32 %v3603_v32, %v8532_v44  ;;  %v3589_v29 = vor.u32 1.1754944e-38, %v3588_v47 }
 0x582   : > { %v5677_v7 = vpop.eup %5676  ;;  %v3652_v28 = vadd.f32 0.112945676, %v3651_v25  ;;  %v3641_v12 = vadd.f32 0.05243302, %v3640_v39  ;;  %vm3587_vm10 = vcmp.eq.f32.partialorder %v3586_v1, 8.507059e+37 }
 0x583   : > { %v3578_v19 = vmul.f32 %v5677_v7, %v3576_v24  ;;  %v3702_v58 = vmul.f32 %v3686_v20, %v3014_v61  ;;  %5678 = vrcp.f32 %v3616_v0  ;;  %vm3583_vm6 = vweird.f32 %v5677_v7  ;;  %v9917_v24 = vld [vmem:[#allocation37_spill] sm:$0xff] }
 0x584   : > { %v3653_v46 = vmul.f32 %v3652_v28, %v8560_v57  ;;  %vm3584_vm9 = vmor %vm3582_vm7, %vm3583_vm6  ;;  %v3566_v61 = vmul.f32 %v3565_v40, %v8495_v55  ;;  %v3605_v32 = vadd.f32 1.1283791, %v3604_v50  ;;  %v3628_v47 = vand.u32 2147483648, %v3616_v0 }
 0x585   : > { %v3579_v56 = vsub.f32 1.0, %v3578_v19  ;;  %5438 = vmatmul.msk.f32.gmra.mxu2 %vm2106_vm8, %v3702_v58  ;;  %5455 = vmatmul.msk.f32.gmra.mxu3 %vm2106_vm8, %v3702_v58  ;;  %v9916_v19 = vld [vmem:[#allocation36_spill] sm:$0xff]  ;;  %v3642_v55 = vmul.f32 %v3641_v12, %v8560_v57  ;;  %v3626_v1 = vand.u32 2147483647, %v3616_v0  ;;  %vm3622_vm12 = vweird.f32 %v3616_v0 }
 0x586   : > { %v3654_v22 = vadd.f32 0.4994258, %v3653_v46  ;;  %v3015_v46 = vmul.f32 0.5, %v8488_v59  ;;  %v3629_v50 = vor.u32 1.1754944e-38, %v3628_v47  ;;  %v3606_v12 = vmul.f32 %v3605_v32, %v8521_v13  ;;  %v9918_v59 = vld [vmem:[#allocation38_spill] sm:$0xff] }
 0x587   : > { %v3580_v16 = vmul.f32 %v5677_v7, %v3579_v56  ;;  %vm3627_vm14 = vcmp.eq.f32.partialorder %v3626_v1, 8.507059e+37 }
 0x588   : > { %v3655_v25 = vmul.f32 %v3654_v22, %v8560_v57 }
 0x589   : > { %v3581_v52 = vadd.f32 %v5677_v7, %v3580_v16  ;;  %v5679_v35 = vpop.eup %5678 }
 0x58a   : > { %v3618_v49 = vmul.f32 %v5679_v35, %v3616_v0  ;;  %vm3623_vm11 = vweird.f32 %v5679_v35  ;;  %v9919_v0 = vld [vmem:[#allocation16_spill] sm:$0xff] }
 0x58b   : > { %v3585_v18 = vsel %vm3584_vm9, %v5677_v7, %v3581_v52  ;;  %v3656_v7 = vadd.f32 1.0, %v3655_v25  ;;  %vm3624_vm13 = vmor %vm3622_vm12, %vm3623_vm11 }
 0x58c   : > { %v3796_v4 = vpop.f32.mrf.mxu2  ;;  %v3861_v20 = vpop.f32.mrf.mxu3  ;;  %v3590_v10 = vsel %vm3587_vm10, %v3589_v29, %v3585_v18  ;;  %v3619_v28 = vsub.f32 1.0, %v3618_v49  ;;  %v3643_v29 = vadd.f32 0.18741608, %v3642_v55  ;;  %v3016_v55 = vmul.f32 0.5, %v8515_v30 }
 0x58d   : > { %v8598_v58 = vadd.f32 %v3796_v4, %v9916_v19  ;;  %v8601_v44 = vadd.f32 %v3861_v20, %v9917_v24  ;;  %v3591_v56 = vmul.f32 %v3590_v10, %v3566_v61  ;;  %5680 = vrcp.f32 %v3656_v7 }
 0x58e   : > { %v3620_v16 = vmul.f32 %v5679_v35, %v3619_v28  ;;  %v3644_v47 = vmul.f32 %v3643_v29, %v8560_v57  ;;  %v3668_v1 = vand.u32 2147483648, %v3656_v7  ;;  %vm3662_vm15 = vweird.f32 %v3656_v7 }
 0x58f   : > { %v3941_v40 = vadd.f32 %v8601_v44, %v8598_v58  ;;  %v5421_v39 = vclamps-f32 %v3591_v56, 1.0 }
 0x590   : > { %v3621_v22 = vadd.f32 %v5679_v35, %v3620_v16  ;;  %v3645_v16 = vadd.f32 1.1283791, %v3644_v47  ;;  %v3669_v57 = vor.u32 1.1754944e-38, %v3668_v1 }
 0x591   : > { %3942 = vadd.xlane.f32.xlu1 %v3941_v40  ;;  %v3687_v52 = vadd.f32 1.0, %v5421_v39 }
 0x592   : > { %v3625_v18 = vsel %vm3624_vm13, %v5679_v35, %v3621_v22  ;;  %v3666_v22 = vand.u32 2147483647, %v3656_v7  ;;  %v3646_v29 = vmul.f32 %v3645_v16, %v8543_v45 }
 0x593   : > { %v3703_v61 = vmul.f32 %v3687_v52, %v3015_v46  ;;  %v3630_v49 = vsel %vm3627_vm14, %v3629_v50, %v3625_v18  ;;  %v5681_v28 = vpop.eup %5680 }
 0x594   : > { %v3799_v4 = vpop.f32.mrf.mxu2  ;;  %v3864_v20 = vpop.f32.mrf.mxu3  ;;  %v3631_v10 = vmul.f32 %v3630_v49, %v3606_v12  ;;  %v3658_v35 = vmul.f32 %v5681_v28, %v3656_v7  ;;  %vm3663_vm0 = vweird.f32 %v5681_v28  ;;  %vm3667_vm2 = vcmp.eq.f32.partialorder %v3666_v22, 8.507059e+37  ;;  %v9922_v22 = vld [vmem:[#allocation19_spill] sm:$0xff] }
 0x595   : > { %5439 = vmatmul.msk.f32.gmra.mxu2 %vm2106_vm8, %v3703_v61  ;;  %5456 = vmatmul.msk.f32.gmra.mxu3 %vm2106_vm8, %v3703_v61  ;;  %v8611_v25 = vadd.f32 %v3799_v4, %v9918_v59  ;;  %v8614_v56 = vadd.f32 %v3864_v20, %v9919_v0  ;;  %vm3664_vm1 = vmor %vm3662_vm15, %vm3663_vm0  ;;  %v9920_v4 = vld [vmem:[#allocation27_spill] sm:$0xff] }
 0x596   : > { %v5422_v13 = vclamps-f32 %v3631_v10, 1.0  ;;  %v3659_v39 = vsub.f32 1.0, %v3658_v35  ;;  %v9921_v10 = vld [vmem:[#allocation28_spill] sm:$0xff]  ;;  %v3017_v35 = vmul.f32 0.5, %v8535_v34 }
 0x597   : > { %v3944_v32 = vadd.f32 %v8614_v56, %v8611_v25 }
 0x598   : > { %v3688_v40 = vadd.f32 1.0, %v5422_v13  ;;  %v3660_v52 = vmul.f32 %v5681_v28, %v3659_v39 }
 0x599   : > { %3945 = vadd.xlane.f32.xlu2 %v3944_v32 }
 0x59a   : > { %v3704_v46 = vmul.f32 %v3688_v40, %v3016_v55  ;;  %v3661_v50 = vadd.f32 %v5681_v28, %v3660_v52 }
 0x59c   : > { %v3665_v30 = vsel %vm3664_vm1, %v5681_v28, %v3661_v50 }
 0x59d   : > { %5440 = vmatmul.msk.f32.gmra.mxu2 %vm2106_vm8, %v3704_v46  ;;  %5457 = vmatmul.msk.f32.gmra.mxu3 %vm2106_vm8, %v3704_v46  ;;  %v3670_v61 = vsel %vm3667_vm2, %v3669_v57, %v3665_v30  ;;  %v9923_v57 = vld [vmem:[#allocation14_spill] sm:$0xff] }
 0x59e   : > { %v3671_v49 = vmul.f32 %v3670_v61, %v3646_v29 }
 0x59f   : > { %v3802_v12 = vpop.f32.mrf.mxu2  ;;  %v3867_v18 = vpop.f32.mrf.mxu3 }
 0x5a0   : > { %v8624_v20 = vadd.f32 %v3802_v12, %v9920_v4  ;;  %v8627_v47 = vadd.f32 %v3867_v18, %v9921_v10  ;;  %v5423_v7 = vclamps-f32 %v3671_v49, 1.0 }
 0x5a2   : > { %v3947_v13 = vadd.f32 %v8627_v47, %v8624_v20  ;;  %v3689_v32 = vadd.f32 1.0, %v5423_v7 }
 0x5a4   : > { %3948 = vadd.xlane.f32.xlu1 %v3947_v13  ;;  %v3705_v45 = vmul.f32 %v3689_v32, %v3017_v35 }
 0x5a6   : > { %5441 = vmatmul.msk.f32.gmra.mxu2 %vm2106_vm8, %v3705_v45  ;;  %5458 = vmatmul.msk.f32.gmra.mxu3 %vm2106_vm8, %v3705_v45 }
 0x5be   : > { %v3928_v28 = vpop.xlane.xlu2 %3927 }
 0x5bf   : > { %v3974_v55 = vmul.f32 %v3928_v28, %v7428_v37  ;;  %v9924_v28 = vld [vmem:[#allocation29_spill] sm:$0xff] }
 0x5c1   : > { %v8636_v40 = vsub.f32 %v8446_v63, %v3974_v55  ;;  %v8639_v39 = vsub.f32 %v8449_v3, %v3974_v55 }
 0x5c3   : > { %v4022_v16 = vmul.f32 %v8636_v40, %v8636_v40  ;;  %v4023_v34 = vmul.f32 %v8639_v39, %v8639_v39 }
 0x5c4   : > { %v3805_v1 = vpop.f32.mrf.mxu2  ;;  %v3870_v46 = vpop.f32.mrf.mxu3 }
 0x5c5   : > { %v4054_v52 = vadd.f32 %v4023_v34, %v4022_v16  ;;  %v8646_v50 = vadd.f32 %v3805_v1, %v9922_v22  ;;  %v8649_v29 = vadd.f32 %v3870_v46, %v9923_v57  ;;  %v9925_v16 = vld [vmem:[#allocation30_spill] sm:$0xff] }
 0x5c7   : > { %4055 = vadd.xlane.f32.xlu0 %v4054_v52  ;;  %v3931_v63 = vpop.xlane.xlu0 %3930  ;;  %v3950_v12 = vadd.f32 %v8649_v29, %v8646_v50 }
 0x5c8   : > { %v3975_v3 = vmul.f32 %v3931_v63, %v7428_v37 }
 0x5ca   : > { %v8653_v30 = vsub.f32 %v8477_v15, %v3975_v3  ;;  %v8656_v61 = vsub.f32 %v8481_v48, %v3975_v3  ;;  %v9926_v3 = vld [vmem:[#allocation31_spill] sm:$0xff] }
 0x5cc   : > { %v4024_v18 = vmul.f32 %v8653_v30, %v8653_v30  ;;  %v4025_v49 = vmul.f32 %v8656_v61, %v8656_v61 }
 0x5ce   : > { %v4057_v15 = vadd.f32 %v4025_v49, %v4024_v18  ;;  %v9927_v18 = vld [vmem:[#allocation20_spill] sm:$0xff] }
 0x5cf   : > { %3951 = vadd.xlane.f32.xlu0 %v3950_v12 }
 0x5d0   : > { %v3808_v7 = vpop.f32.mrf.mxu2  ;;  %v3873_v35 = vpop.f32.mrf.mxu3  ;;  %4058 = vadd.xlane.f32.xlu2 %v4057_v15 }
 0x5d1   : > { %v8672_v55 = vadd.f32 %v3808_v7, %v9924_v28  ;;  %v8675_v34 = vadd.f32 %v3873_v35, %v9925_v16 }
 0x5d7   : > { %v3934_v13 = vpop.xlane.xlu1 %3933 }
 0x5d8   : > { %v3976_v32 = vmul.f32 %v3934_v13, %v7428_v37 }
 0x5da   : > { %v8666_v45 = vsub.f32 %v8498_v42, %v3976_v32  ;;  %v8669_v48 = vsub.f32 %v8501_v33, %v3976_v32  ;;  %v3953_v42 = vadd.f32 %v8675_v34, %v8672_v55 }
 0x5dc   : > { %v4026_v1 = vmul.f32 %v8666_v45, %v8666_v45  ;;  %v4027_v46 = vmul.f32 %v8669_v48, %v8669_v48  ;;  %3954 = vadd.xlane.f32.xlu2 %v3953_v42 }
 0x5de   : > { %v4060_v52 = vadd.f32 %v4027_v46, %v4026_v1 }
 0x5e0   : > { %4061 = vadd.xlane.f32.xlu1 %v4060_v52 }
 0x5e4   : > { %v3811_v33 = vpop.f32.mrf.mxu2  ;;  %v3876_v63 = vpop.f32.mrf.mxu3 }
 0x5e5   : > { %v8684_v12 = vadd.f32 %v3811_v33, %v9926_v3  ;;  %v8687_v49 = vadd.f32 %v3876_v63, %v9927_v18 }
 0x5e7   : > { %v3937_v7 = vpop.xlane.xlu2 %3936  ;;  %v3956_v13 = vadd.f32 %v8687_v49, %v8684_v12 }
 0x5e8   : > { %v3977_v35 = vmul.f32 %v3937_v7, %v7428_v37 }
 0x5e9   : > { %3957 = vadd.xlane.f32.xlu1 %v3956_v13 }
 0x5ea   : > { %v8693_v32 = vsub.f32 %v8546_v51, %v3977_v35  ;;  %v8696_v15 = vsub.f32 %v8550_v41, %v3977_v35 }
 0x5ec   : > { %v4028_v1 = vmul.f32 %v8693_v32, %v8693_v32  ;;  %v4029_v46 = vmul.f32 %v8696_v15, %v8696_v15 }
 0x5ee   : > { %v4063_v52 = vadd.f32 %v4029_v46, %v4028_v1 }
 0x5f0   : > { %4064 = vadd.xlane.f32.xlu0 %v4063_v52 }
 0x5f3   : > { %v3940_v42 = vpop.xlane.xlu0 %3939 }
 0x5f4   : > { %v3978_v33 = vmul.f32 %v3940_v42, %v7428_v37 }
 0x5f5   : > { %v3814_v63 = vpop.f32.mrf.mxu2  ;;  %v3879_v7 = vpop.f32.mrf.mxu3 }
 0x5f6   : > { %v8704_v13 = vadd.f32 %v3814_v63, %v8120_v38  ;;  %v8707_v51 = vadd.f32 %v3879_v7, %v8123_v60  ;;  %v8710_v41 = vsub.f32 %v8576_v43, %v3978_v33  ;;  %v8713_v35 = vsub.f32 %v8581_v54, %v3978_v33 }
 0x5f8   : > { %v3959_v1 = vadd.f32 %v8707_v51, %v8704_v13  ;;  %v4030_v46 = vmul.f32 %v8710_v41, %v8710_v41  ;;  %v4031_v52 = vmul.f32 %v8713_v35, %v8713_v35 }
 0x5fa   : > { %3960 = vadd.xlane.f32.xlu0 %v3959_v1  ;;  %v4066_v42 = vadd.f32 %v4031_v52, %v4030_v46 }
 0x5fc   : > { %4067 = vadd.xlane.f32.xlu2 %v4066_v42 }
 0x604   : > { %v3943_v63 = vpop.xlane.xlu1 %3942 }
 0x605   : > { %v3979_v7 = vmul.f32 %v3943_v63, %v7428_v37 }
 0x607   : > { %v8723_v43 = vsub.f32 %v8598_v58, %v3979_v7  ;;  %v8726_v54 = vsub.f32 %v8601_v44, %v3979_v7 }
 0x608   : > { %v3817_v38 = vpop.f32.mrf.mxu2  ;;  %v3882_v18 = vpop.f32.mrf.mxu3 }
 0x609   : > { %v4032_v33 = vmul.f32 %v8723_v43, %v8723_v43  ;;  %v4033_v60 = vmul.f32 %v8726_v54, %v8726_v54  ;;  %v8733_v1 = vadd.f32 %v3817_v38, %v8201_v2  ;;  %v8736_v46 = vadd.f32 %v3882_v18, %v8217_v26 }
 0x60b   : > { %v4069_v52 = vadd.f32 %v4033_v60, %v4032_v33  ;;  %v3962_v44 = vadd.f32 %v8736_v46, %v8733_v1 }
 0x60c   : > { %v3946_v58 = vpop.xlane.xlu2 %3945 }
 0x60d   : > { %4070 = vadd.xlane.f32.xlu1 %v4069_v52  ;;  %v3980_v42 = vmul.f32 %v3946_v58, %v7428_v37  ;;  %3963 = vadd.xlane.f32.xlu2 %v3962_v44 }
 0x60f   : > { %v8742_v63 = vsub.f32 %v8611_v25, %v3980_v42  ;;  %v8745_v7 = vsub.f32 %v8614_v56, %v3980_v42 }
 0x611   : > { %v4034_v38 = vmul.f32 %v8742_v63, %v8742_v63  ;;  %v4035_v60 = vmul.f32 %v8745_v7, %v8745_v7 }
 0x613   : > { %v4072_v18 = vadd.f32 %v4035_v60, %v4034_v38 }
 0x615   : > { %4073 = vadd.xlane.f32.xlu0 %v4072_v18 }
 0x617   : > { %v3949_v25 = vpop.xlane.xlu1 %3948 }
 0x618   : > { %v3820_v33 = vpop.f32.mrf.mxu2  ;;  %v3885_v52 = vpop.f32.mrf.mxu3  ;;  %v3981_v56 = vmul.f32 %v3949_v25, %v7428_v37 }
 0x619   : > { %v8752_v26 = vadd.f32 %v3820_v33, %v8255_v62  ;;  %v8755_v58 = vadd.f32 %v3885_v52, %v8283_v14 }
 0x61a   : > { %v8761_v42 = vsub.f32 %v8624_v20, %v3981_v56  ;;  %v8764_v38 = vsub.f32 %v8627_v47, %v3981_v56 }
 0x61b   : > { %v3965_v44 = vadd.f32 %v8755_v58, %v8752_v26 }
 0x61c   : > { %v4036_v60 = vmul.f32 %v8761_v42, %v8761_v42  ;;  %v4037_v18 = vmul.f32 %v8764_v38, %v8764_v38 }
 0x61d   : > { %3966 = vadd.xlane.f32.xlu1 %v3965_v44 }
 0x61e   : > { %v4075_v14 = vadd.f32 %v4037_v18, %v4036_v60 }
 0x620   : > { %v3823_v33 = vpop.f32.mrf.mxu2  ;;  %v3888_v52 = vpop.f32.mrf.mxu3  ;;  %4076 = vadd.xlane.f32.xlu2 %v4075_v14 }
 0x621   : > { %v8771_v25 = vadd.f32 %v3823_v33, %v8309_v17  ;;  %v8774_v62 = vadd.f32 %v3888_v52, %v8313_v6 }
 0x623   : > { %v3968_v20 = vadd.f32 %v8774_v62, %v8771_v25 }
 0x625   : > { %3969 = vadd.xlane.f32.xlu0 %v3968_v20 }
 0x629   : > { %v3826_v47 = vpop.f32.mrf.mxu2  ;;  %v3891_v56 = vpop.f32.mrf.mxu3 }
 0x62a   : > { %v8779_v44 = vadd.f32 %v3826_v47, %v8337_v8  ;;  %v8782_v2 = vadd.f32 %v3891_v56, %v8341_v21 }
 0x62c   : > { %v3971_v60 = vadd.f32 %v8782_v2, %v8779_v44 }
 0x62e   : > { %3972 = vadd.xlane.f32.xlu2 %v3971_v60 }
 0x63a   : > { %v4056_v18 = vpop.xlane.xlu0 %4055 }
 0x63b   : > { %v4102_v33 = vmul.f32 %v4056_v18, %v7428_v37 }
 0x63d   : > { %v4118_v14 = vadd.f32 1e-05, %v4102_v33 }
 0x63f   : > { %5682 = vrsqrt.f32 %v4118_v14  ;;  %vm4140_vm3 = vweird.f32 %v4118_v14 }
 0x642   : > { %v3952_v52 = vpop.xlane.xlu0 %3951 }
 0x643   : > { %v3982_v20 = vmul.f32 %v3952_v52, %v7428_v37  ;;  %v4059_v6 = vpop.xlane.xlu2 %4058 }
 0x644   : > { %v4103_v47 = vmul.f32 %v4059_v6, %v7428_v37 }
 0x645   : > { %v5683_v17 = vpop.eup %5682  ;;  %v8790_v8 = vsub.f32 %v8646_v50, %v3982_v20  ;;  %v8793_v56 = vsub.f32 %v8649_v29, %v3982_v20 }
 0x646   : > { %v4135_v21 = vmul.f32 %v5683_v17, %v4118_v14  ;;  %v4119_v60 = vadd.f32 1e-05, %v4103_v47  ;;  %vm4141_vm8 = vweird.f32 %v5683_v17 }
 0x647   : > { %9928 = vst [vmem:[#allocation23_spill] sm:$0xff] %v8790_v8  ;;  %v4038_v18 = vmul.f32 %v8790_v8, %v8790_v8  ;;  %v4039_v33 = vmul.f32 %v8793_v56, %v8793_v56  ;;  %vm4142_vm4 = vmor %vm4140_vm3, %vm4141_vm8 }
 0x648   : > { %9929 = vst [vmem:[#allocation10_spill] sm:$0xff] %v8793_v56  ;;  %v4136_v3 = vmul.f32 %v5683_v17, %v4135_v21  ;;  %5684 = vrsqrt.f32 %v4119_v60  ;;  %vm4150_vm6 = vweird.f32 %v4119_v60 }
 0x649   : > { %v4078_v52 = vadd.f32 %v4039_v33, %v4038_v18 }
 0x64a   : > { %v4137_v16 = vmul.f32 0.5, %v4136_v3 }
 0x64b   : > { %4079 = vadd.xlane.f32.xlu1 %v4078_v52 }
 0x64c   : > { %v4138_v50 = vsub.f32 1.5, %v4137_v16  ;;  %v5374_v16 = vld [vmem:[%s9680_s5 + $0x1] ss:$2 sm:$0x3] }
 0x64e   : > { %v4139_v57 = vmul.f32 %v5683_v17, %v4138_v50  ;;  %v5685_v22 = vpop.eup %5684 }
 0x64f   : > { %v3955_v29 = vpop.xlane.xlu2 %3954  ;;  %vm4151_vm5 = vweird.f32 %v5685_v22 }
 0x650   : > { %v3983_v47 = vmul.f32 %v3955_v29, %v7428_v37  ;;  %v4143_v18 = vsel %vm4142_vm4, %v5683_v17, %v4139_v57  ;;  %v5375_v17 = vld [vmem:[%s9681_s6 + $0x1] ss:$2 sm:$0x3]  ;;  %v8819_v57 = vperm.slane %v5374_v16, 0  ;;  %vm4152_vm7 = vmor %vm4150_vm6, %vm4151_vm5 }
 0x651   : > { %v4294_v52 = vmul.f32 %v4143_v18, %v8636_v40  ;;  %v8823_v29 = vperm.slane %v5375_v17, 0 }
 0x652   : > { %v8802_v21 = vsub.f32 %v8672_v55, %v3983_v47  ;;  %v8805_v3 = vsub.f32 %v8675_v34, %v3983_v47  ;;  %v4295_v55 = vmul.f32 %v4143_v18, %v8639_v39  ;;  %v8821_v34 = vperm.slane %v5374_v16, 1 }
 0x653   : > { %v4062_v28 = vpop.xlane.xlu1 %4061  ;;  %v8825_v47 = vperm.slane %v5375_v17, 1 }
 0x654   : > { %v4104_v6 = vmul.f32 %v4062_v28, %v7428_v37  ;;  %9930 = vst [vmem:[#allocation24_spill] sm:$0xff] %v8802_v21  ;;  %v4145_v28 = vmul.f32 %v5685_v22, %v4119_v60  ;;  %v4040_v33 = vmul.f32 %v8802_v21, %v8802_v21  ;;  %v4041_v14 = vmul.f32 %v8805_v3, %v8805_v3 }
 0x655   : > { %9931 = vst [vmem:[#allocation13_spill] sm:$0xff] %v8805_v3  ;;  %v4331_v3 = vmul.f32 %v8819_v57, %v4294_v52  ;;  %v4332_v40 = vmul.f32 %v8821_v34, %v4295_v55 }
 0x656   : > { %v4120_v20 = vadd.f32 1e-05, %v4104_v6  ;;  %v4146_v6 = vmul.f32 %v5685_v22, %v4145_v28  ;;  %v4081_v50 = vadd.f32 %v4041_v14, %v4040_v33 }
 0x657   : > { %v4368_v16 = vadd.f32 %v8823_v29, %v4331_v3  ;;  %v4369_v33 = vadd.f32 %v8825_v47, %v4332_v40 }
 0x658   : > { %5686 = vrsqrt.f32 %v4120_v20  ;;  %v4147_v21 = vmul.f32 0.5, %v4146_v6  ;;  %4082 = vadd.xlane.f32.xlu0 %v4081_v50  ;;  %vm4160_vm10 = vweird.f32 %v4120_v20 }
 0x659   : > { %v8842_v55 = vadd.f32 %v4369_v33, %v7760_v36 }
 0x65a   : > { %v4148_v28 = vsub.f32 1.5, %v4147_v21  ;;  %v8839_v21 = vadd.f32 %v4368_v16, %v7757_v9 }
 0x65c   : > { %v3958_v18 = vpop.xlane.xlu1 %3957  ;;  %v4149_v14 = vmul.f32 %v5685_v22, %v4148_v28 }
 0x65d   : > { %v3984_v8 = vmul.f32 %v3958_v18, %v7428_v37 }
 0x65e   : > { %v5687_v39 = vpop.eup %5686  ;;  %v4153_v60 = vsel %vm4152_vm7, %v5685_v22, %v4149_v14 }
 0x65f   : > { %v4155_v56 = vmul.f32 %v5687_v39, %v4120_v20  ;;  %v8833_v6 = vsub.f32 %v8684_v12, %v3984_v8  ;;  %v8836_v52 = vsub.f32 %v8687_v49, %v3984_v8  ;;  %v4434_v12 = vadd.f32 %v8842_v55, %v8839_v21 }
 0x660   : > { %v4296_v8 = vmul.f32 %v4153_v60, %v8653_v30  ;;  %v4297_v49 = vmul.f32 %v4153_v60, %v8656_v61  ;;  %vm4161_vm9 = vweird.f32 %v5687_v39 }
 0x661   : > { %v4156_v17 = vmul.f32 %v5687_v39, %v4155_v56  ;;  %v4042_v3 = vmul.f32 %v8833_v6, %v8833_v6  ;;  %v4043_v56 = vmul.f32 %v8836_v52, %v8836_v52  ;;  %4435 = vadd.xlane.f32.xlu1 %v4434_v12  ;;  %vm4162_vm11 = vmor %vm4160_vm10, %vm4161_vm9 }
 0x662   : > { %v4333_v18 = vmul.f32 %v8819_v57, %v4296_v8  ;;  %v4334_v28 = vmul.f32 %v8821_v34, %v4297_v49 }
 0x663   : > { %v4157_v50 = vmul.f32 0.5, %v4156_v17  ;;  %v4065_v40 = vpop.xlane.xlu0 %4064  ;;  %v4084_v36 = vadd.f32 %v4043_v56, %v4042_v3 }
 0x664   : > { %v4105_v22 = vmul.f32 %v4065_v40, %v7428_v37  ;;  %v4370_v30 = vadd.f32 %v8823_v29, %v4333_v18  ;;  %v4371_v61 = vadd.f32 %v8825_v47, %v4334_v28 }
 0x665   : > { %v4158_v9 = vsub.f32 1.5, %v4157_v50  ;;  %4085 = vadd.xlane.f32.xlu2 %v4084_v36 }
 0x666   : > { %v4121_v33 = vadd.f32 1e-05, %v4105_v22  ;;  %v8858_v17 = vadd.f32 %v4370_v30, %v7775_v11  ;;  %v8861_v60 = vadd.f32 %v4371_v61, %v7778_v23 }
 0x667   : > { %v4159_v16 = vmul.f32 %v5687_v39, %v4158_v9 }
 0x668   : > { %5688 = vrsqrt.f32 %v4121_v33  ;;  %v4437_v20 = vadd.f32 %v8861_v60, %v8858_v17  ;;  %vm4170_vm13 = vweird.f32 %v4121_v33 }
 0x669   : > { %v4163_v14 = vsel %vm4162_vm11, %v5687_v39, %v4159_v16 }
 0x66a   : > { %v4298_v50 = vmul.f32 %v4163_v14, %v8666_v45  ;;  %v4299_v3 = vmul.f32 %v4163_v14, %v8669_v48  ;;  %4438 = vadd.xlane.f32.xlu0 %v4437_v20 }
 0x66c   : > { %v4335_v56 = vmul.f32 %v8819_v57, %v4298_v50  ;;  %v4336_v12 = vmul.f32 %v8821_v34, %v4299_v3 }
 0x66d   : > { %v3961_v8 = vpop.xlane.xlu0 %3960 }
 0x66e   : > { %v3985_v39 = vmul.f32 %v3961_v8, %v7428_v37  ;;  %v4372_v11 = vadd.f32 %v8823_v29, %v4335_v56  ;;  %v4373_v23 = vadd.f32 %v8825_v47, %v4336_v12  ;;  %v5689_v49 = vpop.eup %5688 }
 0x66f   : > { %v4165_v9 = vmul.f32 %v5689_v49, %v4121_v33  ;;  %v4068_v45 = vpop.xlane.xlu2 %4067  ;;  %vm4171_vm12 = vweird.f32 %v5689_v49 }
 0x670   : > { %v8873_v48 = vsub.f32 %v8704_v13, %v3985_v39  ;;  %v8876_v40 = vsub.f32 %v8707_v51, %v3985_v39  ;;  %v4106_v36 = vmul.f32 %v4068_v45, %v7428_v37  ;;  %v8880_v22 = vadd.f32 %v4372_v11, %v7795_v31  ;;  %vm4172_vm14 = vmor %vm4170_vm13, %vm4171_vm12 }
 0x671   : > { %v8883_v18 = vadd.f32 %v4373_v23, %v7800_v27  ;;  %v4166_v28 = vmul.f32 %v5689_v49, %v4165_v9 }
 0x672   : > { %v4044_v16 = vmul.f32 %v8873_v48, %v8873_v48  ;;  %v4045_v30 = vmul.f32 %v8876_v40, %v8876_v40  ;;  %v4122_v13 = vadd.f32 1e-05, %v4106_v36 }
 0x673   : > { %v4440_v51 = vadd.f32 %v8883_v18, %v8880_v22  ;;  %v4167_v61 = vmul.f32 0.5, %v4166_v28 }
 0x674   : > { %v4087_v14 = vadd.f32 %v4045_v30, %v4044_v16  ;;  %5690 = vrsqrt.f32 %v4122_v13  ;;  %v9932_v16 = vld [vmem:[#allocation34_spill] sm:$0xff]  ;;  %v9933_v30 = vld [vmem:[#allocation35_spill] sm:$0xff]  ;;  %vm4180_vm15 = vweird.f32 %v4122_v13 }
 0x675   : > { %4441 = vadd.xlane.f32.xlu2 %v4440_v51  ;;  %v4168_v31 = vsub.f32 1.5, %v4167_v61 }
 0x676   : > { %4088 = vadd.xlane.f32.xlu1 %v4087_v14 }
 0x677   : > { %v4169_v27 = vmul.f32 %v5689_v49, %v4168_v31 }
 0x679   : > { %v4173_v50 = vsel %vm4172_vm14, %v5689_v49, %v4169_v27 }
 0x67a   : > { %v5691_v3 = vpop.eup %5690  ;;  %v4300_v20 = vmul.f32 %v4173_v50, %v8693_v32  ;;  %v4301_v56 = vmul.f32 %v4173_v50, %v8696_v15 }
 0x67b   : > { %v4175_v12 = vmul.f32 %v5691_v3, %v4122_v13  ;;  %vm4181_vm0 = vweird.f32 %v5691_v3 }
 0x67c   : > { %v4337_v39 = vmul.f32 %v8819_v57, %v4300_v20  ;;  %v4338_v11 = vmul.f32 %v8821_v34, %v4301_v56  ;;  %vm4182_vm1 = vmor %vm4180_vm15, %vm4181_vm0 }
 0x67d   : > { %v4176_v23 = vmul.f32 %v5691_v3, %v4175_v12 }
 0x67e   : > { %v4374_v36 = vadd.f32 %v8823_v29, %v4337_v39  ;;  %v4375_v33 = vadd.f32 %v8825_v47, %v4338_v11 }
 0x67f   : > { %v4177_v49 = vmul.f32 0.5, %v4176_v23 }
 0x680   : > { %v4071_v8 = vpop.xlane.xlu1 %4070  ;;  %v3964_v45 = vpop.xlane.xlu2 %3963  ;;  %v8900_v15 = vadd.f32 %v4374_v36, %v9932_v16  ;;  %v8903_v51 = vadd.f32 %v4375_v33, %v9933_v30 }
 0x681   : > { %v4107_v9 = vmul.f32 %v4071_v8, %v7428_v37  ;;  %v3986_v32 = vmul.f32 %v3964_v45, %v7428_v37  ;;  %v4178_v61 = vsub.f32 1.5, %v4177_v49 }
 0x682   : > { %v4443_v27 = vadd.f32 %v8903_v51, %v8900_v15 }
 0x683   : > { %v4123_v28 = vadd.f32 1e-05, %v4107_v9  ;;  %v8906_v14 = vsub.f32 %v8733_v1, %v3986_v32  ;;  %v8909_v31 = vsub.f32 %v8736_v46, %v3986_v32  ;;  %v4179_v50 = vmul.f32 %v5691_v3, %v4178_v61 }
 0x684   : > { %4444 = vadd.xlane.f32.xlu1 %v4443_v27 }
 0x685   : > { %5692 = vrsqrt.f32 %v4123_v28  ;;  %v4046_v20 = vmul.f32 %v8906_v14, %v8906_v14  ;;  %v4047_v56 = vmul.f32 %v8909_v31, %v8909_v31  ;;  %v4183_v12 = vsel %vm4182_vm1, %v5691_v3, %v4179_v50 }
 0x686   : > { %v4302_v46 = vmul.f32 %v4183_v12, %v8710_v41  ;;  %v4303_v11 = vmul.f32 %v4183_v12, %v8713_v35  ;;  %vm4190_vm8 = vweird.f32 %v4123_v28 }
 0x687   : > { %v4090_v39 = vadd.f32 %v4047_v56, %v4046_v20 }
 0x688   : > { %v4074_v8 = vpop.xlane.xlu0 %4073  ;;  %v4339_v45 = vmul.f32 %v8819_v57, %v4302_v46  ;;  %v4340_v36 = vmul.f32 %v8821_v34, %v4303_v11 }
 0x689   : > { %v4108_v1 = vmul.f32 %v4074_v8, %v7428_v37  ;;  %4091 = vadd.xlane.f32.xlu0 %v4090_v39 }
 0x68a   : > { %v4376_v3 = vadd.f32 %v8823_v29, %v4339_v45  ;;  %v4377_v49 = vadd.f32 %v8825_v47, %v4340_v36 }
 0x68b   : > { %v5693_v23 = vpop.eup %5692  ;;  %v4124_v13 = vadd.f32 1e-05, %v4108_v1 }
 0x68c   : > { %v4185_v9 = vmul.f32 %v5693_v23, %v4123_v28  ;;  %v8925_v16 = vadd.f32 %v4376_v3, %v7841_v53  ;;  %v8928_v35 = vadd.f32 %v4377_v49, %v7844_v5  ;;  %vm4191_vm2 = vweird.f32 %v5693_v23 }
 0x68d   : > { %5694 = vrsqrt.f32 %v4124_v13  ;;  %vm4192_vm3 = vmor %vm4190_vm8, %vm4191_vm2  ;;  %vm4200_vm5 = vweird.f32 %v4124_v13 }
 0x68e   : > { %v4186_v33 = vmul.f32 %v5693_v23, %v4185_v9  ;;  %v4446_v27 = vadd.f32 %v8928_v35, %v8925_v16 }
 0x690   : > { %v4187_v32 = vmul.f32 0.5, %v4186_v33  ;;  %v3967_v41 = vpop.xlane.xlu1 %3966 }
 0x691   : > { %v3987_v61 = vmul.f32 %v3967_v41, %v7428_v37  ;;  %4447 = vadd.xlane.f32.xlu0 %v4446_v27 }
 0x692   : > { %v4188_v30 = vsub.f32 1.5, %v4187_v32 }
 0x693   : > { %v5695_v50 = vpop.eup %5694  ;;  %v8934_v56 = vsub.f32 %v8752_v26, %v3987_v61  ;;  %v8937_v53 = vsub.f32 %v8755_v58, %v3987_v61  ;;  %v4077_v8 = vpop.xlane.xlu2 %4076 }
 0x694   : > { %v4189_v20 = vmul.f32 %v5693_v23, %v4188_v30  ;;  %v4195_v12 = vmul.f32 %v5695_v50, %v4124_v13  ;;  %v4109_v28 = vmul.f32 %v4077_v8, %v7428_v37  ;;  %vm4201_vm4 = vweird.f32 %v5695_v50 }
 0x695   : > { %v4048_v1 = vmul.f32 %v8934_v56, %v8934_v56  ;;  %v4049_v39 = vmul.f32 %v8937_v53, %v8937_v53  ;;  %vm4202_vm6 = vmor %vm4200_vm5, %vm4201_vm4 }
 0x696   : > { %v4193_v5 = vsel %vm4192_vm3, %v5693_v23, %v4189_v20  ;;  %v4196_v46 = vmul.f32 %v5695_v50, %v4195_v12  ;;  %v4125_v45 = vadd.f32 1e-05, %v4109_v28 }
 0x697   : > { %v4304_v26 = vmul.f32 %v4193_v5, %v8723_v43  ;;  %v4305_v11 = vmul.f32 %v4193_v5, %v8726_v54  ;;  %v4093_v58 = vadd.f32 %v4049_v39, %v4048_v1 }
 0x698   : > { %v4197_v9 = vmul.f32 0.5, %v4196_v46  ;;  %v3970_v36 = vpop.xlane.xlu0 %3969  ;;  %5696 = vrsqrt.f32 %v4125_v45  ;;  %vm4210_vm9 = vweird.f32 %v4125_v45 }
 0x699   : > { %v4341_v23 = vmul.f32 %v8819_v57, %v4304_v26  ;;  %v4342_v33 = vmul.f32 %v8821_v34, %v4305_v11  ;;  %v3988_v3 = vmul.f32 %v3970_v36, %v7428_v37  ;;  %4094 = vadd.xlane.f32.xlu2 %v4093_v58 }
 0x69a   : > { %v4198_v49 = vsub.f32 1.5, %v4197_v9 }
 0x69b   : > { %v4378_v32 = vadd.f32 %v8823_v29, %v4341_v23  ;;  %v8951_v43 = vsub.f32 %v8771_v25, %v3988_v3  ;;  %v8954_v54 = vsub.f32 %v8774_v62, %v3988_v3  ;;  %v4379_v41 = vadd.f32 %v8825_v47, %v4342_v33 }
 0x69c   : > { %v4199_v30 = vmul.f32 %v5695_v50, %v4198_v49 }
 0x69d   : > { %v8958_v61 = vadd.f32 %v4378_v32, %v9916_v19  ;;  %v4050_v27 = vmul.f32 %v8951_v43, %v8951_v43  ;;  %v4051_v20 = vmul.f32 %v8954_v54, %v8954_v54  ;;  %v8965_v25 = vadd.f32 %v4379_v41, %v9917_v24 }
 0x69e   : > { %v4203_v12 = vsel %vm4202_vm6, %v5695_v50, %v4199_v30  ;;  %v5697_v8 = vpop.eup %5696 }
 0x69f   : > { %v4096_v62 = vadd.f32 %v4051_v20, %v4050_v27  ;;  %v4449_v5 = vadd.f32 %v8965_v25, %v8958_v61  ;;  %v4306_v13 = vmul.f32 %v4203_v12, %v8742_v63  ;;  %v4307_v19 = vmul.f32 %v4203_v12, %v8745_v7 }
 0x6a0   : > { %v4205_v1 = vmul.f32 %v5697_v8, %v4125_v45  ;;  %vm4211_vm7 = vweird.f32 %v5697_v8 }
 0x6a1   : > { %4097 = vadd.xlane.f32.xlu1 %v4096_v62  ;;  %4450 = vadd.xlane.f32.xlu2 %v4449_v5  ;;  %v4343_v39 = vmul.f32 %v8819_v57, %v4306_v13  ;;  %v4344_v46 = vmul.f32 %v8821_v34, %v4307_v19  ;;  %v3973_v26 = vpop.xlane.xlu2 %3972  ;;  %vm4212_vm10 = vmor %vm4210_vm9, %vm4211_vm7 }
 0x6a2   : > { %v4206_v28 = vmul.f32 %v5697_v8, %v4205_v1  ;;  %v3989_v58 = vmul.f32 %v3973_v26, %v7428_v37 }
 0x6a3   : > { %v4380_v24 = vadd.f32 %v8823_v29, %v4343_v39  ;;  %v4381_v50 = vadd.f32 %v8825_v47, %v4344_v46 }
 0x6a4   : > { %v4207_v11 = vmul.f32 0.5, %v4206_v28  ;;  %v8983_v36 = vsub.f32 %v8779_v44, %v3989_v58  ;;  %v8986_v23 = vsub.f32 %v8782_v2, %v3989_v58 }
 0x6a5   : > { %v8977_v63 = vadd.f32 %v4380_v24, %v9918_v59  ;;  %v8980_v7 = vadd.f32 %v4381_v50, %v9919_v0 }
 0x6a6   : > { %v4208_v9 = vsub.f32 1.5, %v4207_v11  ;;  %v4052_v59 = vmul.f32 %v8983_v36, %v8983_v36  ;;  %v4053_v0 = vmul.f32 %v8986_v23, %v8986_v23 }
 0x6a7   : > { %v4452_v33 = vadd.f32 %v8980_v7, %v8977_v63 }
 0x6a8   : > { %v4209_v3 = vmul.f32 %v5697_v8, %v4208_v9  ;;  %v4099_v32 = vadd.f32 %v4053_v0, %v4052_v59 }
 0x6a9   : > { %4453 = vadd.xlane.f32.xlu1 %v4452_v33 }
 0x6aa   : > { %v4213_v49 = vsel %vm4212_vm10, %v5697_v8, %v4209_v3  ;;  %4100 = vadd.xlane.f32.xlu0 %v4099_v32 }
 0x6ab   : > { %v4308_v44 = vmul.f32 %v4213_v49, %v8761_v42  ;;  %v4309_v2 = vmul.f32 %v4213_v49, %v8764_v38 }
 0x6ad   : > { %v4345_v41 = vmul.f32 %v8819_v57, %v4308_v44  ;;  %v4346_v30 = vmul.f32 %v8821_v34, %v4309_v2  ;;  %v9934_v44 = vld [vmem:[#allocation23_spill] sm:$0xff] }
 0x6af   : > { %v4382_v45 = vadd.f32 %v8823_v29, %v4345_v41  ;;  %v4383_v27 = vadd.f32 %v8825_v47, %v4346_v30  ;;  %v9935_v41 = vld [vmem:[#allocation10_spill] sm:$0xff] }
 0x6b1   : > { %v9001_v20 = vadd.f32 %v4382_v45, %v9920_v4  ;;  %v9004_v12 = vadd.f32 %v4383_v27, %v9921_v10 }
 0x6b3   : > { %v4455_v42 = vadd.f32 %v9004_v12, %v9001_v20 }
 0x6b5   : > { %4456 = vadd.xlane.f32.xlu0 %v4455_v42 }
 0x6be   : > { %v4080_v38 = vpop.xlane.xlu1 %4079 }
 0x6bf   : > { %v4110_v62 = vmul.f32 %v4080_v38, %v7428_v37 }
 0x6c1   : > { %v4126_v5 = vadd.f32 1e-05, %v4110_v62 }
 0x6c3   : > { %5698 = vrsqrt.f32 %v4126_v5  ;;  %vm4220_vm12 = vweird.f32 %v4126_v5 }
 0x6c9   : > { %v5699_v19 = vpop.eup %5698 }
 0x6ca   : > { %v4215_v1 = vmul.f32 %v5699_v19, %v4126_v5  ;;  %vm4221_vm11 = vweird.f32 %v5699_v19 }
 0x6cb   : > { %v4083_v13 = vpop.xlane.xlu0 %4082  ;;  %vm4222_vm13 = vmor %vm4220_vm12, %vm4221_vm11 }
 0x6cc   : > { %v4111_v8 = vmul.f32 %v4083_v13, %v7428_v37  ;;  %v4216_v4 = vmul.f32 %v5699_v19, %v4215_v1 }
 0x6ce   : > { %v4127_v39 = vadd.f32 1e-05, %v4111_v8  ;;  %v4217_v46 = vmul.f32 0.5, %v4216_v4  ;;  %v9936_v4 = vld [vmem:[#allocation19_spill] sm:$0xff] }
 0x6d0   : > { %5700 = vrsqrt.f32 %v4127_v39  ;;  %v4218_v10 = vsub.f32 1.5, %v4217_v46  ;;  %vm4230_vm0 = vweird.f32 %v4127_v39 }
 0x6d2   : > { %v4219_v26 = vmul.f32 %v5699_v19, %v4218_v10  ;;  %v9937_v10 = vld [vmem:[#allocation14_spill] sm:$0xff] }
 0x6d4   : > { %v4436_v28 = vpop.xlane.xlu1 %4435  ;;  %v4223_v3 = vsel %vm4222_vm13, %v5699_v19, %v4219_v26 }
 0x6d5   : > { %v4482_v50 = vmul.f32 %v4436_v28, %v7428_v37  ;;  %v4310_v2 = vmul.f32 %v4223_v3, %v9934_v44  ;;  %v4311_v30 = vmul.f32 %v4223_v3, %v9935_v41  ;;  %v9939_v44 = vld [vmem:[#allocation13_spill] sm:$0xff] }
 0x6d6   : > { %v5701_v58 = vpop.eup %5700 }
 0x6d7   : > { %v9013_v9 = vsub.f32 %v8839_v21, %v4482_v50  ;;  %v9016_v33 = vsub.f32 %v8842_v55, %v4482_v50  ;;  %v4225_v59 = vmul.f32 %v5701_v58, %v4127_v39  ;;  %v4347_v27 = vmul.f32 %v8819_v57, %v4310_v2 }
 0x6d8   : > { %v4086_v24 = vpop.xlane.xlu2 %4085  ;;  %v4348_v55 = vmul.f32 %v8821_v34, %v4311_v30  ;;  %vm4231_vm14 = vweird.f32 %v5701_v58 }
 0x6d9   : > { %v4112_v11 = vmul.f32 %v4086_v24, %v7428_v37  ;;  %v4530_v49 = vmul.f32 %v9013_v9, %v9013_v9  ;;  %v4531_v32 = vmul.f32 %v9016_v33, %v9016_v33  ;;  %v4226_v45 = vmul.f32 %v5701_v58, %v4225_v59  ;;  %vm4232_vm15 = vmor %vm4230_vm0, %vm4231_vm14 }
 0x6da   : > { %v4384_v5 = vadd.f32 %v8823_v29, %v4347_v27  ;;  %v4385_v13 = vadd.f32 %v8825_v47, %v4348_v55 }
 0x6db   : > { %v4128_v0 = vadd.f32 1e-05, %v4112_v11  ;;  %v4562_v21 = vadd.f32 %v4531_v32, %v4530_v49  ;;  %v4227_v42 = vmul.f32 0.5, %v4226_v45  ;;  %v9938_v49 = vld [vmem:[#allocation24_spill] sm:$0xff] }
 0x6dc   : > { %v9036_v46 = vadd.f32 %v4384_v5, %v9936_v4  ;;  %v9039_v28 = vadd.f32 %v4385_v13, %v9937_v10 }
 0x6dd   : > { %5702 = vrsqrt.f32 %v4128_v0  ;;  %v4439_v38 = vpop.xlane.xlu0 %4438  ;;  %4563 = vadd.xlane.f32.xlu2 %v4562_v21  ;;  %v4228_v19 = vsub.f32 1.5, %v4227_v42  ;;  %vm4240_vm2 = vweird.f32 %v4128_v0 }
 0x6de   : > { %v4483_v62 = vmul.f32 %v4439_v38, %v7428_v37  ;;  %v4458_v11 = vadd.f32 %v9039_v28, %v9036_v46 }
 0x6df   : > { %v4229_v50 = vmul.f32 %v5701_v58, %v4228_v19 }
 0x6e0   : > { %v9030_v8 = vsub.f32 %v8858_v17, %v4483_v62  ;;  %v9033_v1 = vsub.f32 %v8861_v60, %v4483_v62 }
 0x6e1   : > { %v4233_v3 = vsel %vm4232_vm15, %v5701_v58, %v4229_v50 }
 0x6e2   : > { %v4532_v17 = vmul.f32 %v9030_v8, %v9030_v8  ;;  %v4533_v60 = vmul.f32 %v9033_v1, %v9033_v1  ;;  %v4312_v32 = vmul.f32 %v4233_v3, %v9938_v49  ;;  %v4313_v2 = vmul.f32 %v4233_v3, %v9939_v44 }
 0x6e3   : > { %v5703_v24 = vpop.eup %5702 }
 0x6e4   : > { %v4235_v26 = vmul.f32 %v5703_v24, %v4128_v0  ;;  %v4565_v30 = vadd.f32 %v4533_v60, %v4532_v17  ;;  %v4349_v27 = vmul.f32 %v8819_v57, %v4312_v32  ;;  %v4350_v55 = vmul.f32 %v8821_v34, %v4313_v2 }
 0x6e5   : > { %4459 = vadd.xlane.f32.xlu2 %v4458_v11  ;;  %vm4241_vm1 = vweird.f32 %v5703_v24 }
 0x6e6   : > { %v4236_v59 = vmul.f32 %v5703_v24, %v4235_v26  ;;  %4566 = vadd.xlane.f32.xlu1 %v4565_v30  ;;  %v4386_v5 = vadd.f32 %v8823_v29, %v4349_v27  ;;  %v4387_v19 = vadd.f32 %v8825_v47, %v4350_v55  ;;  %v9940_v26 = vld [vmem:[#allocation29_spill] sm:$0xff]  ;;  %vm4242_vm8 = vmor %vm4240_vm2, %vm4241_vm1  ;;  %v9942_v30 = vld [vmem:[#allocation31_spill] sm:$0xff] }
 0x6e8   : > { %v4442_v41 = vpop.xlane.xlu2 %4441  ;;  %v4237_v39 = vmul.f32 0.5, %v4236_v59  ;;  %v9066_v11 = vadd.f32 %v4386_v5, %v9940_v26 }
 0x6e9   : > { %v4089_v45 = vpop.xlane.xlu1 %4088  ;;  %v4484_v21 = vmul.f32 %v4442_v41, %v7428_v37 }
 0x6ea   : > { %v4113_v58 = vmul.f32 %v4089_v45, %v7428_v37  ;;  %v4238_v42 = vsub.f32 1.5, %v4237_v39  ;;  %v9943_v45 = vld [vmem:[#allocation20_spill] sm:$0xff] }
 0x6eb   : > { %v9054_v38 = vsub.f32 %v8880_v22, %v4484_v21  ;;  %v9057_v62 = vsub.f32 %v8883_v18, %v4484_v21  ;;  %v9941_v22 = vld [vmem:[#allocation30_spill] sm:$0xff] }
 0x6ec   : > { %v4129_v13 = vadd.f32 1e-05, %v4113_v58  ;;  %v4239_v4 = vmul.f32 %v5703_v24, %v4238_v42  ;;  %v9069_v18 = vadd.f32 %v4387_v19, %v9941_v22 }
 0x6ed   : > { %v4534_v10 = vmul.f32 %v9054_v38, %v9054_v38  ;;  %v4535_v50 = vmul.f32 %v9057_v62, %v9057_v62 }
 0x6ee   : > { %5704 = vrsqrt.f32 %v4129_v13  ;;  %v4243_v17 = vsel %vm4242_vm8, %v5703_v24, %v4239_v4  ;;  %v4461_v3 = vadd.f32 %v9069_v18, %v9066_v11  ;;  %vm4250_vm4 = vweird.f32 %v4129_v13 }
 0x6ef   : > { %v4568_v0 = vadd.f32 %v4535_v50, %v4534_v10  ;;  %v4314_v60 = vmul.f32 %v4243_v17, %v8833_v6  ;;  %v4315_v59 = vmul.f32 %v4243_v17, %v8836_v52 }
 0x6f0   : > { %4462 = vadd.xlane.f32.xlu1 %v4461_v3 }
 0x6f1   : > { %4569 = vadd.xlane.f32.xlu0 %v4568_v0  ;;  %v4351_v49 = vmul.f32 %v8819_v57, %v4314_v60  ;;  %v4352_v32 = vmul.f32 %v8821_v34, %v4315_v59 }
 0x6f3   : > { %v4388_v2 = vadd.f32 %v8823_v29, %v4351_v49  ;;  %v4389_v41 = vadd.f32 %v8825_v47, %v4352_v32 }
 0x6f4   : > { %v5705_v44 = vpop.eup %5704 }
 0x6f5   : > { %v4245_v24 = vmul.f32 %v5705_v44, %v4129_v13  ;;  %v9080_v39 = vadd.f32 %v4388_v2, %v9942_v30  ;;  %v9083_v21 = vadd.f32 %v4389_v41, %v9943_v45  ;;  %vm4251_vm3 = vweird.f32 %v5705_v44 }
 0x6f6   : > { %vm4252_vm5 = vmor %vm4250_vm4, %vm4251_vm3 }
 0x6f7   : > { %v4246_v6 = vmul.f32 %v5705_v44, %v4245_v24  ;;  %v4445_v52 = vpop.xlane.xlu1 %4444  ;;  %v4464_v27 = vadd.f32 %v9083_v21, %v9080_v39  ;;  %v9945_v24 = vld [vmem:[#allocation32_spill] sm:$0xff] }
 0x6f8   : > { %v4485_v58 = vmul.f32 %v4445_v52, %v7428_v37 }
 0x6f9   : > { %v4247_v55 = vmul.f32 0.5, %v4246_v6  ;;  %4465 = vadd.xlane.f32.xlu0 %v4464_v27 }
 0x6fa   : > { %v9089_v5 = vsub.f32 %v8900_v15, %v4485_v58  ;;  %v9092_v19 = vsub.f32 %v8903_v51, %v4485_v58 }
 0x6fb   : > { %v4248_v42 = vsub.f32 1.5, %v4247_v55 }
 0x6fc   : > { %v4092_v4 = vpop.xlane.xlu0 %4091  ;;  %v4536_v26 = vmul.f32 %v9089_v5, %v9089_v5  ;;  %v4537_v22 = vmul.f32 %v9092_v19, %v9092_v19 }
 0x6fd   : > { %v4249_v10 = vmul.f32 %v5705_v44, %v4248_v42  ;;  %v4114_v50 = vmul.f32 %v4092_v4, %v7428_v37 }
 0x6fe   : > { %v4571_v3 = vadd.f32 %v4537_v22, %v4536_v26 }
 0x6ff   : > { %v4253_v17 = vsel %vm4252_vm5, %v5705_v44, %v4249_v10  ;;  %v4130_v0 = vadd.f32 1e-05, %v4114_v50  ;;  %v9944_v44 = vld [vmem:[#allocation18_spill] sm:$0xff] }
 0x700   : > { %v4316_v15 = vmul.f32 %v4253_v17, %v8873_v48  ;;  %v4317_v51 = vmul.f32 %v4253_v17, %v8876_v40  ;;  %4572 = vadd.xlane.f32.xlu2 %v4571_v3 }
 0x701   : > { %5706 = vrsqrt.f32 %v4130_v0  ;;  %vm4260_vm7 = vweird.f32 %v4130_v0 }
 0x702   : > { %v4353_v13 = vmul.f32 %v8819_v57, %v4316_v15  ;;  %v4354_v60 = vmul.f32 %v8821_v34, %v4317_v51 }
 0x704   : > { %v4390_v59 = vadd.f32 %v8823_v29, %v4353_v13  ;;  %v4391_v49 = vadd.f32 %v8825_v47, %v4354_v60  ;;  %v4448_v32 = vpop.xlane.xlu0 %4447 }
 0x705   : > { %v4486_v2 = vmul.f32 %v4448_v32, %v7428_v37 }
 0x706   : > { %v9107_v41 = vadd.f32 %v4390_v59, %v9944_v44  ;;  %v9110_v48 = vadd.f32 %v4391_v49, %v9945_v24 }
 0x707   : > { %v5707_v40 = vpop.eup %5706  ;;  %v9113_v45 = vsub.f32 %v8925_v16, %v4486_v2  ;;  %v9116_v6 = vsub.f32 %v8928_v35, %v4486_v2 }
 0x708   : > { %v4255_v30 = vmul.f32 %v5707_v40, %v4130_v0  ;;  %v4467_v52 = vadd.f32 %v9110_v48, %v9107_v41  ;;  %vm4261_vm6 = vweird.f32 %v5707_v40 }
 0x709   : > { %v4538_v58 = vmul.f32 %v9113_v45, %v9113_v45  ;;  %v4539_v42 = vmul.f32 %v9116_v6, %v9116_v6  ;;  %vm4262_vm9 = vmor %vm4260_vm7, %vm4261_vm6 }
 0x70a   : > { %v4256_v27 = vmul.f32 %v5707_v40, %v4255_v30  ;;  %4468 = vadd.xlane.f32.xlu2 %v4467_v52 }
 0x70b   : > { %v4574_v16 = vadd.f32 %v4539_v42, %v4538_v58  ;;  %v9947_v42 = vld [vmem:[#allocation15_spill] sm:$0xff] }
 0x70c   : > { %v4095_v55 = vpop.xlane.xlu2 %4094  ;;  %v4257_v10 = vmul.f32 0.5, %v4256_v27 }
 0x70d   : > { %v4115_v4 = vmul.f32 %v4095_v55, %v7428_v37  ;;  %4575 = vadd.xlane.f32.xlu1 %v4574_v16  ;;  %v9946_v55 = vld [vmem:[#allocation21_spill] sm:$0xff] }
 0x70e   : > { %v4258_v26 = vsub.f32 1.5, %v4257_v10 }
 0x70f   : > { %v4131_v50 = vadd.f32 1e-05, %v4115_v4 }
 0x710   : > { %v4259_v35 = vmul.f32 %v5707_v40, %v4258_v26 }
 0x711   : > { %5708 = vrsqrt.f32 %v4131_v50  ;;  %vm4270_vm11 = vweird.f32 %v4131_v50 }
 0x712   : > { %v4263_v22 = vsel %vm4262_vm9, %v5707_v40, %v4259_v35 }
 0x713   : > { %v4318_v13 = vmul.f32 %v4263_v22, %v8906_v14  ;;  %v4319_v60 = vmul.f32 %v4263_v22, %v8909_v31 }
 0x714   : > { %v4098_v17 = vpop.xlane.xlu1 %4097  ;;  %v4451_v3 = vpop.xlane.xlu2 %4450 }
 0x715   : > { %v4116_v15 = vmul.f32 %v4098_v17, %v7428_v37  ;;  %v4487_v51 = vmul.f32 %v4451_v3, %v7428_v37  ;;  %v4355_v2 = vmul.f32 %v8819_v57, %v4318_v13  ;;  %v4356_v24 = vmul.f32 %v8821_v34, %v4319_v60 }
 0x717   : > { %v5709_v59 = vpop.eup %5708  ;;  %v9129_v49 = vadd.f32 1e-05, %v4116_v15  ;;  %v9132_v32 = vsub.f32 %v8958_v61, %v4487_v51  ;;  %v9135_v0 = vsub.f32 %v8965_v25, %v4487_v51  ;;  %v4392_v61 = vadd.f32 %v8823_v29, %v4355_v2 }
 0x718   : > { %v4265_v44 = vmul.f32 %v5709_v59, %v4131_v50  ;;  %v4393_v30 = vadd.f32 %v8825_v47, %v4356_v24  ;;  %vm4271_vm10 = vweird.f32 %v5709_v59  ;;  %v4922_v24 = vld [vmem:[%s9684_s9 + $0x70] sm:$0xff] }
 0x719   : > { %5710 = vrsqrt.f32 %v9129_v49  ;;  %v4540_v14 = vmul.f32 %v9132_v32, %v9132_v32  ;;  %v4541_v31 = vmul.f32 %v9135_v0, %v9135_v0  ;;  %v9147_v58 = vadd.f32 %v4392_v61, %v9946_v55  ;;  %vm4272_vm12 = vmor %vm4270_vm11, %vm4271_vm10 }
 0x71a   : > { %v4266_v40 = vmul.f32 %v5709_v59, %v4265_v44  ;;  %v9150_v4 = vadd.f32 %v4393_v30, %v9947_v42  ;;  %vm4280_vm14 = vweird.f32 %v9129_v49 }
 0x71b   : > { %v4577_v25 = vadd.f32 %v4541_v31, %v4540_v14  ;;  %v4938_v14 = vld [vmem:[%s9684_s9 + $0xf0] sm:$0xff] }
 0x71c   : > { %v4267_v52 = vmul.f32 0.5, %v4266_v40  ;;  %v4454_v27 = vpop.xlane.xlu1 %4453  ;;  %v4470_v26 = vadd.f32 %v9150_v4, %v9147_v58 }
 0x71d   : > { %v4488_v10 = vmul.f32 %v4454_v27, %v7428_v37  ;;  %4578 = vadd.xlane.f32.xlu0 %v4577_v25  ;;  %v4101_v51 = vpop.xlane.xlu0 %4100  ;;  %v4937_v25 = vld [vmem:[%s9684_s9 + $0xe8] sm:$0xff] }
 0x71e   : > { %v4268_v16 = vsub.f32 1.5, %v4267_v52  ;;  %4471 = vadd.xlane.f32.xlu1 %v4470_v26  ;;  %v4117_v13 = vmul.f32 %v4101_v51, %v7428_v37 }
 0x71f   : > { %v5711_v35 = vpop.eup %5710  ;;  %v9156_v22 = vsub.f32 %v8977_v63, %v4488_v10  ;;  %v9159_v17 = vsub.f32 %v8980_v7, %v4488_v10  ;;  %v4923_v63 = vld [vmem:[%s9684_s9 + $0x78] sm:$0xff] }
 0x720   : > { %v4269_v3 = vmul.f32 %v5709_v59, %v4268_v16  ;;  %v4275_v15 = vmul.f32 %v5711_v35, %v9129_v49  ;;  %v4939_v7 = vld [vmem:[%s9684_s9 + $0xf8] sm:$0xff]  ;;  %4944 = vmatpush.msra.mxu0 %v4923_v63  ;;  %v4133_v31 = vadd.f32 1e-05, %v4117_v13  ;;  %vm4281_vm13 = vweird.f32 %v5711_v35  ;;  %v9949_v13 = vld [vmem:[#allocation8_spill] sm:$0xff] }
 0x721   : > { %v4542_v60 = vmul.f32 %v9156_v22, %v9156_v22  ;;  %v4543_v2 = vmul.f32 %v9159_v17, %v9159_v17  ;;  %5009 = vmatpush.msra.mxu1 %v4939_v7  ;;  %vm4282_vm0 = vmor %vm4280_vm14, %vm4281_vm13 }
 0x722   : > { %v4273_v50 = vsel %vm4272_vm12, %v5709_v59, %v4269_v3  ;;  %v4276_v44 = vmul.f32 %v5711_v35, %v4275_v15  ;;  %v4921_v59 = vld [vmem:[%s9684_s9 + $0x68] sm:$0xff]  ;;  %4945 = vmatpush.msra.mxu0 %v4922_v24  ;;  %5712 = vrsqrt.f32 %v4133_v31  ;;  %v9948_v15 = vld [vmem:[#allocation33_spill] sm:$0xff]  ;;  %vm4290_vm1 = vweird.f32 %v4133_v31 }
 0x723   : > { %v4320_v40 = vmul.f32 %v4273_v50, %v8934_v56  ;;  %v4321_v61 = vmul.f32 %v4273_v50, %v8937_v53  ;;  %v4580_v30 = vadd.f32 %v4543_v2, %v4542_v60  ;;  %5010 = vmatpush.msra.mxu1 %v4938_v14  ;;  %v4920_v56 = vld [vmem:[%s9684_s9 + $0x60] sm:$0xff] }
 0x724   : > { %v4277_v52 = vmul.f32 0.5, %v4276_v44  ;;  %v4936_v53 = vld [vmem:[%s9684_s9 + $0xe0] sm:$0xff]  ;;  %4946 = vmatpush.msra.mxu0 %v4921_v59 }
 0x725   : > { %v4357_v27 = vmul.f32 %v8819_v57, %v4320_v40  ;;  %v4358_v55 = vmul.f32 %v8821_v34, %v4321_v61  ;;  %4581 = vadd.xlane.f32.xlu2 %v4580_v30  ;;  %5011 = vmatpush.msra.mxu1 %v4937_v25 }
 0x726   : > { %v4278_v42 = vsub.f32 1.5, %v4277_v52  ;;  %4947 = vmatpush.msra.mxu0 %v4920_v56 }
 0x727   : > { %v4394_v10 = vadd.f32 %v8823_v29, %v4357_v27  ;;  %v4395_v16 = vadd.f32 %v8825_v47, %v4358_v55  ;;  %5012 = vmatpush.msra.mxu1 %v4936_v53  ;;  %v9951_v55 = vld [vmem:[#allocation11_spill] sm:$0xff] }
 0x728   : > { %v4279_v26 = vmul.f32 %v5711_v35, %v4278_v42  ;;  %v4457_v3 = vpop.xlane.xlu0 %4456  ;;  %v5713_v7 = vpop.eup %5712 }
 0x729   : > { %v9199_v51 = vadd.f32 %v4394_v10, %v9948_v15  ;;  %v9202_v60 = vadd.f32 %v4395_v16, %v9949_v13  ;;  %v4489_v63 = vmul.f32 %v4457_v3, %v7428_v37  ;;  %v4285_v24 = vmul.f32 %v5713_v7, %v4133_v31 }
 0x72a   : > { %v4283_v2 = vsel %vm4282_vm0, %v5711_v35, %v4279_v26  ;;  %vm4291_vm15 = vweird.f32 %v5713_v7 }
 0x72b   : > { %v4473_v50 = vadd.f32 %v9202_v60, %v9199_v51  ;;  %v4322_v44 = vmul.f32 %v4283_v2, %v8951_v43  ;;  %v4323_v49 = vmul.f32 %v4283_v2, %v8954_v54  ;;  %v9210_v14 = vsub.f32 %v9001_v20, %v4489_v63  ;;  %vm4292_vm2 = vmor %vm4290_vm1, %vm4291_vm15 }
 0x72c   : > { %v9213_v40 = vsub.f32 %v9004_v12, %v4489_v63  ;;  %v4286_v30 = vmul.f32 %v5713_v7, %v4285_v24  ;;  %v9950_v12 = vld [vmem:[#allocation17_spill] sm:$0xff]  ;;  %v4916_v24 = vld [vmem:[%s9684_s9 + $0x40] sm:$0xff] }
 0x72d   : > { %4474 = vadd.xlane.f32.xlu0 %v4473_v50  ;;  %v4359_v35 = vmul.f32 %v8819_v57, %v4322_v44  ;;  %v4360_v61 = vmul.f32 %v8821_v34, %v4323_v49  ;;  %v4544_v59 = vmul.f32 %v9210_v14, %v9210_v14  ;;  %v9952_v50 = vld [vmem:[#allocation22_spill] sm:$0xff]  ;;  %v9953_v49 = vld [vmem:[#allocation9_spill] sm:$0xff] }
 0x72e   : > { %v4545_v43 = vmul.f32 %v9213_v40, %v9213_v40  ;;  %v4287_v25 = vmul.f32 0.5, %v4286_v30 }
 0x72f   : > { %v4396_v54 = vadd.f32 %v8823_v29, %v4359_v35  ;;  %v4397_v20 = vadd.f32 %v8825_v47, %v4360_v61  ;;  %v4932_v61 = vld [vmem:[%s9684_s9 + $0xc0] sm:$0xff] }
 0x730   : > { %v4583_v52 = vadd.f32 %v4545_v43, %v4544_v59  ;;  %v4288_v53 = vsub.f32 1.5, %v4287_v25  ;;  %v4915_v59 = vld [vmem:[%s9684_s9 + $0x38] sm:$0xff]  ;;  %v4930_v25 = vld [vmem:[%s9684_s9 + $0xb0] sm:$0xff] }
 0x731   : > { %v9224_v27 = vadd.f32 %v4396_v54, %v9950_v12  ;;  %v9227_v56 = vadd.f32 %v4397_v20, %v9951_v55  ;;  %v4931_v43 = vld [vmem:[%s9684_s9 + $0xb8] sm:$0xff]  ;;  %v4914_v20 = vld [vmem:[%s9684_s9 + $0x30] sm:$0xff]  ;;  %v4929_v12 = vld [vmem:[%s9684_s9 + $0xa8] sm:$0xff] }
 0x732   : > { %4584 = vadd.xlane.f32.xlu1 %v4583_v52  ;;  %v4289_v10 = vmul.f32 %v5713_v7, %v4288_v53  ;;  %v4913_v52 = vld [vmem:[%s9684_s9 + $0x28] sm:$0xff]  ;;  %v4912_v55 = vld [vmem:[%s9684_s9 + $0x20] sm:$0xff] }
 0x733   : > { %v4476_v42 = vadd.f32 %v9227_v56, %v9224_v27  ;;  %v4928_v53 = vld [vmem:[%s9684_s9 + $0xa0] sm:$0xff] }
 0x734   : > { %v4293_v16 = vsel %vm4292_vm2, %v5713_v7, %v4289_v10 }
 0x735   : > { %4477 = vadd.xlane.f32.xlu2 %v4476_v42  ;;  %v4324_v26 = vmul.f32 %v4293_v16, %v8983_v36  ;;  %v4325_v3 = vmul.f32 %v4293_v16, %v8986_v23  ;;  %v4917_v36 = vld [vmem:[%s9684_s9 + $0x48] sm:$0xff] }
 0x736   : > { %v4933_v23 = vld [vmem:[%s9684_s9 + $0xc8] sm:$0xff] }
 0x737   : > { %v4361_v15 = vmul.f32 %v8819_v57, %v4324_v26  ;;  %v4362_v13 = vmul.f32 %v8821_v34, %v4325_v3  ;;  %v4919_v57 = vld [vmem:[%s9684_s9 + $0x58] sm:$0xff] }
 0x738   : > { %v4935_v34 = vld [vmem:[%s9684_s9 + $0xd8] sm:$0xff]  ;;  %4948 = vmatpush.msra.mxu0 %v4919_v57 }
 0x739   : > { %v4398_v2 = vadd.f32 %v8823_v29, %v4361_v15  ;;  %v4399_v63 = vadd.f32 %v8825_v47, %v4362_v13  ;;  %v4918_v29 = vld [vmem:[%s9684_s9 + $0x50] sm:$0xff]  ;;  %5013 = vmatpush.msra.mxu1 %v4935_v34  ;;  %v4911_v26 = vld [vmem:[%s9684_s9 + $0x18] sm:$0xff] }
 0x73a   : > { %v4934_v47 = vld [vmem:[%s9684_s9 + $0xd0] sm:$0xff]  ;;  %4949 = vmatpush.msra.mxu0 %v4918_v29  ;;  %v4927_v3 = vld [vmem:[%s9684_s9 + $0x98] sm:$0xff] }
 0x73b   : > { %v9238_v44 = vadd.f32 %v4398_v2, %v9952_v50  ;;  %v9241_v31 = vadd.f32 %v4399_v63, %v9953_v49  ;;  %5014 = vmatpush.msra.mxu1 %v4934_v47  ;;  %v4910_v50 = vld [vmem:[%s9684_s9 + $0x10] sm:$0xff] }
 0x73c   : > { %4950 = vmatpush.msra.mxu0 %v4917_v36  ;;  %v4926_v49 = vld [vmem:[%s9684_s9 + $0x90] sm:$0xff] }
 0x73d   : > { %v4479_v7 = vadd.f32 %v9241_v31, %v9238_v44  ;;  %5015 = vmatpush.msra.mxu1 %v4933_v23 }
 0x73e   : > { %4951 = vmatpush.msra.mxu0 %v4916_v24 }
 0x73f   : > { %4480 = vadd.xlane.f32.xlu1 %v4479_v7  ;;  %5016 = vmatpush.msra.mxu1 %v4932_v61 }
 0x740   : > { %4952 = vmatpush.msra.mxu0 %v4915_v59 }
 0x741   : > { %5017 = vmatpush.msra.mxu1 %v4931_v43 }
 0x742   : > { %4953 = vmatpush.msra.mxu0 %v4914_v20 }
 0x743   : > { %5018 = vmatpush.msra.mxu1 %v4930_v25 }
 0x744   : > { %4954 = vmatpush.msra.mxu0 %v4913_v52 }
 0x745   : > { %5019 = vmatpush.msra.mxu1 %v4929_v12 }
 0x746   : > { %4955 = vmatpush.msra.mxu0 %v4912_v55 }
 0x747   : > { %5020 = vmatpush.msra.mxu1 %v4928_v53 }
 0x748   : > { %4956 = vmatpush.msra.mxu0 %v4911_v26 }
 0x749   : > { %5021 = vmatpush.msra.mxu1 %v4927_v3 }
 0x74a   : > { %4957 = vmatpush.msra.mxu0 %v4910_v50  ;;  %v4433_v50 = vld [vmem:[%s9954_s25] sm:$0x3] }
 0x74b   : > { %5022 = vmatpush.msra.mxu1 %v4926_v49 }
 0x750   : > { %v4564_v35 = vpop.xlane.xlu2 %4563 }
 0x751   : > { %v4610_v30 = vmul.f32 %v4564_v35, %v7428_v37  ;;  %v4432_v35 = vld [vmem:[%s9682_s7] sm:$0x3] }
 0x752   : > { %v9334_v12 = vperm.slane %v4432_v35, 0  ;;  %v9336_v55 = vperm.slane %v4432_v35, 1 }
 0x753   : > { %v4626_v54 = vadd.f32 1e-05, %v4610_v30 }
 0x755   : > { %5714 = vrsqrt.f32 %v4626_v54  ;;  %vm4648_vm3 = vweird.f32 %v4626_v54 }
 0x758   : > { %v4460_v42 = vpop.xlane.xlu2 %4459 }
 0x759   : > { %v4490_v10 = vmul.f32 %v4460_v42, %v7428_v37  ;;  %v4567_v16 = vpop.xlane.xlu1 %4566 }
 0x75a   : > { %v4611_v15 = vmul.f32 %v4567_v16, %v7428_v37 }
 0x75b   : > { %v5715_v13 = vpop.eup %5714  ;;  %v9303_v2 = vsub.f32 %v9036_v46, %v4490_v10  ;;  %v9306_v63 = vsub.f32 %v9039_v28, %v4490_v10 }
 0x75c   : > { %v4643_v7 = vmul.f32 %v5715_v13, %v4626_v54  ;;  %v9314_v57 = vadd.f32 1e-05, %v4611_v15  ;;  %vm4649_vm8 = vweird.f32 %v5715_v13  ;;  %v4925_v54 = vld [vmem:[%s9684_s9 + $0x88] sm:$0xff]  ;;  %v4908_v15 = vld [vmem:[%s9684_s9] sm:$0xff] }
 0x75d   : > { %v4546_v46 = vmul.f32 %v9303_v2, %v9303_v2  ;;  %v4547_v28 = vmul.f32 %v9306_v63, %v9306_v63  ;;  %vm4650_vm4 = vmor %vm4648_vm3, %vm4649_vm8  ;;  %5023 = vmatpush.msra.mxu1 %v4925_v54 }
 0x75e   : > { %v4644_v34 = vmul.f32 %v5715_v13, %v4643_v7  ;;  %5716 = vrsqrt.f32 %v9314_v57  ;;  %v9361_v7 = vperm.slane %v4433_v50, 0  ;;  %vm4658_vm6 = vweird.f32 %v9314_v57 }
 0x75f   : > { %v4586_v29 = vadd.f32 %v4547_v28, %v4546_v46 }
 0x760   : > { %v4645_v47 = vmul.f32 0.5, %v4644_v34 }
 0x761   : > { %4587 = vadd.xlane.f32.xlu0 %v4586_v29 }
 0x762   : > { %v4646_v61 = vsub.f32 1.5, %v4645_v47 }
 0x763   : > { %v4463_v23 = vpop.xlane.xlu1 %4462 }
 0x764   : > { %v4570_v36 = vpop.xlane.xlu0 %4569  ;;  %v4491_v30 = vmul.f32 %v4463_v23, %v7428_v37  ;;  %v5717_v43 = vpop.eup %5716  ;;  %v4647_v20 = vmul.f32 %v5715_v13, %v4646_v61 }
 0x765   : > { %v4612_v24 = vmul.f32 %v4570_v36, %v7428_v37  ;;  %v4653_v53 = vmul.f32 %v5717_v43, %v9314_v57  ;;  %vm4659_vm5 = vweird.f32 %v5717_v43 }
 0x766   : > { %v9329_v25 = vsub.f32 %v9066_v11, %v4491_v30  ;;  %v9332_v52 = vsub.f32 %v9069_v18, %v4491_v30  ;;  %v4651_v42 = vsel %vm4650_vm4, %v5715_v13, %v4647_v20  ;;  %v4909_v18 = vld [vmem:[%s9684_s9 + $0x8] sm:$0xff]  ;;  %v4924_v13 = vld [vmem:[%s9684_s9 + $0x80] sm:$0xff]  ;;  %vm4660_vm7 = vmor %vm4658_vm6, %vm4659_vm5 }
 0x767   : > { %v9326_v59 = vadd.f32 1e-05, %v4612_v24  ;;  %v4802_v16 = vmul.f32 %v4651_v42, %v9013_v9  ;;  %v4803_v26 = vmul.f32 %v4651_v42, %v9016_v33  ;;  %v4654_v3 = vmul.f32 %v5717_v43, %v4653_v53  ;;  %4958 = vmatpush.msra.mxu0 %v4909_v18  ;;  %5024 = vmatpush.msra.mxu1 %v4924_v13 }
 0x768   : > { %v4548_v10 = vmul.f32 %v9329_v25, %v9329_v25  ;;  %v4549_v11 = vmul.f32 %v9332_v52, %v9332_v52  ;;  %v9363_v9 = vperm.slane %v4433_v50, 1 }
 0x769   : > { %5718 = vrsqrt.f32 %v9326_v59  ;;  %v4839_v33 = vmul.f32 %v9334_v12, %v4802_v16  ;;  %v4840_v46 = vmul.f32 %v9336_v55, %v4803_v26  ;;  %v4655_v28 = vmul.f32 0.5, %v4654_v3  ;;  %4959 = vmatpush.msra.mxu0 %v4908_v15 }
 0x76a   : > { %v4589_v49 = vadd.f32 %v4549_v11, %v4548_v10  ;;  %vm4668_vm10 = vweird.f32 %v9326_v59 }
 0x76b   : > { %v4656_v36 = vsub.f32 1.5, %v4655_v28  ;;  %v4876_v23 = vadd.f32 %v9361_v7, %v4839_v33  ;;  %v4877_v24 = vadd.f32 %v9363_v9, %v4840_v46 }
 0x76c   : > { %v4466_v34 = vpop.xlane.xlu0 %4465  ;;  %4590 = vadd.xlane.f32.xlu2 %v4589_v49 }
 0x76d   : > { %v4492_v29 = vmul.f32 %v4466_v34, %v7428_v37  ;;  %v4657_v20 = vmul.f32 %v5717_v43, %v4656_v36  ;;  %4960 = vmatmul.f32.vlgmr.msra.gmra.mxu0 %v4876_v23  ;;  %5025 = vmatmul.f32.vlgmr.msra.gmra.mxu1 %v4877_v24 }
 0x76f   : > { %v5719_v47 = vpop.eup %5718  ;;  %v9372_v61 = vsub.f32 %v9080_v39, %v4492_v29  ;;  %v9375_v30 = vsub.f32 %v9083_v21, %v4492_v29  ;;  %v4661_v11 = vsel %vm4660_vm7, %v5717_v43, %v4657_v20 }
 0x770   : > { %v4663_v35 = vmul.f32 %v5719_v47, %v9326_v59  ;;  %v4804_v21 = vmul.f32 %v4661_v11, %v9030_v8  ;;  %v4805_v16 = vmul.f32 %v4661_v11, %v9033_v1  ;;  %vm4669_vm9 = vweird.f32 %v5719_v47 }
 0x771   : > { %v4550_v42 = vmul.f32 %v9372_v61, %v9372_v61  ;;  %v4551_v10 = vmul.f32 %v9375_v30, %v9375_v30  ;;  %vm4670_vm11 = vmor %vm4668_vm10, %vm4669_vm9 }
 0x772   : > { %v4664_v53 = vmul.f32 %v5719_v47, %v4663_v35  ;;  %v4841_v3 = vmul.f32 %v9334_v12, %v4804_v21  ;;  %v4842_v15 = vmul.f32 %v9336_v55, %v4805_v16 }
 0x773   : > { %v4573_v39 = vpop.xlane.xlu2 %4572  ;;  %v4592_v54 = vadd.f32 %v4551_v10, %v4550_v42 }
 0x774   : > { %v4665_v18 = vmul.f32 0.5, %v4664_v53  ;;  %v4613_v57 = vmul.f32 %v4573_v39, %v7428_v37  ;;  %v4878_v43 = vadd.f32 %v9361_v7, %v4841_v3  ;;  %v4879_v49 = vadd.f32 %v9363_v9, %v4842_v15 }
 0x775   : > { %4593 = vadd.xlane.f32.xlu0 %v4592_v54 }
 0x776   : > { %v4666_v26 = vsub.f32 1.5, %v4665_v18  ;;  %v4629_v13 = vadd.f32 1e-05, %v4613_v57  ;;  %4963 = vmatmul.f32.gmra.mxu0 %v4878_v43  ;;  %5028 = vmatmul.f32.gmra.mxu1 %v4879_v49 }
 0x778   : > { %v4667_v50 = vmul.f32 %v5719_v47, %v4666_v26  ;;  %5720 = vrsqrt.f32 %v4629_v13  ;;  %vm4678_vm13 = vweird.f32 %v4629_v13 }
 0x77a   : > { %v4671_v8 = vsel %vm4670_vm11, %v5719_v47, %v4667_v50 }
 0x77b   : > { %v4806_v1 = vmul.f32 %v4671_v8, %v9054_v38  ;;  %v4807_v33 = vmul.f32 %v4671_v8, %v9057_v62 }
 0x77d   : > { %v4843_v46 = vmul.f32 %v9334_v12, %v4806_v1  ;;  %v4844_v28 = vmul.f32 %v9336_v55, %v4807_v33  ;;  %v4469_v34 = vpop.xlane.xlu2 %4468 }
 0x77e   : > { %v5721_v29 = vpop.eup %5720  ;;  %v4493_v59 = vmul.f32 %v4469_v34, %v7428_v37 }
 0x77f   : > { %v4880_v36 = vadd.f32 %v9361_v7, %v4843_v46  ;;  %v4881_v23 = vadd.f32 %v9363_v9, %v4844_v28  ;;  %v4673_v24 = vmul.f32 %v5721_v29, %v4629_v13  ;;  %vm4679_vm12 = vweird.f32 %v5721_v29 }
 0x780   : > { %v9398_v47 = vsub.f32 %v9107_v41, %v4493_v59  ;;  %v9401_v38 = vsub.f32 %v9110_v48, %v4493_v59  ;;  %v4576_v62 = vpop.xlane.xlu1 %4575  ;;  %vm4680_vm14 = vmor %vm4678_vm13, %vm4679_vm12 }
 0x781   : > { %v4674_v35 = vmul.f32 %v5721_v29, %v4673_v24  ;;  %v4614_v20 = vmul.f32 %v4576_v62, %v7428_v37  ;;  %4966 = vmatmul.f32.gmra.mxu0 %v4880_v36  ;;  %5031 = vmatmul.f32.gmra.mxu1 %v4881_v23 }
 0x782   : > { %v4552_v53 = vmul.f32 %v9398_v47, %v9398_v47  ;;  %v4553_v42 = vmul.f32 %v9401_v38, %v9401_v38 }
 0x783   : > { %v4675_v10 = vmul.f32 0.5, %v4674_v35  ;;  %v4630_v11 = vadd.f32 1e-05, %v4614_v20 }
 0x784   : > { %v4595_v18 = vadd.f32 %v4553_v42, %v4552_v53 }
 0x785   : > { %v4676_v41 = vsub.f32 1.5, %v4675_v10  ;;  %5722 = vrsqrt.f32 %v4630_v11  ;;  %vm4688_vm15 = vweird.f32 %v4630_v11 }
 0x786   : > { %4596 = vadd.xlane.f32.xlu1 %v4595_v18 }
 0x787   : > { %v4677_v48 = vmul.f32 %v5721_v29, %v4676_v41 }
 0x789   : > { %v4681_v39 = vsel %vm4680_vm14, %v5721_v29, %v4677_v48 }
 0x78a   : > { %v4808_v54 = vmul.f32 %v4681_v39, %v9089_v5  ;;  %v4809_v21 = vmul.f32 %v4681_v39, %v9092_v19 }
 0x78b   : > { %v5723_v16 = vpop.eup %5722 }
 0x78c   : > { %v4683_v57 = vmul.f32 %v5723_v16, %v4630_v11  ;;  %v4845_v26 = vmul.f32 %v9334_v12, %v4808_v54  ;;  %v4846_v3 = vmul.f32 %v9336_v55, %v4809_v21  ;;  %vm4689_vm0 = vweird.f32 %v5723_v16  ;;  %v5097_v54 = vld [vmem:[%s9955_s1 + $0x38] sm:$0xff]  ;;  %v5096_v21 = vld [vmem:[%s9955_s1 + $0x30] sm:$0xff] }
 0x78d   : > { %vm4690_vm1 = vmor %vm4688_vm15, %vm4689_vm0  ;;  %5159 = vmatpush.msra.mxu2 %v5097_v54  ;;  %vm5102_vm0 = vcmask 523264  }
 0x78e   : > { %v4684_v50 = vmul.f32 %v5723_v16, %v4683_v57  ;;  %v4882_v49 = vadd.f32 %v9361_v7, %v4845_v26  ;;  %v4883_v13 = vadd.f32 %v9363_v9, %v4846_v3 }
 0x78f   : > { %5160 = vmatpush.msra.mxu2 %v5096_v21 }
 0x790   : > { %v4579_v15 = vpop.xlane.xlu0 %4578  ;;  %v4685_v8 = vmul.f32 0.5, %v4684_v50  ;;  %4969 = vmatmul.f32.gmra.mxu0 %v4882_v49  ;;  %5034 = vmatmul.f32.gmra.mxu1 %v4883_v13 }
 0x791   : > { %v4615_v43 = vmul.f32 %v4579_v15, %v7428_v37  ;;  %v4472_v1 = vpop.xlane.xlu1 %4471 }
 0x792   : > { %v4494_v5 = vmul.f32 %v4472_v1, %v7428_v37  ;;  %v4686_v19 = vsub.f32 1.5, %v4685_v8 }
 0x793   : > { %v4631_v33 = vadd.f32 1e-05, %v4615_v43 }
 0x794   : > { %v9417_v46 = vsub.f32 %v9147_v58, %v4494_v5  ;;  %v9420_v28 = vsub.f32 %v9150_v4, %v4494_v5  ;;  %v4687_v34 = vmul.f32 %v5723_v16, %v4686_v19 }
 0x795   : > { %5724 = vrsqrt.f32 %v4631_v33  ;;  %vm4698_vm8 = vweird.f32 %v4631_v33 }
 0x796   : > { %v4554_v59 = vmul.f32 %v9417_v46, %v9417_v46  ;;  %v4555_v36 = vmul.f32 %v9420_v28, %v9420_v28  ;;  %v4691_v23 = vsel %vm4690_vm1, %v5723_v16, %v4687_v34 }
 0x797   : > { %v4810_v58 = vmul.f32 %v4691_v23, %v9113_v45  ;;  %v4811_v35 = vmul.f32 %v4691_v23, %v9116_v6 }
 0x798   : > { %v4582_v29 = vpop.xlane.xlu2 %4581  ;;  %v4598_v62 = vadd.f32 %v4555_v36, %v4554_v59 }
 0x799   : > { %v4616_v24 = vmul.f32 %v4582_v29, %v7428_v37  ;;  %v4847_v42 = vmul.f32 %v9334_v12, %v4810_v58  ;;  %v4848_v10 = vmul.f32 %v9336_v55, %v4811_v35 }
 0x79a   : > { %4599 = vadd.xlane.f32.xlu2 %v4598_v62 }
 0x79b   : > { %v5725_v4 = vpop.eup %5724  ;;  %v4632_v20 = vadd.f32 1e-05, %v4616_v24  ;;  %v4884_v18 = vadd.f32 %v9361_v7, %v4847_v42  ;;  %v4885_v41 = vadd.f32 %v9363_v9, %v4848_v10 }
 0x79c   : > { %v4693_v53 = vmul.f32 %v5725_v4, %v4631_v33  ;;  %vm4699_vm2 = vweird.f32 %v5725_v4 }
 0x79d   : > { %5726 = vrsqrt.f32 %v4632_v20  ;;  %4972 = vmatmul.f32.gmra.mxu0 %v4884_v18  ;;  %5037 = vmatmul.f32.gmra.mxu1 %v4885_v41  ;;  %vm4700_vm3 = vmor %vm4698_vm8, %vm4699_vm2  ;;  %vm4708_vm5 = vweird.f32 %v4632_v20 }
 0x79e   : > { %v4694_v11 = vmul.f32 %v5725_v4, %v4693_v53 }
 0x7a0   : > { %v4695_v48 = vmul.f32 0.5, %v4694_v11  ;;  %v4475_v39 = vpop.xlane.xlu0 %4474 }
 0x7a1   : > { %v4495_v45 = vmul.f32 %v4475_v39, %v7428_v37 }
 0x7a2   : > { %v4696_v6 = vsub.f32 1.5, %v4695_v48 }
 0x7a3   : > { %v5727_v16 = vpop.eup %5726  ;;  %v9441_v57 = vsub.f32 %v9199_v51, %v4495_v45  ;;  %v9444_v26 = vsub.f32 %v9202_v60, %v4495_v45 }
 0x7a4   : > { %v4697_v3 = vmul.f32 %v5725_v4, %v4696_v6  ;;  %v4703_v15 = vmul.f32 %v5727_v16, %v4632_v20  ;;  %vm4709_vm4 = vweird.f32 %v5727_v16 }
 0x7a5   : > { %v4585_v50 = vpop.xlane.xlu1 %4584  ;;  %v4556_v43 = vmul.f32 %v9441_v57, %v9441_v57  ;;  %v4557_v49 = vmul.f32 %v9444_v26, %v9444_v26  ;;  %vm4710_vm6 = vmor %vm4708_vm5, %vm4709_vm4 }
 0x7a6   : > { %v4701_v13 = vsel %vm4700_vm3, %v5725_v4, %v4697_v3  ;;  %v4704_v8 = vmul.f32 %v5727_v16, %v4703_v15  ;;  %v4617_v51 = vmul.f32 %v4585_v50, %v7428_v37 }
 0x7a7   : > { %v4601_v1 = vadd.f32 %v4557_v49, %v4556_v43  ;;  %v4812_v60 = vmul.f32 %v4701_v13, %v9132_v32  ;;  %v4813_v5 = vmul.f32 %v4701_v13, %v9135_v0 }
 0x7a8   : > { %v4705_v33 = vmul.f32 0.5, %v4704_v8  ;;  %v4478_v19 = vpop.xlane.xlu2 %4477  ;;  %v4633_v34 = vadd.f32 1e-05, %v4617_v51 }
 0x7a9   : > { %v4496_v29 = vmul.f32 %v4478_v19, %v7428_v37  ;;  %4602 = vadd.xlane.f32.xlu0 %v4601_v1  ;;  %v4849_v59 = vmul.f32 %v9334_v12, %v4812_v60  ;;  %v4850_v36 = vmul.f32 %v9336_v55, %v4813_v5  ;;  %v5095_v1 = vld [vmem:[%s9955_s1 + $0x28] sm:$0xff]  ;;  %v5094_v5 = vld [vmem:[%s9955_s1 + $0x20] sm:$0xff] }
 0x7aa   : > { %v4706_v23 = vsub.f32 1.5, %v4705_v33  ;;  %5728 = vrsqrt.f32 %v4633_v34  ;;  %vm4718_vm9 = vweird.f32 %v4633_v34  ;;  %5161 = vmatpush.msra.mxu2 %v5095_v1  ;;  %v5093_v33 = vld [vmem:[%s9955_s1 + $0x18] sm:$0xff] }
 0x7ab   : > { %v9457_v24 = vsub.f32 %v9224_v27, %v4496_v29  ;;  %v9460_v32 = vsub.f32 %v9227_v56, %v4496_v29  ;;  %v4886_v0 = vadd.f32 %v9361_v7, %v4849_v59  ;;  %v4887_v62 = vadd.f32 %v9363_v9, %v4850_v36 }
 0x7ac   : > { %v4707_v58 = vmul.f32 %v5727_v16, %v4706_v23  ;;  %5162 = vmatpush.msra.mxu2 %v5094_v5 }
 0x7ad   : > { %v4558_v35 = vmul.f32 %v9457_v24, %v9457_v24  ;;  %v4559_v4 = vmul.f32 %v9460_v32, %v9460_v32  ;;  %4975 = vmatmul.f32.gmra.mxu0 %v4886_v0  ;;  %5040 = vmatmul.f32.gmra.mxu1 %v4887_v62 }
 0x7ae   : > { %v4711_v27 = vsel %vm4710_vm6, %v5727_v16, %v4707_v58  ;;  %5163 = vmatpush.msra.mxu2 %v5093_v33 }
 0x7af   : > { %v4604_v53 = vadd.f32 %v4559_v4, %v4558_v35  ;;  %v4814_v56 = vmul.f32 %v4711_v27, %v9156_v22  ;;  %v4815_v42 = vmul.f32 %v4711_v27, %v9159_v17  ;;  %v9509_v27 = vld [vmem:[%s9956_s29] ss:$0 sm:$0xff] }
 0x7b0   : > { %v5729_v10 = vpop.eup %5728 }
 0x7b1   : > { %v4713_v11 = vmul.f32 %v5729_v10, %v4633_v34  ;;  %4605 = vadd.xlane.f32.xlu1 %v4604_v53  ;;  %v4851_v20 = vmul.f32 %v9334_v12, %v4814_v56  ;;  %v4852_v18 = vmul.f32 %v9336_v55, %v4815_v42  ;;  %vm4719_vm7 = vweird.f32 %v5729_v10  ;;  %v5092_v34 = vld [vmem:[%s9955_s1 + $0x10] sm:$0xff] }
 0x7b2   : > { %v4481_v45 = vpop.xlane.xlu1 %4480  ;;  %vm4720_vm10 = vmor %vm4718_vm9, %vm4719_vm7  ;;  %5164 = vmatpush.msra.mxu2 %v5092_v34 }
 0x7b3   : > { %v4714_v41 = vmul.f32 %v5729_v10, %v4713_v11  ;;  %v4888_v48 = vadd.f32 %v9361_v7, %v4851_v20  ;;  %v4889_v39 = vadd.f32 %v9363_v9, %v4852_v18  ;;  %v4497_v54 = vmul.f32 %v4481_v45, %v7428_v37 }
 0x7b5   : > { %v4715_v6 = vmul.f32 0.5, %v4714_v41  ;;  %4978 = vmatmul.f32.gmra.mxu0 %v4888_v48  ;;  %5043 = vmatmul.f32.gmra.mxu1 %v4889_v39  ;;  %v9476_v17 = vsub.f32 %v9238_v44, %v4497_v54  ;;  %v9479_v21 = vsub.f32 %v9241_v31, %v4497_v54  ;;  %v5091_v39 = vld [vmem:[%s9955_s1 + $0x8] sm:$0xff]  ;;  %v5090_v54 = vld [vmem:[%s9955_s1] sm:$0xff] }
 0x7b6   : > { %5165 = vmatpush.msra.mxu2 %v5091_v39 }
 0x7b7   : > { %v4716_v22 = vsub.f32 1.5, %v4715_v6  ;;  %v4560_v3 = vmul.f32 %v9476_v17, %v9476_v17  ;;  %v4561_v15 = vmul.f32 %v9479_v21, %v9479_v21 }
 0x7b8   : > { %5166 = vmatpush.msra.mxu2 %v5090_v54 }
 0x7b9   : > { %v4717_v16 = vmul.f32 %v5729_v10, %v4716_v22  ;;  %v4607_v43 = vadd.f32 %v4561_v15, %v4560_v3 }
 0x7bb   : > { %v4721_v50 = vsel %vm4720_vm10, %v5729_v10, %v4717_v16  ;;  %4608 = vadd.xlane.f32.xlu2 %v4607_v43 }
 0x7bc   : > { %v4816_v49 = vmul.f32 %v4721_v50, %v9210_v14  ;;  %v4817_v13 = vmul.f32 %v4721_v50, %v9213_v40 }
 0x7be   : > { %v4853_v44 = vmul.f32 %v9334_v12, %v4816_v49  ;;  %v4854_v31 = vmul.f32 %v9336_v55, %v4817_v13 }
 0x7c0   : > { %v4890_v8 = vadd.f32 %v9361_v7, %v4853_v44  ;;  %v4891_v51 = vadd.f32 %v9363_v9, %v4854_v31 }
 0x7c2   : > { %4981 = vmatmul.f32.gmra.mxu0 %v4890_v8  ;;  %5046 = vmatmul.f32.gmra.mxu1 %v4891_v51 }
 0x7d4   : > { %v4588_v60 = vpop.xlane.xlu0 %4587 }
 0x7d5   : > { %v4618_v14 = vmul.f32 %v4588_v60, %v7428_v37 }
 0x7d7   : > { %v4634_v40 = vadd.f32 1e-05, %v4618_v14 }
 0x7d9   : > { %5730 = vrsqrt.f32 %v4634_v40  ;;  %vm4728_vm12 = vweird.f32 %v4634_v40 }
 0x7df   : > { %v4591_v19 = vpop.xlane.xlu2 %4590  ;;  %v5731_v59 = vpop.eup %5730 }
 0x7e0   : > { %v4619_v29 = vmul.f32 %v4591_v19, %v7428_v37  ;;  %v4723_v36 = vmul.f32 %v5731_v59, %v4634_v40  ;;  %vm4729_vm11 = vweird.f32 %v5731_v59 }
 0x7e1   : > { %vm4730_vm13 = vmor %vm4728_vm12, %vm4729_vm11 }
 0x7e2   : > { %v4635_v23 = vadd.f32 1e-05, %v4619_v29  ;;  %v4724_v0 = vmul.f32 %v5731_v59, %v4723_v36 }
 0x7e4   : > { %5732 = vrsqrt.f32 %v4635_v23  ;;  %v4725_v62 = vmul.f32 0.5, %v4724_v0  ;;  %vm4738_vm15 = vweird.f32 %v4635_v23 }
 0x7e6   : > { %v4726_v35 = vsub.f32 1.5, %v4725_v62 }
 0x7e8   : > { %v4594_v58 = vpop.xlane.xlu0 %4593  ;;  %v4727_v56 = vmul.f32 %v5731_v59, %v4726_v35 }
 0x7e9   : > { %v4620_v4 = vmul.f32 %v4594_v58, %v7428_v37 }
 0x7ea   : > { %v5733_v53 = vpop.eup %5732  ;;  %v4731_v11 = vsel %vm4730_vm13, %v5731_v59, %v4727_v56  ;;  %v4961_v20 = vpop.f32.mrf.mxu0 }
 0x7eb   : > { %v4636_v42 = vadd.f32 1e-05, %v4620_v4  ;;  %v4733_v10 = vmul.f32 %v5733_v53, %v4635_v23  ;;  %v5026_v18 = vpop.f32.mrf.mxu1  ;;  %v4962_v48 = vadd.f32 %v9509_v27, %v4961_v20  ;;  %v4818_v45 = vmul.f32 %v4731_v11, %v9303_v2 }
 0x7ec   : > { %v4819_v6 = vmul.f32 %v4731_v11, %v9306_v63  ;;  %vm4739_vm14 = vweird.f32 %v5733_v53 }
 0x7ed   : > { %5734 = vrsqrt.f32 %v4636_v42  ;;  %v4734_v41 = vmul.f32 %v5733_v53, %v4733_v10  ;;  %v5027_v16 = vadd.f32 %v5026_v18, %v4962_v48  ;;  %v4855_v3 = vmul.f32 %v9334_v12, %v4818_v45  ;;  %vm4740_vm1 = vmor %vm4738_vm15, %vm4739_vm14 }
 0x7ee   : > { %v4856_v15 = vmul.f32 %v9336_v55, %v4819_v6  ;;  %vm4748_vm8 = vweird.f32 %v4636_v42 }
 0x7ef   : > { %v4735_v22 = vmul.f32 0.5, %v4734_v41  ;;  %v5074_v43 = vmax.f32 %v5027_v16, 0.0  ;;  %v4892_v2 = vadd.f32 %v9361_v7, %v4855_v3 }
 0x7f0   : > { %v4893_v63 = vadd.f32 %v9363_v9, %v4856_v15 }
 0x7f1   : > { %v4736_v50 = vsub.f32 1.5, %v4735_v22  ;;  %4984 = vmatmul.f32.gmra.mxu0 %v4892_v2  ;;  %5459 = vmatmul.msk.f32.vlgmr.msra.gmra.mxu2 %vm5102_vm0, %v5074_v43 }
 0x7f2   : > { %5049 = vmatmul.f32.gmra.mxu1 %v4893_v63 }
 0x7f3   : > { %v5735_v49 = vpop.eup %5734  ;;  %v4737_v13 = vmul.f32 %v5733_v53, %v4736_v50  ;;  %v4964_v51 = vpop.f32.mrf.mxu0 }
 0x7f4   : > { %v4743_v44 = vmul.f32 %v5735_v49, %v4636_v42  ;;  %v5029_v1 = vpop.f32.mrf.mxu1  ;;  %v4965_v60 = vadd.f32 %v9509_v27, %v4964_v51  ;;  %vm4749_vm2 = vweird.f32 %v5735_v49 }
 0x7f5   : > { %v4741_v31 = vsel %vm4740_vm1, %v5733_v53, %v4737_v13  ;;  %vm4750_vm3 = vmor %vm4748_vm8, %vm4749_vm2 }
 0x7f6   : > { %v4744_v8 = vmul.f32 %v5735_v49, %v4743_v44  ;;  %v4820_v14 = vmul.f32 %v4741_v31, %v9329_v25  ;;  %v4821_v40 = vmul.f32 %v4741_v31, %v9332_v52  ;;  %v5030_v19 = vadd.f32 %v5029_v1, %v4965_v60 }
 0x7f8   : > { %v4745_v5 = vmul.f32 0.5, %v4744_v8  ;;  %v4857_v34 = vmul.f32 %v9334_v12, %v4820_v14  ;;  %v4858_v29 = vmul.f32 %v9336_v55, %v4821_v40  ;;  %v5075_v23 = vmax.f32 %v5030_v19, 0.0 }
 0x7f9   : > { %v4597_v33 = vpop.xlane.xlu1 %4596 }
 0x7fa   : > { %v4746_v59 = vsub.f32 1.5, %v4745_v5  ;;  %v4621_v36 = vmul.f32 %v4597_v33, %v7428_v37  ;;  %v4894_v0 = vadd.f32 %v9361_v7, %v4857_v34  ;;  %v4895_v62 = vadd.f32 %v9363_v9, %v4858_v29  ;;  %5460 = vmatmul.msk.f32.gmra.mxu2 %vm5102_vm0, %v5075_v23 }
 0x7fc   : > { %v4747_v58 = vmul.f32 %v5735_v49, %v4746_v59  ;;  %v4637_v25 = vadd.f32 1e-05, %v4621_v36  ;;  %4987 = vmatmul.f32.gmra.mxu0 %v4894_v0  ;;  %5052 = vmatmul.f32.gmra.mxu1 %v4895_v62 }
 0x7fe   : > { %v4751_v52 = vsel %vm4750_vm3, %v5735_v49, %v4747_v58  ;;  %5736 = vrsqrt.f32 %v4637_v25  ;;  %v4967_v35 = vpop.f32.mrf.mxu0  ;;  %v5032_v10 = vpop.f32.mrf.mxu1  ;;  %vm4758_vm5 = vweird.f32 %v4637_v25 }
 0x7ff   : > { %v4968_v4 = vadd.f32 %v9509_v27, %v4967_v35  ;;  %v4822_v53 = vmul.f32 %v4751_v52, %v9372_v61  ;;  %v4823_v56 = vmul.f32 %v4751_v52, %v9375_v30 }
 0x801   : > { %v5033_v11 = vadd.f32 %v5032_v10, %v4968_v4  ;;  %v4859_v20 = vmul.f32 %v9334_v12, %v4822_v53  ;;  %v4860_v42 = vmul.f32 %v9336_v55, %v4823_v56 }
 0x803   : > { %v5076_v18 = vmax.f32 %v5033_v11, 0.0  ;;  %v4896_v41 = vadd.f32 %v9361_v7, %v4859_v20  ;;  %v4897_v48 = vadd.f32 %v9363_v9, %v4860_v42 }
 0x804   : > { %v5737_v39 = vpop.eup %5736 }
 0x805   : > { %v4753_v45 = vmul.f32 %v5737_v39, %v4637_v25  ;;  %4990 = vmatmul.f32.gmra.mxu0 %v4896_v41  ;;  %5055 = vmatmul.f32.gmra.mxu1 %v4897_v48  ;;  %vm4759_vm4 = vweird.f32 %v5737_v39 }
 0x806   : > { %5461 = vmatmul.msk.f32.gmra.mxu2 %vm5102_vm0, %v5076_v18  ;;  %vm4760_vm6 = vmor %vm4758_vm5, %vm4759_vm4  ;;  %vm5216_vm4 = vcmask 15360  }
 0x807   : > { %v4754_v61 = vmul.f32 %v5737_v39, %v4753_v45 }
 0x809   : > { %v4755_v6 = vmul.f32 0.5, %v4754_v61 }
 0x80b   : > { %v4756_v30 = vsub.f32 1.5, %v4755_v6 }
 0x80d   : > { %v4600_v54 = vpop.xlane.xlu2 %4599  ;;  %v4757_v22 = vmul.f32 %v5737_v39, %v4756_v30  ;;  %v4970_v3 = vpop.f32.mrf.mxu0 }
 0x80e   : > { %v4622_v16 = vmul.f32 %v4600_v54, %v7428_v37  ;;  %v4971_v15 = vadd.f32 %v9509_v27, %v4970_v3  ;;  %v5035_v2 = vpop.f32.mrf.mxu1 }
 0x80f   : > { %v4761_v50 = vsel %vm4760_vm6, %v5737_v39, %v4757_v22 }
 0x810   : > { %v4638_v43 = vadd.f32 1e-05, %v4622_v16  ;;  %v5036_v63 = vadd.f32 %v5035_v2, %v4971_v15  ;;  %v4824_v49 = vmul.f32 %v4761_v50, %v9398_v47  ;;  %v4825_v13 = vmul.f32 %v4761_v50, %v9401_v38 }
 0x812   : > { %5738 = vrsqrt.f32 %v4638_v43  ;;  %v5077_v44 = vmax.f32 %v5036_v63, 0.0  ;;  %v4861_v31 = vmul.f32 %v9334_v12, %v4824_v49  ;;  %v4862_v8 = vmul.f32 %v9336_v55, %v4825_v13 }
 0x813   : > { %vm4768_vm9 = vweird.f32 %v4638_v43 }
 0x814   : > { %v4898_v51 = vadd.f32 %v9361_v7, %v4861_v31  ;;  %v4899_v1 = vadd.f32 %v9363_v9, %v4862_v8  ;;  %5462 = vmatmul.msk.f32.gmra.mxu2 %vm5102_vm0, %v5077_v44 }
 0x816   : > { %4993 = vmatmul.f32.gmra.mxu0 %v4898_v51  ;;  %5058 = vmatmul.f32.gmra.mxu1 %v4899_v1 }
 0x818   : > { %v5739_v60 = vpop.eup %5738 }
 0x819   : > { %v4763_v14 = vmul.f32 %v5739_v60, %v4638_v43  ;;  %vm4769_vm7 = vweird.f32 %v5739_v60 }
 0x81a   : > { %v4973_v5 = vpop.f32.mrf.mxu0  ;;  %v5038_v29 = vpop.f32.mrf.mxu1  ;;  %vm4770_vm10 = vmor %vm4768_vm9, %vm4769_vm7 }
 0x81b   : > { %v4764_v47 = vmul.f32 %v5739_v60, %v4763_v14  ;;  %v4974_v33 = vadd.f32 %v9509_v27, %v4973_v5 }
 0x81c   : > { %v4603_v40 = vpop.xlane.xlu0 %4602 }
 0x81d   : > { %v4623_v38 = vmul.f32 %v4603_v40, %v7428_v37  ;;  %v4765_v19 = vmul.f32 0.5, %v4764_v47  ;;  %v5039_v59 = vadd.f32 %v5038_v29, %v4974_v33 }
 0x81f   : > { %v4639_v34 = vadd.f32 1e-05, %v4623_v38  ;;  %v4766_v36 = vsub.f32 1.5, %v4765_v19  ;;  %v5078_v23 = vmax.f32 %v5039_v59, 0.0 }
 0x821   : > { %5740 = vrsqrt.f32 %v4639_v34  ;;  %v4767_v0 = vmul.f32 %v5739_v60, %v4766_v36  ;;  %5463 = vmatmul.msk.f32.gmra.mxu2 %vm5102_vm0, %v5078_v23  ;;  %vm4778_vm12 = vweird.f32 %v4639_v34 }
 0x823   : > { %v4771_v58 = vsel %vm4770_vm10, %v5739_v60, %v4767_v0 }
 0x824   : > { %v4606_v62 = vpop.xlane.xlu1 %4605  ;;  %v4826_v52 = vmul.f32 %v4771_v58, %v9417_v46  ;;  %v4827_v35 = vmul.f32 %v4771_v58, %v9420_v28 }
 0x825   : > { %v4624_v25 = vmul.f32 %v4606_v62, %v7428_v37 }
 0x826   : > { %v4863_v10 = vmul.f32 %v9334_v12, %v4826_v52  ;;  %v4864_v11 = vmul.f32 %v9336_v55, %v4827_v35 }
 0x827   : > { %v5741_v4 = vpop.eup %5740  ;;  %v4640_v53 = vadd.f32 1e-05, %v4624_v25 }
 0x828   : > { %v4773_v56 = vmul.f32 %v5741_v4, %v4639_v34  ;;  %v4900_v42 = vadd.f32 %v9361_v7, %v4863_v10  ;;  %v4901_v18 = vadd.f32 %v9363_v9, %v4864_v11  ;;  %vm4779_vm11 = vweird.f32 %v5741_v4 }
 0x829   : > { %5742 = vrsqrt.f32 %v4640_v53  ;;  %vm4780_vm13 = vmor %vm4778_vm12, %vm4779_vm11  ;;  %vm4788_vm15 = vweird.f32 %v4640_v53 }
 0x82a   : > { %v4774_v20 = vmul.f32 %v5741_v4, %v4773_v56  ;;  %v4976_v41 = vpop.f32.mrf.mxu0  ;;  %v5041_v39 = vpop.f32.mrf.mxu1  ;;  %4996 = vmatmul.f32.gmra.mxu0 %v4900_v42  ;;  %5061 = vmatmul.f32.gmra.mxu1 %v4901_v18 }
 0x82b   : > { %v4977_v48 = vadd.f32 %v9509_v27, %v4976_v41 }
 0x82c   : > { %v4775_v46 = vmul.f32 0.5, %v4774_v20 }
 0x82d   : > { %v5042_v28 = vadd.f32 %v5041_v39, %v4977_v48 }
 0x82e   : > { %v4776_v45 = vsub.f32 1.5, %v4775_v46  ;;  %v4609_v22 = vpop.xlane.xlu2 %4608 }
 0x82f   : > { %v5743_v61 = vpop.eup %5742  ;;  %v5079_v6 = vmax.f32 %v5042_v28, 0.0  ;;  %v4625_v16 = vmul.f32 %v4609_v22, %v7428_v37 }
 0x830   : > { %v4777_v30 = vmul.f32 %v5741_v4, %v4776_v45  ;;  %v4783_v54 = vmul.f32 %v5743_v61, %v4640_v53  ;;  %vm4789_vm14 = vweird.f32 %v5743_v61 }
 0x831   : > { %5464 = vmatmul.msk.f32.gmra.mxu2 %vm5102_vm0, %v5079_v6  ;;  %v4641_v43 = vadd.f32 1e-05, %v4625_v16  ;;  %vm4790_vm1 = vmor %vm4788_vm15, %vm4789_vm14 }
 0x832   : > { %v4781_v3 = vsel %vm4780_vm13, %v5741_v4, %v4777_v30  ;;  %v4784_v15 = vmul.f32 %v5743_v61, %v4783_v54  ;;  %v4979_v50 = vpop.f32.mrf.mxu0  ;;  %v5044_v8 = vpop.f32.mrf.mxu1 }
 0x833   : > { %v4828_v2 = vmul.f32 %v4781_v3, %v9441_v57  ;;  %v4829_v63 = vmul.f32 %v4781_v3, %v9444_v26  ;;  %v4980_v49 = vadd.f32 %v9509_v27, %v4979_v50  ;;  %5744 = vrsqrt.f32 %v4641_v43 }
 0x834   : > { %v4785_v13 = vmul.f32 0.5, %v4784_v15  ;;  %vm4798_vm8 = vweird.f32 %v4641_v43 }
 0x835   : > { %v4865_v44 = vmul.f32 %v9334_v12, %v4828_v2  ;;  %v4866_v31 = vmul.f32 %v9336_v55, %v4829_v63  ;;  %v5045_v51 = vadd.f32 %v5044_v8, %v4980_v49 }
 0x836   : > { %v4786_v37 = vsub.f32 1.5, %v4785_v13 }
 0x837   : > { %v4902_v1 = vadd.f32 %v9361_v7, %v4865_v44  ;;  %v4903_v60 = vadd.f32 %v9363_v9, %v4866_v31  ;;  %v5080_v57 = vmax.f32 %v5045_v51, 0.0 }
 0x838   : > { %v4787_v14 = vmul.f32 %v5743_v61, %v4786_v37 }
 0x839   : > { %4999 = vmatmul.f32.gmra.mxu0 %v4902_v1  ;;  %5064 = vmatmul.f32.gmra.mxu1 %v4903_v60  ;;  %v5745_v40 = vpop.eup %5744 }
 0x83a   : > { %v4791_v26 = vsel %vm4790_vm1, %v5743_v61, %v4787_v14  ;;  %5465 = vmatmul.msk.f32.gmra.mxu2 %vm5102_vm0, %v5080_v57  ;;  %v4793_v5 = vmul.f32 %v5745_v40, %v4641_v43  ;;  %vm4799_vm2 = vweird.f32 %v5745_v40 }
 0x83b   : > { %v4830_v47 = vmul.f32 %v4791_v26, %v9457_v24  ;;  %v4831_v38 = vmul.f32 %v4791_v26, %v9460_v32  ;;  %vm4800_vm3 = vmor %vm4798_vm8, %vm4799_vm2 }
 0x83c   : > { %v4794_v34 = vmul.f32 %v5745_v40, %v4793_v5 }
 0x83d   : > { %v4867_v33 = vmul.f32 %v9334_v12, %v4830_v47  ;;  %v4868_v19 = vmul.f32 %v9336_v55, %v4831_v38 }
 0x83e   : > { %v4795_v23 = vmul.f32 0.5, %v4794_v34 }
 0x83f   : > { %v4904_v29 = vadd.f32 %v9361_v7, %v4867_v33  ;;  %v4905_v59 = vadd.f32 %v9363_v9, %v4868_v19  ;;  %v4982_v36 = vpop.f32.mrf.mxu0  ;;  %v5047_v62 = vpop.f32.mrf.mxu1 }
 0x840   : > { %v4983_v0 = vadd.f32 %v9509_v27, %v4982_v36  ;;  %v4796_v24 = vsub.f32 1.5, %v4795_v23 }
 0x841   : > { %5002 = vmatmul.f32.gmra.mxu0 %v4904_v29  ;;  %5067 = vmatmul.f32.gmra.mxu1 %v4905_v59 }
 0x842   : > { %v5048_v32 = vadd.f32 %v5047_v62, %v4983_v0  ;;  %v4797_v58 = vmul.f32 %v5745_v40, %v4796_v24 }
 0x844   : > { %v5081_v25 = vmax.f32 %v5048_v32, 0.0  ;;  %v4801_v52 = vsel %vm4800_vm3, %v5745_v40, %v4797_v58 }
 0x845   : > { %v4832_v35 = vmul.f32 %v4801_v52, %v9476_v17  ;;  %v4833_v4 = vmul.f32 %v4801_v52, %v9479_v21 }
 0x846   : > { %5466 = vmatmul.msk.f32.gmra.mxu2 %vm5102_vm0, %v5081_v25 }
 0x847   : > { %v4869_v53 = vmul.f32 %v9334_v12, %v4832_v35  ;;  %v4870_v56 = vmul.f32 %v9336_v55, %v4833_v4  ;;  %v9592_v12 = vld [vmem:[%s9958_s17] ss:$0 sm:$0xff] }
 0x849   : > { %v4906_v10 = vadd.f32 %v9361_v7, %v4869_v53  ;;  %v4907_v11 = vadd.f32 %v9363_v9, %v4870_v56 }
 0x84b   : > { %5005 = vmatmul.f32.gmra.mxu0 %v4906_v10  ;;  %5070 = vmatmul.f32.gmra.mxu1 %v4907_v11 }
 0x86e   : > { %v4985_v20 = vpop.f32.mrf.mxu0 }
 0x86f   : > { %v5050_v42 = vpop.f32.mrf.mxu1  ;;  %v4986_v17 = vadd.f32 %v9509_v27, %v4985_v20 }
 0x871   : > { %v5051_v18 = vadd.f32 %v5050_v42, %v4986_v17 }
 0x873   : > { %v5082_v55 = vmax.f32 %v5051_v18, 0.0 }
 0x874   : > { %v5168_v7 = vpop.f32.mrf.mxu2 }
 0x875   : > { %5467 = vmatmul.msk.f32.gmra.mxu2 %vm5102_vm0, %v5082_v55  ;;  %v5169_v9 = vadd.f32 %v9592_v12, %v5168_v7 }
 0x877   : > { %5217 = vst.msk [vmem:[%s9597_s23] sm:$0xff] %vm5216_vm4, %v5169_v9 }
 0x879   : > { %v4988_v21 = vpop.f32.mrf.mxu0  ;;  %v5053_v41 = vpop.f32.mrf.mxu1 }
 0x87a   : > { %v4989_v48 = vadd.f32 %v9509_v27, %v4988_v21 }
 0x87c   : > { %v5054_v39 = vadd.f32 %v5053_v41, %v4989_v48 }
 0x87d   : > { %v5171_v28 = vpop.f32.mrf.mxu2 }
 0x87e   : > { %v5083_v46 = vmax.f32 %v5054_v39, 0.0  ;;  %v5172_v45 = vadd.f32 %v9592_v12, %v5171_v28 }
 0x880   : > { %5468 = vmatmul.msk.f32.gmra.mxu2 %vm5102_vm0, %v5083_v46  ;;  %5218 = vst.msk [vmem:[%s9597_s23 + $0x8] sm:$0xff] %vm5216_vm4, %v5172_v45 }
 0x882   : > { %v4991_v61 = vpop.f32.mrf.mxu0  ;;  %v5056_v30 = vpop.f32.mrf.mxu1 }
 0x883   : > { %v4992_v6 = vadd.f32 %v9509_v27, %v4991_v61 }
 0x885   : > { %v5057_v54 = vadd.f32 %v5056_v30, %v4992_v6 }
 0x887   : > { %v5084_v22 = vmax.f32 %v5057_v54, 0.0 }
 0x889   : > { %v5174_v16 = vpop.f32.mrf.mxu2  ;;  %5469 = vmatmul.msk.f32.gmra.mxu2 %vm5102_vm0, %v5084_v22 }
 0x88a   : > { %v5175_v3 = vadd.f32 %v9592_v12, %v5174_v16 }
 0x88c   : > { %5219 = vst.msk [vmem:[%s9597_s23 + $0x10] sm:$0xff] %vm5216_vm4, %v5175_v3 }
 0x893   : > { %v4994_v15 = vpop.f32.mrf.mxu0  ;;  %v5059_v43 = vpop.f32.mrf.mxu1 }
 0x894   : > { %v4995_v50 = vadd.f32 %v9509_v27, %v4994_v15 }
 0x896   : > { %v5060_v2 = vadd.f32 %v5059_v43, %v4995_v50 }
 0x897   : > { %v5177_v63 = vpop.f32.mrf.mxu2 }
 0x898   : > { %v5085_v49 = vmax.f32 %v5060_v2, 0.0  ;;  %v5178_v13 = vadd.f32 %v9592_v12, %v5177_v63 }
 0x89a   : > { %5220 = vst.msk [vmem:[%s9597_s23 + $0x18] sm:$0xff] %vm5216_vm4, %v5178_v13  ;;  %5470 = vmatmul.msk.f32.gmra.mxu2 %vm5102_vm0, %v5085_v49 }
 0x8a4   : > { %v5180_v44 = vpop.f32.mrf.mxu2 }
 0x8a5   : > { %v5181_v31 = vadd.f32 %v9592_v12, %v5180_v44 }
 0x8a7   : > { %v4997_v8 = vpop.f32.mrf.mxu0  ;;  %5221 = vst.msk [vmem:[%s9597_s23 + $0x20] sm:$0xff] %vm5216_vm4, %v5181_v31  ;;  %v5062_v51 = vpop.f32.mrf.mxu1 }
 0x8a8   : > { %v4998_v37 = vadd.f32 %v9509_v27, %v4997_v8 }
 0x8aa   : > { %v5063_v1 = vadd.f32 %v5062_v51, %v4998_v37 }
 0x8ac   : > { %v5086_v60 = vmax.f32 %v5063_v1, 0.0 }
 0x8ae   : > { %5471 = vmatmul.msk.f32.gmra.mxu2 %vm5102_vm0, %v5086_v60 }
 0x8b4   : > { %v5183_v14 = vpop.f32.mrf.mxu2 }
 0x8b5   : > { %v5184_v57 = vadd.f32 %v9592_v12, %v5183_v14 }
 0x8b6   : > { %v5000_v26 = vpop.f32.mrf.mxu0  ;;  %v5065_v40 = vpop.f32.mrf.mxu1 }
 0x8b7   : > { %v5001_v47 = vadd.f32 %v9509_v27, %v5000_v26  ;;  %5222 = vst.msk [vmem:[%s9597_s23 + $0x28] sm:$0xff] %vm5216_vm4, %v5184_v57 }
 0x8b9   : > { %v5066_v38 = vadd.f32 %v5065_v40, %v5001_v47 }
 0x8bb   : > { %v5087_v5 = vmax.f32 %v5066_v38, 0.0 }
 0x8bd   : > { %5472 = vmatmul.msk.f32.gmra.mxu2 %vm5102_vm0, %v5087_v5  ;;  %v5186_v33 = vpop.f32.mrf.mxu2 }
 0x8be   : > { %v5003_v19 = vpop.f32.mrf.mxu0  ;;  %v5187_v34 = vadd.f32 %v9592_v12, %v5186_v33  ;;  %v5068_v59 = vpop.f32.mrf.mxu1 }
 0x8bf   : > { %v5004_v29 = vadd.f32 %v9509_v27, %v5003_v19 }
 0x8c0   : > { %5223 = vst.msk [vmem:[%s9597_s23 + $0x30] sm:$0xff] %vm5216_vm4, %v5187_v34 }
 0x8c1   : > { %v5069_v36 = vadd.f32 %v5068_v59, %v5004_v29 }
 0x8c3   : > { %v5088_v23 = vmax.f32 %v5069_v36, 0.0 }
 0x8c5   : > { %5473 = vmatmul.msk.f32.gmra.mxu2 %vm5102_vm0, %v5088_v23 }
 0x8c8   : > { %v5006_v62 = vpop.f32.mrf.mxu0  ;;  %v5071_v58 = vpop.f32.mrf.mxu1 }
 0x8c9   : > { %v5189_v0 = vpop.f32.mrf.mxu2  ;;  %v5007_v32 = vadd.f32 %v9509_v27, %v5006_v62 }
 0x8ca   : > { %v5190_v24 = vadd.f32 %v9592_v12, %v5189_v0 }
 0x8cb   : > { %v5072_v25 = vadd.f32 %v5071_v58, %v5007_v32 }
 0x8cc   : > { %5224 = vst.msk [vmem:[%s9597_s23 + $0x38] sm:$0xff] %vm5216_vm4, %v5190_v24 }
 0x8cd   : > { %v5089_v52 = vmax.f32 %v5072_v25, 0.0 }
 0x8cf   : > { %5474 = vmatmul.msk.f32.gmra.mxu2 %vm5102_vm0, %v5089_v52 }
 0x8f8   : > { %v5192_v35 = vpop.f32.mrf.mxu2 }
 0x8f9   : > { %v5193_v4 = vadd.f32 %v9592_v12, %v5192_v35 }
 0x8fb   : > { %5225 = vst.msk [vmem:[%s9597_s23 + $0x40] sm:$0xff] %vm5216_vm4, %v5193_v4 }
 0x903   : > { %v5195_v53 = vpop.f32.mrf.mxu2 }
 0x904   : > { %v5196_v56 = vadd.f32 %v9592_v12, %v5195_v53 }
 0x906   : > { %5226 = vst.msk [vmem:[%s9597_s23 + $0x48] sm:$0xff] %vm5216_vm4, %v5196_v56 }
 0x90c   : > { %v5198_v27 = vpop.f32.mrf.mxu2 }
 0x90d   : > { %v5199_v10 = vadd.f32 %v9592_v12, %v5198_v27 }
 0x90f   : > { %5227 = vst.msk [vmem:[%s9597_s23 + $0x50] sm:$0xff] %vm5216_vm4, %v5199_v10 }
 0x91d   : > { %v5201_v11 = vpop.f32.mrf.mxu2 }
 0x91e   : > { %v5202_v20 = vadd.f32 %v9592_v12, %v5201_v11 }
 0x920   : > { %5228 = vst.msk [vmem:[%s9597_s23 + $0x58] sm:$0xff] %vm5216_vm4, %v5202_v20 }
 0x931   : > { %v5204_v42 = vpop.f32.mrf.mxu2 }
 0x932   : > { %v5205_v17 = vadd.f32 %v9592_v12, %v5204_v42 }
 0x934   : > { %5229 = vst.msk [vmem:[%s9597_s23 + $0x60] sm:$0xff] %vm5216_vm4, %v5205_v17 }
 0x940   : > { %v5207_v18 = vpop.f32.mrf.mxu2 }
 0x941   : > { %v5208_v55 = vadd.f32 %v9592_v12, %v5207_v18 }
 0x943   : > { %5230 = vst.msk [vmem:[%s9597_s23 + $0x68] sm:$0xff] %vm5216_vm4, %v5208_v55 }
 0x948   : > { %v5210_v7 = vpop.f32.mrf.mxu2 }
 0x949   : > { %v5211_v9 = vadd.f32 %v9592_v12, %v5210_v7 }
 0x94b   : > { %5231 = vst.msk [vmem:[%s9597_s23 + $0x70] sm:$0xff] %vm5216_vm4, %v5211_v9 }
 0x952   : > { %v5213_v21 = vpop.f32.mrf.mxu2 }
 0x953   : > { %v5214_v41 = vadd.f32 %v9592_v12, %v5213_v21 }
 0x955   : > { %5232 = vst.msk [vmem:[%s9597_s23 + $0x78] sm:$0xff] %vm5216_vm4, %v5214_v41 }
 0x956 PF: > { %p24_p4 = scmp.ge.s32.totalorder %s5968_s21, 4   ;;  %s9960_s25 = smov %s5836_s26 }
 0x957   : > { %s9961_s26 = smov %s5840_s27  ;;  %s9962_s27 = smov %s5978_s15 }
 0x958   : > { %s9963_s28 = smov %s5968_s21  ;;  %26 = sbr.rel (!%p24_p4) target bundleno = 11 (0xb), region = 120 }
 0x95d   :  { %5255 = vsyncpa [#allocation3], 1 }
 0x95e   :  { %5257 = vsyncpa [#allocation3 + $0x1], 1 }
 0x95f   :  { %5258 = vsyncpa [#allocation5], 1 }

</bundles_post_ra>
